<compile_context>
chip_gen: v7x
topology: tpu7x:2x2x1
jax: 0.10.0
libtpu: 0.0.40
codegen_flags: <defaults>
</compile_context>

<pallas_src>
import functools
import math

import jax
import jax.numpy as jnp
from jax.experimental import pallas as pl
from jax.experimental.pallas import tpu as pltpu

EPS = 1e-5


def _round_up(x, m):
    return (x + m - 1) // m * m


# ---------------------------------------------------------------------------
# Pallas kernel 1: tiled MXU matmul with fused BatchNorm affine (+ ReLU)
# ---------------------------------------------------------------------------

def _matmul_bn_kernel(a_ref, b_ref, s_ref, c_ref, o_ref, *, relu):
    k = pl.program_id(2)

    @pl.when(k == 0)
    def _():
        o_ref[...] = jnp.zeros_like(o_ref)

    # bf16 x bf16 -> f32 accumulation directly into the resident output block.
    o_ref[...] += jnp.dot(a_ref[...], b_ref[...],
                          preferred_element_type=jnp.float32)

    @pl.when(k == pl.num_programs(2) - 1)
    def _():
        y = o_ref[...] * s_ref[...] + c_ref[...]
        if relu:
            y = jnp.maximum(y, 0.0)
        o_ref[...] = y


def matmul_bn_pallas(a, b, scale, bias, relu):
    """(a @ b) * scale + bias (+ReLU).  a:[M,K], b:[K,N], scale/bias:[N]."""
    M, K = a.shape
    K2, N = b.shape
    assert K == K2

    # M tiling (sublane axis, multiples of 8).
    tm = min(256, _round_up(M, 8))
    Mp = _round_up(M, tm)
    # K tiling: 128-aligned tiles, or a single full-dim tile when K < 128.
    Kp = K if (K < 128 or K % 128 == 0) else _round_up(K, 128)
    tk = Kp if Kp < 128 else (256 if Kp % 256 == 0 else 128)
    # N tiling: same rule.
    Np = N if (N < 128 or N % 128 == 0) else _round_up(N, 128)
    tn = Np if Np < 128 else (256 if Np % 256 == 0 else 128)

    a_p = jnp.pad(a.astype(jnp.bfloat16), ((0, Mp - M), (0, Kp - K)))
    b_p = jnp.pad(b.astype(jnp.bfloat16), ((0, Kp - K), (0, Np - N)))
    s_p = jnp.pad(scale.astype(jnp.float32), (0, Np - N)).reshape(1, Np)
    c_p = jnp.pad(bias.astype(jnp.float32), (0, Np - N)).reshape(1, Np)

    out = pl.pallas_call(
        functools.partial(_matmul_bn_kernel, relu=relu),
        out_shape=jax.ShapeDtypeStruct((Mp, Np), jnp.float32),
        grid_spec=pltpu.PrefetchScalarGridSpec(
            num_scalar_prefetch=0,
            grid=(Mp // tm, Np // tn, Kp // tk),
            in_specs=[pl.BlockSpec((tm, tk), lambda i, j, k: (i, k)),
                      pl.BlockSpec((tk, tn), lambda i, j, k: (k, j)),
                      pl.BlockSpec((1, tn), lambda i, j, k: (0, j)),
                      pl.BlockSpec((1, tn), lambda i, j, k: (0, j))],
            out_specs=pl.BlockSpec((tm, tn), lambda i, j, k: (i, j))),
        compiler_params=pltpu.CompilerParams(
            dimension_semantics=("parallel", "parallel", "arbitrary"),
            vmem_limit_bytes=32 * 1024 * 1024),
    )(a_p, b_p, s_p, c_p)
    if Mp != M or Np != N:
        out = out[:M, :N]
    return out


# ---------------------------------------------------------------------------
# Pallas kernel 2: channel-gate multiply fused with channel max/mean pooling
# ---------------------------------------------------------------------------

def _chgate_pool_kernel(x_ref, att_ref, xg_ref, mx_ref, mn_ref):
    # sigmoid via EUP exp + approx reciprocal (frees VALU slots).
    gate = pl.reciprocal(1.0 + jnp.exp(-att_ref[...]), approx=True)  # [1,1,C]
    xg = x_ref[...] * gate                                           # [1,tr,C]
    xg_ref[...] = xg
    mx_ref[...] = jnp.max(xg, axis=-1, keepdims=True)
    mn_ref[...] = jnp.mean(xg, axis=-1, keepdims=True)


def channel_gate_and_pool(x, att):
    """x:[B,H,W,C], att:[B,C] logits -> (x*sigmoid(att), channel max/mean)."""
    B, H, W, C = x.shape
    HW = H * W
    tr = min(512, _round_up(HW, 8))
    HWp = _round_up(HW, tr)
    x3 = jnp.pad(x.reshape(B, HW, C), ((0, 0), (0, HWp - HW), (0, 0)))
    att3 = att.reshape(B, 1, C)

    xg, mx, mn = pl.pallas_call(
        _chgate_pool_kernel,
        out_shape=(jax.ShapeDtypeStruct((B, HWp, C), jnp.float32),
                   jax.ShapeDtypeStruct((B, HWp, 1), jnp.float32),
                   jax.ShapeDtypeStruct((B, HWp, 1), jnp.float32)),
        grid_spec=pltpu.PrefetchScalarGridSpec(
            num_scalar_prefetch=0,
            grid=(B, HWp // tr),
            in_specs=[pl.BlockSpec((1, tr, C), lambda b, r: (b, r, 0)),
                      pl.BlockSpec((1, 1, C), lambda b, r: (b, 0, 0))],
            out_specs=(pl.BlockSpec((1, tr, C), lambda b, r: (b, r, 0)),
                       pl.BlockSpec((1, tr, 1), lambda b, r: (b, r, 0)),
                       pl.BlockSpec((1, tr, 1), lambda b, r: (b, r, 0)))),
        compiler_params=pltpu.CompilerParams(
            dimension_semantics=("parallel", "parallel")),
    )(x3, att3)

    xg = xg[:, :HW].reshape(B, H, W, C)
    pooled = jnp.concatenate([mx[:, :HW], mn[:, :HW]],
                             axis=-1).reshape(B, H, W, 2)   # (max, mean)
    return xg, pooled


# ---------------------------------------------------------------------------
# Pallas kernel 3: spatial-gate multiply fused with residual add + ReLU
# ---------------------------------------------------------------------------

def _spgate_add_relu_kernel(xg_ref, sp_ref, id_ref, o_ref):
    g = pl.reciprocal(1.0 + jnp.exp(-sp_ref[...]), approx=True)   # [1,tr,1]
    o_ref[...] = jnp.maximum(xg_ref[...] * g + id_ref[...], 0.0)


def spatial_gate_add_relu(xg, sp, identity):
    """relu(xg * sigmoid(sp) + identity), sp is [B,H,W,1] logits."""
    B, H, W, C = xg.shape
    HW = H * W
    tr = min(512, _round_up(HW, 8))
    HWp = _round_up(HW, tr)

    def pad3(t):
        return jnp.pad(t.reshape(B, HW, t.shape[-1]),
                       ((0, 0), (0, HWp - HW), (0, 0)))

    out = pl.pallas_call(
        _spgate_add_relu_kernel,
        out_shape=jax.ShapeDtypeStruct((B, HWp, C), jnp.float32),
        grid_spec=pltpu.PrefetchScalarGridSpec(
            num_scalar_prefetch=0,
            grid=(B, HWp // tr),
            in_specs=[pl.BlockSpec((1, tr, C), lambda b, r: (b, r, 0)),
                      pl.BlockSpec((1, tr, 1), lambda b, r: (b, r, 0)),
                      pl.BlockSpec((1, tr, C), lambda b, r: (b, r, 0))],
            out_specs=pl.BlockSpec((1, tr, C), lambda b, r: (b, r, 0))),
        compiler_params=pltpu.CompilerParams(
            dimension_semantics=("parallel", "parallel")),
    )(pad3(xg), pad3(sp), pad3(identity))
    return out[:, :HW].reshape(B, H, W, C)


# ---------------------------------------------------------------------------
# NN building blocks (glue in JAX, hot path in Pallas)
# ---------------------------------------------------------------------------

def im2col(x, kh, kw, stride, padding):
    """x: NHWC -> patches [B*Ho*Wo, kh*kw*C] (row order: kh, kw, C)."""
    B, H, W, C = x.shape
    xp = jnp.pad(x, ((0, 0), (padding, padding), (padding, padding), (0, 0)))
    Ho = (H + 2 * padding - kh) // stride + 1
    Wo = (W + 2 * padding - kw) // stride + 1
    patches = []
    for i in range(kh):
        for j in range(kw):
            patches.append(xp[:, i:i + stride * Ho:stride,
                              j:j + stride * Wo:stride, :])
    cols = jnp.stack(patches, axis=3)          # [B, Ho, Wo, kh*kw, C]
    return cols.reshape(B * Ho * Wo, kh * kw * C), Ho, Wo


def conv_bn(x, w_hwio, bn, stride, padding, relu):
    """Conv2d(bias=False) + eval-mode BatchNorm2d (+ReLU), fused in one matmul."""
    B = x.shape[0]
    kh, kw, cin, cout = w_hwio.shape
    cols, Ho, Wo = im2col(x, kh, kw, stride, padding)
    scale = bn["gamma"] / jnp.sqrt(bn["var"] + EPS)
    bias = bn["beta"] - bn["mean"] * scale
    out = matmul_bn_pallas(cols, w_hwio.reshape(kh * kw * cin, cout),
                           scale, bias, relu)
    return out.reshape(B, Ho, Wo, cout)


def maxpool2d(x, k, stride, pad):
    # TODO(synk): maxpool kept in plain JAX (reduce_window); tiny vs conv cost.
    return jax.lax.reduce_window(
        x, -jnp.inf, jax.lax.max,
        (1, k, k, 1), (1, stride, stride, 1),
        ((0, 0), (pad, pad), (pad, pad), (0, 0)))


def channel_att_logits(x, cb):
    """CBAM ChannelGate MLP on avg/max-pooled channels (plain JAX: tiny)."""
    B = x.shape[0]
    avg = jnp.mean(x, axis=(1, 2))                # [B, C]
    mx = jnp.max(x, axis=(1, 2))                  # [B, C]
    v = jnp.concatenate([avg, mx], axis=0)        # [2B, C] — one small matmul
    h = jnp.maximum(jnp.dot(v, cb["w1"]) + cb["b1"], 0.0)
    y = jnp.dot(h, cb["w2"]) + cb["b2"]           # [2B, C]
    return y[:B] + y[B:]                          # [B, C] logits (pre-sigmoid)


def spatial_conv_bn(pooled, cb):
    """CBAM SpatialGate 7x7 conv (2->1 ch) + BN -> logits [B,H,W,1]."""
    # TODO(synk): kept in plain JAX lax.conv — an im2col/MXU path would be
    # >99% padding for a 2->1 channel conv.
    s = jax.lax.conv_general_dilated(
        pooled, cb["spatial_w"], window_strides=(1, 1),
        padding=((3, 3), (3, 3)),
        dimension_numbers=("NHWC", "HWIO", "NHWC"))
    bn = cb["spatial_bn"]
    scale = bn["gamma"] / jnp.sqrt(bn["var"] + EPS)
    bias = bn["beta"] - bn["mean"] * scale
    return s * scale + bias


def basic_block(x, p):
    identity = x
    out = conv_bn(x, p["conv1"], p["bn1"], stride=p["stride"], padding=1,
                  relu=True)
    out = conv_bn(out, p["conv2"], p["bn2"], stride=1, padding=1, relu=False)
    if p["downsample"] is not None:
        identity = conv_bn(x, p["downsample"]["w"], p["downsample"]["bn"],
                           stride=p["stride"], padding=0, relu=False)

    cb = p["cbam"]
    att = channel_att_logits(out, cb)                 # [B, C]
    xg, pooled = channel_gate_and_pool(out, att)      # gated act + (max, mean)
    sp = spatial_conv_bn(pooled, cb)                  # [B, H, W, 1]
    return spatial_gate_add_relu(xg, sp, identity)    # relu(cbam(out)+identity)


def resnet_forward(x_nchw, params):
    # NCHW (PyTorch) -> NHWC (kernel layout)
    x = jnp.transpose(x_nchw, (0, 2, 3, 1)).astype(jnp.float32)
    x = conv_bn(x, params["conv1"], params["bn1"], stride=2, padding=3,
                relu=True)
    x = maxpool2d(x, 3, 2, 1)
    for layer_name in ("layer1", "layer2", "layer3", "layer4"):
        for blk in params[layer_name]:
            x = basic_block(x, blk)
    # AdaptiveAvgPool2d((1,1)) + flatten
    return jnp.mean(x, axis=(1, 2))            # [B, 512]


# ---------------------------------------------------------------------------
# Deterministic parameter construction (BasicBlock ResNet, layers=[1,1,1,1])
# ---------------------------------------------------------------------------

def make_bn(c):
    return {"gamma": jnp.ones((c,), jnp.float32),
            "beta": jnp.zeros((c,), jnp.float32),
            "mean": jnp.zeros((c,), jnp.float32),
            "var": jnp.ones((c,), jnp.float32)}


def make_conv_w(key, cin, cout, k):
    # kaiming_normal_(mode='fan_out', nonlinearity='relu')
    std = math.sqrt(2.0 / (cout * k * k))
    return jax.random.normal(key, (k, k, cin, cout), jnp.float32) * std


def make_cbam(key, c, r=16):
    k1, k2, k3, k4, k5 = jax.random.split(key, 5)
    hid = max(c // r, 1)
    b1 = 1.0 / math.sqrt(c)
    b2 = 1.0 / math.sqrt(hid)
    return {
        "w1": jax.random.uniform(k1, (c, hid), jnp.float32, -b1, b1),
        "b1": jax.random.uniform(k2, (hid,), jnp.float32, -b1, b1),
        "w2": jax.random.uniform(k3, (hid, c), jnp.float32, -b2, b2),
        "b2": jax.random.uniform(k4, (c,), jnp.float32, -b2, b2),
        "spatial_w": make_conv_w(k5, 2, 1, 7),
        "spatial_bn": make_bn(1),
    }


def make_block(key, inplanes, planes, stride):
    k0, k1, k2, k3 = jax.random.split(key, 4)
    p = {
        "stride": stride,
        "conv1": make_conv_w(k0, inplanes, planes, 3),
        "bn1": make_bn(planes),
        "conv2": make_conv_w(k1, planes, planes, 3),
        "bn2": make_bn(planes),
        "cbam": make_cbam(k2, planes),
        "downsample": None,
    }
    if stride != 1 or inplanes != planes:
        p["downsample"] = {"w": make_conv_w(k3, inplanes, planes, 1),
                           "bn": make_bn(planes)}
    return p


def make_resnet_params(key, layers=(1, 1, 1, 1)):
    keys = jax.random.split(key, 16)
    kidx = 0
    params = {"conv1": make_conv_w(keys[kidx], 3, 64, 7), "bn1": make_bn(64)}
    kidx += 1
    inplanes = 64
    for li, (planes, stride, n_blocks) in enumerate(
            zip((64, 128, 256, 512), (1, 2, 2, 2), layers)):
        blocks = []
        for b in range(n_blocks):
            s = stride if b == 0 else 1
            blocks.append(make_block(keys[kidx], inplanes, planes, s))
            kidx += 1
            inplanes = planes
        params["layer%d" % (li + 1)] = blocks
    return params


# ---------------------------------------------------------------------------

if __name__ == "__main__":
    key = jax.random.PRNGKey(0)
    kp, kx = jax.random.split(key)
    params = make_resnet_params(kp, layers=(1, 1, 1, 1))

    # PyTorch-style NCHW input: ResNet stem expects 3 input channels.
    x = jax.random.normal(kx, (2, 3, 32, 32), jnp.float32)

    fwd = jax.jit(lambda inp: resnet_forward(inp, params))
    out = fwd(x)
    out = jax.block_until_ready(out)

    assert out.shape == (2, 512), out.shape
    assert bool(jnp.all(jnp.isfinite(out)))
    print("KERNEL_OK")
</pallas_src>

<mosaic_0001>
module attributes {stable_mosaic.version = 11 : i64} {
  func.func @_matmul_bn_kernel(%arg0: i32, %arg1: i32, %arg2: i32, %arg3: memref<256x256xbf16, #tpu.memory_space<vmem>>, %arg4: memref<256x64xbf16, #tpu.memory_space<vmem>>, %arg5: memref<1x64xf32, #tpu.memory_space<vmem>>, %arg6: memref<1x64xf32, #tpu.memory_space<vmem>>, %arg7: memref<256x64xf32, #tpu.memory_space<vmem>>) attributes {dimension_semantics = [#tpu.dimension_semantics<parallel>, #tpu.dimension_semantics<parallel>, #tpu.dimension_semantics<arbitrary>], iteration_bounds = array<i64: 2, 1, 1>, scalar_prefetch = 0 : i64, scratch_operands = 0 : i64, tpu.core_type = #tpu.core_type<tc>, window_params = [{transform_indices = @transform_0, window_bounds = array<i64: 256, 256>}, {transform_indices = @transform_1, window_bounds = array<i64: 256, 64>}, {transform_indices = @transform_2, window_bounds = array<i64: 1, 64>}, {transform_indices = @transform_3, window_bounds = array<i64: 1, 64>}, {transform_indices = @transform_4, window_bounds = array<i64: 256, 64>}]} {
    %c0_i32 = arith.constant 0 : i32
    %0 = arith.cmpi eq, %arg2, %c0_i32 : i32
    %1 = arith.extui %0 : i1 to i32
    %c0_i32_0 = arith.constant 0 : i32
    %2 = arith.cmpi ne, %1, %c0_i32_0 : i32
    scf.if %2 {
      %cst_10 = arith.constant 0.000000e+00 : f32
      %12 = vector.broadcast %cst_10 : f32 to vector<256x64xf32>
      %c0_11 = arith.constant 0 : index
      %c0_12 = arith.constant 0 : index
      %13 = vector.load %arg7[%c0_11, %c0_12] : memref<256x64xf32, #tpu.memory_space<vmem>>, vector<256x64xf32>
      tpu.vector_store %arg7[%c0_11, %c0_12], %12 {strides = array<i32>} : memref<256x64xf32, #tpu.memory_space<vmem>>, vector<256x64xf32>,
    } else {
    }
    %c0 = arith.constant 0 : index
    %c0_1 = arith.constant 0 : index
    %3 = vector.load %arg7[%c0, %c0_1] : memref<256x64xf32, #tpu.memory_space<vmem>>, vector<256x64xf32>
    %c0_2 = arith.constant 0 : index
    %c0_3 = arith.constant 0 : index
    %4 = vector.load %arg3[%c0_2, %c0_3] : memref<256x256xbf16, #tpu.memory_space<vmem>>, vector<256x256xbf16>
    %c0_4 = arith.constant 0 : index
    %c0_5 = arith.constant 0 : index
    %5 = vector.load %arg4[%c0_4, %c0_5] : memref<256x64xbf16, #tpu.memory_space<vmem>>, vector<256x64xbf16>
    %cst = arith.constant dense<0.000000e+00> : vector<256x64xf32>
    %6 = tpu.matmul %4, %5, %cst {dimension_numbers = #tpu.dot_dimension_numbers<[1], [0], [0], [1], [0, 0, 1, 1], [], []>} : vector<256x256xbf16>, vector<256x64xbf16>, vector<256x64xf32> -> vector<256x64xf32>
    %7 = arith.addf %3, %6 : vector<256x64xf32>
    %c0_6 = arith.constant 0 : index
    %c0_7 = arith.constant 0 : index
    %8 = vector.load %arg7[%c0_6, %c0_7] : memref<256x64xf32, #tpu.memory_space<vmem>>, vector<256x64xf32>
    tpu.vector_store %arg7[%c0_6, %c0_7], %7 {strides = array<i32>} : memref<256x64xf32, #tpu.memory_space<vmem>>, vector<256x64xf32>,
    %c0_i32_8 = arith.constant 0 : i32
    %9 = arith.cmpi eq, %arg2, %c0_i32_8 : i32
    %10 = arith.extui %9 : i1 to i32
    %c0_i32_9 = arith.constant 0 : i32
    %11 = arith.cmpi ne, %10, %c0_i32_9 : i32
    scf.if %11 {
      %c0_10 = arith.constant 0 : index
      %c0_11 = arith.constant 0 : index
      %12 = vector.load %arg7[%c0_10, %c0_11] : memref<256x64xf32, #tpu.memory_space<vmem>>, vector<256x64xf32>
      %c0_12 = arith.constant 0 : index
      %c0_13 = arith.constant 0 : index
      %13 = vector.load %arg5[%c0_12, %c0_13] : memref<1x64xf32, #tpu.memory_space<vmem>>, vector<1x64xf32>
      %14 = vector.broadcast %13 : vector<1x64xf32> to vector<256x64xf32>
      %15 = arith.mulf %12, %14 : vector<256x64xf32>
      %c0_14 = arith.constant 0 : index
      %c0_15 = arith.constant 0 : index
      %16 = vector.load %arg6[%c0_14, %c0_15] : memref<1x64xf32, #tpu.memory_space<vmem>>, vector<1x64xf32>
      %17 = vector.broadcast %16 : vector<1x64xf32> to vector<256x64xf32>
      %18 = arith.addf %15, %17 : vector<256x64xf32>
      %cst_16 = arith.constant 0.000000e+00 : f32
      %19 = vector.broadcast %cst_16 : f32 to vector<256x64xf32>
      %20 = arith.maximumf %18, %19 : vector<256x64xf32>
      %c0_17 = arith.constant 0 : index
      %c0_18 = arith.constant 0 : index
      %21 = vector.load %arg7[%c0_17, %c0_18] : memref<256x64xf32, #tpu.memory_space<vmem>>, vector<256x64xf32>
      tpu.vector_store %arg7[%c0_17, %c0_18], %20 {strides = array<i32>} : memref<256x64xf32, #tpu.memory_space<vmem>>, vector<256x64xf32>,
    } else {
    }
    return
  }
  func.func @transform_0(%arg0: i32, %arg1: i32, %arg2: i32) -> (i32, i32) {
    %c0_i32 = arith.constant 0 : i32
    return %arg0, %arg2 : i32, i32
  }
  func.func @transform_1(%arg0: i32, %arg1: i32, %arg2: i32) -> (i32, i32) {
    %c0_i32 = arith.constant 0 : i32
    return %arg2, %arg1 : i32, i32
  }
  func.func @transform_2(%arg0: i32, %arg1: i32, %arg2: i32) -> (i32, i32) {
    %c0_i32 = arith.constant 0 : i32
    %c0_i32_0 = arith.constant 0 : i32
    return %c0_i32, %arg1 : i32, i32
  }
  func.func @transform_3(%arg0: i32, %arg1: i32, %arg2: i32) -> (i32, i32) {
    %c0_i32 = arith.constant 0 : i32
    %c0_i32_0 = arith.constant 0 : i32
    return %c0_i32, %arg1 : i32, i32
  }
  func.func @transform_4(%arg0: i32, %arg1: i32, %arg2: i32) -> (i32, i32) {
    %c0_i32 = arith.constant 0 : i32
    return %arg0, %arg1 : i32, i32
  }
}

module attributes {stable_mosaic.version = 11 : i64} {
  func.func @_matmul_bn_kernel(%arg0: i32, %arg1: i32, %arg2: i32, %arg3: memref<128x128xbf16, #tpu.memory_space<vmem>>, %arg4: memref<128x64xbf16, #tpu.memory_space<vmem>>, %arg5: memref<1x64xf32, #tpu.memory_space<vmem>>, %arg6: memref<1x64xf32, #tpu.memory_space<vmem>>, %arg7: memref<128x64xf32, #tpu.memory_space<vmem>>) attributes {dimension_semantics = [#tpu.dimension_semantics<parallel>, #tpu.dimension_semantics<parallel>, #tpu.dimension_semantics<arbitrary>], iteration_bounds = array<i64: 1, 1, 5>, scalar_prefetch = 0 : i64, scratch_operands = 0 : i64, tpu.core_type = #tpu.core_type<tc>, window_params = [{transform_indices = @transform_0, window_bounds = array<i64: 128, 128>}, {transform_indices = @transform_1, window_bounds = array<i64: 128, 64>}, {transform_indices = @transform_2, window_bounds = array<i64: 1, 64>}, {transform_indices = @transform_3, window_bounds = array<i64: 1, 64>}, {transform_indices = @transform_4, window_bounds = array<i64: 128, 64>}]} {
    %c0_i32 = arith.constant 0 : i32
    %0 = arith.cmpi eq, %arg2, %c0_i32 : i32
    %1 = arith.extui %0 : i1 to i32
    %c0_i32_0 = arith.constant 0 : i32
    %2 = arith.cmpi ne, %1, %c0_i32_0 : i32
    scf.if %2 {
      %cst_9 = arith.constant 0.000000e+00 : f32
      %12 = vector.broadcast %cst_9 : f32 to vector<128x64xf32>
      %c0_10 = arith.constant 0 : index
      %c0_11 = arith.constant 0 : index
      %13 = vector.load %arg7[%c0_10, %c0_11] : memref<128x64xf32, #tpu.memory_space<vmem>>, vector<128x64xf32>
      tpu.vector_store %arg7[%c0_10, %c0_11], %12 {strides = array<i32>} : memref<128x64xf32, #tpu.memory_space<vmem>>, vector<128x64xf32>,
    } else {
    }
    %c0 = arith.constant 0 : index
    %c0_1 = arith.constant 0 : index
    %3 = vector.load %arg7[%c0, %c0_1] : memref<128x64xf32, #tpu.memory_space<vmem>>, vector<128x64xf32>
    %c0_2 = arith.constant 0 : index
    %c0_3 = arith.constant 0 : index
    %4 = vector.load %arg3[%c0_2, %c0_3] : memref<128x128xbf16, #tpu.memory_space<vmem>>, vector<128x128xbf16>
    %c0_4 = arith.constant 0 : index
    %c0_5 = arith.constant 0 : index
    %5 = vector.load %arg4[%c0_4, %c0_5] : memref<128x64xbf16, #tpu.memory_space<vmem>>, vector<128x64xbf16>
    %cst = arith.constant dense<0.000000e+00> : vector<128x64xf32>
    %6 = tpu.matmul %4, %5, %cst {dimension_numbers = #tpu.dot_dimension_numbers<[1], [0], [0], [1], [0, 0, 1, 1], [], []>} : vector<128x128xbf16>, vector<128x64xbf16>, vector<128x64xf32> -> vector<128x64xf32>
    %7 = arith.addf %3, %6 : vector<128x64xf32>
    %c0_6 = arith.constant 0 : index
    %c0_7 = arith.constant 0 : index
    %8 = vector.load %arg7[%c0_6, %c0_7] : memref<128x64xf32, #tpu.memory_space<vmem>>, vector<128x64xf32>
    tpu.vector_store %arg7[%c0_6, %c0_7], %7 {strides = array<i32>} : memref<128x64xf32, #tpu.memory_space<vmem>>, vector<128x64xf32>,
    %c4_i32 = arith.constant 4 : i32
    %9 = arith.cmpi eq, %arg2, %c4_i32 : i32
    %10 = arith.extui %9 : i1 to i32
    %c0_i32_8 = arith.constant 0 : i32
    %11 = arith.cmpi ne, %10, %c0_i32_8 : i32
    scf.if %11 {
      %c0_9 = arith.constant 0 : index
      %c0_10 = arith.constant 0 : index
      %12 = vector.load %arg7[%c0_9, %c0_10] : memref<128x64xf32, #tpu.memory_space<vmem>>, vector<128x64xf32>
      %c0_11 = arith.constant 0 : index
      %c0_12 = arith.constant 0 : index
      %13 = vector.load %arg5[%c0_11, %c0_12] : memref<1x64xf32, #tpu.memory_space<vmem>>, vector<1x64xf32>
      %14 = vector.broadcast %13 : vector<1x64xf32> to vector<128x64xf32>
      %15 = arith.mulf %12, %14 : vector<128x64xf32>
      %c0_13 = arith.constant 0 : index
      %c0_14 = arith.constant 0 : index
      %16 = vector.load %arg6[%c0_13, %c0_14] : memref<1x64xf32, #tpu.memory_space<vmem>>, vector<1x64xf32>
      %17 = vector.broadcast %16 : vector<1x64xf32> to vector<128x64xf32>
      %18 = arith.addf %15, %17 : vector<128x64xf32>
      %cst_15 = arith.constant 0.000000e+00 : f32
      %19 = vector.broadcast %cst_15 : f32 to vector<128x64xf32>
      %20 = arith.maximumf %18, %19 : vector<128x64xf32>
      %c0_16 = arith.constant 0 : index
      %c0_17 = arith.constant 0 : index
      %21 = vector.load %arg7[%c0_16, %c0_17] : memref<128x64xf32, #tpu.memory_space<vmem>>, vector<128x64xf32>
      tpu.vector_store %arg7[%c0_16, %c0_17], %20 {strides = array<i32>} : memref<128x64xf32, #tpu.memory_space<vmem>>, vector<128x64xf32>,
    } else {
    }
    return
  }
  func.func @transform_0(%arg0: i32, %arg1: i32, %arg2: i32) -> (i32, i32) {
    %c0_i32 = arith.constant 0 : i32
    return %arg0, %arg2 : i32, i32
  }
  func.func @transform_1(%arg0: i32, %arg1: i32, %arg2: i32) -> (i32, i32) {
    %c0_i32 = arith.constant 0 : i32
    return %arg2, %arg1 : i32, i32
  }
  func.func @transform_2(%arg0: i32, %arg1: i32, %arg2: i32) -> (i32, i32) {
    %c0_i32 = arith.constant 0 : i32
    %c0_i32_0 = arith.constant 0 : i32
    return %c0_i32, %arg1 : i32, i32
  }
  func.func @transform_3(%arg0: i32, %arg1: i32, %arg2: i32) -> (i32, i32) {
    %c0_i32 = arith.constant 0 : i32
    %c0_i32_0 = arith.constant 0 : i32
    return %c0_i32, %arg1 : i32, i32
  }
  func.func @transform_4(%arg0: i32, %arg1: i32, %arg2: i32) -> (i32, i32) {
    %c0_i32 = arith.constant 0 : i32
    return %arg0, %arg1 : i32, i32
  }
}

module attributes {stable_mosaic.version = 11 : i64} {
  func.func @_matmul_bn_kernel(%arg0: i32, %arg1: i32, %arg2: i32, %arg3: memref<128x128xbf16, #tpu.memory_space<vmem>>, %arg4: memref<128x64xbf16, #tpu.memory_space<vmem>>, %arg5: memref<1x64xf32, #tpu.memory_space<vmem>>, %arg6: memref<1x64xf32, #tpu.memory_space<vmem>>, %arg7: memref<128x64xf32, #tpu.memory_space<vmem>>) attributes {dimension_semantics = [#tpu.dimension_semantics<parallel>, #tpu.dimension_semantics<parallel>, #tpu.dimension_semantics<arbitrary>], iteration_bounds = array<i64: 1, 1, 5>, scalar_prefetch = 0 : i64, scratch_operands = 0 : i64, tpu.core_type = #tpu.core_type<tc>, window_params = [{transform_indices = @transform_0, window_bounds = array<i64: 128, 128>}, {transform_indices = @transform_1, window_bounds = array<i64: 128, 64>}, {transform_indices = @transform_2, window_bounds = array<i64: 1, 64>}, {transform_indices = @transform_3, window_bounds = array<i64: 1, 64>}, {transform_indices = @transform_4, window_bounds = array<i64: 128, 64>}]} {
    %c0_i32 = arith.constant 0 : i32
    %0 = arith.cmpi eq, %arg2, %c0_i32 : i32
    %1 = arith.extui %0 : i1 to i32
    %c0_i32_0 = arith.constant 0 : i32
    %2 = arith.cmpi ne, %1, %c0_i32_0 : i32
    scf.if %2 {
      %cst_9 = arith.constant 0.000000e+00 : f32
      %12 = vector.broadcast %cst_9 : f32 to vector<128x64xf32>
      %c0_10 = arith.constant 0 : index
      %c0_11 = arith.constant 0 : index
      %13 = vector.load %arg7[%c0_10, %c0_11] : memref<128x64xf32, #tpu.memory_space<vmem>>, vector<128x64xf32>
      tpu.vector_store %arg7[%c0_10, %c0_11], %12 {strides = array<i32>} : memref<128x64xf32, #tpu.memory_space<vmem>>, vector<128x64xf32>,
    } else {
    }
    %c0 = arith.constant 0 : index
    %c0_1 = arith.constant 0 : index
    %3 = vector.load %arg7[%c0, %c0_1] : memref<128x64xf32, #tpu.memory_space<vmem>>, vector<128x64xf32>
    %c0_2 = arith.constant 0 : index
    %c0_3 = arith.constant 0 : index
    %4 = vector.load %arg3[%c0_2, %c0_3] : memref<128x128xbf16, #tpu.memory_space<vmem>>, vector<128x128xbf16>
    %c0_4 = arith.constant 0 : index
    %c0_5 = arith.constant 0 : index
    %5 = vector.load %arg4[%c0_4, %c0_5] : memref<128x64xbf16, #tpu.memory_space<vmem>>, vector<128x64xbf16>
    %cst = arith.constant dense<0.000000e+00> : vector<128x64xf32>
    %6 = tpu.matmul %4, %5, %cst {dimension_numbers = #tpu.dot_dimension_numbers<[1], [0], [0], [1], [0, 0, 1, 1], [], []>} : vector<128x128xbf16>, vector<128x64xbf16>, vector<128x64xf32> -> vector<128x64xf32>
    %7 = arith.addf %3, %6 : vector<128x64xf32>
    %c0_6 = arith.constant 0 : index
    %c0_7 = arith.constant 0 : index
    %8 = vector.load %arg7[%c0_6, %c0_7] : memref<128x64xf32, #tpu.memory_space<vmem>>, vector<128x64xf32>
    tpu.vector_store %arg7[%c0_6, %c0_7], %7 {strides = array<i32>} : memref<128x64xf32, #tpu.memory_space<vmem>>, vector<128x64xf32>,
    %c4_i32 = arith.constant 4 : i32
    %9 = arith.cmpi eq, %arg2, %c4_i32 : i32
    %10 = arith.extui %9 : i1 to i32
    %c0_i32_8 = arith.constant 0 : i32
    %11 = arith.cmpi ne, %10, %c0_i32_8 : i32
    scf.if %11 {
      %c0_9 = arith.constant 0 : index
      %c0_10 = arith.constant 0 : index
      %12 = vector.load %arg7[%c0_9, %c0_10] : memref<128x64xf32, #tpu.memory_space<vmem>>, vector<128x64xf32>
      %c0_11 = arith.constant 0 : index
      %c0_12 = arith.constant 0 : index
      %13 = vector.load %arg5[%c0_11, %c0_12] : memref<1x64xf32, #tpu.memory_space<vmem>>, vector<1x64xf32>
      %14 = vector.broadcast %13 : vector<1x64xf32> to vector<128x64xf32>
      %15 = arith.mulf %12, %14 : vector<128x64xf32>
      %c0_13 = arith.constant 0 : index
      %c0_14 = arith.constant 0 : index
      %16 = vector.load %arg6[%c0_13, %c0_14] : memref<1x64xf32, #tpu.memory_space<vmem>>, vector<1x64xf32>
      %17 = vector.broadcast %16 : vector<1x64xf32> to vector<128x64xf32>
      %18 = arith.addf %15, %17 : vector<128x64xf32>
      %c0_15 = arith.constant 0 : index
      %c0_16 = arith.constant 0 : index
      %19 = vector.load %arg7[%c0_15, %c0_16] : memref<128x64xf32, #tpu.memory_space<vmem>>, vector<128x64xf32>
      tpu.vector_store %arg7[%c0_15, %c0_16], %18 {strides = array<i32>} : memref<128x64xf32, #tpu.memory_space<vmem>>, vector<128x64xf32>,
    } else {
    }
    return
  }
  func.func @transform_0(%arg0: i32, %arg1: i32, %arg2: i32) -> (i32, i32) {
    %c0_i32 = arith.constant 0 : i32
    return %arg0, %arg2 : i32, i32
  }
  func.func @transform_1(%arg0: i32, %arg1: i32, %arg2: i32) -> (i32, i32) {
    %c0_i32 = arith.constant 0 : i32
    return %arg2, %arg1 : i32, i32
  }
  func.func @transform_2(%arg0: i32, %arg1: i32, %arg2: i32) -> (i32, i32) {
    %c0_i32 = arith.constant 0 : i32
    %c0_i32_0 = arith.constant 0 : i32
    return %c0_i32, %arg1 : i32, i32
  }
  func.func @transform_3(%arg0: i32, %arg1: i32, %arg2: i32) -> (i32, i32) {
    %c0_i32 = arith.constant 0 : i32
    %c0_i32_0 = arith.constant 0 : i32
    return %c0_i32, %arg1 : i32, i32
  }
  func.func @transform_4(%arg0: i32, %arg1: i32, %arg2: i32) -> (i32, i32) {
    %c0_i32 = arith.constant 0 : i32
    return %arg0, %arg1 : i32, i32
  }
}

module attributes {stable_mosaic.version = 11 : i64} {
  func.func @_chgate_pool_kernel(%arg0: i32, %arg1: i32, %arg2: memref<1x64x64xf32, #tpu.memory_space<vmem>>, %arg3: memref<1x1x64xf32, #tpu.memory_space<vmem>>, %arg4: memref<1x64x64xf32, #tpu.memory_space<vmem>>, %arg5: memref<1x64x1xf32, #tpu.memory_space<vmem>>, %arg6: memref<1x64x1xf32, #tpu.memory_space<vmem>>) attributes {dimension_semantics = [#tpu.dimension_semantics<parallel>, #tpu.dimension_semantics<parallel>], iteration_bounds = array<i64: 2, 1>, scalar_prefetch = 0 : i64, scratch_operands = 0 : i64, tpu.core_type = #tpu.core_type<tc>, window_params = [{transform_indices = @transform_0, window_bounds = array<i64: 1, 64, 64>}, {transform_indices = @transform_1, window_bounds = array<i64: 1, 1, 64>}, {transform_indices = @transform_2, window_bounds = array<i64: 1, 64, 64>}, {transform_indices = @transform_3, window_bounds = array<i64: 1, 64, 1>}, {transform_indices = @transform_4, window_bounds = array<i64: 1, 64, 1>}]} {
    %c0 = arith.constant 0 : index
    %c0_0 = arith.constant 0 : index
    %c0_1 = arith.constant 0 : index
    %0 = vector.load %arg3[%c0, %c0_0, %c0_1] : memref<1x1x64xf32, #tpu.memory_space<vmem>>, vector<1x1x64xf32>
    %cst = arith.constant 0.000000e+00 : f32
    %1 = vector.broadcast %cst : f32 to vector<1x1x64xf32>
    %2 = arith.subf %1, %0 : vector<1x1x64xf32>
    %3 = math.exp %2 : vector<1x1x64xf32>
    %cst_2 = arith.constant 1.000000e+00 : f32
    %4 = vector.broadcast %cst_2 : f32 to vector<1x1x64xf32>
    %5 = arith.addf %4, %3 : vector<1x1x64xf32>
    %6 = tpu.reciprocal %5 {approx = true} : vector<1x1x64xf32> -> vector<1x1x64xf32>
    %c0_3 = arith.constant 0 : index
    %c0_4 = arith.constant 0 : index
    %c0_5 = arith.constant 0 : index
    %7 = vector.load %arg2[%c0_3, %c0_4, %c0_5] : memref<1x64x64xf32, #tpu.memory_space<vmem>>, vector<1x64x64xf32>
    %8 = vector.broadcast %6 : vector<1x1x64xf32> to vector<1x64x64xf32>
    %9 = arith.mulf %7, %8 : vector<1x64x64xf32>
    %c0_6 = arith.constant 0 : index
    %c0_7 = arith.constant 0 : index
    %c0_8 = arith.constant 0 : index
    %10 = vector.load %arg4[%c0_6, %c0_7, %c0_8] : memref<1x64x64xf32, #tpu.memory_space<vmem>>, vector<1x64x64xf32>
    tpu.vector_store %arg4[%c0_6, %c0_7, %c0_8], %9 {strides = array<i32>} : memref<1x64x64xf32, #tpu.memory_space<vmem>>, vector<1x64x64xf32>,
    %cst_9 = arith.constant dense<0xFF800000> : vector<1x64xf32>
    %11 = vector.multi_reduction <maximumf>, %9, %cst_9 [2] : vector<1x64x64xf32> to vector<1x64xf32>
    %12 = vector.shape_cast %11 : vector<1x64xf32> to vector<1x64x1xf32>
    %c0_10 = arith.constant 0 : index
    %c0_11 = arith.constant 0 : index
    %c0_12 = arith.constant 0 : index
    %13 = vector.load %arg5[%c0_10, %c0_11, %c0_12] : memref<1x64x1xf32, #tpu.memory_space<vmem>>, vector<1x64x1xf32>
    tpu.vector_store %arg5[%c0_10, %c0_11, %c0_12], %12 {strides = array<i32>} : memref<1x64x1xf32, #tpu.memory_space<vmem>>, vector<1x64x1xf32>,
    %cst_13 = arith.constant dense<0.000000e+00> : vector<1x64xf32>
    %14 = vector.multi_reduction <add>, %9, %cst_13 [2] : vector<1x64x64xf32> to vector<1x64xf32>
    %15 = vector.shape_cast %14 : vector<1x64xf32> to vector<1x64x1xf32>
    %cst_14 = arith.constant 6.400000e+01 : f32
    %16 = vector.broadcast %cst_14 : f32 to vector<1x64x1xf32>
    %17 = arith.divf %15, %16 : vector<1x64x1xf32>
    %c0_15 = arith.constant 0 : index
    %c0_16 = arith.constant 0 : index
    %c0_17 = arith.constant 0 : index
    %18 = vector.load %arg6[%c0_15, %c0_16, %c0_17] : memref<1x64x1xf32, #tpu.memory_space<vmem>>, vector<1x64x1xf32>
    tpu.vector_store %arg6[%c0_15, %c0_16, %c0_17], %17 {strides = array<i32>} : memref<1x64x1xf32, #tpu.memory_space<vmem>>, vector<1x64x1xf32>,
    return
  }
  func.func @transform_0(%arg0: i32, %arg1: i32) -> (i32, i32, i32) {
    %c0_i32 = arith.constant 0 : i32
    %c0_i32_0 = arith.constant 0 : i32
    return %arg0, %arg1, %c0_i32 : i32, i32, i32
  }
  func.func @transform_1(%arg0: i32, %arg1: i32) -> (i32, i32, i32) {
    %c0_i32 = arith.constant 0 : i32
    %c0_i32_0 = arith.constant 0 : i32
    %c0_i32_1 = arith.constant 0 : i32
    return %arg0, %c0_i32, %c0_i32_0 : i32, i32, i32
  }
  func.func @transform_2(%arg0: i32, %arg1: i32) -> (i32, i32, i32) {
    %c0_i32 = arith.constant 0 : i32
    %c0_i32_0 = arith.constant 0 : i32
    return %arg0, %arg1, %c0_i32 : i32, i32, i32
  }
  func.func @transform_3(%arg0: i32, %arg1: i32) -> (i32, i32, i32) {
    %c0_i32 = arith.constant 0 : i32
    %c0_i32_0 = arith.constant 0 : i32
    return %arg0, %arg1, %c0_i32 : i32, i32, i32
  }
  func.func @transform_4(%arg0: i32, %arg1: i32) -> (i32, i32, i32) {
    %c0_i32 = arith.constant 0 : i32
    %c0_i32_0 = arith.constant 0 : i32
    return %arg0, %arg1, %c0_i32 : i32, i32, i32
  }
}

module attributes {stable_mosaic.version = 11 : i64} {
  func.func @_spgate_add_relu_kernel(%arg0: i32, %arg1: i32, %arg2: memref<1x64x64xf32, #tpu.memory_space<vmem>>, %arg3: memref<1x64x1xf32, #tpu.memory_space<vmem>>, %arg4: memref<1x64x64xf32, #tpu.memory_space<vmem>>, %arg5: memref<1x64x64xf32, #tpu.memory_space<vmem>>) attributes {dimension_semantics = [#tpu.dimension_semantics<parallel>, #tpu.dimension_semantics<parallel>], iteration_bounds = array<i64: 2, 1>, scalar_prefetch = 0 : i64, scratch_operands = 0 : i64, tpu.core_type = #tpu.core_type<tc>, window_params = [{transform_indices = @transform_0, window_bounds = array<i64: 1, 64, 64>}, {transform_indices = @transform_1, window_bounds = array<i64: 1, 64, 1>}, {transform_indices = @transform_2, window_bounds = array<i64: 1, 64, 64>}, {transform_indices = @transform_3, window_bounds = array<i64: 1, 64, 64>}]} {
    %c0 = arith.constant 0 : index
    %c0_0 = arith.constant 0 : index
    %c0_1 = arith.constant 0 : index
    %0 = vector.load %arg3[%c0, %c0_0, %c0_1] : memref<1x64x1xf32, #tpu.memory_space<vmem>>, vector<1x64x1xf32>
    %cst = arith.constant 0.000000e+00 : f32
    %1 = vector.broadcast %cst : f32 to vector<1x64x1xf32>
    %2 = arith.subf %1, %0 : vector<1x64x1xf32>
    %3 = math.exp %2 : vector<1x64x1xf32>
    %cst_2 = arith.constant 1.000000e+00 : f32
    %4 = vector.broadcast %cst_2 : f32 to vector<1x64x1xf32>
    %5 = arith.addf %4, %3 : vector<1x64x1xf32>
    %6 = tpu.reciprocal %5 {approx = true} : vector<1x64x1xf32> -> vector<1x64x1xf32>
    %c0_3 = arith.constant 0 : index
    %c0_4 = arith.constant 0 : index
    %c0_5 = arith.constant 0 : index
    %7 = vector.load %arg2[%c0_3, %c0_4, %c0_5] : memref<1x64x64xf32, #tpu.memory_space<vmem>>, vector<1x64x64xf32>
    %8 = vector.broadcast %6 : vector<1x64x1xf32> to vector<1x64x64xf32>
    %9 = arith.mulf %7, %8 : vector<1x64x64xf32>
    %c0_6 = arith.constant 0 : index
    %c0_7 = arith.constant 0 : index
    %c0_8 = arith.constant 0 : index
    %10 = vector.load %arg4[%c0_6, %c0_7, %c0_8] : memref<1x64x64xf32, #tpu.memory_space<vmem>>, vector<1x64x64xf32>
    %11 = arith.addf %9, %10 : vector<1x64x64xf32>
    %cst_9 = arith.constant 0.000000e+00 : f32
    %12 = vector.broadcast %cst_9 : f32 to vector<1x64x64xf32>
    %13 = arith.maximumf %11, %12 : vector<1x64x64xf32>
    %c0_10 = arith.constant 0 : index
    %c0_11 = arith.constant 0 : index
    %c0_12 = arith.constant 0 : index
    %14 = vector.load %arg5[%c0_10, %c0_11, %c0_12] : memref<1x64x64xf32, #tpu.memory_space<vmem>>, vector<1x64x64xf32>
    tpu.vector_store %arg5[%c0_10, %c0_11, %c0_12], %13 {strides = array<i32>} : memref<1x64x64xf32, #tpu.memory_space<vmem>>, vector<1x64x64xf32>,
    return
  }
  func.func @transform_0(%arg0: i32, %arg1: i32) -> (i32, i32, i32) {
    %c0_i32 = arith.constant 0 : i32
    %c0_i32_0 = arith.constant 0 : i32
    return %arg0, %arg1, %c0_i32 : i32, i32, i32
  }
  func.func @transform_1(%arg0: i32, %arg1: i32) -> (i32, i32, i32) {
    %c0_i32 = arith.constant 0 : i32
    %c0_i32_0 = arith.constant 0 : i32
    return %arg0, %arg1, %c0_i32 : i32, i32, i32
  }
  func.func @transform_2(%arg0: i32, %arg1: i32) -> (i32, i32, i32) {
    %c0_i32 = arith.constant 0 : i32
    %c0_i32_0 = arith.constant 0 : i32
    return %arg0, %arg1, %c0_i32 : i32, i32, i32
  }
  func.func @transform_3(%arg0: i32, %arg1: i32) -> (i32, i32, i32) {
    %c0_i32 = arith.constant 0 : i32
    %c0_i32_0 = arith.constant 0 : i32
    return %arg0, %arg1, %c0_i32 : i32, i32, i32
  }
}

module attributes {stable_mosaic.version = 11 : i64} {
  func.func @_matmul_bn_kernel(%arg0: i32, %arg1: i32, %arg2: i32, %arg3: memref<32x128xbf16, #tpu.memory_space<vmem>>, %arg4: memref<128x128xbf16, #tpu.memory_space<vmem>>, %arg5: memref<1x128xf32, #tpu.memory_space<vmem>>, %arg6: memref<1x128xf32, #tpu.memory_space<vmem>>, %arg7: memref<32x128xf32, #tpu.memory_space<vmem>>) attributes {dimension_semantics = [#tpu.dimension_semantics<parallel>, #tpu.dimension_semantics<parallel>, #tpu.dimension_semantics<arbitrary>], iteration_bounds = array<i64: 1, 1, 5>, scalar_prefetch = 0 : i64, scratch_operands = 0 : i64, tpu.core_type = #tpu.core_type<tc>, window_params = [{transform_indices = @transform_0, window_bounds = array<i64: 32, 128>}, {transform_indices = @transform_1, window_bounds = array<i64: 128, 128>}, {transform_indices = @transform_2, window_bounds = array<i64: 1, 128>}, {transform_indices = @transform_3, window_bounds = array<i64: 1, 128>}, {transform_indices = @transform_4, window_bounds = array<i64: 32, 128>}]} {
    %c0_i32 = arith.constant 0 : i32
    %0 = arith.cmpi eq, %arg2, %c0_i32 : i32
    %1 = arith.extui %0 : i1 to i32
    %c0_i32_0 = arith.constant 0 : i32
    %2 = arith.cmpi ne, %1, %c0_i32_0 : i32
    scf.if %2 {
      %cst_9 = arith.constant 0.000000e+00 : f32
      %12 = vector.broadcast %cst_9 : f32 to vector<32x128xf32>
      %c0_10 = arith.constant 0 : index
      %c0_11 = arith.constant 0 : index
      %13 = vector.load %arg7[%c0_10, %c0_11] : memref<32x128xf32, #tpu.memory_space<vmem>>, vector<32x128xf32>
      tpu.vector_store %arg7[%c0_10, %c0_11], %12 {strides = array<i32>} : memref<32x128xf32, #tpu.memory_space<vmem>>, vector<32x128xf32>,
    } else {
    }
    %c0 = arith.constant 0 : index
    %c0_1 = arith.constant 0 : index
    %3 = vector.load %arg7[%c0, %c0_1] : memref<32x128xf32, #tpu.memory_space<vmem>>, vector<32x128xf32>
    %c0_2 = arith.constant 0 : index
    %c0_3 = arith.constant 0 : index
    %4 = vector.load %arg3[%c0_2, %c0_3] : memref<32x128xbf16, #tpu.memory_space<vmem>>, vector<32x128xbf16>
    %c0_4 = arith.constant 0 : index
    %c0_5 = arith.constant 0 : index
    %5 = vector.load %arg4[%c0_4, %c0_5] : memref<128x128xbf16, #tpu.memory_space<vmem>>, vector<128x128xbf16>
    %cst = arith.constant dense<0.000000e+00> : vector<32x128xf32>
    %6 = tpu.matmul %4, %5, %cst {dimension_numbers = #tpu.dot_dimension_numbers<[1], [0], [0], [1], [0, 0, 1, 1], [], []>} : vector<32x128xbf16>, vector<128x128xbf16>, vector<32x128xf32> -> vector<32x128xf32>
    %7 = arith.addf %3, %6 : vector<32x128xf32>
    %c0_6 = arith.constant 0 : index
    %c0_7 = arith.constant 0 : index
    %8 = vector.load %arg7[%c0_6, %c0_7] : memref<32x128xf32, #tpu.memory_space<vmem>>, vector<32x128xf32>
    tpu.vector_store %arg7[%c0_6, %c0_7], %7 {strides = array<i32>} : memref<32x128xf32, #tpu.memory_space<vmem>>, vector<32x128xf32>,
    %c4_i32 = arith.constant 4 : i32
    %9 = arith.cmpi eq, %arg2, %c4_i32 : i32
    %10 = arith.extui %9 : i1 to i32
    %c0_i32_8 = arith.constant 0 : i32
    %11 = arith.cmpi ne, %10, %c0_i32_8 : i32
    scf.if %11 {
      %c0_9 = arith.constant 0 : index
      %c0_10 = arith.constant 0 : index
      %12 = vector.load %arg7[%c0_9, %c0_10] : memref<32x128xf32, #tpu.memory_space<vmem>>, vector<32x128xf32>
      %c0_11 = arith.constant 0 : index
      %c0_12 = arith.constant 0 : index
      %13 = vector.load %arg5[%c0_11, %c0_12] : memref<1x128xf32, #tpu.memory_space<vmem>>, vector<1x128xf32>
      %14 = vector.broadcast %13 : vector<1x128xf32> to vector<32x128xf32>
      %15 = arith.mulf %12, %14 : vector<32x128xf32>
      %c0_13 = arith.constant 0 : index
      %c0_14 = arith.constant 0 : index
      %16 = vector.load %arg6[%c0_13, %c0_14] : memref<1x128xf32, #tpu.memory_space<vmem>>, vector<1x128xf32>
      %17 = vector.broadcast %16 : vector<1x128xf32> to vector<32x128xf32>
      %18 = arith.addf %15, %17 : vector<32x128xf32>
      %cst_15 = arith.constant 0.000000e+00 : f32
      %19 = vector.broadcast %cst_15 : f32 to vector<32x128xf32>
      %20 = arith.maximumf %18, %19 : vector<32x128xf32>
      %c0_16 = arith.constant 0 : index
      %c0_17 = arith.constant 0 : index
      %21 = vector.load %arg7[%c0_16, %c0_17] : memref<32x128xf32, #tpu.memory_space<vmem>>, vector<32x128xf32>
      tpu.vector_store %arg7[%c0_16, %c0_17], %20 {strides = array<i32>} : memref<32x128xf32, #tpu.memory_space<vmem>>, vector<32x128xf32>,
    } else {
    }
    return
  }
  func.func @transform_0(%arg0: i32, %arg1: i32, %arg2: i32) -> (i32, i32) {
    %c0_i32 = arith.constant 0 : i32
    return %arg0, %arg2 : i32, i32
  }
  func.func @transform_1(%arg0: i32, %arg1: i32, %arg2: i32) -> (i32, i32) {
    %c0_i32 = arith.constant 0 : i32
    return %arg2, %arg1 : i32, i32
  }
  func.func @transform_2(%arg0: i32, %arg1: i32, %arg2: i32) -> (i32, i32) {
    %c0_i32 = arith.constant 0 : i32
    %c0_i32_0 = arith.constant 0 : i32
    return %c0_i32, %arg1 : i32, i32
  }
  func.func @transform_3(%arg0: i32, %arg1: i32, %arg2: i32) -> (i32, i32) {
    %c0_i32 = arith.constant 0 : i32
    %c0_i32_0 = arith.constant 0 : i32
    return %c0_i32, %arg1 : i32, i32
  }
  func.func @transform_4(%arg0: i32, %arg1: i32, %arg2: i32) -> (i32, i32) {
    %c0_i32 = arith.constant 0 : i32
    return %arg0, %arg1 : i32, i32
  }
}

module attributes {stable_mosaic.version = 11 : i64} {
  func.func @_matmul_bn_kernel(%arg0: i32, %arg1: i32, %arg2: i32, %arg3: memref<32x128xbf16, #tpu.memory_space<vmem>>, %arg4: memref<128x128xbf16, #tpu.memory_space<vmem>>, %arg5: memref<1x128xf32, #tpu.memory_space<vmem>>, %arg6: memref<1x128xf32, #tpu.memory_space<vmem>>, %arg7: memref<32x128xf32, #tpu.memory_space<vmem>>) attributes {dimension_semantics = [#tpu.dimension_semantics<parallel>, #tpu.dimension_semantics<parallel>, #tpu.dimension_semantics<arbitrary>], iteration_bounds = array<i64: 1, 1, 9>, scalar_prefetch = 0 : i64, scratch_operands = 0 : i64, tpu.core_type = #tpu.core_type<tc>, window_params = [{transform_indices = @transform_0, window_bounds = array<i64: 32, 128>}, {transform_indices = @transform_1, window_bounds = array<i64: 128, 128>}, {transform_indices = @transform_2, window_bounds = array<i64: 1, 128>}, {transform_indices = @transform_3, window_bounds = array<i64: 1, 128>}, {transform_indices = @transform_4, window_bounds = array<i64: 32, 128>}]} {
    %c0_i32 = arith.constant 0 : i32
    %0 = arith.cmpi eq, %arg2, %c0_i32 : i32
    %1 = arith.extui %0 : i1 to i32
    %c0_i32_0 = arith.constant 0 : i32
    %2 = arith.cmpi ne, %1, %c0_i32_0 : i32
    scf.if %2 {
      %cst_9 = arith.constant 0.000000e+00 : f32
      %12 = vector.broadcast %cst_9 : f32 to vector<32x128xf32>
      %c0_10 = arith.constant 0 : index
      %c0_11 = arith.constant 0 : index
      %13 = vector.load %arg7[%c0_10, %c0_11] : memref<32x128xf32, #tpu.memory_space<vmem>>, vector<32x128xf32>
      tpu.vector_store %arg7[%c0_10, %c0_11], %12 {strides = array<i32>} : memref<32x128xf32, #tpu.memory_space<vmem>>, vector<32x128xf32>,
    } else {
    }
    %c0 = arith.constant 0 : index
    %c0_1 = arith.constant 0 : index
    %3 = vector.load %arg7[%c0, %c0_1] : memref<32x128xf32, #tpu.memory_space<vmem>>, vector<32x128xf32>
    %c0_2 = arith.constant 0 : index
    %c0_3 = arith.constant 0 : index
    %4 = vector.load %arg3[%c0_2, %c0_3] : memref<32x128xbf16, #tpu.memory_space<vmem>>, vector<32x128xbf16>
    %c0_4 = arith.constant 0 : index
    %c0_5 = arith.constant 0 : index
    %5 = vector.load %arg4[%c0_4, %c0_5] : memref<128x128xbf16, #tpu.memory_space<vmem>>, vector<128x128xbf16>
    %cst = arith.constant dense<0.000000e+00> : vector<32x128xf32>
    %6 = tpu.matmul %4, %5, %cst {dimension_numbers = #tpu.dot_dimension_numbers<[1], [0], [0], [1], [0, 0, 1, 1], [], []>} : vector<32x128xbf16>, vector<128x128xbf16>, vector<32x128xf32> -> vector<32x128xf32>
    %7 = arith.addf %3, %6 : vector<32x128xf32>
    %c0_6 = arith.constant 0 : index
    %c0_7 = arith.constant 0 : index
    %8 = vector.load %arg7[%c0_6, %c0_7] : memref<32x128xf32, #tpu.memory_space<vmem>>, vector<32x128xf32>
    tpu.vector_store %arg7[%c0_6, %c0_7], %7 {strides = array<i32>} : memref<32x128xf32, #tpu.memory_space<vmem>>, vector<32x128xf32>,
    %c8_i32 = arith.constant 8 : i32
    %9 = arith.cmpi eq, %arg2, %c8_i32 : i32
    %10 = arith.extui %9 : i1 to i32
    %c0_i32_8 = arith.constant 0 : i32
    %11 = arith.cmpi ne, %10, %c0_i32_8 : i32
    scf.if %11 {
      %c0_9 = arith.constant 0 : index
      %c0_10 = arith.constant 0 : index
      %12 = vector.load %arg7[%c0_9, %c0_10] : memref<32x128xf32, #tpu.memory_space<vmem>>, vector<32x128xf32>
      %c0_11 = arith.constant 0 : index
      %c0_12 = arith.constant 0 : index
      %13 = vector.load %arg5[%c0_11, %c0_12] : memref<1x128xf32, #tpu.memory_space<vmem>>, vector<1x128xf32>
      %14 = vector.broadcast %13 : vector<1x128xf32> to vector<32x128xf32>
      %15 = arith.mulf %12, %14 : vector<32x128xf32>
      %c0_13 = arith.constant 0 : index
      %c0_14 = arith.constant 0 : index
      %16 = vector.load %arg6[%c0_13, %c0_14] : memref<1x128xf32, #tpu.memory_space<vmem>>, vector<1x128xf32>
      %17 = vector.broadcast %16 : vector<1x128xf32> to vector<32x128xf32>
      %18 = arith.addf %15, %17 : vector<32x128xf32>
      %c0_15 = arith.constant 0 : index
      %c0_16 = arith.constant 0 : index
      %19 = vector.load %arg7[%c0_15, %c0_16] : memref<32x128xf32, #tpu.memory_space<vmem>>, vector<32x128xf32>
      tpu.vector_store %arg7[%c0_15, %c0_16], %18 {strides = array<i32>} : memref<32x128xf32, #tpu.memory_space<vmem>>, vector<32x128xf32>,
    } else {
    }
    return
  }
  func.func @transform_0(%arg0: i32, %arg1: i32, %arg2: i32) -> (i32, i32) {
    %c0_i32 = arith.constant 0 : i32
    return %arg0, %arg2 : i32, i32
  }
  func.func @transform_1(%arg0: i32, %arg1: i32, %arg2: i32) -> (i32, i32) {
    %c0_i32 = arith.constant 0 : i32
    return %arg2, %arg1 : i32, i32
  }
  func.func @transform_2(%arg0: i32, %arg1: i32, %arg2: i32) -> (i32, i32) {
    %c0_i32 = arith.constant 0 : i32
    %c0_i32_0 = arith.constant 0 : i32
    return %c0_i32, %arg1 : i32, i32
  }
  func.func @transform_3(%arg0: i32, %arg1: i32, %arg2: i32) -> (i32, i32) {
    %c0_i32 = arith.constant 0 : i32
    %c0_i32_0 = arith.constant 0 : i32
    return %c0_i32, %arg1 : i32, i32
  }
  func.func @transform_4(%arg0: i32, %arg1: i32, %arg2: i32) -> (i32, i32) {
    %c0_i32 = arith.constant 0 : i32
    return %arg0, %arg1 : i32, i32
  }
}

module attributes {stable_mosaic.version = 11 : i64} {
  func.func @_chgate_pool_kernel(%arg0: i32, %arg1: i32, %arg2: memref<1x16x128xf32, #tpu.memory_space<vmem>>, %arg3: memref<1x1x128xf32, #tpu.memory_space<vmem>>, %arg4: memref<1x16x128xf32, #tpu.memory_space<vmem>>, %arg5: memref<1x16x1xf32, #tpu.memory_space<vmem>>, %arg6: memref<1x16x1xf32, #tpu.memory_space<vmem>>) attributes {dimension_semantics = [#tpu.dimension_semantics<parallel>, #tpu.dimension_semantics<parallel>], iteration_bounds = array<i64: 2, 1>, scalar_prefetch = 0 : i64, scratch_operands = 0 : i64, tpu.core_type = #tpu.core_type<tc>, window_params = [{transform_indices = @transform_0, window_bounds = array<i64: 1, 16, 128>}, {transform_indices = @transform_1, window_bounds = array<i64: 1, 1, 128>}, {transform_indices = @transform_2, window_bounds = array<i64: 1, 16, 128>}, {transform_indices = @transform_3, window_bounds = array<i64: 1, 16, 1>}, {transform_indices = @transform_4, window_bounds = array<i64: 1, 16, 1>}]} {
    %c0 = arith.constant 0 : index
    %c0_0 = arith.constant 0 : index
    %c0_1 = arith.constant 0 : index
    %0 = vector.load %arg3[%c0, %c0_0, %c0_1] : memref<1x1x128xf32, #tpu.memory_space<vmem>>, vector<1x1x128xf32>
    %cst = arith.constant 0.000000e+00 : f32
    %1 = vector.broadcast %cst : f32 to vector<1x1x128xf32>
    %2 = arith.subf %1, %0 : vector<1x1x128xf32>
    %3 = math.exp %2 : vector<1x1x128xf32>
    %cst_2 = arith.constant 1.000000e+00 : f32
    %4 = vector.broadcast %cst_2 : f32 to vector<1x1x128xf32>
    %5 = arith.addf %4, %3 : vector<1x1x128xf32>
    %6 = tpu.reciprocal %5 {approx = true} : vector<1x1x128xf32> -> vector<1x1x128xf32>
    %c0_3 = arith.constant 0 : index
    %c0_4 = arith.constant 0 : index
    %c0_5 = arith.constant 0 : index
    %7 = vector.load %arg2[%c0_3, %c0_4, %c0_5] : memref<1x16x128xf32, #tpu.memory_space<vmem>>, vector<1x16x128xf32>
    %8 = vector.broadcast %6 : vector<1x1x128xf32> to vector<1x16x128xf32>
    %9 = arith.mulf %7, %8 : vector<1x16x128xf32>
    %c0_6 = arith.constant 0 : index
    %c0_7 = arith.constant 0 : index
    %c0_8 = arith.constant 0 : index
    %10 = vector.load %arg4[%c0_6, %c0_7, %c0_8] : memref<1x16x128xf32, #tpu.memory_space<vmem>>, vector<1x16x128xf32>
    tpu.vector_store %arg4[%c0_6, %c0_7, %c0_8], %9 {strides = array<i32>} : memref<1x16x128xf32, #tpu.memory_space<vmem>>, vector<1x16x128xf32>,
    %cst_9 = arith.constant dense<0xFF800000> : vector<1x16xf32>
    %11 = vector.multi_reduction <maximumf>, %9, %cst_9 [2] : vector<1x16x128xf32> to vector<1x16xf32>
    %12 = vector.shape_cast %11 : vector<1x16xf32> to vector<1x16x1xf32>
    %c0_10 = arith.constant 0 : index
    %c0_11 = arith.constant 0 : index
    %c0_12 = arith.constant 0 : index
    %13 = vector.load %arg5[%c0_10, %c0_11, %c0_12] : memref<1x16x1xf32, #tpu.memory_space<vmem>>, vector<1x16x1xf32>
    tpu.vector_store %arg5[%c0_10, %c0_11, %c0_12], %12 {strides = array<i32>} : memref<1x16x1xf32, #tpu.memory_space<vmem>>, vector<1x16x1xf32>,
    %cst_13 = arith.constant dense<0.000000e+00> : vector<1x16xf32>
    %14 = vector.multi_reduction <add>, %9, %cst_13 [2] : vector<1x16x128xf32> to vector<1x16xf32>
    %15 = vector.shape_cast %14 : vector<1x16xf32> to vector<1x16x1xf32>
    %cst_14 = arith.constant 1.280000e+02 : f32
    %16 = vector.broadcast %cst_14 : f32 to vector<1x16x1xf32>
    %17 = arith.divf %15, %16 : vector<1x16x1xf32>
    %c0_15 = arith.constant 0 : index
    %c0_16 = arith.constant 0 : index
    %c0_17 = arith.constant 0 : index
    %18 = vector.load %arg6[%c0_15, %c0_16, %c0_17] : memref<1x16x1xf32, #tpu.memory_space<vmem>>, vector<1x16x1xf32>
    tpu.vector_store %arg6[%c0_15, %c0_16, %c0_17], %17 {strides = array<i32>} : memref<1x16x1xf32, #tpu.memory_space<vmem>>, vector<1x16x1xf32>,
    return
  }
  func.func @transform_0(%arg0: i32, %arg1: i32) -> (i32, i32, i32) {
    %c0_i32 = arith.constant 0 : i32
    %c0_i32_0 = arith.constant 0 : i32
    return %arg0, %arg1, %c0_i32 : i32, i32, i32
  }
  func.func @transform_1(%arg0: i32, %arg1: i32) -> (i32, i32, i32) {
    %c0_i32 = arith.constant 0 : i32
    %c0_i32_0 = arith.constant 0 : i32
    %c0_i32_1 = arith.constant 0 : i32
    return %arg0, %c0_i32, %c0_i32_0 : i32, i32, i32
  }
  func.func @transform_2(%arg0: i32, %arg1: i32) -> (i32, i32, i32) {
    %c0_i32 = arith.constant 0 : i32
    %c0_i32_0 = arith.constant 0 : i32
    return %arg0, %arg1, %c0_i32 : i32, i32, i32
  }
  func.func @transform_3(%arg0: i32, %arg1: i32) -> (i32, i32, i32) {
    %c0_i32 = arith.constant 0 : i32
    %c0_i32_0 = arith.constant 0 : i32
    return %arg0, %arg1, %c0_i32 : i32, i32, i32
  }
  func.func @transform_4(%arg0: i32, %arg1: i32) -> (i32, i32, i32) {
    %c0_i32 = arith.constant 0 : i32
    %c0_i32_0 = arith.constant 0 : i32
    return %arg0, %arg1, %c0_i32 : i32, i32, i32
  }
}

module attributes {stable_mosaic.version = 11 : i64} {
  func.func @_spgate_add_relu_kernel(%arg0: i32, %arg1: i32, %arg2: memref<1x16x128xf32, #tpu.memory_space<vmem>>, %arg3: memref<1x16x1xf32, #tpu.memory_space<vmem>>, %arg4: memref<1x16x128xf32, #tpu.memory_space<vmem>>, %arg5: memref<1x16x128xf32, #tpu.memory_space<vmem>>) attributes {dimension_semantics = [#tpu.dimension_semantics<parallel>, #tpu.dimension_semantics<parallel>], iteration_bounds = array<i64: 2, 1>, scalar_prefetch = 0 : i64, scratch_operands = 0 : i64, tpu.core_type = #tpu.core_type<tc>, window_params = [{transform_indices = @transform_0, window_bounds = array<i64: 1, 16, 128>}, {transform_indices = @transform_1, window_bounds = array<i64: 1, 16, 1>}, {transform_indices = @transform_2, window_bounds = array<i64: 1, 16, 128>}, {transform_indices = @transform_3, window_bounds = array<i64: 1, 16, 128>}]} {
    %c0 = arith.constant 0 : index
    %c0_0 = arith.constant 0 : index
    %c0_1 = arith.constant 0 : index
    %0 = vector.load %arg3[%c0, %c0_0, %c0_1] : memref<1x16x1xf32, #tpu.memory_space<vmem>>, vector<1x16x1xf32>
    %cst = arith.constant 0.000000e+00 : f32
    %1 = vector.broadcast %cst : f32 to vector<1x16x1xf32>
    %2 = arith.subf %1, %0 : vector<1x16x1xf32>
    %3 = math.exp %2 : vector<1x16x1xf32>
    %cst_2 = arith.constant 1.000000e+00 : f32
    %4 = vector.broadcast %cst_2 : f32 to vector<1x16x1xf32>
    %5 = arith.addf %4, %3 : vector<1x16x1xf32>
    %6 = tpu.reciprocal %5 {approx = true} : vector<1x16x1xf32> -> vector<1x16x1xf32>
    %c0_3 = arith.constant 0 : index
    %c0_4 = arith.constant 0 : index
    %c0_5 = arith.constant 0 : index
    %7 = vector.load %arg2[%c0_3, %c0_4, %c0_5] : memref<1x16x128xf32, #tpu.memory_space<vmem>>, vector<1x16x128xf32>
    %8 = vector.broadcast %6 : vector<1x16x1xf32> to vector<1x16x128xf32>
    %9 = arith.mulf %7, %8 : vector<1x16x128xf32>
    %c0_6 = arith.constant 0 : index
    %c0_7 = arith.constant 0 : index
    %c0_8 = arith.constant 0 : index
    %10 = vector.load %arg4[%c0_6, %c0_7, %c0_8] : memref<1x16x128xf32, #tpu.memory_space<vmem>>, vector<1x16x128xf32>
    %11 = arith.addf %9, %10 : vector<1x16x128xf32>
    %cst_9 = arith.constant 0.000000e+00 : f32
    %12 = vector.broadcast %cst_9 : f32 to vector<1x16x128xf32>
    %13 = arith.maximumf %11, %12 : vector<1x16x128xf32>
    %c0_10 = arith.constant 0 : index
    %c0_11 = arith.constant 0 : index
    %c0_12 = arith.constant 0 : index
    %14 = vector.load %arg5[%c0_10, %c0_11, %c0_12] : memref<1x16x128xf32, #tpu.memory_space<vmem>>, vector<1x16x128xf32>
    tpu.vector_store %arg5[%c0_10, %c0_11, %c0_12], %13 {strides = array<i32>} : memref<1x16x128xf32, #tpu.memory_space<vmem>>, vector<1x16x128xf32>,
    return
  }
  func.func @transform_0(%arg0: i32, %arg1: i32) -> (i32, i32, i32) {
    %c0_i32 = arith.constant 0 : i32
    %c0_i32_0 = arith.constant 0 : i32
    return %arg0, %arg1, %c0_i32 : i32, i32, i32
  }
  func.func @transform_1(%arg0: i32, %arg1: i32) -> (i32, i32, i32) {
    %c0_i32 = arith.constant 0 : i32
    %c0_i32_0 = arith.constant 0 : i32
    return %arg0, %arg1, %c0_i32 : i32, i32, i32
  }
  func.func @transform_2(%arg0: i32, %arg1: i32) -> (i32, i32, i32) {
    %c0_i32 = arith.constant 0 : i32
    %c0_i32_0 = arith.constant 0 : i32
    return %arg0, %arg1, %c0_i32 : i32, i32, i32
  }
  func.func @transform_3(%arg0: i32, %arg1: i32) -> (i32, i32, i32) {
    %c0_i32 = arith.constant 0 : i32
    %c0_i32_0 = arith.constant 0 : i32
    return %arg0, %arg1, %c0_i32 : i32, i32, i32
  }
}

module attributes {stable_mosaic.version = 11 : i64} {
  func.func @_matmul_bn_kernel(%arg0: i32, %arg1: i32, %arg2: i32, %arg3: memref<32x64xbf16, #tpu.memory_space<vmem>>, %arg4: memref<64x128xbf16, #tpu.memory_space<vmem>>, %arg5: memref<1x128xf32, #tpu.memory_space<vmem>>, %arg6: memref<1x128xf32, #tpu.memory_space<vmem>>, %arg7: memref<32x128xf32, #tpu.memory_space<vmem>>) attributes {dimension_semantics = [#tpu.dimension_semantics<parallel>, #tpu.dimension_semantics<parallel>, #tpu.dimension_semantics<arbitrary>], iteration_bounds = array<i64: 1, 1, 1>, scalar_prefetch = 0 : i64, scratch_operands = 0 : i64, tpu.core_type = #tpu.core_type<tc>, window_params = [{transform_indices = @transform_0, window_bounds = array<i64: 32, 64>}, {transform_indices = @transform_1, window_bounds = array<i64: 64, 128>}, {transform_indices = @transform_2, window_bounds = array<i64: 1, 128>}, {transform_indices = @transform_3, window_bounds = array<i64: 1, 128>}, {transform_indices = @transform_4, window_bounds = array<i64: 32, 128>}]} {
    %c0_i32 = arith.constant 0 : i32
    %0 = arith.cmpi eq, %arg2, %c0_i32 : i32
    %1 = arith.extui %0 : i1 to i32
    %c0_i32_0 = arith.constant 0 : i32
    %2 = arith.cmpi ne, %1, %c0_i32_0 : i32
    scf.if %2 {
      %cst_10 = arith.constant 0.000000e+00 : f32
      %12 = vector.broadcast %cst_10 : f32 to vector<32x128xf32>
      %c0_11 = arith.constant 0 : index
      %c0_12 = arith.constant 0 : index
      %13 = vector.load %arg7[%c0_11, %c0_12] : memref<32x128xf32, #tpu.memory_space<vmem>>, vector<32x128xf32>
      tpu.vector_store %arg7[%c0_11, %c0_12], %12 {strides = array<i32>} : memref<32x128xf32, #tpu.memory_space<vmem>>, vector<32x128xf32>,
    } else {
    }
    %c0 = arith.constant 0 : index
    %c0_1 = arith.constant 0 : index
    %3 = vector.load %arg7[%c0, %c0_1] : memref<32x128xf32, #tpu.memory_space<vmem>>, vector<32x128xf32>
    %c0_2 = arith.constant 0 : index
    %c0_3 = arith.constant 0 : index
    %4 = vector.load %arg3[%c0_2, %c0_3] : memref<32x64xbf16, #tpu.memory_space<vmem>>, vector<32x64xbf16>
    %c0_4 = arith.constant 0 : index
    %c0_5 = arith.constant 0 : index
    %5 = vector.load %arg4[%c0_4, %c0_5] : memref<64x128xbf16, #tpu.memory_space<vmem>>, vector<64x128xbf16>
    %cst = arith.constant dense<0.000000e+00> : vector<32x128xf32>
    %6 = tpu.matmul %4, %5, %cst {dimension_numbers = #tpu.dot_dimension_numbers<[1], [0], [0], [1], [0, 0, 1, 1], [], []>} : vector<32x64xbf16>, vector<64x128xbf16>, vector<32x128xf32> -> vector<32x128xf32>
    %7 = arith.addf %3, %6 : vector<32x128xf32>
    %c0_6 = arith.constant 0 : index
    %c0_7 = arith.constant 0 : index
    %8 = vector.load %arg7[%c0_6, %c0_7] : memref<32x128xf32, #tpu.memory_space<vmem>>, vector<32x128xf32>
    tpu.vector_store %arg7[%c0_6, %c0_7], %7 {strides = array<i32>} : memref<32x128xf32, #tpu.memory_space<vmem>>, vector<32x128xf32>,
    %c0_i32_8 = arith.constant 0 : i32
    %9 = arith.cmpi eq, %arg2, %c0_i32_8 : i32
    %10 = arith.extui %9 : i1 to i32
    %c0_i32_9 = arith.constant 0 : i32
    %11 = arith.cmpi ne, %10, %c0_i32_9 : i32
    scf.if %11 {
      %c0_10 = arith.constant 0 : index
      %c0_11 = arith.constant 0 : index
      %12 = vector.load %arg7[%c0_10, %c0_11] : memref<32x128xf32, #tpu.memory_space<vmem>>, vector<32x128xf32>
      %c0_12 = arith.constant 0 : index
      %c0_13 = arith.constant 0 : index
      %13 = vector.load %arg5[%c0_12, %c0_13] : memref<1x128xf32, #tpu.memory_space<vmem>>, vector<1x128xf32>
      %14 = vector.broadcast %13 : vector<1x128xf32> to vector<32x128xf32>
      %15 = arith.mulf %12, %14 : vector<32x128xf32>
      %c0_14 = arith.constant 0 : index
      %c0_15 = arith.constant 0 : index
      %16 = vector.load %arg6[%c0_14, %c0_15] : memref<1x128xf32, #tpu.memory_space<vmem>>, vector<1x128xf32>
      %17 = vector.broadcast %16 : vector<1x128xf32> to vector<32x128xf32>
      %18 = arith.addf %15, %17 : vector<32x128xf32>
      %c0_16 = arith.constant 0 : index
      %c0_17 = arith.constant 0 : index
      %19 = vector.load %arg7[%c0_16, %c0_17] : memref<32x128xf32, #tpu.memory_space<vmem>>, vector<32x128xf32>
      tpu.vector_store %arg7[%c0_16, %c0_17], %18 {strides = array<i32>} : memref<32x128xf32, #tpu.memory_space<vmem>>, vector<32x128xf32>,
    } else {
    }
    return
  }
  func.func @transform_0(%arg0: i32, %arg1: i32, %arg2: i32) -> (i32, i32) {
    %c0_i32 = arith.constant 0 : i32
    return %arg0, %arg2 : i32, i32
  }
  func.func @transform_1(%arg0: i32, %arg1: i32, %arg2: i32) -> (i32, i32) {
    %c0_i32 = arith.constant 0 : i32
    return %arg2, %arg1 : i32, i32
  }
  func.func @transform_2(%arg0: i32, %arg1: i32, %arg2: i32) -> (i32, i32) {
    %c0_i32 = arith.constant 0 : i32
    %c0_i32_0 = arith.constant 0 : i32
    return %c0_i32, %arg1 : i32, i32
  }
  func.func @transform_3(%arg0: i32, %arg1: i32, %arg2: i32) -> (i32, i32) {
    %c0_i32 = arith.constant 0 : i32
    %c0_i32_0 = arith.constant 0 : i32
    return %c0_i32, %arg1 : i32, i32
  }
  func.func @transform_4(%arg0: i32, %arg1: i32, %arg2: i32) -> (i32, i32) {
    %c0_i32 = arith.constant 0 : i32
    return %arg0, %arg1 : i32, i32
  }
}

module attributes {stable_mosaic.version = 11 : i64} {
  func.func @_matmul_bn_kernel(%arg0: i32, %arg1: i32, %arg2: i32, %arg3: memref<8x128xbf16, #tpu.memory_space<vmem>>, %arg4: memref<128x256xbf16, #tpu.memory_space<vmem>>, %arg5: memref<1x256xf32, #tpu.memory_space<vmem>>, %arg6: memref<1x256xf32, #tpu.memory_space<vmem>>, %arg7: memref<8x256xf32, #tpu.memory_space<vmem>>) attributes {dimension_semantics = [#tpu.dimension_semantics<parallel>, #tpu.dimension_semantics<parallel>, #tpu.dimension_semantics<arbitrary>], iteration_bounds = array<i64: 1, 1, 9>, scalar_prefetch = 0 : i64, scratch_operands = 0 : i64, tpu.core_type = #tpu.core_type<tc>, window_params = [{transform_indices = @transform_0, window_bounds = array<i64: 8, 128>}, {transform_indices = @transform_1, window_bounds = array<i64: 128, 256>}, {transform_indices = @transform_2, window_bounds = array<i64: 1, 256>}, {transform_indices = @transform_3, window_bounds = array<i64: 1, 256>}, {transform_indices = @transform_4, window_bounds = array<i64: 8, 256>}]} {
    %c0_i32 = arith.constant 0 : i32
    %0 = arith.cmpi eq, %arg2, %c0_i32 : i32
    %1 = arith.extui %0 : i1 to i32
    %c0_i32_0 = arith.constant 0 : i32
    %2 = arith.cmpi ne, %1, %c0_i32_0 : i32
    scf.if %2 {
      %cst_9 = arith.constant 0.000000e+00 : f32
      %12 = vector.broadcast %cst_9 : f32 to vector<8x256xf32>
      %c0_10 = arith.constant 0 : index
      %c0_11 = arith.constant 0 : index
      %13 = vector.load %arg7[%c0_10, %c0_11] : memref<8x256xf32, #tpu.memory_space<vmem>>, vector<8x256xf32>
      tpu.vector_store %arg7[%c0_10, %c0_11], %12 {strides = array<i32>} : memref<8x256xf32, #tpu.memory_space<vmem>>, vector<8x256xf32>,
    } else {
    }
    %c0 = arith.constant 0 : index
    %c0_1 = arith.constant 0 : index
    %3 = vector.load %arg7[%c0, %c0_1] : memref<8x256xf32, #tpu.memory_space<vmem>>, vector<8x256xf32>
    %c0_2 = arith.constant 0 : index
    %c0_3 = arith.constant 0 : index
    %4 = vector.load %arg3[%c0_2, %c0_3] : memref<8x128xbf16, #tpu.memory_space<vmem>>, vector<8x128xbf16>
    %c0_4 = arith.constant 0 : index
    %c0_5 = arith.constant 0 : index
    %5 = vector.load %arg4[%c0_4, %c0_5] : memref<128x256xbf16, #tpu.memory_space<vmem>>, vector<128x256xbf16>
    %cst = arith.constant dense<0.000000e+00> : vector<8x256xf32>
    %6 = tpu.matmul %4, %5, %cst {dimension_numbers = #tpu.dot_dimension_numbers<[1], [0], [0], [1], [0, 0, 1, 1], [], []>} : vector<8x128xbf16>, vector<128x256xbf16>, vector<8x256xf32> -> vector<8x256xf32>
    %7 = arith.addf %3, %6 : vector<8x256xf32>
    %c0_6 = arith.constant 0 : index
    %c0_7 = arith.constant 0 : index
    %8 = vector.load %arg7[%c0_6, %c0_7] : memref<8x256xf32, #tpu.memory_space<vmem>>, vector<8x256xf32>
    tpu.vector_store %arg7[%c0_6, %c0_7], %7 {strides = array<i32>} : memref<8x256xf32, #tpu.memory_space<vmem>>, vector<8x256xf32>,
    %c8_i32 = arith.constant 8 : i32
    %9 = arith.cmpi eq, %arg2, %c8_i32 : i32
    %10 = arith.extui %9 : i1 to i32
    %c0_i32_8 = arith.constant 0 : i32
    %11 = arith.cmpi ne, %10, %c0_i32_8 : i32
    scf.if %11 {
      %c0_9 = arith.constant 0 : index
      %c0_10 = arith.constant 0 : index
      %12 = vector.load %arg7[%c0_9, %c0_10] : memref<8x256xf32, #tpu.memory_space<vmem>>, vector<8x256xf32>
      %c0_11 = arith.constant 0 : index
      %c0_12 = arith.constant 0 : index
      %13 = vector.load %arg5[%c0_11, %c0_12] : memref<1x256xf32, #tpu.memory_space<vmem>>, vector<1x256xf32>
      %14 = vector.broadcast %13 : vector<1x256xf32> to vector<8x256xf32>
      %15 = arith.mulf %12, %14 : vector<8x256xf32>
      %c0_13 = arith.constant 0 : index
      %c0_14 = arith.constant 0 : index
      %16 = vector.load %arg6[%c0_13, %c0_14] : memref<1x256xf32, #tpu.memory_space<vmem>>, vector<1x256xf32>
      %17 = vector.broadcast %16 : vector<1x256xf32> to vector<8x256xf32>
      %18 = arith.addf %15, %17 : vector<8x256xf32>
      %cst_15 = arith.constant 0.000000e+00 : f32
      %19 = vector.broadcast %cst_15 : f32 to vector<8x256xf32>
      %20 = arith.maximumf %18, %19 : vector<8x256xf32>
      %c0_16 = arith.constant 0 : index
      %c0_17 = arith.constant 0 : index
      %21 = vector.load %arg7[%c0_16, %c0_17] : memref<8x256xf32, #tpu.memory_space<vmem>>, vector<8x256xf32>
      tpu.vector_store %arg7[%c0_16, %c0_17], %20 {strides = array<i32>} : memref<8x256xf32, #tpu.memory_space<vmem>>, vector<8x256xf32>,
    } else {
    }
    return
  }
  func.func @transform_0(%arg0: i32, %arg1: i32, %arg2: i32) -> (i32, i32) {
    %c0_i32 = arith.constant 0 : i32
    return %arg0, %arg2 : i32, i32
  }
  func.func @transform_1(%arg0: i32, %arg1: i32, %arg2: i32) -> (i32, i32) {
    %c0_i32 = arith.constant 0 : i32
    return %arg2, %arg1 : i32, i32
  }
  func.func @transform_2(%arg0: i32, %arg1: i32, %arg2: i32) -> (i32, i32) {
    %c0_i32 = arith.constant 0 : i32
    %c0_i32_0 = arith.constant 0 : i32
    return %c0_i32, %arg1 : i32, i32
  }
  func.func @transform_3(%arg0: i32, %arg1: i32, %arg2: i32) -> (i32, i32) {
    %c0_i32 = arith.constant 0 : i32
    %c0_i32_0 = arith.constant 0 : i32
    return %c0_i32, %arg1 : i32, i32
  }
  func.func @transform_4(%arg0: i32, %arg1: i32, %arg2: i32) -> (i32, i32) {
    %c0_i32 = arith.constant 0 : i32
    return %arg0, %arg1 : i32, i32
  }
}

module attributes {stable_mosaic.version = 11 : i64} {
  func.func @_matmul_bn_kernel(%arg0: i32, %arg1: i32, %arg2: i32, %arg3: memref<8x256xbf16, #tpu.memory_space<vmem>>, %arg4: memref<256x256xbf16, #tpu.memory_space<vmem>>, %arg5: memref<1x256xf32, #tpu.memory_space<vmem>>, %arg6: memref<1x256xf32, #tpu.memory_space<vmem>>, %arg7: memref<8x256xf32, #tpu.memory_space<vmem>>) attributes {dimension_semantics = [#tpu.dimension_semantics<parallel>, #tpu.dimension_semantics<parallel>, #tpu.dimension_semantics<arbitrary>], iteration_bounds = array<i64: 1, 1, 9>, scalar_prefetch = 0 : i64, scratch_operands = 0 : i64, tpu.core_type = #tpu.core_type<tc>, window_params = [{transform_indices = @transform_0, window_bounds = array<i64: 8, 256>}, {transform_indices = @transform_1, window_bounds = array<i64: 256, 256>}, {transform_indices = @transform_2, window_bounds = array<i64: 1, 256>}, {transform_indices = @transform_3, window_bounds = array<i64: 1, 256>}, {transform_indices = @transform_4, window_bounds = array<i64: 8, 256>}]} {
    %c0_i32 = arith.constant 0 : i32
    %0 = arith.cmpi eq, %arg2, %c0_i32 : i32
    %1 = arith.extui %0 : i1 to i32
    %c0_i32_0 = arith.constant 0 : i32
    %2 = arith.cmpi ne, %1, %c0_i32_0 : i32
    scf.if %2 {
      %cst_9 = arith.constant 0.000000e+00 : f32
      %12 = vector.broadcast %cst_9 : f32 to vector<8x256xf32>
      %c0_10 = arith.constant 0 : index
      %c0_11 = arith.constant 0 : index
      %13 = vector.load %arg7[%c0_10, %c0_11] : memref<8x256xf32, #tpu.memory_space<vmem>>, vector<8x256xf32>
      tpu.vector_store %arg7[%c0_10, %c0_11], %12 {strides = array<i32>} : memref<8x256xf32, #tpu.memory_space<vmem>>, vector<8x256xf32>,
    } else {
    }
    %c0 = arith.constant 0 : index
    %c0_1 = arith.constant 0 : index
    %3 = vector.load %arg7[%c0, %c0_1] : memref<8x256xf32, #tpu.memory_space<vmem>>, vector<8x256xf32>
    %c0_2 = arith.constant 0 : index
    %c0_3 = arith.constant 0 : index
    %4 = vector.load %arg3[%c0_2, %c0_3] : memref<8x256xbf16, #tpu.memory_space<vmem>>, vector<8x256xbf16>
    %c0_4 = arith.constant 0 : index
    %c0_5 = arith.constant 0 : index
    %5 = vector.load %arg4[%c0_4, %c0_5] : memref<256x256xbf16, #tpu.memory_space<vmem>>, vector<256x256xbf16>
    %cst = arith.constant dense<0.000000e+00> : vector<8x256xf32>
    %6 = tpu.matmul %4, %5, %cst {dimension_numbers = #tpu.dot_dimension_numbers<[1], [0], [0], [1], [0, 0, 1, 1], [], []>} : vector<8x256xbf16>, vector<256x256xbf16>, vector<8x256xf32> -> vector<8x256xf32>
    %7 = arith.addf %3, %6 : vector<8x256xf32>
    %c0_6 = arith.constant 0 : index
    %c0_7 = arith.constant 0 : index
    %8 = vector.load %arg7[%c0_6, %c0_7] : memref<8x256xf32, #tpu.memory_space<vmem>>, vector<8x256xf32>
    tpu.vector_store %arg7[%c0_6, %c0_7], %7 {strides = array<i32>} : memref<8x256xf32, #tpu.memory_space<vmem>>, vector<8x256xf32>,
    %c8_i32 = arith.constant 8 : i32
    %9 = arith.cmpi eq, %arg2, %c8_i32 : i32
    %10 = arith.extui %9 : i1 to i32
    %c0_i32_8 = arith.constant 0 : i32
    %11 = arith.cmpi ne, %10, %c0_i32_8 : i32
    scf.if %11 {
      %c0_9 = arith.constant 0 : index
      %c0_10 = arith.constant 0 : index
      %12 = vector.load %arg7[%c0_9, %c0_10] : memref<8x256xf32, #tpu.memory_space<vmem>>, vector<8x256xf32>
      %c0_11 = arith.constant 0 : index
      %c0_12 = arith.constant 0 : index
      %13 = vector.load %arg5[%c0_11, %c0_12] : memref<1x256xf32, #tpu.memory_space<vmem>>, vector<1x256xf32>
      %14 = vector.broadcast %13 : vector<1x256xf32> to vector<8x256xf32>
      %15 = arith.mulf %12, %14 : vector<8x256xf32>
      %c0_13 = arith.constant 0 : index
      %c0_14 = arith.constant 0 : index
      %16 = vector.load %arg6[%c0_13, %c0_14] : memref<1x256xf32, #tpu.memory_space<vmem>>, vector<1x256xf32>
      %17 = vector.broadcast %16 : vector<1x256xf32> to vector<8x256xf32>
      %18 = arith.addf %15, %17 : vector<8x256xf32>
      %c0_15 = arith.constant 0 : index
      %c0_16 = arith.constant 0 : index
      %19 = vector.load %arg7[%c0_15, %c0_16] : memref<8x256xf32, #tpu.memory_space<vmem>>, vector<8x256xf32>
      tpu.vector_store %arg7[%c0_15, %c0_16], %18 {strides = array<i32>} : memref<8x256xf32, #tpu.memory_space<vmem>>, vector<8x256xf32>,
    } else {
    }
    return
  }
  func.func @transform_0(%arg0: i32, %arg1: i32, %arg2: i32) -> (i32, i32) {
    %c0_i32 = arith.constant 0 : i32
    return %arg0, %arg2 : i32, i32
  }
  func.func @transform_1(%arg0: i32, %arg1: i32, %arg2: i32) -> (i32, i32) {
    %c0_i32 = arith.constant 0 : i32
    return %arg2, %arg1 : i32, i32
  }
  func.func @transform_2(%arg0: i32, %arg1: i32, %arg2: i32) -> (i32, i32) {
    %c0_i32 = arith.constant 0 : i32
    %c0_i32_0 = arith.constant 0 : i32
    return %c0_i32, %arg1 : i32, i32
  }
  func.func @transform_3(%arg0: i32, %arg1: i32, %arg2: i32) -> (i32, i32) {
    %c0_i32 = arith.constant 0 : i32
    %c0_i32_0 = arith.constant 0 : i32
    return %c0_i32, %arg1 : i32, i32
  }
  func.func @transform_4(%arg0: i32, %arg1: i32, %arg2: i32) -> (i32, i32) {
    %c0_i32 = arith.constant 0 : i32
    return %arg0, %arg1 : i32, i32
  }
}

module attributes {stable_mosaic.version = 11 : i64} {
  func.func @_chgate_pool_kernel(%arg0: i32, %arg1: i32, %arg2: memref<1x8x256xf32, #tpu.memory_space<vmem>>, %arg3: memref<1x1x256xf32, #tpu.memory_space<vmem>>, %arg4: memref<1x8x256xf32, #tpu.memory_space<vmem>>, %arg5: memref<1x8x1xf32, #tpu.memory_space<vmem>>, %arg6: memref<1x8x1xf32, #tpu.memory_space<vmem>>) attributes {dimension_semantics = [#tpu.dimension_semantics<parallel>, #tpu.dimension_semantics<parallel>], iteration_bounds = array<i64: 2, 1>, scalar_prefetch = 0 : i64, scratch_operands = 0 : i64, tpu.core_type = #tpu.core_type<tc>, window_params = [{transform_indices = @transform_0, window_bounds = array<i64: 1, 8, 256>}, {transform_indices = @transform_1, window_bounds = array<i64: 1, 1, 256>}, {transform_indices = @transform_2, window_bounds = array<i64: 1, 8, 256>}, {transform_indices = @transform_3, window_bounds = array<i64: 1, 8, 1>}, {transform_indices = @transform_4, window_bounds = array<i64: 1, 8, 1>}]} {
    %c0 = arith.constant 0 : index
    %c0_0 = arith.constant 0 : index
    %c0_1 = arith.constant 0 : index
    %0 = vector.load %arg3[%c0, %c0_0, %c0_1] : memref<1x1x256xf32, #tpu.memory_space<vmem>>, vector<1x1x256xf32>
    %cst = arith.constant 0.000000e+00 : f32
    %1 = vector.broadcast %cst : f32 to vector<1x1x256xf32>
    %2 = arith.subf %1, %0 : vector<1x1x256xf32>
    %3 = math.exp %2 : vector<1x1x256xf32>
    %cst_2 = arith.constant 1.000000e+00 : f32
    %4 = vector.broadcast %cst_2 : f32 to vector<1x1x256xf32>
    %5 = arith.addf %4, %3 : vector<1x1x256xf32>
    %6 = tpu.reciprocal %5 {approx = true} : vector<1x1x256xf32> -> vector<1x1x256xf32>
    %c0_3 = arith.constant 0 : index
    %c0_4 = arith.constant 0 : index
    %c0_5 = arith.constant 0 : index
    %7 = vector.load %arg2[%c0_3, %c0_4, %c0_5] : memref<1x8x256xf32, #tpu.memory_space<vmem>>, vector<1x8x256xf32>
    %8 = vector.broadcast %6 : vector<1x1x256xf32> to vector<1x8x256xf32>
    %9 = arith.mulf %7, %8 : vector<1x8x256xf32>
    %c0_6 = arith.constant 0 : index
    %c0_7 = arith.constant 0 : index
    %c0_8 = arith.constant 0 : index
    %10 = vector.load %arg4[%c0_6, %c0_7, %c0_8] : memref<1x8x256xf32, #tpu.memory_space<vmem>>, vector<1x8x256xf32>
    tpu.vector_store %arg4[%c0_6, %c0_7, %c0_8], %9 {strides = array<i32>} : memref<1x8x256xf32, #tpu.memory_space<vmem>>, vector<1x8x256xf32>,
    %cst_9 = arith.constant dense<0xFF800000> : vector<1x8xf32>
    %11 = vector.multi_reduction <maximumf>, %9, %cst_9 [2] : vector<1x8x256xf32> to vector<1x8xf32>
    %12 = vector.shape_cast %11 : vector<1x8xf32> to vector<1x8x1xf32>
    %c0_10 = arith.constant 0 : index
    %c0_11 = arith.constant 0 : index
    %c0_12 = arith.constant 0 : index
    %13 = vector.load %arg5[%c0_10, %c0_11, %c0_12] : memref<1x8x1xf32, #tpu.memory_space<vmem>>, vector<1x8x1xf32>
    tpu.vector_store %arg5[%c0_10, %c0_11, %c0_12], %12 {strides = array<i32>} : memref<1x8x1xf32, #tpu.memory_space<vmem>>, vector<1x8x1xf32>,
    %cst_13 = arith.constant dense<0.000000e+00> : vector<1x8xf32>
    %14 = vector.multi_reduction <add>, %9, %cst_13 [2] : vector<1x8x256xf32> to vector<1x8xf32>
    %15 = vector.shape_cast %14 : vector<1x8xf32> to vector<1x8x1xf32>
    %cst_14 = arith.constant 2.560000e+02 : f32
    %16 = vector.broadcast %cst_14 : f32 to vector<1x8x1xf32>
    %17 = arith.divf %15, %16 : vector<1x8x1xf32>
    %c0_15 = arith.constant 0 : index
    %c0_16 = arith.constant 0 : index
    %c0_17 = arith.constant 0 : index
    %18 = vector.load %arg6[%c0_15, %c0_16, %c0_17] : memref<1x8x1xf32, #tpu.memory_space<vmem>>, vector<1x8x1xf32>
    tpu.vector_store %arg6[%c0_15, %c0_16, %c0_17], %17 {strides = array<i32>} : memref<1x8x1xf32, #tpu.memory_space<vmem>>, vector<1x8x1xf32>,
    return
  }
  func.func @transform_0(%arg0: i32, %arg1: i32) -> (i32, i32, i32) {
    %c0_i32 = arith.constant 0 : i32
    %c0_i32_0 = arith.constant 0 : i32
    return %arg0, %arg1, %c0_i32 : i32, i32, i32
  }
  func.func @transform_1(%arg0: i32, %arg1: i32) -> (i32, i32, i32) {
    %c0_i32 = arith.constant 0 : i32
    %c0_i32_0 = arith.constant 0 : i32
    %c0_i32_1 = arith.constant 0 : i32
    return %arg0, %c0_i32, %c0_i32_0 : i32, i32, i32
  }
  func.func @transform_2(%arg0: i32, %arg1: i32) -> (i32, i32, i32) {
    %c0_i32 = arith.constant 0 : i32
    %c0_i32_0 = arith.constant 0 : i32
    return %arg0, %arg1, %c0_i32 : i32, i32, i32
  }
  func.func @transform_3(%arg0: i32, %arg1: i32) -> (i32, i32, i32) {
    %c0_i32 = arith.constant 0 : i32
    %c0_i32_0 = arith.constant 0 : i32
    return %arg0, %arg1, %c0_i32 : i32, i32, i32
  }
  func.func @transform_4(%arg0: i32, %arg1: i32) -> (i32, i32, i32) {
    %c0_i32 = arith.constant 0 : i32
    %c0_i32_0 = arith.constant 0 : i32
    return %arg0, %arg1, %c0_i32 : i32, i32, i32
  }
}

module attributes {stable_mosaic.version = 11 : i64} {
  func.func @_spgate_add_relu_kernel(%arg0: i32, %arg1: i32, %arg2: memref<1x8x256xf32, #tpu.memory_space<vmem>>, %arg3: memref<1x8x1xf32, #tpu.memory_space<vmem>>, %arg4: memref<1x8x256xf32, #tpu.memory_space<vmem>>, %arg5: memref<1x8x256xf32, #tpu.memory_space<vmem>>) attributes {dimension_semantics = [#tpu.dimension_semantics<parallel>, #tpu.dimension_semantics<parallel>], iteration_bounds = array<i64: 2, 1>, scalar_prefetch = 0 : i64, scratch_operands = 0 : i64, tpu.core_type = #tpu.core_type<tc>, window_params = [{transform_indices = @transform_0, window_bounds = array<i64: 1, 8, 256>}, {transform_indices = @transform_1, window_bounds = array<i64: 1, 8, 1>}, {transform_indices = @transform_2, window_bounds = array<i64: 1, 8, 256>}, {transform_indices = @transform_3, window_bounds = array<i64: 1, 8, 256>}]} {
    %c0 = arith.constant 0 : index
    %c0_0 = arith.constant 0 : index
    %c0_1 = arith.constant 0 : index
    %0 = vector.load %arg3[%c0, %c0_0, %c0_1] : memref<1x8x1xf32, #tpu.memory_space<vmem>>, vector<1x8x1xf32>
    %cst = arith.constant 0.000000e+00 : f32
    %1 = vector.broadcast %cst : f32 to vector<1x8x1xf32>
    %2 = arith.subf %1, %0 : vector<1x8x1xf32>
    %3 = math.exp %2 : vector<1x8x1xf32>
    %cst_2 = arith.constant 1.000000e+00 : f32
    %4 = vector.broadcast %cst_2 : f32 to vector<1x8x1xf32>
    %5 = arith.addf %4, %3 : vector<1x8x1xf32>
    %6 = tpu.reciprocal %5 {approx = true} : vector<1x8x1xf32> -> vector<1x8x1xf32>
    %c0_3 = arith.constant 0 : index
    %c0_4 = arith.constant 0 : index
    %c0_5 = arith.constant 0 : index
    %7 = vector.load %arg2[%c0_3, %c0_4, %c0_5] : memref<1x8x256xf32, #tpu.memory_space<vmem>>, vector<1x8x256xf32>
    %8 = vector.broadcast %6 : vector<1x8x1xf32> to vector<1x8x256xf32>
    %9 = arith.mulf %7, %8 : vector<1x8x256xf32>
    %c0_6 = arith.constant 0 : index
    %c0_7 = arith.constant 0 : index
    %c0_8 = arith.constant 0 : index
    %10 = vector.load %arg4[%c0_6, %c0_7, %c0_8] : memref<1x8x256xf32, #tpu.memory_space<vmem>>, vector<1x8x256xf32>
    %11 = arith.addf %9, %10 : vector<1x8x256xf32>
    %cst_9 = arith.constant 0.000000e+00 : f32
    %12 = vector.broadcast %cst_9 : f32 to vector<1x8x256xf32>
    %13 = arith.maximumf %11, %12 : vector<1x8x256xf32>
    %c0_10 = arith.constant 0 : index
    %c0_11 = arith.constant 0 : index
    %c0_12 = arith.constant 0 : index
    %14 = vector.load %arg5[%c0_10, %c0_11, %c0_12] : memref<1x8x256xf32, #tpu.memory_space<vmem>>, vector<1x8x256xf32>
    tpu.vector_store %arg5[%c0_10, %c0_11, %c0_12], %13 {strides = array<i32>} : memref<1x8x256xf32, #tpu.memory_space<vmem>>, vector<1x8x256xf32>,
    return
  }
  func.func @transform_0(%arg0: i32, %arg1: i32) -> (i32, i32, i32) {
    %c0_i32 = arith.constant 0 : i32
    %c0_i32_0 = arith.constant 0 : i32
    return %arg0, %arg1, %c0_i32 : i32, i32, i32
  }
  func.func @transform_1(%arg0: i32, %arg1: i32) -> (i32, i32, i32) {
    %c0_i32 = arith.constant 0 : i32
    %c0_i32_0 = arith.constant 0 : i32
    return %arg0, %arg1, %c0_i32 : i32, i32, i32
  }
  func.func @transform_2(%arg0: i32, %arg1: i32) -> (i32, i32, i32) {
    %c0_i32 = arith.constant 0 : i32
    %c0_i32_0 = arith.constant 0 : i32
    return %arg0, %arg1, %c0_i32 : i32, i32, i32
  }
  func.func @transform_3(%arg0: i32, %arg1: i32) -> (i32, i32, i32) {
    %c0_i32 = arith.constant 0 : i32
    %c0_i32_0 = arith.constant 0 : i32
    return %arg0, %arg1, %c0_i32 : i32, i32, i32
  }
}

module attributes {stable_mosaic.version = 11 : i64} {
  func.func @_matmul_bn_kernel(%arg0: i32, %arg1: i32, %arg2: i32, %arg3: memref<8x128xbf16, #tpu.memory_space<vmem>>, %arg4: memref<128x256xbf16, #tpu.memory_space<vmem>>, %arg5: memref<1x256xf32, #tpu.memory_space<vmem>>, %arg6: memref<1x256xf32, #tpu.memory_space<vmem>>, %arg7: memref<8x256xf32, #tpu.memory_space<vmem>>) attributes {dimension_semantics = [#tpu.dimension_semantics<parallel>, #tpu.dimension_semantics<parallel>, #tpu.dimension_semantics<arbitrary>], iteration_bounds = array<i64: 1, 1, 1>, scalar_prefetch = 0 : i64, scratch_operands = 0 : i64, tpu.core_type = #tpu.core_type<tc>, window_params = [{transform_indices = @transform_0, window_bounds = array<i64: 8, 128>}, {transform_indices = @transform_1, window_bounds = array<i64: 128, 256>}, {transform_indices = @transform_2, window_bounds = array<i64: 1, 256>}, {transform_indices = @transform_3, window_bounds = array<i64: 1, 256>}, {transform_indices = @transform_4, window_bounds = array<i64: 8, 256>}]} {
    %c0_i32 = arith.constant 0 : i32
    %0 = arith.cmpi eq, %arg2, %c0_i32 : i32
    %1 = arith.extui %0 : i1 to i32
    %c0_i32_0 = arith.constant 0 : i32
    %2 = arith.cmpi ne, %1, %c0_i32_0 : i32
    scf.if %2 {
      %cst_10 = arith.constant 0.000000e+00 : f32
      %12 = vector.broadcast %cst_10 : f32 to vector<8x256xf32>
      %c0_11 = arith.constant 0 : index
      %c0_12 = arith.constant 0 : index
      %13 = vector.load %arg7[%c0_11, %c0_12] : memref<8x256xf32, #tpu.memory_space<vmem>>, vector<8x256xf32>
      tpu.vector_store %arg7[%c0_11, %c0_12], %12 {strides = array<i32>} : memref<8x256xf32, #tpu.memory_space<vmem>>, vector<8x256xf32>,
    } else {
    }
    %c0 = arith.constant 0 : index
    %c0_1 = arith.constant 0 : index
    %3 = vector.load %arg7[%c0, %c0_1] : memref<8x256xf32, #tpu.memory_space<vmem>>, vector<8x256xf32>
    %c0_2 = arith.constant 0 : index
    %c0_3 = arith.constant 0 : index
    %4 = vector.load %arg3[%c0_2, %c0_3] : memref<8x128xbf16, #tpu.memory_space<vmem>>, vector<8x128xbf16>
    %c0_4 = arith.constant 0 : index
    %c0_5 = arith.constant 0 : index
    %5 = vector.load %arg4[%c0_4, %c0_5] : memref<128x256xbf16, #tpu.memory_space<vmem>>, vector<128x256xbf16>
    %cst = arith.constant dense<0.000000e+00> : vector<8x256xf32>
    %6 = tpu.matmul %4, %5, %cst {dimension_numbers = #tpu.dot_dimension_numbers<[1], [0], [0], [1], [0, 0, 1, 1], [], []>} : vector<8x128xbf16>, vector<128x256xbf16>, vector<8x256xf32> -> vector<8x256xf32>
    %7 = arith.addf %3, %6 : vector<8x256xf32>
    %c0_6 = arith.constant 0 : index
    %c0_7 = arith.constant 0 : index
    %8 = vector.load %arg7[%c0_6, %c0_7] : memref<8x256xf32, #tpu.memory_space<vmem>>, vector<8x256xf32>
    tpu.vector_store %arg7[%c0_6, %c0_7], %7 {strides = array<i32>} : memref<8x256xf32, #tpu.memory_space<vmem>>, vector<8x256xf32>,
    %c0_i32_8 = arith.constant 0 : i32
    %9 = arith.cmpi eq, %arg2, %c0_i32_8 : i32
    %10 = arith.extui %9 : i1 to i32
    %c0_i32_9 = arith.constant 0 : i32
    %11 = arith.cmpi ne, %10, %c0_i32_9 : i32
    scf.if %11 {
      %c0_10 = arith.constant 0 : index
      %c0_11 = arith.constant 0 : index
      %12 = vector.load %arg7[%c0_10, %c0_11] : memref<8x256xf32, #tpu.memory_space<vmem>>, vector<8x256xf32>
      %c0_12 = arith.constant 0 : index
      %c0_13 = arith.constant 0 : index
      %13 = vector.load %arg5[%c0_12, %c0_13] : memref<1x256xf32, #tpu.memory_space<vmem>>, vector<1x256xf32>
      %14 = vector.broadcast %13 : vector<1x256xf32> to vector<8x256xf32>
      %15 = arith.mulf %12, %14 : vector<8x256xf32>
      %c0_14 = arith.constant 0 : index
      %c0_15 = arith.constant 0 : index
      %16 = vector.load %arg6[%c0_14, %c0_15] : memref<1x256xf32, #tpu.memory_space<vmem>>, vector<1x256xf32>
      %17 = vector.broadcast %16 : vector<1x256xf32> to vector<8x256xf32>
      %18 = arith.addf %15, %17 : vector<8x256xf32>
      %c0_16 = arith.constant 0 : index
      %c0_17 = arith.constant 0 : index
      %19 = vector.load %arg7[%c0_16, %c0_17] : memref<8x256xf32, #tpu.memory_space<vmem>>, vector<8x256xf32>
      tpu.vector_store %arg7[%c0_16, %c0_17], %18 {strides = array<i32>} : memref<8x256xf32, #tpu.memory_space<vmem>>, vector<8x256xf32>,
    } else {
    }
    return
  }
  func.func @transform_0(%arg0: i32, %arg1: i32, %arg2: i32) -> (i32, i32) {
    %c0_i32 = arith.constant 0 : i32
    return %arg0, %arg2 : i32, i32
  }
  func.func @transform_1(%arg0: i32, %arg1: i32, %arg2: i32) -> (i32, i32) {
    %c0_i32 = arith.constant 0 : i32
    return %arg2, %arg1 : i32, i32
  }
  func.func @transform_2(%arg0: i32, %arg1: i32, %arg2: i32) -> (i32, i32) {
    %c0_i32 = arith.constant 0 : i32
    %c0_i32_0 = arith.constant 0 : i32
    return %c0_i32, %arg1 : i32, i32
  }
  func.func @transform_3(%arg0: i32, %arg1: i32, %arg2: i32) -> (i32, i32) {
    %c0_i32 = arith.constant 0 : i32
    %c0_i32_0 = arith.constant 0 : i32
    return %c0_i32, %arg1 : i32, i32
  }
  func.func @transform_4(%arg0: i32, %arg1: i32, %arg2: i32) -> (i32, i32) {
    %c0_i32 = arith.constant 0 : i32
    return %arg0, %arg1 : i32, i32
  }
}

module attributes {stable_mosaic.version = 11 : i64} {
  func.func @_matmul_bn_kernel(%arg0: i32, %arg1: i32, %arg2: i32, %arg3: memref<8x256xbf16, #tpu.memory_space<vmem>>, %arg4: memref<256x256xbf16, #tpu.memory_space<vmem>>, %arg5: memref<1x256xf32, #tpu.memory_space<vmem>>, %arg6: memref<1x256xf32, #tpu.memory_space<vmem>>, %arg7: memref<8x256xf32, #tpu.memory_space<vmem>>) attributes {dimension_semantics = [#tpu.dimension_semantics<parallel>, #tpu.dimension_semantics<parallel>, #tpu.dimension_semantics<arbitrary>], iteration_bounds = array<i64: 1, 2, 9>, scalar_prefetch = 0 : i64, scratch_operands = 0 : i64, tpu.core_type = #tpu.core_type<tc>, window_params = [{transform_indices = @transform_0, window_bounds = array<i64: 8, 256>}, {transform_indices = @transform_1, window_bounds = array<i64: 256, 256>}, {transform_indices = @transform_2, window_bounds = array<i64: 1, 256>}, {transform_indices = @transform_3, window_bounds = array<i64: 1, 256>}, {transform_indices = @transform_4, window_bounds = array<i64: 8, 256>}]} {
    %c0_i32 = arith.constant 0 : i32
    %0 = arith.cmpi eq, %arg2, %c0_i32 : i32
    %1 = arith.extui %0 : i1 to i32
    %c0_i32_0 = arith.constant 0 : i32
    %2 = arith.cmpi ne, %1, %c0_i32_0 : i32
    scf.if %2 {
      %cst_9 = arith.constant 0.000000e+00 : f32
      %12 = vector.broadcast %cst_9 : f32 to vector<8x256xf32>
      %c0_10 = arith.constant 0 : index
      %c0_11 = arith.constant 0 : index
      %13 = vector.load %arg7[%c0_10, %c0_11] : memref<8x256xf32, #tpu.memory_space<vmem>>, vector<8x256xf32>
      tpu.vector_store %arg7[%c0_10, %c0_11], %12 {strides = array<i32>} : memref<8x256xf32, #tpu.memory_space<vmem>>, vector<8x256xf32>,
    } else {
    }
    %c0 = arith.constant 0 : index
    %c0_1 = arith.constant 0 : index
    %3 = vector.load %arg7[%c0, %c0_1] : memref<8x256xf32, #tpu.memory_space<vmem>>, vector<8x256xf32>
    %c0_2 = arith.constant 0 : index
    %c0_3 = arith.constant 0 : index
    %4 = vector.load %arg3[%c0_2, %c0_3] : memref<8x256xbf16, #tpu.memory_space<vmem>>, vector<8x256xbf16>
    %c0_4 = arith.constant 0 : index
    %c0_5 = arith.constant 0 : index
    %5 = vector.load %arg4[%c0_4, %c0_5] : memref<256x256xbf16, #tpu.memory_space<vmem>>, vector<256x256xbf16>
    %cst = arith.constant dense<0.000000e+00> : vector<8x256xf32>
    %6 = tpu.matmul %4, %5, %cst {dimension_numbers = #tpu.dot_dimension_numbers<[1], [0], [0], [1], [0, 0, 1, 1], [], []>} : vector<8x256xbf16>, vector<256x256xbf16>, vector<8x256xf32> -> vector<8x256xf32>
    %7 = arith.addf %3, %6 : vector<8x256xf32>
    %c0_6 = arith.constant 0 : index
    %c0_7 = arith.constant 0 : index
    %8 = vector.load %arg7[%c0_6, %c0_7] : memref<8x256xf32, #tpu.memory_space<vmem>>, vector<8x256xf32>
    tpu.vector_store %arg7[%c0_6, %c0_7], %7 {strides = array<i32>} : memref<8x256xf32, #tpu.memory_space<vmem>>, vector<8x256xf32>,
    %c8_i32 = arith.constant 8 : i32
    %9 = arith.cmpi eq, %arg2, %c8_i32 : i32
    %10 = arith.extui %9 : i1 to i32
    %c0_i32_8 = arith.constant 0 : i32
    %11 = arith.cmpi ne, %10, %c0_i32_8 : i32
    scf.if %11 {
      %c0_9 = arith.constant 0 : index
      %c0_10 = arith.constant 0 : index
      %12 = vector.load %arg7[%c0_9, %c0_10] : memref<8x256xf32, #tpu.memory_space<vmem>>, vector<8x256xf32>
      %c0_11 = arith.constant 0 : index
      %c0_12 = arith.constant 0 : index
      %13 = vector.load %arg5[%c0_11, %c0_12] : memref<1x256xf32, #tpu.memory_space<vmem>>, vector<1x256xf32>
      %14 = vector.broadcast %13 : vector<1x256xf32> to vector<8x256xf32>
      %15 = arith.mulf %12, %14 : vector<8x256xf32>
      %c0_13 = arith.constant 0 : index
      %c0_14 = arith.constant 0 : index
      %16 = vector.load %arg6[%c0_13, %c0_14] : memref<1x256xf32, #tpu.memory_space<vmem>>, vector<1x256xf32>
      %17 = vector.broadcast %16 : vector<1x256xf32> to vector<8x256xf32>
      %18 = arith.addf %15, %17 : vector<8x256xf32>
      %cst_15 = arith.constant 0.000000e+00 : f32
      %19 = vector.broadcast %cst_15 : f32 to vector<8x256xf32>
      %20 = arith.maximumf %18, %19 : vector<8x256xf32>
      %c0_16 = arith.constant 0 : index
      %c0_17 = arith.constant 0 : index
      %21 = vector.load %arg7[%c0_16, %c0_17] : memref<8x256xf32, #tpu.memory_space<vmem>>, vector<8x256xf32>
      tpu.vector_store %arg7[%c0_16, %c0_17], %20 {strides = array<i32>} : memref<8x256xf32, #tpu.memory_space<vmem>>, vector<8x256xf32>,
    } else {
    }
    return
  }
  func.func @transform_0(%arg0: i32, %arg1: i32, %arg2: i32) -> (i32, i32) {
    %c0_i32 = arith.constant 0 : i32
    return %arg0, %arg2 : i32, i32
  }
  func.func @transform_1(%arg0: i32, %arg1: i32, %arg2: i32) -> (i32, i32) {
    %c0_i32 = arith.constant 0 : i32
    return %arg2, %arg1 : i32, i32
  }
  func.func @transform_2(%arg0: i32, %arg1: i32, %arg2: i32) -> (i32, i32) {
    %c0_i32 = arith.constant 0 : i32
    %c0_i32_0 = arith.constant 0 : i32
    return %c0_i32, %arg1 : i32, i32
  }
  func.func @transform_3(%arg0: i32, %arg1: i32, %arg2: i32) -> (i32, i32) {
    %c0_i32 = arith.constant 0 : i32
    %c0_i32_0 = arith.constant 0 : i32
    return %c0_i32, %arg1 : i32, i32
  }
  func.func @transform_4(%arg0: i32, %arg1: i32, %arg2: i32) -> (i32, i32) {
    %c0_i32 = arith.constant 0 : i32
    return %arg0, %arg1 : i32, i32
  }
}

module attributes {stable_mosaic.version = 11 : i64} {
  func.func @_matmul_bn_kernel(%arg0: i32, %arg1: i32, %arg2: i32, %arg3: memref<8x256xbf16, #tpu.memory_space<vmem>>, %arg4: memref<256x256xbf16, #tpu.memory_space<vmem>>, %arg5: memref<1x256xf32, #tpu.memory_space<vmem>>, %arg6: memref<1x256xf32, #tpu.memory_space<vmem>>, %arg7: memref<8x256xf32, #tpu.memory_space<vmem>>) attributes {dimension_semantics = [#tpu.dimension_semantics<parallel>, #tpu.dimension_semantics<parallel>, #tpu.dimension_semantics<arbitrary>], iteration_bounds = array<i64: 1, 2, 18>, scalar_prefetch = 0 : i64, scratch_operands = 0 : i64, tpu.core_type = #tpu.core_type<tc>, window_params = [{transform_indices = @transform_0, window_bounds = array<i64: 8, 256>}, {transform_indices = @transform_1, window_bounds = array<i64: 256, 256>}, {transform_indices = @transform_2, window_bounds = array<i64: 1, 256>}, {transform_indices = @transform_3, window_bounds = array<i64: 1, 256>}, {transform_indices = @transform_4, window_bounds = array<i64: 8, 256>}]} {
    %c0_i32 = arith.constant 0 : i32
    %0 = arith.cmpi eq, %arg2, %c0_i32 : i32
    %1 = arith.extui %0 : i1 to i32
    %c0_i32_0 = arith.constant 0 : i32
    %2 = arith.cmpi ne, %1, %c0_i32_0 : i32
    scf.if %2 {
      %cst_9 = arith.constant 0.000000e+00 : f32
      %12 = vector.broadcast %cst_9 : f32 to vector<8x256xf32>
      %c0_10 = arith.constant 0 : index
      %c0_11 = arith.constant 0 : index
      %13 = vector.load %arg7[%c0_10, %c0_11] : memref<8x256xf32, #tpu.memory_space<vmem>>, vector<8x256xf32>
      tpu.vector_store %arg7[%c0_10, %c0_11], %12 {strides = array<i32>} : memref<8x256xf32, #tpu.memory_space<vmem>>, vector<8x256xf32>,
    } else {
    }
    %c0 = arith.constant 0 : index
    %c0_1 = arith.constant 0 : index
    %3 = vector.load %arg7[%c0, %c0_1] : memref<8x256xf32, #tpu.memory_space<vmem>>, vector<8x256xf32>
    %c0_2 = arith.constant 0 : index
    %c0_3 = arith.constant 0 : index
    %4 = vector.load %arg3[%c0_2, %c0_3] : memref<8x256xbf16, #tpu.memory_space<vmem>>, vector<8x256xbf16>
    %c0_4 = arith.constant 0 : index
    %c0_5 = arith.constant 0 : index
    %5 = vector.load %arg4[%c0_4, %c0_5] : memref<256x256xbf16, #tpu.memory_space<vmem>>, vector<256x256xbf16>
    %cst = arith.constant dense<0.000000e+00> : vector<8x256xf32>
    %6 = tpu.matmul %4, %5, %cst {dimension_numbers = #tpu.dot_dimension_numbers<[1], [0], [0], [1], [0, 0, 1, 1], [], []>} : vector<8x256xbf16>, vector<256x256xbf16>, vector<8x256xf32> -> vector<8x256xf32>
    %7 = arith.addf %3, %6 : vector<8x256xf32>
    %c0_6 = arith.constant 0 : index
    %c0_7 = arith.constant 0 : index
    %8 = vector.load %arg7[%c0_6, %c0_7] : memref<8x256xf32, #tpu.memory_space<vmem>>, vector<8x256xf32>
    tpu.vector_store %arg7[%c0_6, %c0_7], %7 {strides = array<i32>} : memref<8x256xf32, #tpu.memory_space<vmem>>, vector<8x256xf32>,
    %c17_i32 = arith.constant 17 : i32
    %9 = arith.cmpi eq, %arg2, %c17_i32 : i32
    %10 = arith.extui %9 : i1 to i32
    %c0_i32_8 = arith.constant 0 : i32
    %11 = arith.cmpi ne, %10, %c0_i32_8 : i32
    scf.if %11 {
      %c0_9 = arith.constant 0 : index
      %c0_10 = arith.constant 0 : index
      %12 = vector.load %arg7[%c0_9, %c0_10] : memref<8x256xf32, #tpu.memory_space<vmem>>, vector<8x256xf32>
      %c0_11 = arith.constant 0 : index
      %c0_12 = arith.constant 0 : index
      %13 = vector.load %arg5[%c0_11, %c0_12] : memref<1x256xf32, #tpu.memory_space<vmem>>, vector<1x256xf32>
      %14 = vector.broadcast %13 : vector<1x256xf32> to vector<8x256xf32>
      %15 = arith.mulf %12, %14 : vector<8x256xf32>
      %c0_13 = arith.constant 0 : index
      %c0_14 = arith.constant 0 : index
      %16 = vector.load %arg6[%c0_13, %c0_14] : memref<1x256xf32, #tpu.memory_space<vmem>>, vector<1x256xf32>
      %17 = vector.broadcast %16 : vector<1x256xf32> to vector<8x256xf32>
      %18 = arith.addf %15, %17 : vector<8x256xf32>
      %c0_15 = arith.constant 0 : index
      %c0_16 = arith.constant 0 : index
      %19 = vector.load %arg7[%c0_15, %c0_16] : memref<8x256xf32, #tpu.memory_space<vmem>>, vector<8x256xf32>
      tpu.vector_store %arg7[%c0_15, %c0_16], %18 {strides = array<i32>} : memref<8x256xf32, #tpu.memory_space<vmem>>, vector<8x256xf32>,
    } else {
    }
    return
  }
  func.func @transform_0(%arg0: i32, %arg1: i32, %arg2: i32) -> (i32, i32) {
    %c0_i32 = arith.constant 0 : i32
    return %arg0, %arg2 : i32, i32
  }
  func.func @transform_1(%arg0: i32, %arg1: i32, %arg2: i32) -> (i32, i32) {
    %c0_i32 = arith.constant 0 : i32
    return %arg2, %arg1 : i32, i32
  }
  func.func @transform_2(%arg0: i32, %arg1: i32, %arg2: i32) -> (i32, i32) {
    %c0_i32 = arith.constant 0 : i32
    %c0_i32_0 = arith.constant 0 : i32
    return %c0_i32, %arg1 : i32, i32
  }
  func.func @transform_3(%arg0: i32, %arg1: i32, %arg2: i32) -> (i32, i32) {
    %c0_i32 = arith.constant 0 : i32
    %c0_i32_0 = arith.constant 0 : i32
    return %c0_i32, %arg1 : i32, i32
  }
  func.func @transform_4(%arg0: i32, %arg1: i32, %arg2: i32) -> (i32, i32) {
    %c0_i32 = arith.constant 0 : i32
    return %arg0, %arg1 : i32, i32
  }
}

module attributes {stable_mosaic.version = 11 : i64} {
  func.func @_chgate_pool_kernel(%arg0: i32, %arg1: i32, %arg2: memref<1x8x512xf32, #tpu.memory_space<vmem>>, %arg3: memref<1x1x512xf32, #tpu.memory_space<vmem>>, %arg4: memref<1x8x512xf32, #tpu.memory_space<vmem>>, %arg5: memref<1x8x1xf32, #tpu.memory_space<vmem>>, %arg6: memref<1x8x1xf32, #tpu.memory_space<vmem>>) attributes {dimension_semantics = [#tpu.dimension_semantics<parallel>, #tpu.dimension_semantics<parallel>], iteration_bounds = array<i64: 2, 1>, scalar_prefetch = 0 : i64, scratch_operands = 0 : i64, tpu.core_type = #tpu.core_type<tc>, window_params = [{transform_indices = @transform_0, window_bounds = array<i64: 1, 8, 512>}, {transform_indices = @transform_1, window_bounds = array<i64: 1, 1, 512>}, {transform_indices = @transform_2, window_bounds = array<i64: 1, 8, 512>}, {transform_indices = @transform_3, window_bounds = array<i64: 1, 8, 1>}, {transform_indices = @transform_4, window_bounds = array<i64: 1, 8, 1>}]} {
    %c0 = arith.constant 0 : index
    %c0_0 = arith.constant 0 : index
    %c0_1 = arith.constant 0 : index
    %0 = vector.load %arg3[%c0, %c0_0, %c0_1] : memref<1x1x512xf32, #tpu.memory_space<vmem>>, vector<1x1x512xf32>
    %cst = arith.constant 0.000000e+00 : f32
    %1 = vector.broadcast %cst : f32 to vector<1x1x512xf32>
    %2 = arith.subf %1, %0 : vector<1x1x512xf32>
    %3 = math.exp %2 : vector<1x1x512xf32>
    %cst_2 = arith.constant 1.000000e+00 : f32
    %4 = vector.broadcast %cst_2 : f32 to vector<1x1x512xf32>
    %5 = arith.addf %4, %3 : vector<1x1x512xf32>
    %6 = tpu.reciprocal %5 {approx = true} : vector<1x1x512xf32> -> vector<1x1x512xf32>
    %c0_3 = arith.constant 0 : index
    %c0_4 = arith.constant 0 : index
    %c0_5 = arith.constant 0 : index
    %7 = vector.load %arg2[%c0_3, %c0_4, %c0_5] : memref<1x8x512xf32, #tpu.memory_space<vmem>>, vector<1x8x512xf32>
    %8 = vector.broadcast %6 : vector<1x1x512xf32> to vector<1x8x512xf32>
    %9 = arith.mulf %7, %8 : vector<1x8x512xf32>
    %c0_6 = arith.constant 0 : index
    %c0_7 = arith.constant 0 : index
    %c0_8 = arith.constant 0 : index
    %10 = vector.load %arg4[%c0_6, %c0_7, %c0_8] : memref<1x8x512xf32, #tpu.memory_space<vmem>>, vector<1x8x512xf32>
    tpu.vector_store %arg4[%c0_6, %c0_7, %c0_8], %9 {strides = array<i32>} : memref<1x8x512xf32, #tpu.memory_space<vmem>>, vector<1x8x512xf32>,
    %cst_9 = arith.constant dense<0xFF800000> : vector<1x8xf32>
    %11 = vector.multi_reduction <maximumf>, %9, %cst_9 [2] : vector<1x8x512xf32> to vector<1x8xf32>
    %12 = vector.shape_cast %11 : vector<1x8xf32> to vector<1x8x1xf32>
    %c0_10 = arith.constant 0 : index
    %c0_11 = arith.constant 0 : index
    %c0_12 = arith.constant 0 : index
    %13 = vector.load %arg5[%c0_10, %c0_11, %c0_12] : memref<1x8x1xf32, #tpu.memory_space<vmem>>, vector<1x8x1xf32>
    tpu.vector_store %arg5[%c0_10, %c0_11, %c0_12], %12 {strides = array<i32>} : memref<1x8x1xf32, #tpu.memory_space<vmem>>, vector<1x8x1xf32>,
    %cst_13 = arith.constant dense<0.000000e+00> : vector<1x8xf32>
    %14 = vector.multi_reduction <add>, %9, %cst_13 [2] : vector<1x8x512xf32> to vector<1x8xf32>
    %15 = vector.shape_cast %14 : vector<1x8xf32> to vector<1x8x1xf32>
    %cst_14 = arith.constant 5.120000e+02 : f32
    %16 = vector.broadcast %cst_14 : f32 to vector<1x8x1xf32>
    %17 = arith.divf %15, %16 : vector<1x8x1xf32>
    %c0_15 = arith.constant 0 : index
    %c0_16 = arith.constant 0 : index
    %c0_17 = arith.constant 0 : index
    %18 = vector.load %arg6[%c0_15, %c0_16, %c0_17] : memref<1x8x1xf32, #tpu.memory_space<vmem>>, vector<1x8x1xf32>
    tpu.vector_store %arg6[%c0_15, %c0_16, %c0_17], %17 {strides = array<i32>} : memref<1x8x1xf32, #tpu.memory_space<vmem>>, vector<1x8x1xf32>,
    return
  }
  func.func @transform_0(%arg0: i32, %arg1: i32) -> (i32, i32, i32) {
    %c0_i32 = arith.constant 0 : i32
    %c0_i32_0 = arith.constant 0 : i32
    return %arg0, %arg1, %c0_i32 : i32, i32, i32
  }
  func.func @transform_1(%arg0: i32, %arg1: i32) -> (i32, i32, i32) {
    %c0_i32 = arith.constant 0 : i32
    %c0_i32_0 = arith.constant 0 : i32
    %c0_i32_1 = arith.constant 0 : i32
    return %arg0, %c0_i32, %c0_i32_0 : i32, i32, i32
  }
  func.func @transform_2(%arg0: i32, %arg1: i32) -> (i32, i32, i32) {
    %c0_i32 = arith.constant 0 : i32
    %c0_i32_0 = arith.constant 0 : i32
    return %arg0, %arg1, %c0_i32 : i32, i32, i32
  }
  func.func @transform_3(%arg0: i32, %arg1: i32) -> (i32, i32, i32) {
    %c0_i32 = arith.constant 0 : i32
    %c0_i32_0 = arith.constant 0 : i32
    return %arg0, %arg1, %c0_i32 : i32, i32, i32
  }
  func.func @transform_4(%arg0: i32, %arg1: i32) -> (i32, i32, i32) {
    %c0_i32 = arith.constant 0 : i32
    %c0_i32_0 = arith.constant 0 : i32
    return %arg0, %arg1, %c0_i32 : i32, i32, i32
  }
}

module attributes {stable_mosaic.version = 11 : i64} {
  func.func @_matmul_bn_kernel(%arg0: i32, %arg1: i32, %arg2: i32, %arg3: memref<8x256xbf16, #tpu.memory_space<vmem>>, %arg4: memref<256x256xbf16, #tpu.memory_space<vmem>>, %arg5: memref<1x256xf32, #tpu.memory_space<vmem>>, %arg6: memref<1x256xf32, #tpu.memory_space<vmem>>, %arg7: memref<8x256xf32, #tpu.memory_space<vmem>>) attributes {dimension_semantics = [#tpu.dimension_semantics<parallel>, #tpu.dimension_semantics<parallel>, #tpu.dimension_semantics<arbitrary>], iteration_bounds = array<i64: 1, 2, 1>, scalar_prefetch = 0 : i64, scratch_operands = 0 : i64, tpu.core_type = #tpu.core_type<tc>, window_params = [{transform_indices = @transform_0, window_bounds = array<i64: 8, 256>}, {transform_indices = @transform_1, window_bounds = array<i64: 256, 256>}, {transform_indices = @transform_2, window_bounds = array<i64: 1, 256>}, {transform_indices = @transform_3, window_bounds = array<i64: 1, 256>}, {transform_indices = @transform_4, window_bounds = array<i64: 8, 256>}]} {
    %c0_i32 = arith.constant 0 : i32
    %0 = arith.cmpi eq, %arg2, %c0_i32 : i32
    %1 = arith.extui %0 : i1 to i32
    %c0_i32_0 = arith.constant 0 : i32
    %2 = arith.cmpi ne, %1, %c0_i32_0 : i32
    scf.if %2 {
      %cst_10 = arith.constant 0.000000e+00 : f32
      %12 = vector.broadcast %cst_10 : f32 to vector<8x256xf32>
      %c0_11 = arith.constant 0 : index
      %c0_12 = arith.constant 0 : index
      %13 = vector.load %arg7[%c0_11, %c0_12] : memref<8x256xf32, #tpu.memory_space<vmem>>, vector<8x256xf32>
      tpu.vector_store %arg7[%c0_11, %c0_12], %12 {strides = array<i32>} : memref<8x256xf32, #tpu.memory_space<vmem>>, vector<8x256xf32>,
    } else {
    }
    %c0 = arith.constant 0 : index
    %c0_1 = arith.constant 0 : index
    %3 = vector.load %arg7[%c0, %c0_1] : memref<8x256xf32, #tpu.memory_space<vmem>>, vector<8x256xf32>
    %c0_2 = arith.constant 0 : index
    %c0_3 = arith.constant 0 : index
    %4 = vector.load %arg3[%c0_2, %c0_3] : memref<8x256xbf16, #tpu.memory_space<vmem>>, vector<8x256xbf16>
    %c0_4 = arith.constant 0 : index
    %c0_5 = arith.constant 0 : index
    %5 = vector.load %arg4[%c0_4, %c0_5] : memref<256x256xbf16, #tpu.memory_space<vmem>>, vector<256x256xbf16>
    %cst = arith.constant dense<0.000000e+00> : vector<8x256xf32>
    %6 = tpu.matmul %4, %5, %cst {dimension_numbers = #tpu.dot_dimension_numbers<[1], [0], [0], [1], [0, 0, 1, 1], [], []>} : vector<8x256xbf16>, vector<256x256xbf16>, vector<8x256xf32> -> vector<8x256xf32>
    %7 = arith.addf %3, %6 : vector<8x256xf32>
    %c0_6 = arith.constant 0 : index
    %c0_7 = arith.constant 0 : index
    %8 = vector.load %arg7[%c0_6, %c0_7] : memref<8x256xf32, #tpu.memory_space<vmem>>, vector<8x256xf32>
    tpu.vector_store %arg7[%c0_6, %c0_7], %7 {strides = array<i32>} : memref<8x256xf32, #tpu.memory_space<vmem>>, vector<8x256xf32>,
    %c0_i32_8 = arith.constant 0 : i32
    %9 = arith.cmpi eq, %arg2, %c0_i32_8 : i32
    %10 = arith.extui %9 : i1 to i32
    %c0_i32_9 = arith.constant 0 : i32
    %11 = arith.cmpi ne, %10, %c0_i32_9 : i32
    scf.if %11 {
      %c0_10 = arith.constant 0 : index
      %c0_11 = arith.constant 0 : index
      %12 = vector.load %arg7[%c0_10, %c0_11] : memref<8x256xf32, #tpu.memory_space<vmem>>, vector<8x256xf32>
      %c0_12 = arith.constant 0 : index
      %c0_13 = arith.constant 0 : index
      %13 = vector.load %arg5[%c0_12, %c0_13] : memref<1x256xf32, #tpu.memory_space<vmem>>, vector<1x256xf32>
      %14 = vector.broadcast %13 : vector<1x256xf32> to vector<8x256xf32>
      %15 = arith.mulf %12, %14 : vector<8x256xf32>
      %c0_14 = arith.constant 0 : index
      %c0_15 = arith.constant 0 : index
      %16 = vector.load %arg6[%c0_14, %c0_15] : memref<1x256xf32, #tpu.memory_space<vmem>>, vector<1x256xf32>
      %17 = vector.broadcast %16 : vector<1x256xf32> to vector<8x256xf32>
      %18 = arith.addf %15, %17 : vector<8x256xf32>
      %c0_16 = arith.constant 0 : index
      %c0_17 = arith.constant 0 : index
      %19 = vector.load %arg7[%c0_16, %c0_17] : memref<8x256xf32, #tpu.memory_space<vmem>>, vector<8x256xf32>
      tpu.vector_store %arg7[%c0_16, %c0_17], %18 {strides = array<i32>} : memref<8x256xf32, #tpu.memory_space<vmem>>, vector<8x256xf32>,
    } else {
    }
    return
  }
  func.func @transform_0(%arg0: i32, %arg1: i32, %arg2: i32) -> (i32, i32) {
    %c0_i32 = arith.constant 0 : i32
    return %arg0, %arg2 : i32, i32
  }
  func.func @transform_1(%arg0: i32, %arg1: i32, %arg2: i32) -> (i32, i32) {
    %c0_i32 = arith.constant 0 : i32
    return %arg2, %arg1 : i32, i32
  }
  func.func @transform_2(%arg0: i32, %arg1: i32, %arg2: i32) -> (i32, i32) {
    %c0_i32 = arith.constant 0 : i32
    %c0_i32_0 = arith.constant 0 : i32
    return %c0_i32, %arg1 : i32, i32
  }
  func.func @transform_3(%arg0: i32, %arg1: i32, %arg2: i32) -> (i32, i32) {
    %c0_i32 = arith.constant 0 : i32
    %c0_i32_0 = arith.constant 0 : i32
    return %c0_i32, %arg1 : i32, i32
  }
  func.func @transform_4(%arg0: i32, %arg1: i32, %arg2: i32) -> (i32, i32) {
    %c0_i32 = arith.constant 0 : i32
    return %arg0, %arg1 : i32, i32
  }
}

module attributes {stable_mosaic.version = 11 : i64} {
  func.func @_spgate_add_relu_kernel(%arg0: i32, %arg1: i32, %arg2: memref<1x8x512xf32, #tpu.memory_space<vmem>>, %arg3: memref<1x8x1xf32, #tpu.memory_space<vmem>>, %arg4: memref<1x8x512xf32, #tpu.memory_space<vmem>>, %arg5: memref<1x8x512xf32, #tpu.memory_space<vmem>>) attributes {dimension_semantics = [#tpu.dimension_semantics<parallel>, #tpu.dimension_semantics<parallel>], iteration_bounds = array<i64: 2, 1>, scalar_prefetch = 0 : i64, scratch_operands = 0 : i64, tpu.core_type = #tpu.core_type<tc>, window_params = [{transform_indices = @transform_0, window_bounds = array<i64: 1, 8, 512>}, {transform_indices = @transform_1, window_bounds = array<i64: 1, 8, 1>}, {transform_indices = @transform_2, window_bounds = array<i64: 1, 8, 512>}, {transform_indices = @transform_3, window_bounds = array<i64: 1, 8, 512>}]} {
    %c0 = arith.constant 0 : index
    %c0_0 = arith.constant 0 : index
    %c0_1 = arith.constant 0 : index
    %0 = vector.load %arg3[%c0, %c0_0, %c0_1] : memref<1x8x1xf32, #tpu.memory_space<vmem>>, vector<1x8x1xf32>
    %cst = arith.constant 0.000000e+00 : f32
    %1 = vector.broadcast %cst : f32 to vector<1x8x1xf32>
    %2 = arith.subf %1, %0 : vector<1x8x1xf32>
    %3 = math.exp %2 : vector<1x8x1xf32>
    %cst_2 = arith.constant 1.000000e+00 : f32
    %4 = vector.broadcast %cst_2 : f32 to vector<1x8x1xf32>
    %5 = arith.addf %4, %3 : vector<1x8x1xf32>
    %6 = tpu.reciprocal %5 {approx = true} : vector<1x8x1xf32> -> vector<1x8x1xf32>
    %c0_3 = arith.constant 0 : index
    %c0_4 = arith.constant 0 : index
    %c0_5 = arith.constant 0 : index
    %7 = vector.load %arg2[%c0_3, %c0_4, %c0_5] : memref<1x8x512xf32, #tpu.memory_space<vmem>>, vector<1x8x512xf32>
    %8 = vector.broadcast %6 : vector<1x8x1xf32> to vector<1x8x512xf32>
    %9 = arith.mulf %7, %8 : vector<1x8x512xf32>
    %c0_6 = arith.constant 0 : index
    %c0_7 = arith.constant 0 : index
    %c0_8 = arith.constant 0 : index
    %10 = vector.load %arg4[%c0_6, %c0_7, %c0_8] : memref<1x8x512xf32, #tpu.memory_space<vmem>>, vector<1x8x512xf32>
    %11 = arith.addf %9, %10 : vector<1x8x512xf32>
    %cst_9 = arith.constant 0.000000e+00 : f32
    %12 = vector.broadcast %cst_9 : f32 to vector<1x8x512xf32>
    %13 = arith.maximumf %11, %12 : vector<1x8x512xf32>
    %c0_10 = arith.constant 0 : index
    %c0_11 = arith.constant 0 : index
    %c0_12 = arith.constant 0 : index
    %14 = vector.load %arg5[%c0_10, %c0_11, %c0_12] : memref<1x8x512xf32, #tpu.memory_space<vmem>>, vector<1x8x512xf32>
    tpu.vector_store %arg5[%c0_10, %c0_11, %c0_12], %13 {strides = array<i32>} : memref<1x8x512xf32, #tpu.memory_space<vmem>>, vector<1x8x512xf32>,
    return
  }
  func.func @transform_0(%arg0: i32, %arg1: i32) -> (i32, i32, i32) {
    %c0_i32 = arith.constant 0 : i32
    %c0_i32_0 = arith.constant 0 : i32
    return %arg0, %arg1, %c0_i32 : i32, i32, i32
  }
  func.func @transform_1(%arg0: i32, %arg1: i32) -> (i32, i32, i32) {
    %c0_i32 = arith.constant 0 : i32
    %c0_i32_0 = arith.constant 0 : i32
    return %arg0, %arg1, %c0_i32 : i32, i32, i32
  }
  func.func @transform_2(%arg0: i32, %arg1: i32) -> (i32, i32, i32) {
    %c0_i32 = arith.constant 0 : i32
    %c0_i32_0 = arith.constant 0 : i32
    return %arg0, %arg1, %c0_i32 : i32, i32, i32
  }
  func.func @transform_3(%arg0: i32, %arg1: i32) -> (i32, i32, i32) {
    %c0_i32 = arith.constant 0 : i32
    %c0_i32_0 = arith.constant 0 : i32
    return %arg0, %arg1, %c0_i32 : i32, i32, i32
  }
}

</mosaic_0001>

<bundles_post_ra>
// kernel: _lambda_.20
= control target key start
LH: loop header
LB: loop body
LE: loop exit
PB: predicated region body
PF: predicated region fallthrough
CT: control target
= control target key end

     0   :  { %s1560_s15 = smov 0   ;;  %s1562_s16 = smov 0   ;;  %s2014_s0 = inlined_call_operand.vmem [shape: bf16[512,256], index: 0, kind: input, shape index: {}]   ;;  %s2015_s1 = inlined_call_operand.vmem [shape: bf16[256,64], index: 1, kind: input, shape index: {}]   ;;  %s2016_s2 = inlined_call_operand.vmem [shape: f32[1,64], index: 2, kind: input, shape index: {}]   ;;  %s2017_s3 = inlined_call_operand.vmem [shape: f32[1,64], index: 3, kind: input, shape index: {}]   ;;  %s2018_s4 = inlined_call_operand.vmem [shape: f32[512,64], index: 4, kind: output, shape index: {}]  }
   0x1   :  { %s1564_s17 = smov 0  }
   0x2 LB: > { %s33_s18 = sadd.s32 1, %s1528_s16  ;;  %p1234_p0 = scmp.ge.s32.totalorder %s1532_s17, 1  ;;  %s1532_s17 = sphi %s1564_s17, %s14_s17   ;;  %s1528_s16 = sphi %s1562_s16, %s2020_s16   ;;  %s1524_s15 = sphi %s1560_s15, %s2019_s15  }
   0x3   : > { %p35_p1 = scmp.ge.s32.totalorder %s33_s18, 2  ;;  %p224_p2 = scmp.lt.s32.totalorder %s1532_s17, 3 }
   0x5   : > { %s2022_s18 = smov (%p35_p1, %s33_s18), 0  ;;  %p225_p3 = pnand %p1234_p0, %p224_p2 }
   0x6   : > { %v1446_v0 = vld [vmem:[%s2015_s1 + $0x40] sm:$0xff] (!%p225_p3)   ;;  %s1235_s21 = sshll.u32 (!%p225_p3), %s1524_s15, 5  ;;  %v1448_v2 = vld [vmem:[%s2015_s1 + $0x48] sm:$0xff] (!%p225_p3)   ;;  %v1450_v4 = vld [vmem:[%s2015_s1 + $0x50] sm:$0xff] (!%p225_p3)   ;;  %vm313_vm0 = vcmask (!%p225_p3), 523264   ;;  %v1534_v48 = vmov (!%p225_p3), 0.0  }
   0x7   : > { %228 = sbr.rel (%p225_p3) target bundleno = 330 (0x14a), region = 36  ;;  %v1447_v1 = vld [vmem:[%s2015_s1] sm:$0xff] (!%p225_p3)   ;;  %1293 = vmatprep.subr.bf16.mxu0 (!%p225_p3), %v1446_v0  ;;  %1405 = vmatprep.subr.bf16.mxu1 (!%p225_p3), %v1446_v0  ;;  %v1449_v3 = vld [vmem:[%s2015_s1 + $0x8] sm:$0xff] (!%p225_p3)   ;;  %p274_p4 = scmp.lt.s32.totalorder (!%p225_p3), %s1235_s21, 63  ;;  %v1451_v5 = vld [vmem:[%s2015_s1 + $0x10] sm:$0xff] (!%p225_p3)  }
   0x8   : > { %1294 = vmatpush3.bf16.msra.mxu0 (!%p225_p3), %v1447_v1  ;;  %1413 = vmatpush3.bf16.msra.mxu1 (!%p225_p3), %v1447_v1  ;;  %v1452_v6 = vld [vmem:[%s2015_s1 + $0x58] sm:$0xff] (!%p225_p3)   ;;  %v1454_v8 = vld [vmem:[%s2015_s1 + $0x60] sm:$0xff] (!%p225_p3)   ;;  %v1456_v10 = vld [vmem:[%s2015_s1 + $0x68] sm:$0xff] (!%p225_p3)  }
   0x9   : > { %1295 = vmatprep.subr.bf16.mxu0 (!%p225_p3), %v1448_v2  ;;  %1406 = vmatprep.subr.bf16.mxu1 (!%p225_p3), %v1448_v2  ;;  %v1453_v7 = vld [vmem:[%s2015_s1 + $0x18] sm:$0xff] (!%p225_p3)   ;;  %v1455_v9 = vld [vmem:[%s2015_s1 + $0x20] sm:$0xff] (!%p225_p3)   ;;  %v1457_v13 = vld [vmem:[%s2015_s1 + $0x28] sm:$0xff] (!%p225_p3)  }
   0xa   : > { %v1458_v14 = vld [vmem:[%s2015_s1 + $0x70] sm:$0xff] (!%p225_p3)   ;;  %v1460_v16 = vld [vmem:[%s2015_s1 + $0x78] sm:$0xff] (!%p225_p3)  }
   0xb   : > { %v1459_v15 = vld [vmem:[%s2015_s1 + $0x30] sm:$0xff] (!%p225_p3)   ;;  %v1461_v17 = vld [vmem:[%s2015_s1 + $0x38] sm:$0xff] (!%p225_p3)  }
   0xc   : > { %1296 = vmatpush3.bf16.msra.mxu0 (!%p225_p3), %v1449_v3  ;;  %1414 = vmatpush3.bf16.msra.mxu1 (!%p225_p3), %v1449_v3 }
   0xd   : > { %1297 = vmatprep.subr.bf16.mxu0 (!%p225_p3), %v1450_v4  ;;  %1407 = vmatprep.subr.bf16.mxu1 (!%p225_p3), %v1450_v4 }
   0xe   : > { %s2024_s21 = smov (!%p274_p4, %s1235_s21), 63 }
   0xf   : > { %s1292_s10 = sshll.u32 %s2024_s21, 3 }
  0x10   : > { %1298 = vmatpush3.bf16.msra.mxu0 %v1451_v5  ;;  %1415 = vmatpush3.bf16.msra.mxu1 %v1451_v5  ;;  %s1613_s15 = scalar_lea.vmem %s2014_s0, %s1292_s10  ;;  %s1673_s11 = scalar_lea.vmem %s2018_s4, %s1292_s10 }
  0x11   : > { %1299 = vmatprep.subr.bf16.mxu0 %v1452_v6  ;;  %1408 = vmatprep.subr.bf16.mxu1 %v1452_v6  ;;  %v1464_v11 = vld [vmem:[%s1613_s15 + $0x4] ss:$8 sps:$4 sm:$0xff]   ;;  %v1462_v18 = vld [vmem:[%s1613_s15] ss:$8 sps:$4 sm:$0xff]   ;;  %v1468_v20 = vld [vmem:[%s1613_s15 + $0x14] ss:$8 sps:$4 sm:$0xff]  }
  0x12   : > { %v1467_v12 = vld [vmem:[%s1613_s15 + $0x84] ss:$8 sps:$4 sm:$0xff]   ;;  %730 = vmatprep.mubr.bf16.mxu0 %v1464_v11  ;;  %v1465_v19 = vld [vmem:[%s1613_s15 + $0x80] ss:$8 sps:$4 sm:$0xff]   ;;  %v1470_v21 = vld [vmem:[%s1613_s15 + $0x94] ss:$8 sps:$4 sm:$0xff]  }
  0x13   : > { %794 = vmatprep.mubr.bf16.mxu1 %v1467_v12  ;;  %v1472_v22 = vld [vmem:[%s1613_s15 + $0x10] ss:$8 sps:$4 sm:$0xff]   ;;  %v1474_v24 = vld [vmem:[%s1613_s15 + $0x24] ss:$8 sps:$4 sm:$0xff]   ;;  %v1478_v26 = vld [vmem:[%s1613_s15 + $0x20] ss:$8 sps:$4 sm:$0xff]  }
  0x14   : > { %1300 = vmatpush3.bf16.msra.mxu0 %v1453_v7  ;;  %1416 = vmatpush3.bf16.msra.mxu1 %v1453_v7  ;;  %v1473_v23 = vld [vmem:[%s1613_s15 + $0x90] ss:$8 sps:$4 sm:$0xff]   ;;  %v1476_v25 = vld [vmem:[%s1613_s15 + $0xa4] ss:$8 sps:$4 sm:$0xff]   ;;  %v1479_v27 = vld [vmem:[%s1613_s15 + $0xa0] ss:$8 sps:$4 sm:$0xff]  }
  0x15   : > { %1301 = vmatprep.subr.bf16.mxu0 %v1454_v8  ;;  %1409 = vmatprep.subr.bf16.mxu1 %v1454_v8  ;;  %v1480_v28 = vld [vmem:[%s1613_s15 + $0x34] ss:$8 sps:$4 sm:$0xff]   ;;  %v1484_v30 = vld [vmem:[%s1613_s15 + $0x30] ss:$8 sps:$4 sm:$0xff]   ;;  %v1486_v32 = vld [vmem:[%s1613_s15 + $0x44] ss:$8 sps:$4 sm:$0xff]  }
  0x16   : > { %v1482_v29 = vld [vmem:[%s1613_s15 + $0xb4] ss:$8 sps:$4 sm:$0xff]   ;;  %v1485_v31 = vld [vmem:[%s1613_s15 + $0xb0] ss:$8 sps:$4 sm:$0xff]   ;;  %v1488_v33 = vld [vmem:[%s1613_s15 + $0xc4] ss:$8 sps:$4 sm:$0xff]  }
  0x17   : > { %v1490_v34 = vld [vmem:[%s1613_s15 + $0x40] ss:$8 sps:$4 sm:$0xff]   ;;  %v1492_v36 = vld [vmem:[%s1613_s15 + $0x54] ss:$8 sps:$4 sm:$0xff]   ;;  %v1496_v38 = vld [vmem:[%s1613_s15 + $0x50] ss:$8 sps:$4 sm:$0xff]  }
  0x18   : > { %1302 = vmatpush3.bf16.msra.mxu0 %v1455_v9  ;;  %1417 = vmatpush3.bf16.msra.mxu1 %v1455_v9  ;;  %v1491_v35 = vld [vmem:[%s1613_s15 + $0xc0] ss:$8 sps:$4 sm:$0xff]   ;;  %v1494_v37 = vld [vmem:[%s1613_s15 + $0xd4] ss:$8 sps:$4 sm:$0xff]   ;;  %v1497_v39 = vld [vmem:[%s1613_s15 + $0xd0] ss:$8 sps:$4 sm:$0xff]  }
  0x19   : > { %1303 = vmatprep.subr.bf16.mxu0 %v1456_v10  ;;  %1410 = vmatprep.subr.bf16.mxu1 %v1456_v10  ;;  %v1498_v40 = vld [vmem:[%s1613_s15 + $0x64] ss:$8 sps:$4 sm:$0xff]   ;;  %v1502_v42 = vld [vmem:[%s1613_s15 + $0x60] ss:$8 sps:$4 sm:$0xff]   ;;  %v1504_v44 = vld [vmem:[%s1613_s15 + $0x74] ss:$8 sps:$4 sm:$0xff]  }
  0x1a   : > { %v1500_v41 = vld [vmem:[%s1613_s15 + $0xe4] ss:$8 sps:$4 sm:$0xff]   ;;  %v1503_v43 = vld [vmem:[%s1613_s15 + $0xe0] ss:$8 sps:$4 sm:$0xff]   ;;  %v1506_v45 = vld [vmem:[%s1613_s15 + $0xf4] ss:$8 sps:$4 sm:$0xff]  }
  0x1b   : > { %v1508_v46 = vld [vmem:[%s1613_s15 + $0x70] ss:$8 sps:$4 sm:$0xff]   ;;  %314 = vst.msk [vmem:[%s1673_s11] sm:$0xff] %vm313_vm0, %v1534_v48  ;;  %315 = vst.msk [vmem:[%s1673_s11 + $0x8] sm:$0xff] %vm313_vm0, %v1534_v48 }
  0x1c   : > { %1304 = vmatpush3.bf16.msra.mxu0 %v1457_v13  ;;  %1418 = vmatpush3.bf16.msra.mxu1 %v1457_v13  ;;  %v1509_v47 = vld [vmem:[%s1613_s15 + $0xf0] ss:$8 sps:$4 sm:$0xff]   ;;  %316 = vst.msk [vmem:[%s1673_s11 + $0x10] sm:$0xff] %vm313_vm0, %v1534_v48  ;;  %317 = vst.msk [vmem:[%s1673_s11 + $0x18] sm:$0xff] %vm313_vm0, %v1534_v48 }
  0x1d   : > { %1305 = vmatprep.subr.bf16.mxu0 %v1458_v14  ;;  %1411 = vmatprep.subr.bf16.mxu1 %v1458_v14  ;;  %318 = vst.msk [vmem:[%s1673_s11 + $0x20] sm:$0xff] %vm313_vm0, %v1534_v48  ;;  %319 = vst.msk [vmem:[%s1673_s11 + $0x28] sm:$0xff] %vm313_vm0, %v1534_v48 }
  0x1e   : > { %320 = vst.msk [vmem:[%s1673_s11 + $0x30] sm:$0xff] %vm313_vm0, %v1534_v48  ;;  %321 = vst.msk [vmem:[%s1673_s11 + $0x38] sm:$0xff] %vm313_vm0, %v1534_v48 }
  0x1f   : > { %322 = vst.msk [vmem:[%s1673_s11 + $0x40] sm:$0xff] %vm313_vm0, %v1534_v48  ;;  %323 = vst.msk [vmem:[%s1673_s11 + $0x48] sm:$0xff] %vm313_vm0, %v1534_v48 }
  0x20   : > { %1306 = vmatpush3.bf16.msra.mxu0 %v1459_v15  ;;  %1419 = vmatpush3.bf16.msra.mxu1 %v1459_v15  ;;  %324 = vst.msk [vmem:[%s1673_s11 + $0x50] sm:$0xff] %vm313_vm0, %v1534_v48  ;;  %325 = vst.msk [vmem:[%s1673_s11 + $0x58] sm:$0xff] %vm313_vm0, %v1534_v48  ;;  %v1756_v15 = vld [vmem:[%s2016_s2] ss:$0 sm:$0xff] }
  0x21   : > { %1307 = vmatprep.subr.bf16.mxu0 %v1460_v16  ;;  %1412 = vmatprep.subr.bf16.mxu1 %v1460_v16  ;;  %326 = vst.msk [vmem:[%s1673_s11 + $0x60] sm:$0xff] %vm313_vm0, %v1534_v48  ;;  %327 = vst.msk [vmem:[%s1673_s11 + $0x68] sm:$0xff] %vm313_vm0, %v1534_v48 }
  0x22   : > { %328 = vst.msk [vmem:[%s1673_s11 + $0x70] sm:$0xff] %vm313_vm0, %v1534_v48  ;;  %329 = vst.msk [vmem:[%s1673_s11 + $0x78] sm:$0xff] %vm313_vm0, %v1534_v48  ;;  %v346_v51 = vld [vmem:[%s1673_s11] sm:$0xff]  ;;  %v347_v59 = vld [vmem:[%s1673_s11 + $0x8] sm:$0xff] }
  0x23   : > { %330 = vst.msk [vmem:[%s1673_s11 + $0x80] sm:$0xff] %vm313_vm0, %v1534_v48  ;;  %331 = vst.msk [vmem:[%s1673_s11 + $0x88] sm:$0xff] %vm313_vm0, %v1534_v48  ;;  %v348_v7 = vld [vmem:[%s1673_s11 + $0x10] sm:$0xff]  ;;  %v349_v16 = vld [vmem:[%s1673_s11 + $0x18] sm:$0xff] }
  0x24   : > { %1308 = vmatpush3.bf16.msra.mxu0 %v1461_v17  ;;  %1420 = vmatpush3.bf16.msra.mxu1 %v1461_v17  ;;  %332 = vst.msk [vmem:[%s1673_s11 + $0x90] sm:$0xff] %vm313_vm0, %v1534_v48  ;;  %333 = vst.msk [vmem:[%s1673_s11 + $0x98] sm:$0xff] %vm313_vm0, %v1534_v48 }
  0x25   : > { %334 = vst.msk [vmem:[%s1673_s11 + $0xa0] sm:$0xff] %vm313_vm0, %v1534_v48  ;;  %335 = vst.msk [vmem:[%s1673_s11 + $0xa8] sm:$0xff] %vm313_vm0, %v1534_v48 }
  0x26   : > { %336 = vst.msk [vmem:[%s1673_s11 + $0xb0] sm:$0xff] %vm313_vm0, %v1534_v48  ;;  %337 = vst.msk [vmem:[%s1673_s11 + $0xb8] sm:$0xff] %vm313_vm0, %v1534_v48 }
  0x27   : > { %731 = vmatmul.mubr.bf16.vlgmr.msra.gmra.mrb[0].mxu0 %v1462_v18  ;;  %795 = vmatmul.mubr.bf16.vlgmr.msra.gmra.mrb[0].mxu1 %v1465_v19  ;;  %338 = vst.msk [vmem:[%s1673_s11 + $0xc0] sm:$0xff] %vm313_vm0, %v1534_v48  ;;  %339 = vst.msk [vmem:[%s1673_s11 + $0xc8] sm:$0xff] %vm313_vm0, %v1534_v48 }
  0x28   : > { %738 = vmatprep.mubr.bf16.mxu0 %v1468_v20  ;;  %802 = vmatprep.mubr.bf16.mxu1 %v1470_v21  ;;  %340 = vst.msk [vmem:[%s1673_s11 + $0xd0] sm:$0xff] %vm313_vm0, %v1534_v48  ;;  %341 = vst.msk [vmem:[%s1673_s11 + $0xd8] sm:$0xff] %vm313_vm0, %v1534_v48 }
  0x29   : > { %342 = vst.msk [vmem:[%s1673_s11 + $0xe0] sm:$0xff] %vm313_vm0, %v1534_v48  ;;  %343 = vst.msk [vmem:[%s1673_s11 + $0xe8] sm:$0xff] %vm313_vm0, %v1534_v48 }
  0x2a   : > { %344 = vst.msk [vmem:[%s1673_s11 + $0xf0] sm:$0xff] %vm313_vm0, %v1534_v48  ;;  %345 = vst.msk [vmem:[%s1673_s11 + $0xf8] sm:$0xff] %vm313_vm0, %v1534_v48  ;;  %v362_v53 = vld [vmem:[%s1673_s11 + $0x80] sm:$0xff]  ;;  %v363_v61 = vld [vmem:[%s1673_s11 + $0x88] sm:$0xff] }
  0x2b   : > { %v364_v9 = vld [vmem:[%s1673_s11 + $0x90] sm:$0xff]  ;;  %v365_v18 = vld [vmem:[%s1673_s11 + $0x98] sm:$0xff] }
  0x2f   : > { %739 = vmatmul.mubr.bf16.gmra.mrb[4].mxu0 %v1472_v22  ;;  %803 = vmatmul.mubr.bf16.gmra.mrb[4].mxu1 %v1473_v23 }
  0x30   : > { %746 = vmatprep.mubr.bf16.mxu0 %v1474_v24  ;;  %810 = vmatprep.mubr.bf16.mxu1 %v1476_v25  ;;  %v1764_v25 = vld [vmem:[%s2017_s3] ss:$0 sm:$0xff] }
  0x37   : > { %747 = vmatmul.mubr.bf16.gmra.mrb[8].mxu0 %v1478_v26  ;;  %811 = vmatmul.mubr.bf16.gmra.mrb[8].mxu1 %v1479_v27 }
  0x38   : > { %754 = vmatprep.mubr.bf16.mxu0 %v1480_v28  ;;  %818 = vmatprep.mubr.bf16.mxu1 %v1482_v29 }
  0x3f   : > { %755 = vmatmul.mubr.bf16.gmra.mrb[12].mxu0 %v1484_v30  ;;  %819 = vmatmul.mubr.bf16.gmra.mrb[12].mxu1 %v1485_v31 }
  0x40   : > { %762 = vmatprep.mubr.bf16.mxu0 %v1486_v32  ;;  %826 = vmatprep.mubr.bf16.mxu1 %v1488_v33 }
  0x47   : > { %763 = vmatmul.mubr.bf16.gmra.mrb[16].mxu0 %v1490_v34  ;;  %827 = vmatmul.mubr.bf16.gmra.mrb[16].mxu1 %v1491_v35 }
  0x48   : > { %770 = vmatprep.mubr.bf16.mxu0 %v1492_v36  ;;  %834 = vmatprep.mubr.bf16.mxu1 %v1494_v37 }
  0x4f   : > { %771 = vmatmul.mubr.bf16.gmra.mrb[20].mxu0 %v1496_v38  ;;  %835 = vmatmul.mubr.bf16.gmra.mrb[20].mxu1 %v1497_v39 }
  0x50   : > { %778 = vmatprep.mubr.bf16.mxu0 %v1498_v40  ;;  %842 = vmatprep.mubr.bf16.mxu1 %v1500_v41 }
  0x57   : > { %779 = vmatmul.mubr.bf16.gmra.mrb[24].mxu0 %v1502_v42  ;;  %843 = vmatmul.mubr.bf16.gmra.mrb[24].mxu1 %v1503_v43 }
  0x58   : > { %786 = vmatprep.mubr.bf16.mxu0 %v1504_v44  ;;  %850 = vmatprep.mubr.bf16.mxu1 %v1506_v45  ;;  %v350_v45 = vld [vmem:[%s1673_s11 + $0x20] sm:$0xff] }
  0x5f   : > { %787 = vmatmul.mubr.bf16.gmra.mrb[28].mxu0 %v1508_v46  ;;  %851 = vmatmul.mubr.bf16.gmra.mrb[28].mxu1 %v1509_v47  ;;  %v366_v46 = vld [vmem:[%s1673_s11 + $0xa0] sm:$0xff] }
  0xfa   : > { %v1309_v49 = vpop.f32.mrb[0].mxu0  ;;  %v1357_v50 = vpop.f32.mrb[0].mxu1 }
  0xfb   : > { %v1310_v52 = vpop.f32.mrb[1].mxu0  ;;  %v1358_v54 = vpop.f32.mrb[1].mxu1 }
  0xfc   : > { %v1311_v55 = vadd.f32 %v1310_v52, %v1309_v49  ;;  %v1359_v56 = vadd.f32 %v1358_v54, %v1357_v50  ;;  %v1312_v57 = vpop.f32.mrb[2].mxu0  ;;  %v1360_v58 = vpop.f32.mrb[2].mxu1 }
  0xfd   : > { %v1313_v60 = vpop.f32.mrb[3].mxu0  ;;  %v1361_v62 = vpop.f32.mrb[3].mxu1 }
  0xfe   : > { %v859_v63 = vadd.f32 %v1311_v55, %v346_v51  ;;  %v875_v0 = vadd.f32 %v1359_v56, %v362_v53  ;;  %v1314_v1 = vadd.f32 %v1313_v60, %v1312_v57  ;;  %v1362_v2 = vadd.f32 %v1361_v62, %v1360_v58  ;;  %v351_v51 = vld [vmem:[%s1673_s11 + $0x28] sm:$0xff] }
  0xff   : > { %v367_v53 = vld [vmem:[%s1673_s11 + $0xa8] sm:$0xff] }
 0x100   : > { %892 = vst.msk [vmem:[%s1673_s11] sm:$0xff] %vm313_vm0, %v859_v63  ;;  %908 = vst.msk [vmem:[%s1673_s11 + $0x80] sm:$0xff] %vm313_vm0, %v875_v0  ;;  %v860_v3 = vadd.f32 %v1314_v1, %v347_v59  ;;  %v876_v4 = vadd.f32 %v1362_v2, %v363_v61 }
 0x102   : > { %893 = vst.msk [vmem:[%s1673_s11 + $0x8] sm:$0xff] %vm313_vm0, %v860_v3  ;;  %909 = vst.msk [vmem:[%s1673_s11 + $0x88] sm:$0xff] %vm313_vm0, %v876_v4  ;;  %v1315_v5 = vpop.f32.mrb[4].mxu0  ;;  %v1363_v6 = vpop.f32.mrb[4].mxu1 }
 0x103   : > { %v1316_v8 = vpop.f32.mrb[5].mxu0  ;;  %v1364_v10 = vpop.f32.mrb[5].mxu1 }
 0x104   : > { %v1317_v11 = vadd.f32 %v1316_v8, %v1315_v5  ;;  %v1365_v12 = vadd.f32 %v1364_v10, %v1363_v6  ;;  %v1318_v13 = vpop.f32.mrb[6].mxu0  ;;  %v1366_v14 = vpop.f32.mrb[6].mxu1 }
 0x105   : > { %v1319_v17 = vpop.f32.mrb[7].mxu0  ;;  %v1367_v19 = vpop.f32.mrb[7].mxu1 }
 0x106   : > { %v861_v20 = vadd.f32 %v1317_v11, %v348_v7  ;;  %v877_v21 = vadd.f32 %v1365_v12, %v364_v9  ;;  %v1320_v22 = vadd.f32 %v1319_v17, %v1318_v13  ;;  %v1368_v23 = vadd.f32 %v1367_v19, %v1366_v14  ;;  %v368_v19 = vld [vmem:[%s1673_s11 + $0xb0] sm:$0xff] }
 0x107   : > { %v927_v24 = vld [vmem:[%s1673_s11] sm:$0xff] }
 0x108   : > { %v943_v26 = vld [vmem:[%s1673_s11 + $0x80] sm:$0xff]  ;;  %v966_v27 = vmul.f32 %v1756_v15, %v927_v24  ;;  %894 = vst.msk [vmem:[%s1673_s11 + $0x10] sm:$0xff] %vm313_vm0, %v861_v20  ;;  %910 = vst.msk [vmem:[%s1673_s11 + $0x90] sm:$0xff] %vm313_vm0, %v877_v21  ;;  %v862_v29 = vadd.f32 %v1320_v22, %v349_v16  ;;  %v878_v30 = vadd.f32 %v1368_v23, %v365_v18  ;;  %v352_v18 = vld [vmem:[%s1673_s11 + $0x30] sm:$0xff] }
 0x109   : > { %v982_v28 = vmul.f32 %v1756_v15, %v943_v26  ;;  %v928_v31 = vld [vmem:[%s1673_s11 + $0x8] sm:$0xff]  ;;  %v353_v24 = vld [vmem:[%s1673_s11 + $0x38] sm:$0xff] }
 0x10a   : > { %v944_v32 = vld [vmem:[%s1673_s11 + $0x88] sm:$0xff]  ;;  %v1005_v33 = vadd.f32 %v1764_v25, %v966_v27  ;;  %v967_v35 = vmul.f32 %v1756_v15, %v928_v31  ;;  %895 = vst.msk [vmem:[%s1673_s11 + $0x18] sm:$0xff] %vm313_vm0, %v862_v29  ;;  %911 = vst.msk [vmem:[%s1673_s11 + $0x98] sm:$0xff] %vm313_vm0, %v878_v30  ;;  %v1321_v37 = vpop.f32.mrb[8].mxu0  ;;  %v1369_v38 = vpop.f32.mrb[8].mxu1  ;;  %v369_v27 = vld [vmem:[%s1673_s11 + $0xb8] sm:$0xff] }
 0x10b   : > { %v1021_v34 = vadd.f32 %v1764_v25, %v982_v28  ;;  %v983_v36 = vmul.f32 %v1756_v15, %v944_v32  ;;  %v1322_v39 = vpop.f32.mrb[9].mxu0  ;;  %v1370_v40 = vpop.f32.mrb[9].mxu1 }
 0x10c   : > { %v1037_v41 = vmax.f32 %v1005_v33, 0.0  ;;  %v1006_v43 = vadd.f32 %v1764_v25, %v967_v35  ;;  %v1324_v47 = vpop.f32.mrb[10].mxu0  ;;  %v1372_v48 = vpop.f32.mrb[10].mxu1  ;;  %v1323_v49 = vadd.f32 %v1322_v39, %v1321_v37  ;;  %v1371_v50 = vadd.f32 %v1370_v40, %v1369_v38 }
 0x10d   : > { %v1053_v42 = vmax.f32 %v1021_v34, 0.0  ;;  %v1022_v44 = vadd.f32 %v1764_v25, %v983_v36  ;;  %v1325_v52 = vpop.f32.mrb[11].mxu0  ;;  %v1373_v54 = vpop.f32.mrb[11].mxu1 }
 0x10e   : > { %1069 = vst.msk [vmem:[%s1673_s11] sm:$0xff] %vm313_vm0, %v1037_v41  ;;  %v1038_v55 = vmax.f32 %v1006_v43, 0.0  ;;  %v1326_v57 = vadd.f32 %v1325_v52, %v1324_v47  ;;  %v1374_v58 = vadd.f32 %v1373_v54, %v1372_v48  ;;  %v863_v61 = vadd.f32 %v1323_v49, %v350_v45  ;;  %v354_v49 = vld [vmem:[%s1673_s11 + $0x40] sm:$0xff] }
 0x10f   : > { %1085 = vst.msk [vmem:[%s1673_s11 + $0x80] sm:$0xff] %vm313_vm0, %v1053_v42  ;;  %v1054_v56 = vmax.f32 %v1022_v44, 0.0  ;;  %v929_v59 = vld [vmem:[%s1673_s11 + $0x10] sm:$0xff]  ;;  %v879_v62 = vadd.f32 %v1371_v50, %v366_v46 }
 0x110   : > { %v945_v60 = vld [vmem:[%s1673_s11 + $0x90] sm:$0xff]  ;;  %1070 = vst.msk [vmem:[%s1673_s11 + $0x8] sm:$0xff] %vm313_vm0, %v1038_v55  ;;  %v968_v63 = vmul.f32 %v1756_v15, %v929_v59  ;;  %v864_v1 = vadd.f32 %v1326_v57, %v351_v51  ;;  %v880_v2 = vadd.f32 %v1374_v58, %v367_v53  ;;  %896 = vst.msk [vmem:[%s1673_s11 + $0x20] sm:$0xff] %vm313_vm0, %v863_v61  ;;  %v370_v51 = vld [vmem:[%s1673_s11 + $0xc0] sm:$0xff] }
 0x111   : > { %1086 = vst.msk [vmem:[%s1673_s11 + $0x88] sm:$0xff] %vm313_vm0, %v1054_v56  ;;  %v984_v0 = vmul.f32 %v1756_v15, %v945_v60  ;;  %v930_v3 = vld [vmem:[%s1673_s11 + $0x18] sm:$0xff]  ;;  %912 = vst.msk [vmem:[%s1673_s11 + $0xa0] sm:$0xff] %vm313_vm0, %v879_v62 }
 0x112   : > { %v946_v4 = vld [vmem:[%s1673_s11 + $0x98] sm:$0xff]  ;;  %v1007_v5 = vadd.f32 %v1764_v25, %v968_v63  ;;  %v969_v7 = vmul.f32 %v1756_v15, %v930_v3  ;;  %897 = vst.msk [vmem:[%s1673_s11 + $0x28] sm:$0xff] %vm313_vm0, %v864_v1  ;;  %913 = vst.msk [vmem:[%s1673_s11 + $0xa8] sm:$0xff] %vm313_vm0, %v880_v2  ;;  %v1327_v9 = vpop.f32.mrb[12].mxu0  ;;  %v1375_v10 = vpop.f32.mrb[12].mxu1  ;;  %v355_v3 = vld [vmem:[%s1673_s11 + $0x48] sm:$0xff] }
 0x113   : > { %v1023_v6 = vadd.f32 %v1764_v25, %v984_v0  ;;  %v985_v8 = vmul.f32 %v1756_v15, %v946_v4  ;;  %v1328_v11 = vpop.f32.mrb[13].mxu0  ;;  %v1376_v12 = vpop.f32.mrb[13].mxu1  ;;  %v371_v4 = vld [vmem:[%s1673_s11 + $0xc8] sm:$0xff] }
 0x114   : > { %v1039_v13 = vmax.f32 %v1007_v5, 0.0  ;;  %v1008_v16 = vadd.f32 %v1764_v25, %v969_v7  ;;  %v1330_v20 = vpop.f32.mrb[14].mxu0  ;;  %v1378_v21 = vpop.f32.mrb[14].mxu1  ;;  %v1329_v22 = vadd.f32 %v1328_v11, %v1327_v9  ;;  %v1377_v23 = vadd.f32 %v1376_v12, %v1375_v10 }
 0x115   : > { %v1055_v14 = vmax.f32 %v1023_v6, 0.0  ;;  %v1024_v17 = vadd.f32 %v1764_v25, %v985_v8  ;;  %v1331_v26 = vpop.f32.mrb[15].mxu0  ;;  %v1379_v28 = vpop.f32.mrb[15].mxu1 }
 0x116   : > { %1071 = vst.msk [vmem:[%s1673_s11 + $0x10] sm:$0xff] %vm313_vm0, %v1039_v13  ;;  %v1040_v29 = vmax.f32 %v1008_v16, 0.0  ;;  %v1332_v31 = vadd.f32 %v1331_v26, %v1330_v20  ;;  %v1380_v32 = vadd.f32 %v1379_v28, %v1378_v21  ;;  %v865_v33 = vadd.f32 %v1329_v22, %v352_v18  ;;  %v356_v22 = vld [vmem:[%s1673_s11 + $0x50] sm:$0xff] }
 0x117   : > { %1087 = vst.msk [vmem:[%s1673_s11 + $0x90] sm:$0xff] %vm313_vm0, %v1055_v14  ;;  %v1056_v30 = vmax.f32 %v1024_v17, 0.0  ;;  %v881_v34 = vadd.f32 %v1377_v23, %v368_v19  ;;  %v931_v35 = vld [vmem:[%s1673_s11 + $0x20] sm:$0xff] }
 0x118   : > { %1072 = vst.msk [vmem:[%s1673_s11 + $0x18] sm:$0xff] %vm313_vm0, %v1040_v29  ;;  %v947_v36 = vld [vmem:[%s1673_s11 + $0xa0] sm:$0xff]  ;;  %v866_v37 = vadd.f32 %v1332_v31, %v353_v24  ;;  %v882_v38 = vadd.f32 %v1380_v32, %v369_v27  ;;  %v970_v39 = vmul.f32 %v1756_v15, %v931_v35  ;;  %898 = vst.msk [vmem:[%s1673_s11 + $0x30] sm:$0xff] %vm313_vm0, %v865_v33  ;;  %v372_v24 = vld [vmem:[%s1673_s11 + $0xd0] sm:$0xff] }
 0x119   : > { %1088 = vst.msk [vmem:[%s1673_s11 + $0x98] sm:$0xff] %vm313_vm0, %v1056_v30  ;;  %v986_v40 = vmul.f32 %v1756_v15, %v947_v36  ;;  %v932_v41 = vld [vmem:[%s1673_s11 + $0x28] sm:$0xff]  ;;  %914 = vst.msk [vmem:[%s1673_s11 + $0xb0] sm:$0xff] %vm313_vm0, %v881_v34 }
 0x11a   : > { %v948_v42 = vld [vmem:[%s1673_s11 + $0xa8] sm:$0xff]  ;;  %v971_v43 = vmul.f32 %v1756_v15, %v932_v41  ;;  %899 = vst.msk [vmem:[%s1673_s11 + $0x38] sm:$0xff] %vm313_vm0, %v866_v37  ;;  %915 = vst.msk [vmem:[%s1673_s11 + $0xb8] sm:$0xff] %vm313_vm0, %v882_v38  ;;  %v1333_v45 = vpop.f32.mrb[16].mxu0  ;;  %v1381_v46 = vpop.f32.mrb[16].mxu1  ;;  %v1009_v47 = vadd.f32 %v1764_v25, %v970_v39  ;;  %v357_v41 = vld [vmem:[%s1673_s11 + $0x58] sm:$0xff] }
 0x11b   : > { %v987_v44 = vmul.f32 %v1756_v15, %v948_v42  ;;  %v1025_v48 = vadd.f32 %v1764_v25, %v986_v40  ;;  %v1334_v50 = vpop.f32.mrb[17].mxu0  ;;  %v1382_v52 = vpop.f32.mrb[17].mxu1  ;;  %v373_v42 = vld [vmem:[%s1673_s11 + $0xd8] sm:$0xff] }
 0x11c   : > { %v1010_v53 = vadd.f32 %v1764_v25, %v971_v43  ;;  %v1335_v55 = vadd.f32 %v1334_v50, %v1333_v45  ;;  %v1383_v56 = vadd.f32 %v1382_v52, %v1381_v46  ;;  %v1336_v57 = vpop.f32.mrb[18].mxu0  ;;  %v1384_v58 = vpop.f32.mrb[18].mxu1  ;;  %v1041_v59 = vmax.f32 %v1009_v47, 0.0 }
 0x11d   : > { %v1026_v54 = vadd.f32 %v1764_v25, %v987_v44  ;;  %v1057_v60 = vmax.f32 %v1025_v48, 0.0  ;;  %v1337_v61 = vpop.f32.mrb[19].mxu0  ;;  %v1385_v62 = vpop.f32.mrb[19].mxu1 }
 0x11e   : > { %v1042_v63 = vmax.f32 %v1010_v53, 0.0  ;;  %v867_v1 = vadd.f32 %v1335_v55, %v354_v49  ;;  %v883_v2 = vadd.f32 %v1383_v56, %v370_v51  ;;  %1073 = vst.msk [vmem:[%s1673_s11 + $0x20] sm:$0xff] %vm313_vm0, %v1041_v59  ;;  %v1338_v5 = vadd.f32 %v1337_v61, %v1336_v57  ;;  %v358_v59 = vld [vmem:[%s1673_s11 + $0x60] sm:$0xff] }
 0x11f   : > { %v1058_v0 = vmax.f32 %v1026_v54, 0.0  ;;  %1089 = vst.msk [vmem:[%s1673_s11 + $0xa0] sm:$0xff] %vm313_vm0, %v1057_v60  ;;  %v1386_v6 = vadd.f32 %v1385_v62, %v1384_v58  ;;  %v933_v7 = vld [vmem:[%s1673_s11 + $0x30] sm:$0xff]  ;;  %v374_v61 = vld [vmem:[%s1673_s11 + $0xe0] sm:$0xff] }
 0x120   : > { %1074 = vst.msk [vmem:[%s1673_s11 + $0x28] sm:$0xff] %vm313_vm0, %v1042_v63  ;;  %v949_v8 = vld [vmem:[%s1673_s11 + $0xb0] sm:$0xff]  ;;  %900 = vst.msk [vmem:[%s1673_s11 + $0x40] sm:$0xff] %vm313_vm0, %v867_v1  ;;  %v972_v9 = vmul.f32 %v1756_v15, %v933_v7  ;;  %v868_v13 = vadd.f32 %v1338_v5, %v355_v3  ;;  %v359_v7 = vld [vmem:[%s1673_s11 + $0x68] sm:$0xff] }
 0x121   : > { %1090 = vst.msk [vmem:[%s1673_s11 + $0xa8] sm:$0xff] %vm313_vm0, %v1058_v0  ;;  %916 = vst.msk [vmem:[%s1673_s11 + $0xc0] sm:$0xff] %vm313_vm0, %v883_v2  ;;  %v988_v10 = vmul.f32 %v1756_v15, %v949_v8  ;;  %v934_v11 = vld [vmem:[%s1673_s11 + $0x38] sm:$0xff]  ;;  %v884_v14 = vadd.f32 %v1386_v6, %v371_v4 }
 0x122   : > { %v950_v12 = vld [vmem:[%s1673_s11 + $0xb8] sm:$0xff]  ;;  %v973_v16 = vmul.f32 %v1756_v15, %v934_v11  ;;  %v1339_v18 = vpop.f32.mrb[20].mxu0  ;;  %v1387_v19 = vpop.f32.mrb[20].mxu1  ;;  %v1011_v20 = vadd.f32 %v1764_v25, %v972_v9  ;;  %901 = vst.msk [vmem:[%s1673_s11 + $0x48] sm:$0xff] %vm313_vm0, %v868_v13  ;;  %v375_v9 = vld [vmem:[%s1673_s11 + $0xe8] sm:$0xff] }
 0x123   : > { %v989_v17 = vmul.f32 %v1756_v15, %v950_v12  ;;  %v1027_v21 = vadd.f32 %v1764_v25, %v988_v10  ;;  %917 = vst.msk [vmem:[%s1673_s11 + $0xc8] sm:$0xff] %vm313_vm0, %v884_v14  ;;  %v1340_v23 = vpop.f32.mrb[21].mxu0  ;;  %v1388_v26 = vpop.f32.mrb[21].mxu1 }
 0x124   : > { %v1012_v27 = vadd.f32 %v1764_v25, %v973_v16  ;;  %v1341_v29 = vadd.f32 %v1340_v23, %v1339_v18  ;;  %v1389_v30 = vadd.f32 %v1388_v26, %v1387_v19  ;;  %v1342_v31 = vpop.f32.mrb[22].mxu0  ;;  %v1390_v32 = vpop.f32.mrb[22].mxu1  ;;  %v1043_v33 = vmax.f32 %v1011_v20, 0.0 }
 0x125   : > { %v1028_v28 = vadd.f32 %v1764_v25, %v989_v17  ;;  %v1059_v34 = vmax.f32 %v1027_v21, 0.0  ;;  %v1343_v35 = vpop.f32.mrb[23].mxu0  ;;  %v1391_v36 = vpop.f32.mrb[23].mxu1 }
 0x126   : > { %v1044_v37 = vmax.f32 %v1012_v27, 0.0  ;;  %v869_v39 = vadd.f32 %v1341_v29, %v356_v22  ;;  %v885_v40 = vadd.f32 %v1389_v30, %v372_v24  ;;  %1075 = vst.msk [vmem:[%s1673_s11 + $0x30] sm:$0xff] %vm313_vm0, %v1043_v33  ;;  %v1344_v45 = vadd.f32 %v1343_v35, %v1342_v31  ;;  %v360_v33 = vld [vmem:[%s1673_s11 + $0x70] sm:$0xff] }
 0x127   : > { %v1060_v38 = vmax.f32 %v1028_v28, 0.0  ;;  %1091 = vst.msk [vmem:[%s1673_s11 + $0xb0] sm:$0xff] %vm313_vm0, %v1059_v34  ;;  %v935_v43 = vld [vmem:[%s1673_s11 + $0x40] sm:$0xff]  ;;  %v1392_v46 = vadd.f32 %v1391_v36, %v1390_v32  ;;  %v376_v35 = vld [vmem:[%s1673_s11 + $0xf0] sm:$0xff] }
 0x128   : > { %v951_v44 = vld [vmem:[%s1673_s11 + $0xc0] sm:$0xff]  ;;  %1076 = vst.msk [vmem:[%s1673_s11 + $0x38] sm:$0xff] %vm313_vm0, %v1044_v37  ;;  %v974_v47 = vmul.f32 %v1756_v15, %v935_v43  ;;  %902 = vst.msk [vmem:[%s1673_s11 + $0x50] sm:$0xff] %vm313_vm0, %v869_v39  ;;  %v870_v49 = vadd.f32 %v1344_v45, %v357_v41  ;;  %v361_v45 = vld [vmem:[%s1673_s11 + $0x78] sm:$0xff] }
 0x129   : > { %1092 = vst.msk [vmem:[%s1673_s11 + $0xb8] sm:$0xff] %vm313_vm0, %v1060_v38  ;;  %v990_v48 = vmul.f32 %v1756_v15, %v951_v44  ;;  %918 = vst.msk [vmem:[%s1673_s11 + $0xd0] sm:$0xff] %vm313_vm0, %v885_v40  ;;  %v886_v50 = vadd.f32 %v1392_v46, %v373_v42  ;;  %v936_v53 = vld [vmem:[%s1673_s11 + $0x48] sm:$0xff] }
 0x12a   : > { %v1013_v51 = vadd.f32 %v1764_v25, %v974_v47  ;;  %v952_v54 = vld [vmem:[%s1673_s11 + $0xc8] sm:$0xff]  ;;  %v1345_v55 = vpop.f32.mrb[24].mxu0  ;;  %v1393_v56 = vpop.f32.mrb[24].mxu1  ;;  %v975_v57 = vmul.f32 %v1756_v15, %v936_v53  ;;  %903 = vst.msk [vmem:[%s1673_s11 + $0x58] sm:$0xff] %vm313_vm0, %v870_v49  ;;  %v377_v47 = vld [vmem:[%s1673_s11 + $0xf8] sm:$0xff] }
 0x12b   : > { %v1029_v52 = vadd.f32 %v1764_v25, %v990_v48  ;;  %v991_v58 = vmul.f32 %v1756_v15, %v952_v54  ;;  %919 = vst.msk [vmem:[%s1673_s11 + $0xd8] sm:$0xff] %vm313_vm0, %v886_v50  ;;  %v1346_v60 = vpop.f32.mrb[25].mxu0  ;;  %v1394_v62 = vpop.f32.mrb[25].mxu1 }
 0x12c   : > { %v1045_v63 = vmax.f32 %v1013_v51, 0.0  ;;  %v1347_v1 = vadd.f32 %v1346_v60, %v1345_v55  ;;  %v1395_v2 = vadd.f32 %v1394_v62, %v1393_v56  ;;  %v1348_v3 = vpop.f32.mrb[26].mxu0  ;;  %v1396_v4 = vpop.f32.mrb[26].mxu1  ;;  %v1014_v5 = vadd.f32 %v1764_v25, %v975_v57 }
 0x12d   : > { %v1061_v0 = vmax.f32 %v1029_v52, 0.0  ;;  %v1030_v6 = vadd.f32 %v1764_v25, %v991_v58  ;;  %v1349_v8 = vpop.f32.mrb[27].mxu0  ;;  %v1397_v10 = vpop.f32.mrb[27].mxu1 }
 0x12e   : > { %1077 = vst.msk [vmem:[%s1673_s11 + $0x40] sm:$0xff] %vm313_vm0, %v1045_v63  ;;  %v871_v11 = vadd.f32 %v1347_v1, %v358_v59  ;;  %v887_v12 = vadd.f32 %v1395_v2, %v374_v61  ;;  %v1350_v13 = vadd.f32 %v1349_v8, %v1348_v3  ;;  %v1398_v14 = vadd.f32 %v1397_v10, %v1396_v4 }
 0x12f   : > { %1093 = vst.msk [vmem:[%s1673_s11 + $0xc0] sm:$0xff] %vm313_vm0, %v1061_v0  ;;  %v1046_v16 = vmax.f32 %v1014_v5, 0.0  ;;  %v1062_v17 = vmax.f32 %v1030_v6, 0.0  ;;  %v937_v18 = vld [vmem:[%s1673_s11 + $0x50] sm:$0xff] }
 0x130   : > { %v953_v19 = vld [vmem:[%s1673_s11 + $0xd0] sm:$0xff]  ;;  %v976_v20 = vmul.f32 %v1756_v15, %v937_v18  ;;  %904 = vst.msk [vmem:[%s1673_s11 + $0x60] sm:$0xff] %vm313_vm0, %v871_v11  ;;  %920 = vst.msk [vmem:[%s1673_s11 + $0xe0] sm:$0xff] %vm313_vm0, %v887_v12  ;;  %v872_v22 = vadd.f32 %v1350_v13, %v359_v7  ;;  %v888_v23 = vadd.f32 %v1398_v14, %v375_v9 }
 0x131   : > { %v992_v21 = vmul.f32 %v1756_v15, %v953_v19  ;;  %1078 = vst.msk [vmem:[%s1673_s11 + $0x48] sm:$0xff] %vm313_vm0, %v1046_v16  ;;  %1094 = vst.msk [vmem:[%s1673_s11 + $0xc8] sm:$0xff] %vm313_vm0, %v1062_v17  ;;  %v938_v27 = vld [vmem:[%s1673_s11 + $0x58] sm:$0xff] }
 0x132   : > { %v1015_v24 = vadd.f32 %v1764_v25, %v976_v20  ;;  %v954_v28 = vld [vmem:[%s1673_s11 + $0xd8] sm:$0xff]  ;;  %905 = vst.msk [vmem:[%s1673_s11 + $0x68] sm:$0xff] %vm313_vm0, %v872_v22  ;;  %921 = vst.msk [vmem:[%s1673_s11 + $0xe8] sm:$0xff] %vm313_vm0, %v888_v23  ;;  %v1351_v29 = vpop.f32.mrb[28].mxu0  ;;  %v1399_v30 = vpop.f32.mrb[28].mxu1  ;;  %v977_v31 = vmul.f32 %v1756_v15, %v938_v27 }
 0x133   : > { %v1031_v26 = vadd.f32 %v1764_v25, %v992_v21  ;;  %v993_v32 = vmul.f32 %v1756_v15, %v954_v28  ;;  %v1352_v34 = vpop.f32.mrb[29].mxu0  ;;  %v1400_v36 = vpop.f32.mrb[29].mxu1 }
 0x134   : > { %v1047_v37 = vmax.f32 %v1015_v24, 0.0  ;;  %v1353_v39 = vadd.f32 %v1352_v34, %v1351_v29  ;;  %v1401_v40 = vadd.f32 %v1400_v36, %v1399_v30  ;;  %v1354_v41 = vpop.f32.mrb[30].mxu0  ;;  %v1402_v42 = vpop.f32.mrb[30].mxu1  ;;  %v1016_v43 = vadd.f32 %v1764_v25, %v977_v31 }
 0x135   : > { %v1063_v38 = vmax.f32 %v1031_v26, 0.0  ;;  %v1032_v44 = vadd.f32 %v1764_v25, %v993_v32  ;;  %v1355_v46 = vpop.f32.mrb[31].mxu0  ;;  %v1403_v48 = vpop.f32.mrb[31].mxu1 }
 0x136   : > { %1079 = vst.msk [vmem:[%s1673_s11 + $0x50] sm:$0xff] %vm313_vm0, %v1047_v37  ;;  %v873_v49 = vadd.f32 %v1353_v39, %v360_v33  ;;  %v889_v50 = vadd.f32 %v1401_v40, %v376_v35  ;;  %v1356_v51 = vadd.f32 %v1355_v46, %v1354_v41  ;;  %v1404_v52 = vadd.f32 %v1403_v48, %v1402_v42 }
 0x137   : > { %1095 = vst.msk [vmem:[%s1673_s11 + $0xd0] sm:$0xff] %vm313_vm0, %v1063_v38  ;;  %v1048_v53 = vmax.f32 %v1016_v43, 0.0  ;;  %v1064_v54 = vmax.f32 %v1032_v44, 0.0  ;;  %v939_v55 = vld [vmem:[%s1673_s11 + $0x60] sm:$0xff] }
 0x138   : > { %v955_v56 = vld [vmem:[%s1673_s11 + $0xe0] sm:$0xff]  ;;  %v978_v57 = vmul.f32 %v1756_v15, %v939_v55  ;;  %906 = vst.msk [vmem:[%s1673_s11 + $0x70] sm:$0xff] %vm313_vm0, %v873_v49  ;;  %922 = vst.msk [vmem:[%s1673_s11 + $0xf0] sm:$0xff] %vm313_vm0, %v889_v50  ;;  %v874_v59 = vadd.f32 %v1356_v51, %v361_v45  ;;  %v890_v60 = vadd.f32 %v1404_v52, %v377_v47 }
 0x139   : > { %v994_v58 = vmul.f32 %v1756_v15, %v955_v56  ;;  %1080 = vst.msk [vmem:[%s1673_s11 + $0x58] sm:$0xff] %vm313_vm0, %v1048_v53  ;;  %1096 = vst.msk [vmem:[%s1673_s11 + $0xd8] sm:$0xff] %vm313_vm0, %v1064_v54  ;;  %v940_v61 = vld [vmem:[%s1673_s11 + $0x68] sm:$0xff] }
 0x13a   : > { %v956_v62 = vld [vmem:[%s1673_s11 + $0xe8] sm:$0xff]  ;;  %v1017_v63 = vadd.f32 %v1764_v25, %v978_v57  ;;  %v979_v1 = vmul.f32 %v1756_v15, %v940_v61  ;;  %907 = vst.msk [vmem:[%s1673_s11 + $0x78] sm:$0xff] %vm313_vm0, %v874_v59  ;;  %923 = vst.msk [vmem:[%s1673_s11 + $0xf8] sm:$0xff] %vm313_vm0, %v890_v60 }
 0x13b   : > { %v1033_v0 = vadd.f32 %v1764_v25, %v994_v58  ;;  %v995_v2 = vmul.f32 %v1756_v15, %v956_v62 }
 0x13c   : > { %v1049_v3 = vmax.f32 %v1017_v63, 0.0  ;;  %v1018_v5 = vadd.f32 %v1764_v25, %v979_v1 }
 0x13d   : > { %v1065_v4 = vmax.f32 %v1033_v0, 0.0  ;;  %v1034_v6 = vadd.f32 %v1764_v25, %v995_v2 }
 0x13e   : > { %1081 = vst.msk [vmem:[%s1673_s11 + $0x60] sm:$0xff] %vm313_vm0, %v1049_v3  ;;  %v1050_v7 = vmax.f32 %v1018_v5, 0.0 }
 0x13f   : > { %1097 = vst.msk [vmem:[%s1673_s11 + $0xe0] sm:$0xff] %vm313_vm0, %v1065_v4  ;;  %v1066_v8 = vmax.f32 %v1034_v6, 0.0  ;;  %v941_v9 = vld [vmem:[%s1673_s11 + $0x70] sm:$0xff] }
 0x140   : > { %v957_v10 = vld [vmem:[%s1673_s11 + $0xf0] sm:$0xff]  ;;  %1082 = vst.msk [vmem:[%s1673_s11 + $0x68] sm:$0xff] %vm313_vm0, %v1050_v7  ;;  %v980_v11 = vmul.f32 %v1756_v15, %v941_v9 }
 0x141   : > { %1098 = vst.msk [vmem:[%s1673_s11 + $0xe8] sm:$0xff] %vm313_vm0, %v1066_v8  ;;  %v996_v12 = vmul.f32 %v1756_v15, %v957_v10  ;;  %v942_v13 = vld [vmem:[%s1673_s11 + $0x78] sm:$0xff] }
 0x142   : > { %v958_v14 = vld [vmem:[%s1673_s11 + $0xf8] sm:$0xff]  ;;  %v1019_v16 = vadd.f32 %v1764_v25, %v980_v11  ;;  %v981_v18 = vmul.f32 %v1756_v15, %v942_v13 }
 0x143   : > { %v1035_v17 = vadd.f32 %v1764_v25, %v996_v12  ;;  %v997_v19 = vmul.f32 %v1756_v15, %v958_v14 }
 0x144   : > { %v1051_v20 = vmax.f32 %v1019_v16, 0.0  ;;  %v1020_v22 = vadd.f32 %v1764_v25, %v981_v18 }
 0x145   : > { %v1067_v21 = vmax.f32 %v1035_v17, 0.0  ;;  %v1036_v23 = vadd.f32 %v1764_v25, %v997_v19 }
 0x146   : > { %1083 = vst.msk [vmem:[%s1673_s11 + $0x70] sm:$0xff] %vm313_vm0, %v1051_v20  ;;  %v1052_v24 = vmax.f32 %v1020_v22, 0.0 }
 0x147   : > { %1099 = vst.msk [vmem:[%s1673_s11 + $0xf0] sm:$0xff] %vm313_vm0, %v1067_v21  ;;  %v1068_v26 = vmax.f32 %v1036_v23, 0.0 }
 0x148   : > { %1084 = vst.msk [vmem:[%s1673_s11 + $0x78] sm:$0xff] %vm313_vm0, %v1052_v24 }
 0x149   : > { %1100 = vst.msk [vmem:[%s1673_s11 + $0xf8] sm:$0xff] %vm313_vm0, %v1068_v26 }
 0x14a PF: > { %s14_s17 = sadd.s32 1, %s1532_s17   ;;  %s2019_s15 = smov %s1528_s16 }
 0x14b   : > { %p11_p5 = scmp.ge.s32.totalorder %s14_s17, 4   ;;  %s2020_s16 = smov %s2022_s18 }
 0x14d   :  { %13 = sbr.rel (!%p11_p5) target bundleno = 2 (0x2), region = 83 }

// kernel: _lambda_.21
= control target key start
LH: loop header
LB: loop body
LE: loop exit
PB: predicated region body
PF: predicated region fallthrough
CT: control target
= control target key end

     0   :  { %s1132_s15 = smov 0   ;;  %s1134_s16 = smov 0   ;;  %s1549_s0 = inlined_call_operand.vmem [shape: bf16[128,640], index: 0, kind: input, shape index: {}]   ;;  %s1550_s1 = inlined_call_operand.vmem [shape: bf16[640,64], index: 1, kind: input, shape index: {}]   ;;  %s1551_s2 = inlined_call_operand.vmem [shape: f32[1,64], index: 2, kind: input, shape index: {}]   ;;  %s1552_s3 = inlined_call_operand.vmem [shape: f32[1,64], index: 3, kind: input, shape index: {}]   ;;  %s1553_s4 = inlined_call_operand.vmem [shape: f32[128,64], index: 4, kind: output, shape index: {}]  }
   0x1   :  { %s1136_s17 = smov 0   ;;  %s1138_s18 = smov 0  }
   0x2   :  { %s1140_s19 = smov 0  }
   0x3 LB: > { %s26_s20 = sadd.s32 1, %s1100_s18  ;;  %p49_p1 = scmp.ne.s32.totalorder %s1092_s16, %s1088_s15  ;;  %s1104_s19 = sphi %s1140_s19, %s14_s19   ;;  %s1100_s18 = sphi %s1138_s18, %s1557_s18   ;;  %s1096_s17 = sphi %s1136_s17, %s1556_s17   ;;  %s1092_s16 = sphi %s1134_s16, %s1555_s16   ;;  %s1088_s15 = sphi %s1132_s15, %s1554_s15  }
   0x4   : > { %p27_p0 = scmp.ge.s32.totalorder %s26_s20, 5  ;;  %p50_p2 = scmp.eq.s32.totalorder %s1104_s19, 0 }
   0x5   : > { %s42_s22 = sadd.s32 1, %s1092_s16  ;;  %p914_p5 = scmp.ge.s32.totalorder %s1104_s19, 5 }
   0x6   : > { %s1559_s20 = smov (%p27_p0, %s26_s20), 0  ;;  %p51_p3 = por %p50_p2, %p49_p1 }
   0x7   : > { %s38_s21 = ssub.s32 %s1100_s18, %s1559_s20  ;;  %195 = sbr.rel (%p914_p5) target bundleno = 28 (0x1c), region = 24 }
   0x8   : > { %p40_p4 = scmp.eq.s32.totalorder %s38_s21, 0 }
   0xa   : > { %s1167_s23 = scalar_select %p40_p4, %s1092_s16, %s42_s22  }
   0xe   : > { %198 = sbr.rel (!%p51_p3) target bundleno = 28 (0x1c), region = 28  ;;  %s200_s24 = sand.u32 (%p51_p3), 1, %s1092_s16  }
   0xf   : > { %s916_s25 = sshll.u32 (%p51_p3), %s1100_s18, 2  ;;  %s915_s26 = sshll.u32 (%p51_p3), %s200_s24, 6 }
  0x10   : > { %s1175_s29 = scalar_lea.vmem (%p51_p3), %s1549_s0, %s916_s25  ;;  %s202_s30 = scalar_lea.vmem (%p51_p3), [#allocation2], %s915_s26 }
  0x11   : > { %v223_v0 = vld [vmem:[%s1175_s29] sm:$0xf] (%p51_p3)  ;;  %v225_v1 = vld [vmem:[%s1175_s29 + $0x14] sm:$0xf] (%p51_p3)  ;;  %v227_v2 = vld [vmem:[%s1175_s29 + $0x28] sm:$0xf] (%p51_p3) }
  0x12   : > { %224 = vst [vmem:[%s202_s30] sm:$0xf] (%p51_p3), %v223_v0  ;;  %226 = vst [vmem:[%s202_s30 + $0x4] sm:$0xf] (%p51_p3), %v225_v1  ;;  %v229_v3 = vld [vmem:[%s1175_s29 + $0x3c] sm:$0xf] (%p51_p3) }
  0x13   : > { %v231_v4 = vld [vmem:[%s1175_s29 + $0x50] sm:$0xf] (%p51_p3)  ;;  %228 = vst [vmem:[%s202_s30 + $0x8] sm:$0xf] (%p51_p3), %v227_v2  ;;  %230 = vst [vmem:[%s202_s30 + $0xc] sm:$0xf] (%p51_p3), %v229_v3 }
  0x14   : > { %232 = vst [vmem:[%s202_s30 + $0x10] sm:$0xf] (%p51_p3), %v231_v4  ;;  %v233_v5 = vld [vmem:[%s1175_s29 + $0x64] sm:$0xf] (%p51_p3)  ;;  %v235_v6 = vld [vmem:[%s1175_s29 + $0x78] sm:$0xf] (%p51_p3) }
  0x15   : > { %v237_v7 = vld [vmem:[%s1175_s29 + $0x8c] sm:$0xf]  ;;  %234 = vst [vmem:[%s202_s30 + $0x14] sm:$0xf] %v233_v5  ;;  %236 = vst [vmem:[%s202_s30 + $0x18] sm:$0xf] %v235_v6 }
  0x16   : > { %238 = vst [vmem:[%s202_s30 + $0x1c] sm:$0xf] %v237_v7  ;;  %v239_v8 = vld [vmem:[%s1175_s29 + $0xa0] sm:$0xf]  ;;  %v241_v9 = vld [vmem:[%s1175_s29 + $0xb4] sm:$0xf] }
  0x17   : > { %v243_v10 = vld [vmem:[%s1175_s29 + $0xc8] sm:$0xf]  ;;  %240 = vst [vmem:[%s202_s30 + $0x20] sm:$0xf] %v239_v8  ;;  %242 = vst [vmem:[%s202_s30 + $0x24] sm:$0xf] %v241_v9 }
  0x18   : > { %244 = vst [vmem:[%s202_s30 + $0x28] sm:$0xf] %v243_v10  ;;  %v245_v11 = vld [vmem:[%s1175_s29 + $0xdc] sm:$0xf]  ;;  %v247_v12 = vld [vmem:[%s1175_s29 + $0xf0] sm:$0xf] }
  0x19   : > { %v249_v13 = vld [vmem:[%s1175_s29 + $0x104] sm:$0xf]  ;;  %246 = vst [vmem:[%s202_s30 + $0x2c] sm:$0xf] %v245_v11  ;;  %248 = vst [vmem:[%s202_s30 + $0x30] sm:$0xf] %v247_v12 }
  0x1a   : > { %250 = vst [vmem:[%s202_s30 + $0x34] sm:$0xf] %v249_v13  ;;  %v251_v14 = vld [vmem:[%s1175_s29 + $0x118] sm:$0xf]  ;;  %v253_v15 = vld [vmem:[%s1175_s29 + $0x12c] sm:$0xf] }
  0x1b   : > { %252 = vst [vmem:[%s202_s30 + $0x38] sm:$0xf] %v251_v14  ;;  %254 = vst [vmem:[%s202_s30 + $0x3c] sm:$0xf] %v253_v15 }
  0x1c PF: > { %p917_p6 = scmp.ge.s32.totalorder %s1104_s19, 1  ;;  %p320_p7 = scmp.lt.s32.totalorder %s1104_s19, 6 }
  0x1e   : > { %p321_p8 = pnand %p917_p6, %p320_p7 }
  0x1f   : > { %s327_s5 = sand.u32 (!%p321_p8), 1, %s1088_s15   ;;  %s919_s6 = sshll.u32 (!%p321_p8), %s1096_s17, 4 }
  0x20   : > { %324 = sbr.rel (%p321_p8) target bundleno = 323 (0x143), region = 73  ;;  %s918_s7 = sshll.u32 (!%p321_p8), %s327_s5, 6 }
  0x21   : > { %p371_p9 = scmp.lt.s32.totalorder (!%p321_p8), %s919_s6, 79  ;;  %s1202_s12 = scalar_lea.vmem (!%p321_p8), [#allocation2], %s918_s7 }
  0x22   : > { %p921_p10 = scmp.ne.s32.totalorder (!%p321_p8), %s1096_s17, 0 }
  0x27   : > { %s1561_s6 = smov (!%p371_p9, %s919_s6), 79  ;;  %398 = sbr.rel (%p921_p10) target bundleno = 49 (0x31), region = 81 }
  0x28   : > { %s920_s8 = sshll.u32 %s1561_s6, 2  ;;  %vm399_vm0 = vcmask (!%p921_p10), 523264   ;;  %v1106_v16 = vmov (!%p921_p10), 0.0  }
  0x29   : > { %s1200_s11 = scalar_lea.vmem %s1550_s1, %s920_s8  ;;  %400 = vst.msk [vmem:[%s1553_s4] sm:$0xff] (!%p921_p10), %vm399_vm0, %v1106_v16  ;;  %401 = vst.msk [vmem:[%s1553_s4 + $0x8] sm:$0xff] (!%p921_p10), %vm399_vm0, %v1106_v16 }
  0x2a   : > { %402 = vst.msk [vmem:[%s1553_s4 + $0x10] sm:$0xff] (!%p921_p10), %vm399_vm0, %v1106_v16  ;;  %403 = vst.msk [vmem:[%s1553_s4 + $0x18] sm:$0xff] (!%p921_p10), %vm399_vm0, %v1106_v16 }
  0x2b   : > { %404 = vst.msk [vmem:[%s1553_s4 + $0x20] sm:$0xff] (!%p921_p10), %vm399_vm0, %v1106_v16  ;;  %405 = vst.msk [vmem:[%s1553_s4 + $0x28] sm:$0xff] (!%p921_p10), %vm399_vm0, %v1106_v16 }
  0x2c   : > { %406 = vst.msk [vmem:[%s1553_s4 + $0x30] sm:$0xff] (!%p921_p10), %vm399_vm0, %v1106_v16  ;;  %407 = vst.msk [vmem:[%s1553_s4 + $0x38] sm:$0xff] (!%p921_p10), %vm399_vm0, %v1106_v16 }
  0x2d   : > { %408 = vst.msk [vmem:[%s1553_s4 + $0x40] sm:$0xff] (!%p921_p10), %vm399_vm0, %v1106_v16  ;;  %409 = vst.msk [vmem:[%s1553_s4 + $0x48] sm:$0xff] (!%p921_p10), %vm399_vm0, %v1106_v16 }
  0x2e   : > { %410 = vst.msk [vmem:[%s1553_s4 + $0x50] sm:$0xff] %vm399_vm0, %v1106_v16  ;;  %411 = vst.msk [vmem:[%s1553_s4 + $0x58] sm:$0xff] %vm399_vm0, %v1106_v16 }
  0x2f   : > { %412 = vst.msk [vmem:[%s1553_s4 + $0x60] sm:$0xff] %vm399_vm0, %v1106_v16  ;;  %413 = vst.msk [vmem:[%s1553_s4 + $0x68] sm:$0xff] %vm399_vm0, %v1106_v16 }
  0x30   : > { %414 = vst.msk [vmem:[%s1553_s4 + $0x70] sm:$0xff] %vm399_vm0, %v1106_v16  ;;  %415 = vst.msk [vmem:[%s1553_s4 + $0x78] sm:$0xff] %vm399_vm0, %v1106_v16 }
  0x31 PF: > { %v1050_v17 = vld [vmem:[%s1200_s11] sm:$0xff]   ;;  %v1051_v18 = vld [vmem:[%s1200_s11 + $0x8] sm:$0xff]   ;;  %v1052_v19 = vld [vmem:[%s1200_s11 + $0x10] sm:$0xff]   ;;  %vm673_vm1 = vcmask 523264   ;;  %p938_p11 = scmp.ne.s32.totalorder %s1096_s17, 4 }
  0x32   : > { %961 = vmatprep.subr.bf16.mxu0 %v1050_v17  ;;  %993 = vmatprep.subr.bf16.mxu1 %v1050_v17  ;;  %v1053_v20 = vld [vmem:[%s1200_s11 + $0x18] sm:$0xff]   ;;  %v1058_v21 = vld [vmem:[%s1202_s12] sm:$0xff]   ;;  %v1055_v24 = vld [vmem:[%s1200_s11 + $0x28] sm:$0xff]  }
  0x33   : > { %962 = vmatpush3.bf16.msra.mxu0 %v1050_v17  ;;  %1001 = vmatpush3.bf16.msra.mxu1 %v1050_v17  ;;  %v1059_v22 = vld [vmem:[%s1202_s12 + $0x20] sm:$0xff]   ;;  %v1056_v25 = vld [vmem:[%s1200_s11 + $0x30] sm:$0xff]   ;;  %v1057_v26 = vld [vmem:[%s1200_s11 + $0x38] sm:$0xff]  }
  0x34   : > { %963 = vmatprep.subr.bf16.mxu0 %v1051_v18  ;;  %994 = vmatprep.subr.bf16.mxu1 %v1051_v18  ;;  %v1054_v23 = vld [vmem:[%s1200_s11 + $0x20] sm:$0xff]   ;;  %v1060_v27 = vld [vmem:[%s1202_s12 + $0x8] sm:$0xff]   ;;  %v1062_v29 = vld [vmem:[%s1202_s12 + $0x10] sm:$0xff]  }
  0x35   : > { %977 = vmatprep.mubr.bf16.mxu0 %v1058_v21  ;;  %985 = vmatprep.mubr.bf16.mxu1 %v1059_v22  ;;  %v1061_v28 = vld [vmem:[%s1202_s12 + $0x28] sm:$0xff]   ;;  %v1063_v30 = vld [vmem:[%s1202_s12 + $0x30] sm:$0xff]   ;;  %v1064_v31 = vld [vmem:[%s1202_s12 + $0x18] sm:$0xff]  }
  0x36   : > { %v1065_v32 = vld [vmem:[%s1202_s12 + $0x38] sm:$0xff]   ;;  %v418_v33 = vld [vmem:[%s1553_s4 + $0x10] sm:$0xff]  ;;  %v416_v35 = vld [vmem:[%s1553_s4] sm:$0xff] }
  0x37   : > { %964 = vmatpush3.bf16.msra.mxu0 %v1051_v18  ;;  %1002 = vmatpush3.bf16.msra.mxu1 %v1051_v18  ;;  %v426_v34 = vld [vmem:[%s1553_s4 + $0x50] sm:$0xff]  ;;  %v424_v36 = vld [vmem:[%s1553_s4 + $0x40] sm:$0xff]  ;;  %v419_v39 = vld [vmem:[%s1553_s4 + $0x18] sm:$0xff] }
  0x38   : > { %965 = vmatprep.subr.bf16.mxu0 %v1052_v19  ;;  %995 = vmatprep.subr.bf16.mxu1 %v1052_v19  ;;  %v427_v40 = vld [vmem:[%s1553_s4 + $0x58] sm:$0xff]  ;;  %v417_v45 = vld [vmem:[%s1553_s4 + $0x8] sm:$0xff]  ;;  %v422_v57 = vld [vmem:[%s1553_s4 + $0x30] sm:$0xff] }
  0x39   : > { %v425_v46 = vld [vmem:[%s1553_s4 + $0x48] sm:$0xff]  ;;  %v430_v58 = vld [vmem:[%s1553_s4 + $0x70] sm:$0xff]  ;;  %v420_v59 = vld [vmem:[%s1553_s4 + $0x20] sm:$0xff] }
  0x3a   : > { %v428_v60 = vld [vmem:[%s1553_s4 + $0x60] sm:$0xff]  ;;  %v423_v63 = vld [vmem:[%s1553_s4 + $0x38] sm:$0xff]  ;;  %v421_v5 = vld [vmem:[%s1553_s4 + $0x28] sm:$0xff] }
  0x3b   : > { %966 = vmatpush3.bf16.msra.mxu0 %v1052_v19  ;;  %1003 = vmatpush3.bf16.msra.mxu1 %v1052_v19  ;;  %v431_v0 = vld [vmem:[%s1553_s4 + $0x78] sm:$0xff]  ;;  %v429_v6 = vld [vmem:[%s1553_s4 + $0x68] sm:$0xff]  ;;  %v939_v18 = vld [vmem:[%s1551_s2] ss:$0 sm:$0xff] (!%p938_p11) }
  0x3c   : > { %967 = vmatprep.subr.bf16.mxu0 %v1053_v20  ;;  %996 = vmatprep.subr.bf16.mxu1 %v1053_v20  ;;  %v1407_v19 = vld [vmem:[%s1552_s3] ss:$0 sm:$0xff] (!%p938_p11) }
  0x3f   : > { %968 = vmatpush3.bf16.msra.mxu0 %v1053_v20  ;;  %1004 = vmatpush3.bf16.msra.mxu1 %v1053_v20 }
  0x40   : > { %969 = vmatprep.subr.bf16.mxu0 %v1054_v23  ;;  %997 = vmatprep.subr.bf16.mxu1 %v1054_v23 }
  0x43   : > { %970 = vmatpush3.bf16.msra.mxu0 %v1054_v23  ;;  %1005 = vmatpush3.bf16.msra.mxu1 %v1054_v23 }
  0x44   : > { %971 = vmatprep.subr.bf16.mxu0 %v1055_v24  ;;  %998 = vmatprep.subr.bf16.mxu1 %v1055_v24 }
  0x47   : > { %972 = vmatpush3.bf16.msra.mxu0 %v1055_v24  ;;  %1006 = vmatpush3.bf16.msra.mxu1 %v1055_v24 }
  0x48   : > { %973 = vmatprep.subr.bf16.mxu0 %v1056_v25  ;;  %999 = vmatprep.subr.bf16.mxu1 %v1056_v25 }
  0x4b   : > { %974 = vmatpush3.bf16.msra.mxu0 %v1056_v25  ;;  %1007 = vmatpush3.bf16.msra.mxu1 %v1056_v25 }
  0x4c   : > { %975 = vmatprep.subr.bf16.mxu0 %v1057_v26  ;;  %1000 = vmatprep.subr.bf16.mxu1 %v1057_v26 }
  0x4f   : > { %976 = vmatpush3.bf16.msra.mxu0 %v1057_v26  ;;  %1008 = vmatpush3.bf16.msra.mxu1 %v1057_v26 }
  0x52   : > { %978 = vmatmul.mubr.bf16.vlgmr.msra.gmra.mrb[0].mxu0 %v1060_v27  ;;  %986 = vmatmul.mubr.bf16.vlgmr.msra.gmra.mrb[0].mxu1 %v1061_v28 }
  0x53   : > { %981 = vmatprep.mubr.bf16.mxu0 %v1062_v29  ;;  %989 = vmatprep.mubr.bf16.mxu1 %v1063_v30 }
  0x5a   : > { %982 = vmatmul.mubr.bf16.gmra.mrb[4].mxu0 %v1064_v31  ;;  %990 = vmatmul.mubr.bf16.gmra.mrb[4].mxu1 %v1065_v32 }
 0x125   : > { %v979_v37 = vpop.f32.mrb[0].mxu0  ;;  %v987_v38 = vpop.f32.mrb[0].mxu1 }
 0x126   : > { %v659_v41 = vadd.f32 %v979_v37, %v418_v33  ;;  %v667_v42 = vadd.f32 %v987_v38, %v426_v34  ;;  %v594_v43 = vpop.f32.mrb[1].mxu0  ;;  %v626_v44 = vpop.f32.mrb[1].mxu1 }
 0x127   : > { %v657_v47 = vadd.f32 %v594_v43, %v416_v35  ;;  %v665_v48 = vadd.f32 %v626_v44, %v424_v36  ;;  %v980_v49 = vpop.f32.mrb[2].mxu0  ;;  %v988_v50 = vpop.f32.mrb[2].mxu1 }
 0x128   : > { %676 = vst.msk [vmem:[%s1553_s4 + $0x10] sm:$0xff] %vm673_vm1, %v659_v41  ;;  %684 = vst.msk [vmem:[%s1553_s4 + $0x50] sm:$0xff] %vm673_vm1, %v667_v42  ;;  %v660_v51 = vadd.f32 %v980_v49, %v419_v39  ;;  %v668_v52 = vadd.f32 %v988_v50, %v427_v40  ;;  %v597_v53 = vpop.f32.mrb[3].mxu0  ;;  %v629_v54 = vpop.f32.mrb[3].mxu1 }
 0x129   : > { %674 = vst.msk [vmem:[%s1553_s4] sm:$0xff] %vm673_vm1, %v657_v47  ;;  %682 = vst.msk [vmem:[%s1553_s4 + $0x40] sm:$0xff] %vm673_vm1, %v665_v48  ;;  %v658_v55 = vadd.f32 %v597_v53, %v417_v45  ;;  %v666_v56 = vadd.f32 %v629_v54, %v425_v46 }
 0x12a   : > { %677 = vst.msk [vmem:[%s1553_s4 + $0x18] sm:$0xff] %vm673_vm1, %v660_v51  ;;  %685 = vst.msk [vmem:[%s1553_s4 + $0x58] sm:$0xff] %vm673_vm1, %v668_v52 }
 0x12b   : > { %675 = vst.msk [vmem:[%s1553_s4 + $0x8] sm:$0xff] %vm673_vm1, %v658_v55  ;;  %683 = vst.msk [vmem:[%s1553_s4 + $0x48] sm:$0xff] %vm673_vm1, %v666_v56 }
 0x12d   : > { %v983_v61 = vpop.f32.mrb[4].mxu0  ;;  %v991_v62 = vpop.f32.mrb[4].mxu1  ;;  %693 = sbr.rel (%p938_p11) target bundleno = 323 (0x143), region = 85 }
 0x12e   : > { %v663_v1 = vadd.f32 %v983_v61, %v422_v57  ;;  %v671_v2 = vadd.f32 %v991_v62, %v430_v58  ;;  %v610_v3 = vpop.f32.mrb[5].mxu0  ;;  %v642_v4 = vpop.f32.mrb[5].mxu1 }
 0x12f   : > { %v661_v7 = vadd.f32 %v610_v3, %v420_v59  ;;  %v669_v8 = vadd.f32 %v642_v4, %v428_v60  ;;  %v984_v9 = vpop.f32.mrb[6].mxu0  ;;  %v992_v10 = vpop.f32.mrb[6].mxu1  ;;  %v696_v22 = vld [vmem:[%s1553_s4 + $0x10] sm:$0xff] (!%p938_p11) }
 0x130   : > { %680 = vst.msk [vmem:[%s1553_s4 + $0x30] sm:$0xff] %vm673_vm1, %v663_v1  ;;  %688 = vst.msk [vmem:[%s1553_s4 + $0x70] sm:$0xff] %vm673_vm1, %v671_v2  ;;  %v664_v11 = vadd.f32 %v984_v9, %v423_v63  ;;  %v672_v12 = vadd.f32 %v992_v10, %v431_v0  ;;  %v613_v13 = vpop.f32.mrb[7].mxu0  ;;  %v645_v14 = vpop.f32.mrb[7].mxu1  ;;  %v694_v17 = vld [vmem:[%s1553_s4] sm:$0xff] (!%p938_p11)  ;;  %v719_v25 = vmul.f32 (!%p938_p11), %v939_v18, %v696_v22  ;;  %v704_v45 = vld [vmem:[%s1553_s4 + $0x50] sm:$0xff] (!%p938_p11) }
 0x131   : > { %678 = vst.msk [vmem:[%s1553_s4 + $0x20] sm:$0xff] %vm673_vm1, %v661_v7  ;;  %686 = vst.msk [vmem:[%s1553_s4 + $0x60] sm:$0xff] %vm673_vm1, %v669_v8  ;;  %v662_v15 = vadd.f32 %v613_v13, %v421_v5  ;;  %v670_v16 = vadd.f32 %v645_v14, %v429_v6  ;;  %v717_v20 = vmul.f32 (!%p938_p11), %v939_v18, %v694_v17  ;;  %v697_v23 = vld [vmem:[%s1553_s4 + $0x18] sm:$0xff] (!%p938_p11)  ;;  %v702_v39 = vld [vmem:[%s1553_s4 + $0x40] sm:$0xff] (!%p938_p11) }
 0x132   : > { %681 = vst.msk [vmem:[%s1553_s4 + $0x38] sm:$0xff] %vm673_vm1, %v664_v11  ;;  %689 = vst.msk [vmem:[%s1553_s4 + $0x78] sm:$0xff] %vm673_vm1, %v672_v12  ;;  %v695_v21 = vld [vmem:[%s1553_s4 + $0x8] sm:$0xff] (!%p938_p11)  ;;  %v720_v26 = vmul.f32 (!%p938_p11), %v939_v18, %v697_v23  ;;  %v742_v36 = vadd.f32 (!%p938_p11), %v1407_v19, %v719_v25  ;;  %v705_v46 = vld [vmem:[%s1553_s4 + $0x58] sm:$0xff] (!%p938_p11)  ;;  %v725_v57 = vmul.f32 (!%p938_p11), %v939_v18, %v702_v39 }
 0x133   : > { %679 = vst.msk [vmem:[%s1553_s4 + $0x28] sm:$0xff] %vm673_vm1, %v662_v15  ;;  %687 = vst.msk [vmem:[%s1553_s4 + $0x68] sm:$0xff] %vm673_vm1, %v670_v16  ;;  %v718_v24 = vmul.f32 (!%p938_p11), %v939_v18, %v695_v21  ;;  %v740_v30 = vadd.f32 (!%p938_p11), %v1407_v19, %v717_v20  ;;  %v703_v44 = vld [vmem:[%s1553_s4 + $0x48] sm:$0xff] (!%p938_p11)  ;;  %v727_v61 = vmul.f32 (!%p938_p11), %v939_v18, %v704_v45 }
 0x134   : > { %v743_v37 = vadd.f32 %v1407_v19, %v720_v26  ;;  %v758_v48 = vmax.f32 %v742_v36, 0.0  ;;  %v726_v60 = vmul.f32 %v939_v18, %v703_v44  ;;  %v728_v62 = vmul.f32 %v939_v18, %v705_v46 }
 0x135   : > { %v741_v35 = vadd.f32 %v1407_v19, %v718_v24  ;;  %v756_v40 = vmax.f32 %v740_v30, 0.0  ;;  %v748_v63 = vadd.f32 %v1407_v19, %v725_v57  ;;  %v750_v4 = vadd.f32 %v1407_v19, %v727_v61 }
 0x136   : > { %v759_v49 = vmax.f32 %v743_v37, 0.0  ;;  %774 = vst.msk [vmem:[%s1553_s4 + $0x10] sm:$0xff] %vm673_vm1, %v758_v48  ;;  %v749_v3 = vadd.f32 %v1407_v19, %v726_v60  ;;  %v751_v5 = vadd.f32 %v1407_v19, %v728_v62 }
 0x137   : > { %v700_v29 = vld [vmem:[%s1553_s4 + $0x30] sm:$0xff]  ;;  %v757_v47 = vmax.f32 %v741_v35, 0.0  ;;  %772 = vst.msk [vmem:[%s1553_s4] sm:$0xff] %vm673_vm1, %v756_v40  ;;  %v764_v7 = vmax.f32 %v748_v63, 0.0  ;;  %v766_v12 = vmax.f32 %v750_v4, 0.0 }
 0x138   : > { %v698_v27 = vld [vmem:[%s1553_s4 + $0x20] sm:$0xff]  ;;  %v723_v33 = vmul.f32 %v939_v18, %v700_v29  ;;  %v708_v53 = vld [vmem:[%s1553_s4 + $0x70] sm:$0xff]  ;;  %775 = vst.msk [vmem:[%s1553_s4 + $0x18] sm:$0xff] %vm673_vm1, %v759_v49  ;;  %v765_v11 = vmax.f32 %v749_v3, 0.0  ;;  %v767_v13 = vmax.f32 %v751_v5, 0.0 }
 0x139   : > { %v721_v31 = vmul.f32 %v939_v18, %v698_v27  ;;  %v701_v34 = vld [vmem:[%s1553_s4 + $0x38] sm:$0xff]  ;;  %v706_v51 = vld [vmem:[%s1553_s4 + $0x60] sm:$0xff]  ;;  %773 = vst.msk [vmem:[%s1553_s4 + $0x8] sm:$0xff] %vm673_vm1, %v757_v47  ;;  %v731_v2 = vmul.f32 %v939_v18, %v708_v53  ;;  %780 = vst.msk [vmem:[%s1553_s4 + $0x40] sm:$0xff] %vm673_vm1, %v764_v7 }
 0x13a   : > { %v699_v28 = vld [vmem:[%s1553_s4 + $0x28] sm:$0xff]  ;;  %v724_v38 = vmul.f32 %v939_v18, %v701_v34  ;;  %v746_v43 = vadd.f32 %v1407_v19, %v723_v33  ;;  %v709_v58 = vld [vmem:[%s1553_s4 + $0x78] sm:$0xff]  ;;  %v729_v0 = vmul.f32 %v939_v18, %v706_v51  ;;  %781 = vst.msk [vmem:[%s1553_s4 + $0x48] sm:$0xff] %vm673_vm1, %v765_v11  ;;  %782 = vst.msk [vmem:[%s1553_s4 + $0x50] sm:$0xff] %vm673_vm1, %v766_v12 }
 0x13b   : > { %v722_v32 = vmul.f32 %v939_v18, %v699_v28  ;;  %v744_v41 = vadd.f32 %v1407_v19, %v721_v31  ;;  %v707_v52 = vld [vmem:[%s1553_s4 + $0x68] sm:$0xff]  ;;  %v732_v6 = vmul.f32 %v939_v18, %v709_v58  ;;  %v754_v10 = vadd.f32 %v1407_v19, %v731_v2  ;;  %783 = vst.msk [vmem:[%s1553_s4 + $0x58] sm:$0xff] %vm673_vm1, %v767_v13 }
 0x13c   : > { %v747_v50 = vadd.f32 %v1407_v19, %v724_v38  ;;  %v762_v56 = vmax.f32 %v746_v43, 0.0  ;;  %v730_v1 = vmul.f32 %v939_v18, %v707_v52  ;;  %v752_v8 = vadd.f32 %v1407_v19, %v729_v0 }
 0x13d   : > { %v745_v42 = vadd.f32 %v1407_v19, %v722_v32  ;;  %v760_v54 = vmax.f32 %v744_v41, 0.0  ;;  %v755_v14 = vadd.f32 %v1407_v19, %v732_v6  ;;  %v770_v17 = vmax.f32 %v754_v10, 0.0 }
 0x13e   : > { %v763_v59 = vmax.f32 %v747_v50, 0.0  ;;  %778 = vst.msk [vmem:[%s1553_s4 + $0x30] sm:$0xff] %vm673_vm1, %v762_v56  ;;  %v753_v9 = vadd.f32 %v1407_v19, %v730_v1  ;;  %v768_v15 = vmax.f32 %v752_v8, 0.0 }
 0x13f   : > { %v761_v55 = vmax.f32 %v745_v42, 0.0  ;;  %776 = vst.msk [vmem:[%s1553_s4 + $0x20] sm:$0xff] %vm673_vm1, %v760_v54  ;;  %v771_v18 = vmax.f32 %v755_v14, 0.0  ;;  %786 = vst.msk [vmem:[%s1553_s4 + $0x70] sm:$0xff] %vm673_vm1, %v770_v17 }
 0x140   : > { %779 = vst.msk [vmem:[%s1553_s4 + $0x38] sm:$0xff] %vm673_vm1, %v763_v59  ;;  %v769_v16 = vmax.f32 %v753_v9, 0.0  ;;  %784 = vst.msk [vmem:[%s1553_s4 + $0x60] sm:$0xff] %vm673_vm1, %v768_v15 }
 0x141   : > { %777 = vst.msk [vmem:[%s1553_s4 + $0x28] sm:$0xff] %vm673_vm1, %v761_v55  ;;  %787 = vst.msk [vmem:[%s1553_s4 + $0x78] sm:$0xff] %vm673_vm1, %v771_v18 }
 0x142   : > { %785 = vst.msk [vmem:[%s1553_s4 + $0x68] sm:$0xff] %vm673_vm1, %v769_v16 }
 0x143 PF: > { %s14_s19 = sadd.s32 1, %s1104_s19   ;;  %s1554_s15 = smov %s1092_s16 }
 0x144   : > { %p11_p12 = scmp.ge.s32.totalorder %s14_s19, 7   ;;  %s1555_s16 = smov %s1167_s23 }
 0x145   : > { %s1556_s17 = smov %s1100_s18  ;;  %s1557_s18 = smov %s1559_s20 }
 0x146   :  { %13 = sbr.rel (!%p11_p12) target bundleno = 3 (0x3), region = 129 }

// kernel: _lambda_.22
= control target key start
LH: loop header
LB: loop body
LE: loop exit
PB: predicated region body
PF: predicated region fallthrough
CT: control target
= control target key end

     0   :  { %s1116_s15 = smov 0   ;;  %s1118_s16 = smov 0   ;;  %s1515_s0 = inlined_call_operand.vmem [shape: bf16[128,640], index: 0, kind: input, shape index: {}]   ;;  %s1516_s1 = inlined_call_operand.vmem [shape: bf16[640,64], index: 1, kind: input, shape index: {}]   ;;  %s1517_s2 = inlined_call_operand.vmem [shape: f32[1,64], index: 2, kind: input, shape index: {}]   ;;  %s1518_s3 = inlined_call_operand.vmem [shape: f32[1,64], index: 3, kind: input, shape index: {}]   ;;  %s1519_s4 = inlined_call_operand.vmem [shape: f32[128,64], index: 4, kind: output, shape index: {}]  }
   0x1   :  { %s1120_s17 = smov 0   ;;  %s1122_s18 = smov 0  }
   0x2   :  { %s1124_s19 = smov 0  }
   0x3 LB: > { %s26_s20 = sadd.s32 1, %s1084_s18  ;;  %p49_p1 = scmp.ne.s32.totalorder %s1076_s16, %s1072_s15  ;;  %s1088_s19 = sphi %s1124_s19, %s14_s19   ;;  %s1084_s18 = sphi %s1122_s18, %s1523_s18   ;;  %s1080_s17 = sphi %s1120_s17, %s1522_s17   ;;  %s1076_s16 = sphi %s1118_s16, %s1521_s16   ;;  %s1072_s15 = sphi %s1116_s15, %s1520_s15  }
   0x4   : > { %p27_p0 = scmp.ge.s32.totalorder %s26_s20, 5  ;;  %p50_p2 = scmp.eq.s32.totalorder %s1088_s19, 0 }
   0x5   : > { %s42_s22 = sadd.s32 1, %s1076_s16  ;;  %p898_p5 = scmp.ge.s32.totalorder %s1088_s19, 5 }
   0x6   : > { %s1525_s20 = smov (%p27_p0, %s26_s20), 0  ;;  %p51_p3 = por %p50_p2, %p49_p1 }
   0x7   : > { %s38_s21 = ssub.s32 %s1084_s18, %s1525_s20  ;;  %195 = sbr.rel (%p898_p5) target bundleno = 28 (0x1c), region = 24 }
   0x8   : > { %p40_p4 = scmp.eq.s32.totalorder %s38_s21, 0 }
   0xa   : > { %s1151_s23 = scalar_select %p40_p4, %s1076_s16, %s42_s22  }
   0xe   : > { %198 = sbr.rel (!%p51_p3) target bundleno = 28 (0x1c), region = 28  ;;  %s200_s24 = sand.u32 (%p51_p3), 1, %s1076_s16  }
   0xf   : > { %s900_s25 = sshll.u32 (%p51_p3), %s1084_s18, 2  ;;  %s899_s26 = sshll.u32 (%p51_p3), %s200_s24, 6 }
  0x10   : > { %s1159_s29 = scalar_lea.vmem (%p51_p3), %s1515_s0, %s900_s25  ;;  %s202_s30 = scalar_lea.vmem (%p51_p3), [#allocation2], %s899_s26 }
  0x11   : > { %v223_v0 = vld [vmem:[%s1159_s29] sm:$0xf] (%p51_p3)  ;;  %v225_v1 = vld [vmem:[%s1159_s29 + $0x14] sm:$0xf] (%p51_p3)  ;;  %v227_v2 = vld [vmem:[%s1159_s29 + $0x28] sm:$0xf] (%p51_p3) }
  0x12   : > { %224 = vst [vmem:[%s202_s30] sm:$0xf] (%p51_p3), %v223_v0  ;;  %226 = vst [vmem:[%s202_s30 + $0x4] sm:$0xf] (%p51_p3), %v225_v1  ;;  %v229_v3 = vld [vmem:[%s1159_s29 + $0x3c] sm:$0xf] (%p51_p3) }
  0x13   : > { %v231_v4 = vld [vmem:[%s1159_s29 + $0x50] sm:$0xf] (%p51_p3)  ;;  %228 = vst [vmem:[%s202_s30 + $0x8] sm:$0xf] (%p51_p3), %v227_v2  ;;  %230 = vst [vmem:[%s202_s30 + $0xc] sm:$0xf] (%p51_p3), %v229_v3 }
  0x14   : > { %232 = vst [vmem:[%s202_s30 + $0x10] sm:$0xf] (%p51_p3), %v231_v4  ;;  %v233_v5 = vld [vmem:[%s1159_s29 + $0x64] sm:$0xf] (%p51_p3)  ;;  %v235_v6 = vld [vmem:[%s1159_s29 + $0x78] sm:$0xf] (%p51_p3) }
  0x15   : > { %v237_v7 = vld [vmem:[%s1159_s29 + $0x8c] sm:$0xf]  ;;  %234 = vst [vmem:[%s202_s30 + $0x14] sm:$0xf] %v233_v5  ;;  %236 = vst [vmem:[%s202_s30 + $0x18] sm:$0xf] %v235_v6 }
  0x16   : > { %238 = vst [vmem:[%s202_s30 + $0x1c] sm:$0xf] %v237_v7  ;;  %v239_v8 = vld [vmem:[%s1159_s29 + $0xa0] sm:$0xf]  ;;  %v241_v9 = vld [vmem:[%s1159_s29 + $0xb4] sm:$0xf] }
  0x17   : > { %v243_v10 = vld [vmem:[%s1159_s29 + $0xc8] sm:$0xf]  ;;  %240 = vst [vmem:[%s202_s30 + $0x20] sm:$0xf] %v239_v8  ;;  %242 = vst [vmem:[%s202_s30 + $0x24] sm:$0xf] %v241_v9 }
  0x18   : > { %244 = vst [vmem:[%s202_s30 + $0x28] sm:$0xf] %v243_v10  ;;  %v245_v11 = vld [vmem:[%s1159_s29 + $0xdc] sm:$0xf]  ;;  %v247_v12 = vld [vmem:[%s1159_s29 + $0xf0] sm:$0xf] }
  0x19   : > { %v249_v13 = vld [vmem:[%s1159_s29 + $0x104] sm:$0xf]  ;;  %246 = vst [vmem:[%s202_s30 + $0x2c] sm:$0xf] %v245_v11  ;;  %248 = vst [vmem:[%s202_s30 + $0x30] sm:$0xf] %v247_v12 }
  0x1a   : > { %250 = vst [vmem:[%s202_s30 + $0x34] sm:$0xf] %v249_v13  ;;  %v251_v14 = vld [vmem:[%s1159_s29 + $0x118] sm:$0xf]  ;;  %v253_v15 = vld [vmem:[%s1159_s29 + $0x12c] sm:$0xf] }
  0x1b   : > { %252 = vst [vmem:[%s202_s30 + $0x38] sm:$0xf] %v251_v14  ;;  %254 = vst [vmem:[%s202_s30 + $0x3c] sm:$0xf] %v253_v15 }
  0x1c PF: > { %p901_p6 = scmp.ge.s32.totalorder %s1088_s19, 1  ;;  %p320_p7 = scmp.lt.s32.totalorder %s1088_s19, 6 }
  0x1e   : > { %p321_p8 = pnand %p901_p6, %p320_p7 }
  0x1f   : > { %s327_s5 = sand.u32 (!%p321_p8), 1, %s1072_s15   ;;  %s903_s6 = sshll.u32 (!%p321_p8), %s1080_s17, 4 }
  0x20   : > { %324 = sbr.rel (%p321_p8) target bundleno = 321 (0x141), region = 73  ;;  %s902_s7 = sshll.u32 (!%p321_p8), %s327_s5, 6 }
  0x21   : > { %p371_p9 = scmp.lt.s32.totalorder (!%p321_p8), %s903_s6, 79  ;;  %s1186_s12 = scalar_lea.vmem (!%p321_p8), [#allocation2], %s902_s7 }
  0x22   : > { %p905_p10 = scmp.ne.s32.totalorder (!%p321_p8), %s1080_s17, 0 }
  0x27   : > { %s1527_s6 = smov (!%p371_p9, %s903_s6), 79  ;;  %398 = sbr.rel (%p905_p10) target bundleno = 49 (0x31), region = 81 }
  0x28   : > { %s904_s8 = sshll.u32 %s1527_s6, 2  ;;  %vm399_vm0 = vcmask (!%p905_p10), 523264   ;;  %v1090_v16 = vmov (!%p905_p10), 0.0  }
  0x29   : > { %s1184_s11 = scalar_lea.vmem %s1516_s1, %s904_s8  ;;  %400 = vst.msk [vmem:[%s1519_s4] sm:$0xff] (!%p905_p10), %vm399_vm0, %v1090_v16  ;;  %401 = vst.msk [vmem:[%s1519_s4 + $0x8] sm:$0xff] (!%p905_p10), %vm399_vm0, %v1090_v16 }
  0x2a   : > { %402 = vst.msk [vmem:[%s1519_s4 + $0x10] sm:$0xff] (!%p905_p10), %vm399_vm0, %v1090_v16  ;;  %403 = vst.msk [vmem:[%s1519_s4 + $0x18] sm:$0xff] (!%p905_p10), %vm399_vm0, %v1090_v16 }
  0x2b   : > { %404 = vst.msk [vmem:[%s1519_s4 + $0x20] sm:$0xff] (!%p905_p10), %vm399_vm0, %v1090_v16  ;;  %405 = vst.msk [vmem:[%s1519_s4 + $0x28] sm:$0xff] (!%p905_p10), %vm399_vm0, %v1090_v16 }
  0x2c   : > { %406 = vst.msk [vmem:[%s1519_s4 + $0x30] sm:$0xff] (!%p905_p10), %vm399_vm0, %v1090_v16  ;;  %407 = vst.msk [vmem:[%s1519_s4 + $0x38] sm:$0xff] (!%p905_p10), %vm399_vm0, %v1090_v16 }
  0x2d   : > { %408 = vst.msk [vmem:[%s1519_s4 + $0x40] sm:$0xff] (!%p905_p10), %vm399_vm0, %v1090_v16  ;;  %409 = vst.msk [vmem:[%s1519_s4 + $0x48] sm:$0xff] (!%p905_p10), %vm399_vm0, %v1090_v16 }
  0x2e   : > { %410 = vst.msk [vmem:[%s1519_s4 + $0x50] sm:$0xff] %vm399_vm0, %v1090_v16  ;;  %411 = vst.msk [vmem:[%s1519_s4 + $0x58] sm:$0xff] %vm399_vm0, %v1090_v16 }
  0x2f   : > { %412 = vst.msk [vmem:[%s1519_s4 + $0x60] sm:$0xff] %vm399_vm0, %v1090_v16  ;;  %413 = vst.msk [vmem:[%s1519_s4 + $0x68] sm:$0xff] %vm399_vm0, %v1090_v16 }
  0x30   : > { %414 = vst.msk [vmem:[%s1519_s4 + $0x70] sm:$0xff] %vm399_vm0, %v1090_v16  ;;  %415 = vst.msk [vmem:[%s1519_s4 + $0x78] sm:$0xff] %vm399_vm0, %v1090_v16 }
  0x31 PF: > { %v1034_v17 = vld [vmem:[%s1184_s11] sm:$0xff]   ;;  %v1035_v18 = vld [vmem:[%s1184_s11 + $0x8] sm:$0xff]   ;;  %v1036_v19 = vld [vmem:[%s1184_s11 + $0x10] sm:$0xff]   ;;  %vm673_vm1 = vcmask 523264   ;;  %p922_p11 = scmp.ne.s32.totalorder %s1080_s17, 4 }
  0x32   : > { %945 = vmatprep.subr.bf16.mxu0 %v1034_v17  ;;  %977 = vmatprep.subr.bf16.mxu1 %v1034_v17  ;;  %v1037_v20 = vld [vmem:[%s1184_s11 + $0x18] sm:$0xff]   ;;  %v1042_v21 = vld [vmem:[%s1186_s12] sm:$0xff]   ;;  %v1039_v24 = vld [vmem:[%s1184_s11 + $0x28] sm:$0xff]  }
  0x33   : > { %946 = vmatpush3.bf16.msra.mxu0 %v1034_v17  ;;  %985 = vmatpush3.bf16.msra.mxu1 %v1034_v17  ;;  %v1043_v22 = vld [vmem:[%s1186_s12 + $0x20] sm:$0xff]   ;;  %v1040_v25 = vld [vmem:[%s1184_s11 + $0x30] sm:$0xff]   ;;  %v1041_v26 = vld [vmem:[%s1184_s11 + $0x38] sm:$0xff]  }
  0x34   : > { %947 = vmatprep.subr.bf16.mxu0 %v1035_v18  ;;  %978 = vmatprep.subr.bf16.mxu1 %v1035_v18  ;;  %v1038_v23 = vld [vmem:[%s1184_s11 + $0x20] sm:$0xff]   ;;  %v1044_v27 = vld [vmem:[%s1186_s12 + $0x8] sm:$0xff]   ;;  %v1046_v29 = vld [vmem:[%s1186_s12 + $0x10] sm:$0xff]  }
  0x35   : > { %961 = vmatprep.mubr.bf16.mxu0 %v1042_v21  ;;  %969 = vmatprep.mubr.bf16.mxu1 %v1043_v22  ;;  %v1045_v28 = vld [vmem:[%s1186_s12 + $0x28] sm:$0xff]   ;;  %v1047_v30 = vld [vmem:[%s1186_s12 + $0x30] sm:$0xff]   ;;  %v1048_v31 = vld [vmem:[%s1186_s12 + $0x18] sm:$0xff]  }
  0x36   : > { %v1049_v32 = vld [vmem:[%s1186_s12 + $0x38] sm:$0xff]   ;;  %v418_v33 = vld [vmem:[%s1519_s4 + $0x10] sm:$0xff]  ;;  %v416_v35 = vld [vmem:[%s1519_s4] sm:$0xff] }
  0x37   : > { %948 = vmatpush3.bf16.msra.mxu0 %v1035_v18  ;;  %986 = vmatpush3.bf16.msra.mxu1 %v1035_v18  ;;  %v426_v34 = vld [vmem:[%s1519_s4 + $0x50] sm:$0xff]  ;;  %v424_v36 = vld [vmem:[%s1519_s4 + $0x40] sm:$0xff]  ;;  %v419_v39 = vld [vmem:[%s1519_s4 + $0x18] sm:$0xff] }
  0x38   : > { %949 = vmatprep.subr.bf16.mxu0 %v1036_v19  ;;  %979 = vmatprep.subr.bf16.mxu1 %v1036_v19  ;;  %v427_v40 = vld [vmem:[%s1519_s4 + $0x58] sm:$0xff]  ;;  %v417_v45 = vld [vmem:[%s1519_s4 + $0x8] sm:$0xff]  ;;  %v422_v57 = vld [vmem:[%s1519_s4 + $0x30] sm:$0xff] }
  0x39   : > { %v425_v46 = vld [vmem:[%s1519_s4 + $0x48] sm:$0xff]  ;;  %v430_v58 = vld [vmem:[%s1519_s4 + $0x70] sm:$0xff]  ;;  %v420_v59 = vld [vmem:[%s1519_s4 + $0x20] sm:$0xff] }
  0x3a   : > { %v428_v60 = vld [vmem:[%s1519_s4 + $0x60] sm:$0xff]  ;;  %v423_v63 = vld [vmem:[%s1519_s4 + $0x38] sm:$0xff]  ;;  %v421_v5 = vld [vmem:[%s1519_s4 + $0x28] sm:$0xff] }
  0x3b   : > { %950 = vmatpush3.bf16.msra.mxu0 %v1036_v19  ;;  %987 = vmatpush3.bf16.msra.mxu1 %v1036_v19  ;;  %v431_v0 = vld [vmem:[%s1519_s4 + $0x78] sm:$0xff]  ;;  %v429_v6 = vld [vmem:[%s1519_s4 + $0x68] sm:$0xff]  ;;  %v923_v18 = vld [vmem:[%s1517_s2] ss:$0 sm:$0xff] (!%p922_p11) }
  0x3c   : > { %951 = vmatprep.subr.bf16.mxu0 %v1037_v20  ;;  %980 = vmatprep.subr.bf16.mxu1 %v1037_v20  ;;  %v924_v19 = vld [vmem:[%s1518_s3] ss:$0 sm:$0xff] (!%p922_p11) }
  0x3f   : > { %952 = vmatpush3.bf16.msra.mxu0 %v1037_v20  ;;  %988 = vmatpush3.bf16.msra.mxu1 %v1037_v20 }
  0x40   : > { %953 = vmatprep.subr.bf16.mxu0 %v1038_v23  ;;  %981 = vmatprep.subr.bf16.mxu1 %v1038_v23 }
  0x43   : > { %954 = vmatpush3.bf16.msra.mxu0 %v1038_v23  ;;  %989 = vmatpush3.bf16.msra.mxu1 %v1038_v23 }
  0x44   : > { %955 = vmatprep.subr.bf16.mxu0 %v1039_v24  ;;  %982 = vmatprep.subr.bf16.mxu1 %v1039_v24 }
  0x47   : > { %956 = vmatpush3.bf16.msra.mxu0 %v1039_v24  ;;  %990 = vmatpush3.bf16.msra.mxu1 %v1039_v24 }
  0x48   : > { %957 = vmatprep.subr.bf16.mxu0 %v1040_v25  ;;  %983 = vmatprep.subr.bf16.mxu1 %v1040_v25 }
  0x4b   : > { %958 = vmatpush3.bf16.msra.mxu0 %v1040_v25  ;;  %991 = vmatpush3.bf16.msra.mxu1 %v1040_v25 }
  0x4c   : > { %959 = vmatprep.subr.bf16.mxu0 %v1041_v26  ;;  %984 = vmatprep.subr.bf16.mxu1 %v1041_v26 }
  0x4f   : > { %960 = vmatpush3.bf16.msra.mxu0 %v1041_v26  ;;  %992 = vmatpush3.bf16.msra.mxu1 %v1041_v26 }
  0x52   : > { %962 = vmatmul.mubr.bf16.vlgmr.msra.gmra.mrb[0].mxu0 %v1044_v27  ;;  %970 = vmatmul.mubr.bf16.vlgmr.msra.gmra.mrb[0].mxu1 %v1045_v28 }
  0x53   : > { %965 = vmatprep.mubr.bf16.mxu0 %v1046_v29  ;;  %973 = vmatprep.mubr.bf16.mxu1 %v1047_v30 }
  0x5a   : > { %966 = vmatmul.mubr.bf16.gmra.mrb[4].mxu0 %v1048_v31  ;;  %974 = vmatmul.mubr.bf16.gmra.mrb[4].mxu1 %v1049_v32 }
 0x125   : > { %v963_v37 = vpop.f32.mrb[0].mxu0  ;;  %v971_v38 = vpop.f32.mrb[0].mxu1 }
 0x126   : > { %v659_v41 = vadd.f32 %v963_v37, %v418_v33  ;;  %v667_v42 = vadd.f32 %v971_v38, %v426_v34  ;;  %v594_v43 = vpop.f32.mrb[1].mxu0  ;;  %v626_v44 = vpop.f32.mrb[1].mxu1 }
 0x127   : > { %v657_v47 = vadd.f32 %v594_v43, %v416_v35  ;;  %v665_v48 = vadd.f32 %v626_v44, %v424_v36  ;;  %v964_v49 = vpop.f32.mrb[2].mxu0  ;;  %v972_v50 = vpop.f32.mrb[2].mxu1 }
 0x128   : > { %676 = vst.msk [vmem:[%s1519_s4 + $0x10] sm:$0xff] %vm673_vm1, %v659_v41  ;;  %684 = vst.msk [vmem:[%s1519_s4 + $0x50] sm:$0xff] %vm673_vm1, %v667_v42  ;;  %v660_v51 = vadd.f32 %v964_v49, %v419_v39  ;;  %v668_v52 = vadd.f32 %v972_v50, %v427_v40  ;;  %v597_v53 = vpop.f32.mrb[3].mxu0  ;;  %v629_v54 = vpop.f32.mrb[3].mxu1 }
 0x129   : > { %674 = vst.msk [vmem:[%s1519_s4] sm:$0xff] %vm673_vm1, %v657_v47  ;;  %682 = vst.msk [vmem:[%s1519_s4 + $0x40] sm:$0xff] %vm673_vm1, %v665_v48  ;;  %v658_v55 = vadd.f32 %v597_v53, %v417_v45  ;;  %v666_v56 = vadd.f32 %v629_v54, %v425_v46 }
 0x12a   : > { %677 = vst.msk [vmem:[%s1519_s4 + $0x18] sm:$0xff] %vm673_vm1, %v660_v51  ;;  %685 = vst.msk [vmem:[%s1519_s4 + $0x58] sm:$0xff] %vm673_vm1, %v668_v52 }
 0x12b   : > { %675 = vst.msk [vmem:[%s1519_s4 + $0x8] sm:$0xff] %vm673_vm1, %v658_v55  ;;  %683 = vst.msk [vmem:[%s1519_s4 + $0x48] sm:$0xff] %vm673_vm1, %v666_v56 }
 0x12d   : > { %v967_v61 = vpop.f32.mrb[4].mxu0  ;;  %v975_v62 = vpop.f32.mrb[4].mxu1  ;;  %693 = sbr.rel (%p922_p11) target bundleno = 321 (0x141), region = 85 }
 0x12e   : > { %v663_v1 = vadd.f32 %v967_v61, %v422_v57  ;;  %v671_v2 = vadd.f32 %v975_v62, %v430_v58  ;;  %v610_v3 = vpop.f32.mrb[5].mxu0  ;;  %v642_v4 = vpop.f32.mrb[5].mxu1 }
 0x12f   : > { %v661_v7 = vadd.f32 %v610_v3, %v420_v59  ;;  %v669_v8 = vadd.f32 %v642_v4, %v428_v60  ;;  %v968_v9 = vpop.f32.mrb[6].mxu0  ;;  %v976_v10 = vpop.f32.mrb[6].mxu1  ;;  %v696_v22 = vld [vmem:[%s1519_s4 + $0x10] sm:$0xff] (!%p922_p11) }
 0x130   : > { %680 = vst.msk [vmem:[%s1519_s4 + $0x30] sm:$0xff] %vm673_vm1, %v663_v1  ;;  %688 = vst.msk [vmem:[%s1519_s4 + $0x70] sm:$0xff] %vm673_vm1, %v671_v2  ;;  %v664_v11 = vadd.f32 %v968_v9, %v423_v63  ;;  %v672_v12 = vadd.f32 %v976_v10, %v431_v0  ;;  %v613_v13 = vpop.f32.mrb[7].mxu0  ;;  %v645_v14 = vpop.f32.mrb[7].mxu1  ;;  %v694_v17 = vld [vmem:[%s1519_s4] sm:$0xff] (!%p922_p11)  ;;  %v719_v25 = vmul.f32 (!%p922_p11), %v923_v18, %v696_v22  ;;  %v704_v41 = vld [vmem:[%s1519_s4 + $0x50] sm:$0xff] (!%p922_p11) }
 0x131   : > { %678 = vst.msk [vmem:[%s1519_s4 + $0x20] sm:$0xff] %vm673_vm1, %v661_v7  ;;  %686 = vst.msk [vmem:[%s1519_s4 + $0x60] sm:$0xff] %vm673_vm1, %v669_v8  ;;  %v662_v15 = vadd.f32 %v613_v13, %v421_v5  ;;  %v670_v16 = vadd.f32 %v645_v14, %v429_v6  ;;  %v717_v20 = vmul.f32 (!%p922_p11), %v923_v18, %v694_v17  ;;  %v697_v23 = vld [vmem:[%s1519_s4 + $0x18] sm:$0xff] (!%p922_p11)  ;;  %v702_v35 = vld [vmem:[%s1519_s4 + $0x40] sm:$0xff] (!%p922_p11) }
 0x132   : > { %681 = vst.msk [vmem:[%s1519_s4 + $0x38] sm:$0xff] %vm673_vm1, %v664_v11  ;;  %689 = vst.msk [vmem:[%s1519_s4 + $0x78] sm:$0xff] %vm673_vm1, %v672_v12  ;;  %v695_v21 = vld [vmem:[%s1519_s4 + $0x8] sm:$0xff] (!%p922_p11)  ;;  %v720_v26 = vmul.f32 (!%p922_p11), %v923_v18, %v697_v23  ;;  %v742_v38 = vadd.f32 (!%p922_p11), %v924_v19, %v719_v25  ;;  %v705_v42 = vld [vmem:[%s1519_s4 + $0x58] sm:$0xff] (!%p922_p11)  ;;  %v725_v47 = vmul.f32 (!%p922_p11), %v923_v18, %v702_v35 }
 0x133   : > { %679 = vst.msk [vmem:[%s1519_s4 + $0x28] sm:$0xff] %vm673_vm1, %v662_v15  ;;  %687 = vst.msk [vmem:[%s1519_s4 + $0x68] sm:$0xff] %vm673_vm1, %v670_v16  ;;  %v718_v24 = vmul.f32 (!%p922_p11), %v923_v18, %v695_v21  ;;  %v740_v30 = vadd.f32 (!%p922_p11), %v924_v19, %v717_v20  ;;  %v703_v36 = vld [vmem:[%s1519_s4 + $0x48] sm:$0xff] (!%p922_p11)  ;;  %v727_v53 = vmul.f32 (!%p922_p11), %v923_v18, %v704_v41 }
 0x134   : > { %v743_v39 = vadd.f32 %v924_v19, %v720_v26  ;;  %758 = vst.msk [vmem:[%s1519_s4 + $0x10] sm:$0xff] %vm673_vm1, %v742_v38  ;;  %v726_v52 = vmul.f32 %v923_v18, %v703_v36  ;;  %v728_v54 = vmul.f32 %v923_v18, %v705_v42  ;;  %v748_v55 = vadd.f32 %v924_v19, %v725_v47 }
 0x135   : > { %v741_v37 = vadd.f32 %v924_v19, %v718_v24  ;;  %756 = vst.msk [vmem:[%s1519_s4] sm:$0xff] %vm673_vm1, %v740_v30  ;;  %v750_v60 = vadd.f32 %v924_v19, %v727_v53 }
 0x136   : > { %759 = vst.msk [vmem:[%s1519_s4 + $0x18] sm:$0xff] %vm673_vm1, %v743_v39  ;;  %v749_v59 = vadd.f32 %v924_v19, %v726_v52  ;;  %v751_v61 = vadd.f32 %v924_v19, %v728_v54  ;;  %764 = vst.msk [vmem:[%s1519_s4 + $0x40] sm:$0xff] %vm673_vm1, %v748_v55 }
 0x137   : > { %v700_v29 = vld [vmem:[%s1519_s4 + $0x30] sm:$0xff]  ;;  %757 = vst.msk [vmem:[%s1519_s4 + $0x8] sm:$0xff] %vm673_vm1, %v741_v37  ;;  %766 = vst.msk [vmem:[%s1519_s4 + $0x50] sm:$0xff] %vm673_vm1, %v750_v60 }
 0x138   : > { %v698_v27 = vld [vmem:[%s1519_s4 + $0x20] sm:$0xff]  ;;  %v723_v33 = vmul.f32 %v923_v18, %v700_v29  ;;  %v708_v49 = vld [vmem:[%s1519_s4 + $0x70] sm:$0xff]  ;;  %765 = vst.msk [vmem:[%s1519_s4 + $0x48] sm:$0xff] %vm673_vm1, %v749_v59  ;;  %767 = vst.msk [vmem:[%s1519_s4 + $0x58] sm:$0xff] %vm673_vm1, %v751_v61 }
 0x139   : > { %v721_v31 = vmul.f32 %v923_v18, %v698_v27  ;;  %v701_v34 = vld [vmem:[%s1519_s4 + $0x38] sm:$0xff]  ;;  %v706_v43 = vld [vmem:[%s1519_s4 + $0x60] sm:$0xff]  ;;  %v731_v58 = vmul.f32 %v923_v18, %v708_v49 }
 0x13a   : > { %v699_v28 = vld [vmem:[%s1519_s4 + $0x28] sm:$0xff]  ;;  %v724_v40 = vmul.f32 %v923_v18, %v701_v34  ;;  %v746_v46 = vadd.f32 %v924_v19, %v723_v33  ;;  %v709_v50 = vld [vmem:[%s1519_s4 + $0x78] sm:$0xff]  ;;  %v729_v56 = vmul.f32 %v923_v18, %v706_v43 }
 0x13b   : > { %v722_v32 = vmul.f32 %v923_v18, %v699_v28  ;;  %v744_v44 = vadd.f32 %v924_v19, %v721_v31  ;;  %v707_v48 = vld [vmem:[%s1519_s4 + $0x68] sm:$0xff]  ;;  %v732_v62 = vmul.f32 %v923_v18, %v709_v50  ;;  %v754_v1 = vadd.f32 %v924_v19, %v731_v58 }
 0x13c   : > { %v747_v51 = vadd.f32 %v924_v19, %v724_v40  ;;  %762 = vst.msk [vmem:[%s1519_s4 + $0x30] sm:$0xff] %vm673_vm1, %v746_v46  ;;  %v730_v57 = vmul.f32 %v923_v18, %v707_v48  ;;  %v752_v63 = vadd.f32 %v924_v19, %v729_v56 }
 0x13d   : > { %v745_v45 = vadd.f32 %v924_v19, %v722_v32  ;;  %760 = vst.msk [vmem:[%s1519_s4 + $0x20] sm:$0xff] %vm673_vm1, %v744_v44  ;;  %v755_v2 = vadd.f32 %v924_v19, %v732_v62  ;;  %770 = vst.msk [vmem:[%s1519_s4 + $0x70] sm:$0xff] %vm673_vm1, %v754_v1 }
 0x13e   : > { %763 = vst.msk [vmem:[%s1519_s4 + $0x38] sm:$0xff] %vm673_vm1, %v747_v51  ;;  %v753_v0 = vadd.f32 %v924_v19, %v730_v57  ;;  %768 = vst.msk [vmem:[%s1519_s4 + $0x60] sm:$0xff] %vm673_vm1, %v752_v63 }
 0x13f   : > { %761 = vst.msk [vmem:[%s1519_s4 + $0x28] sm:$0xff] %vm673_vm1, %v745_v45  ;;  %771 = vst.msk [vmem:[%s1519_s4 + $0x78] sm:$0xff] %vm673_vm1, %v755_v2 }
 0x140   : > { %769 = vst.msk [vmem:[%s1519_s4 + $0x68] sm:$0xff] %vm673_vm1, %v753_v0 }
 0x141 PF: > { %s14_s19 = sadd.s32 1, %s1088_s19   ;;  %s1520_s15 = smov %s1076_s16 }
 0x142   : > { %p11_p12 = scmp.ge.s32.totalorder %s14_s19, 7   ;;  %s1521_s16 = smov %s1151_s23 }
 0x143   : > { %s1522_s17 = smov %s1084_s18  ;;  %s1523_s18 = smov %s1525_s20 }
 0x144   :  { %13 = sbr.rel (!%p11_p12) target bundleno = 3 (0x3), region = 129 }

// kernel: _lambda_.23
= control target key start
LH: loop header
LB: loop body
LE: loop exit
PB: predicated region body
PF: predicated region fallthrough
CT: control target
= control target key end

     0   :  { %s701_s15 = smov 0   ;;  %s703_s16 = smov 0   ;;  %s789_s0 = inlined_call_operand.vmem [shape: f32[2,64,64], index: 0, kind: input, shape index: {}]   ;;  %s790_s1 = inlined_call_operand.vmem [shape: f32[2,1,64], index: 1, kind: input, shape index: {}]   ;;  %s791_s2 = inlined_call_operand.vmem [shape: f32[2,64,64], index: 2, kind: output, shape index: {0}]   ;;  %s792_s3 = inlined_call_operand.vmem [shape: f32[2,64,1], index: 3, kind: output, shape index: {1}]   ;;  %s793_s4 = inlined_call_operand.vmem [shape: f32[2,64,1], index: 4, kind: output, shape index: {2}]  }
   0x1   :  { %s705_s17 = smov 0  }
   0x2 LB: > { %s27_s18 = sadd.s32 1, %s670_s16  ;;  %p609_p0 = scmp.ge.s32.totalorder %s674_s17, 1  ;;  %s674_s17 = sphi %s705_s17, %s15_s17   ;;  %s670_s16 = sphi %s703_s16, %s795_s16   ;;  %s666_s15 = sphi %s701_s15, %s794_s15  }
   0x3   : > { %p29_p1 = scmp.ge.s32.totalorder %s27_s18, 2  ;;  %p200_p2 = scmp.lt.s32.totalorder %s674_s17, 3 }
   0x5   : > { %s797_s18 = smov (%p29_p1, %s27_s18), 0  ;;  %p201_p3 = pnand %p609_p0, %p200_p2 }
   0x6   : > { %p256_p4 = scmp.lt.s32.totalorder (!%p201_p3), %s666_s15, 1  ;;  %v313_v5 = vlaneseq (!%p201_p3)  ;;  %vm326_vm0 = vcmask (!%p201_p3), 523264   ;;  %vm359_vm1 = vcmask (!%p201_p3), 7168  }
   0x7   : > { %204 = sbr.rel (%p201_p3) target bundleno = 221 (0xdd), region = 28 }
   0x8   : > { %v314_v6 = vshrl.u32 (!%p201_p3), %v313_v5, 7 }
   0xa   : > { %v315_v7 = vsub.s32 (!%p201_p3), 0, %v314_v6 }
   0xe   : > { %s799_s15 = smov (!%p256_p4, %s666_s15), 1 }
   0xf   : > { %s267_s21 = scalar_lea.vmem %s790_s1, %s799_s15  ;;  %s722_s22 = sshll.u32 %s799_s15, 6 }
  0x10   : > { %v298_v0 = vld [vmem:[%s267_s21] sm:$0x1]  ;;  %s263_s25 = scalar_lea.vmem %s789_s0, %s722_s22  ;;  %s276_s28 = scalar_lea.vmem %s791_s2, %s722_s22 }
  0x11   : > { %v299_v1 = vsub.f32 0.0, %v298_v0  ;;  %v306_v8 = vld [vmem:[%s263_s25 + $0x10] sm:$0xff]  ;;  %v304_v9 = vld [vmem:[%s263_s25] sm:$0xff]  ;;  %v307_v11 = vld [vmem:[%s263_s25 + $0x18] sm:$0xff]  ;;  %s296_s5 = scalar_lea.vmem %s793_s4, %s722_s22  ;;  %s286_s8 = scalar_lea.vmem %s792_s3, %s722_s22 }
  0x12   : > { %v305_v12 = vld [vmem:[%s263_s25 + $0x8] sm:$0xff]  ;;  %v308_v15 = vld [vmem:[%s263_s25 + $0x20] sm:$0xff]  ;;  %v311_v16 = vld [vmem:[%s263_s25 + $0x38] sm:$0xff] }
  0x13   : > { %v300_v2 = vmul.f32 1.442695, %v299_v1  ;;  %v309_v13 = vld [vmem:[%s263_s25 + $0x28] sm:$0xff]  ;;  %v310_v17 = vld [vmem:[%s263_s25 + $0x30] sm:$0xff] }
  0x15   : > { %648 = vpow2.f32 %v300_v2 }
  0x1f   : > { %v649_v3 = vpop.eup %648 }
  0x20   : > { %v302_v4 = vadd.f32 1.0, %v649_v3 }
  0x22   : > { %650 = vrcp.f32 %v302_v4 }
  0x2c   : > { %v651_v10 = vpop.eup %650 }
  0x2d   : > { %v316_v14 = vrot.slane %v651_v10, %v315_v7 }
  0x2f   : > { %v320_v18 = vmul.f32 %v316_v14, %v306_v8  ;;  %v318_v19 = vmul.f32 %v316_v14, %v304_v9  ;;  %v321_v20 = vmul.f32 %v316_v14, %v307_v11  ;;  %v319_v21 = vmul.f32 %v316_v14, %v305_v12 }
  0x30   : > { %v323_v22 = vmul.f32 %v316_v14, %v309_v13  ;;  %v322_v23 = vmul.f32 %v316_v14, %v308_v15  ;;  %v325_v24 = vmul.f32 %v316_v14, %v311_v16  ;;  %v324_v25 = vmul.f32 %v316_v14, %v310_v17 }
  0x31   : > { %v374_v26 = vsel %vm326_vm0, %v320_v18, 0.0  ;;  %329 = vst.msk [vmem:[%s276_s28 + $0x10] sm:$0xff] %vm326_vm0, %v320_v18  ;;  %v368_v27 = vsel %vm326_vm0, %v318_v19, 0.0  ;;  %327 = vst.msk [vmem:[%s276_s28] sm:$0xff] %vm326_vm0, %v318_v19  ;;  %v377_v28 = vsel %vm326_vm0, %v321_v20, 0.0  ;;  %v371_v29 = vsel %vm326_vm0, %v319_v21, 0.0 }
  0x32   : > { %330 = vst.msk [vmem:[%s276_s28 + $0x18] sm:$0xff] %vm326_vm0, %v321_v20  ;;  %328 = vst.msk [vmem:[%s276_s28 + $0x8] sm:$0xff] %vm326_vm0, %v319_v21  ;;  %375 = vadd.xlane.f32.xlu1 %v374_v26  ;;  %369 = vadd.xlane.f32.xlu0 %v368_v27  ;;  %v383_v30 = vsel %vm326_vm0, %v323_v22, 0.0  ;;  %v380_v31 = vsel %vm326_vm0, %v322_v23, 0.0  ;;  %v389_v32 = vsel %vm326_vm0, %v325_v24, 0.0  ;;  %v386_v33 = vsel %vm326_vm0, %v324_v25, 0.0 }
  0x33   : > { %332 = vst.msk [vmem:[%s276_s28 + $0x28] sm:$0xff] %vm326_vm0, %v323_v22  ;;  %331 = vst.msk [vmem:[%s276_s28 + $0x20] sm:$0xff] %vm326_vm0, %v322_v23  ;;  %v338_v34 = vsel %vm326_vm0, %v319_v21, -inf  ;;  %v335_v35 = vsel %vm326_vm0, %v318_v19, -inf  ;;  %v344_v36 = vsel %vm326_vm0, %v321_v20, -inf  ;;  %v341_v37 = vsel %vm326_vm0, %v320_v18, -inf }
  0x34   : > { %334 = vst.msk [vmem:[%s276_s28 + $0x38] sm:$0xff] %vm326_vm0, %v325_v24  ;;  %333 = vst.msk [vmem:[%s276_s28 + $0x30] sm:$0xff] %vm326_vm0, %v324_v25  ;;  %v350_v38 = vsel %vm326_vm0, %v323_v22, -inf  ;;  %v347_v39 = vsel %vm326_vm0, %v322_v23, -inf  ;;  %v356_v40 = vsel %vm326_vm0, %v325_v24, -inf  ;;  %v353_v41 = vsel %vm326_vm0, %v324_v25, -inf }
  0x36   : > { %378 = vadd.xlane.f32.xlu1 %v377_v28  ;;  %372 = vadd.xlane.f32.xlu0 %v371_v29 }
  0x3a   : > { %384 = vadd.xlane.f32.xlu1 %v383_v30  ;;  %381 = vadd.xlane.f32.xlu0 %v380_v31 }
  0x3e   : > { %390 = vadd.xlane.f32.xlu1 %v389_v32  ;;  %387 = vadd.xlane.f32.xlu0 %v386_v33 }
  0x42   : > { %339 = vmax.xlane.f32.xlu1 %v338_v34  ;;  %336 = vmax.xlane.f32.xlu0 %v335_v35 }
  0x46   : > { %345 = vmax.xlane.f32.xlu1 %v344_v36  ;;  %342 = vmax.xlane.f32.xlu0 %v341_v37 }
  0x4a   : > { %351 = vmax.xlane.f32.xlu1 %v350_v38  ;;  %348 = vmax.xlane.f32.xlu0 %v347_v39 }
  0x4e   : > { %357 = vmax.xlane.f32.xlu1 %v356_v40  ;;  %354 = vmax.xlane.f32.xlu0 %v353_v41 }
  0xbf   : > { %v376_v42 = vpop.xlane.xlu1 %375  ;;  %v370_v43 = vpop.xlane.xlu0 %369 }
  0xc0   : > { %v395_v44 = vmul.f32 0.015625, %v376_v42  ;;  %v393_v45 = vmul.f32 0.015625, %v370_v43 }
  0xc2   : > { %403 = vst.msk [vmem:[%s296_s5 + $0x10] sm:$0xff] %vm359_vm1, %v395_v44  ;;  %401 = vst.msk [vmem:[%s296_s5] sm:$0xff] %vm359_vm1, %v393_v45 }
  0xc3   : > { %v379_v46 = vpop.xlane.xlu1 %378  ;;  %v373_v47 = vpop.xlane.xlu0 %372 }
  0xc4   : > { %v396_v48 = vmul.f32 0.015625, %v379_v46  ;;  %v394_v49 = vmul.f32 0.015625, %v373_v47 }
  0xc6   : > { %404 = vst.msk [vmem:[%s296_s5 + $0x18] sm:$0xff] %vm359_vm1, %v396_v48  ;;  %402 = vst.msk [vmem:[%s296_s5 + $0x8] sm:$0xff] %vm359_vm1, %v394_v49 }
  0xc7   : > { %v385_v50 = vpop.xlane.xlu1 %384  ;;  %v382_v51 = vpop.xlane.xlu0 %381 }
  0xc8   : > { %v398_v52 = vmul.f32 0.015625, %v385_v50  ;;  %v397_v53 = vmul.f32 0.015625, %v382_v51 }
  0xca   : > { %406 = vst.msk [vmem:[%s296_s5 + $0x28] sm:$0xff] %vm359_vm1, %v398_v52  ;;  %405 = vst.msk [vmem:[%s296_s5 + $0x20] sm:$0xff] %vm359_vm1, %v397_v53 }
  0xcb   : > { %v391_v54 = vpop.xlane.xlu1 %390  ;;  %v388_v55 = vpop.xlane.xlu0 %387 }
  0xcc   : > { %v400_v56 = vmul.f32 0.015625, %v391_v54  ;;  %v399_v57 = vmul.f32 0.015625, %v388_v55 }
  0xce   : > { %408 = vst.msk [vmem:[%s296_s5 + $0x38] sm:$0xff] %vm359_vm1, %v400_v56  ;;  %407 = vst.msk [vmem:[%s296_s5 + $0x30] sm:$0xff] %vm359_vm1, %v399_v57 }
  0xcf   : > { %v340_v58 = vpop.xlane.xlu1 %339  ;;  %v337_v59 = vpop.xlane.xlu0 %336 }
  0xd0   : > { %361 = vst.msk [vmem:[%s286_s8 + $0x8] sm:$0xff] %vm359_vm1, %v340_v58  ;;  %360 = vst.msk [vmem:[%s286_s8] sm:$0xff] %vm359_vm1, %v337_v59 }
  0xd3   : > { %v346_v60 = vpop.xlane.xlu1 %345  ;;  %v343_v61 = vpop.xlane.xlu0 %342 }
  0xd4   : > { %363 = vst.msk [vmem:[%s286_s8 + $0x18] sm:$0xff] %vm359_vm1, %v346_v60  ;;  %362 = vst.msk [vmem:[%s286_s8 + $0x10] sm:$0xff] %vm359_vm1, %v343_v61 }
  0xd7   : > { %v352_v62 = vpop.xlane.xlu1 %351  ;;  %v349_v63 = vpop.xlane.xlu0 %348 }
  0xd8   : > { %365 = vst.msk [vmem:[%s286_s8 + $0x28] sm:$0xff] %vm359_vm1, %v352_v62  ;;  %364 = vst.msk [vmem:[%s286_s8 + $0x20] sm:$0xff] %vm359_vm1, %v349_v63 }
  0xdb   : > { %v358_v0 = vpop.xlane.xlu1 %357  ;;  %v355_v1 = vpop.xlane.xlu0 %354 }
  0xdc   : > { %367 = vst.msk [vmem:[%s286_s8 + $0x38] sm:$0xff] %vm359_vm1, %v358_v0  ;;  %366 = vst.msk [vmem:[%s286_s8 + $0x30] sm:$0xff] %vm359_vm1, %v355_v1 }
  0xdd PF: > { %s15_s17 = sadd.s32 1, %s674_s17   ;;  %s794_s15 = smov %s670_s16 }
  0xde   : > { %p12_p5 = scmp.ge.s32.totalorder %s15_s17, 4   ;;  %s795_s16 = smov %s797_s18 }
  0xe0   :  { %14 = sbr.rel (!%p12_p5) target bundleno = 2 (0x2), region = 85 }

// kernel: _lambda_.24
= control target key start
LH: loop header
LB: loop body
LE: loop exit
PB: predicated region body
PF: predicated region fallthrough
CT: control target
= control target key end

     0   :  { %s665_s12 = smov 0   ;;  %s667_s13 = smov 0   ;;  %s748_s0 = inlined_call_operand.vmem [shape: f32[2,64,64], index: 0, kind: input, shape index: {}]   ;;  %s749_s1 = inlined_call_operand.vmem [shape: f32[2,64,1], index: 1, kind: input, shape index: {}]   ;;  %s750_s2 = inlined_call_operand.vmem [shape: f32[2,64,64], index: 2, kind: input, shape index: {}]   ;;  %s751_s3 = inlined_call_operand.vmem [shape: f32[2,64,64], index: 3, kind: output, shape index: {}]  }
   0x1   :  { %s669_s14 = smov 0  }
   0x2 LB: > { %s25_s15 = sadd.s32 1, %s638_s13  ;;  %p546_p0 = scmp.ge.s32.totalorder %s642_s14, 1  ;;  %s642_s14 = sphi %s669_s14, %s13_s14   ;;  %s638_s13 = sphi %s667_s13, %s753_s13   ;;  %s634_s12 = sphi %s665_s12, %s752_s12  }
   0x3   : > { %p27_p1 = scmp.ge.s32.totalorder %s25_s15, 2  ;;  %p192_p2 = scmp.lt.s32.totalorder %s642_s14, 3 }
   0x5   : > { %s755_s15 = smov (%p27_p1, %s25_s15), 0  ;;  %p193_p3 = pnand %p546_p0, %p192_p2 }
   0x6   : > { %p243_p4 = scmp.lt.s32.totalorder (!%p193_p3), %s634_s12, 1  ;;  %v644_v0 = vmov (!%p193_p3), 0   ;;  %vm410_vm0 = vcmask (!%p193_p3), 523264  }
   0x7   : > { %196 = sbr.rel (%p193_p3) target bundleno = 194 (0xc2), region = 32  ;;  %587 = vset.pattern.permute.xlu1 (!%p193_p3), %v644_v0  ;;  %586 = vset.pattern.permute.xlu0 (!%p193_p3), %v644_v0 }
   0xe   : > { %s757_s12 = smov (!%p243_p4, %s634_s12), 1 }
   0xf   : > { %s683_s16 = sshll.u32 %s757_s12, 6 }
  0x10   : > { %s260_s19 = scalar_lea.vmem %s749_s1, %s683_s16  ;;  %s693_s22 = scalar_lea.vmem %s748_s0, %s683_s16 }
  0x11   : > { %v284_v1 = vld [vmem:[%s260_s19 + $0x10] sm:$0xff]  ;;  %v282_v2 = vld [vmem:[%s260_s19] sm:$0xff]  ;;  %v285_v3 = vld [vmem:[%s260_s19 + $0x18] sm:$0xff]  ;;  %s699_s25 = scalar_lea.vmem %s750_s2, %s683_s16  ;;  %s711_s28 = scalar_lea.vmem %s751_s3, %s683_s16 }
  0x12   : > { %v292_v4 = vsub.f32 0.0, %v284_v1  ;;  %v290_v5 = vsub.f32 0.0, %v282_v2  ;;  %v293_v6 = vsub.f32 0.0, %v285_v3  ;;  %v283_v7 = vld [vmem:[%s260_s19 + $0x8] sm:$0xff]  ;;  %v286_v9 = vld [vmem:[%s260_s19 + $0x20] sm:$0xff]  ;;  %v289_v13 = vld [vmem:[%s260_s19 + $0x38] sm:$0xff] }
  0x13   : > { %v287_v8 = vld [vmem:[%s260_s19 + $0x28] sm:$0xff]  ;;  %v291_v10 = vsub.f32 0.0, %v283_v7  ;;  %v294_v12 = vsub.f32 0.0, %v286_v9  ;;  %v288_v14 = vld [vmem:[%s260_s19 + $0x30] sm:$0xff]  ;;  %v297_v20 = vsub.f32 0.0, %v289_v13  ;;  %v330_v50 = vld [vmem:[%s693_s22] sm:$0xff] }
  0x14   : > { %v295_v11 = vsub.f32 0.0, %v287_v8  ;;  %v302_v15 = vmul.f32 1.442695, %v292_v4  ;;  %v298_v16 = vmul.f32 1.442695, %v290_v5  ;;  %v296_v21 = vsub.f32 0.0, %v288_v14 }
  0x15   : > { %v304_v17 = vmul.f32 1.442695, %v293_v6  ;;  %v300_v18 = vmul.f32 1.442695, %v291_v10  ;;  %v306_v22 = vmul.f32 1.442695, %v294_v12 }
  0x16   : > { %588 = vpow2.f32 %v302_v15  ;;  %v308_v19 = vmul.f32 1.442695, %v295_v11  ;;  %v312_v23 = vmul.f32 1.442695, %v297_v20  ;;  %v310_v24 = vmul.f32 1.442695, %v296_v21 }
  0x17   : > { %590 = vpow2.f32 %v298_v16  ;;  %v332_v49 = vld [vmem:[%s693_s22 + $0x10] sm:$0xff]  ;;  %v386_v54 = vld [vmem:[%s699_s25] sm:$0xff]  ;;  %v333_v57 = vld [vmem:[%s693_s22 + $0x18] sm:$0xff] }
  0x18   : > { %592 = vpow2.f32 %v304_v17  ;;  %v388_v51 = vld [vmem:[%s699_s25 + $0x10] sm:$0xff]  ;;  %v331_v59 = vld [vmem:[%s693_s22 + $0x8] sm:$0xff]  ;;  %v389_v61 = vld [vmem:[%s699_s25 + $0x18] sm:$0xff] }
  0x19   : > { %594 = vpow2.f32 %v300_v18  ;;  %v387_v1 = vld [vmem:[%s699_s25 + $0x8] sm:$0xff]  ;;  %v334_v7 = vld [vmem:[%s693_s22 + $0x20] sm:$0xff]  ;;  %v337_v17 = vld [vmem:[%s693_s22 + $0x38] sm:$0xff] }
  0x1a   : > { %596 = vpow2.f32 %v308_v19  ;;  %v335_v5 = vld [vmem:[%s693_s22 + $0x28] sm:$0xff]  ;;  %v390_v13 = vld [vmem:[%s699_s25 + $0x20] sm:$0xff]  ;;  %v336_v19 = vld [vmem:[%s693_s22 + $0x30] sm:$0xff] }
  0x1b   : > { %598 = vpow2.f32 %v306_v22  ;;  %v391_v9 = vld [vmem:[%s699_s25 + $0x28] sm:$0xff]  ;;  %v393_v21 = vld [vmem:[%s699_s25 + $0x38] sm:$0xff] }
  0x1c   : > { %600 = vpow2.f32 %v312_v23 }
  0x1d   : > { %602 = vpow2.f32 %v310_v24 }
  0x20   : > { %v589_v25 = vpop.eup %588 }
  0x21   : > { %v591_v26 = vpop.eup %590  ;;  %v316_v27 = vadd.f32 1.0, %v589_v25  ;;  %v392_v25 = vld [vmem:[%s699_s25 + $0x30] sm:$0xff] }
  0x22   : > { %v593_v28 = vpop.eup %592  ;;  %v314_v29 = vadd.f32 1.0, %v591_v26 }
  0x23   : > { %v595_v30 = vpop.eup %594  ;;  %604 = vrcp.f32 %v316_v27  ;;  %v317_v31 = vadd.f32 1.0, %v593_v28 }
  0x24   : > { %v597_v32 = vpop.eup %596  ;;  %606 = vrcp.f32 %v314_v29  ;;  %v315_v33 = vadd.f32 1.0, %v595_v30 }
  0x25   : > { %v599_v34 = vpop.eup %598  ;;  %608 = vrcp.f32 %v317_v31  ;;  %v319_v35 = vadd.f32 1.0, %v597_v32 }
  0x26   : > { %v601_v36 = vpop.eup %600  ;;  %610 = vrcp.f32 %v315_v33  ;;  %v318_v37 = vadd.f32 1.0, %v599_v34 }
  0x27   : > { %v603_v38 = vpop.eup %602  ;;  %612 = vrcp.f32 %v319_v35  ;;  %v321_v39 = vadd.f32 1.0, %v601_v36 }
  0x28   : > { %614 = vrcp.f32 %v318_v37  ;;  %v320_v40 = vadd.f32 1.0, %v603_v38 }
  0x29   : > { %616 = vrcp.f32 %v321_v39 }
  0x2a   : > { %618 = vrcp.f32 %v320_v40 }
  0x2d   : > { %v605_v41 = vpop.eup %604 }
  0x2e   : > { %v607_v42 = vpop.eup %606  ;;  %350 = vperm.xlu1 %587, %v605_v41  }
  0x2f   : > { %v609_v43 = vpop.eup %608  ;;  %340 = vperm.xlu0 %586, %v607_v42  }
  0x30   : > { %v611_v44 = vpop.eup %610 }
  0x31   : > { %v613_v45 = vpop.eup %612 }
  0x32   : > { %355 = vperm.xlu1 %587, %v609_v43   ;;  %v615_v46 = vpop.eup %614 }
  0x33   : > { %345 = vperm.xlu0 %586, %v611_v44   ;;  %v617_v47 = vpop.eup %616 }
  0x34   : > { %v619_v48 = vpop.eup %618 }
  0x36   : > { %365 = vperm.xlu1 %587, %v613_v45  }
  0x37   : > { %360 = vperm.xlu0 %586, %v615_v46  }
  0x3a   : > { %375 = vperm.xlu1 %587, %v617_v47  }
  0x3b   : > { %370 = vperm.xlu0 %586, %v619_v48  }
  0xad   : > { %v351_v52 = vpop.permute.xlu1 %350 }
  0xae   : > { %v380_v53 = vmul.f32 %v351_v52, %v332_v49  ;;  %v341_v55 = vpop.permute.xlu0 %340 }
  0xaf   : > { %v378_v56 = vmul.f32 %v341_v55, %v330_v50 }
  0xb0   : > { %v396_v58 = vadd.f32 %v388_v51, %v380_v53 }
  0xb1   : > { %v394_v60 = vadd.f32 %v386_v54, %v378_v56  ;;  %v356_v62 = vpop.permute.xlu1 %355 }
  0xb2   : > { %v404_v63 = vmax.f32 %v396_v58, 0.0  ;;  %v381_v0 = vmul.f32 %v356_v62, %v333_v57  ;;  %v346_v2 = vpop.permute.xlu0 %345 }
  0xb3   : > { %v402_v3 = vmax.f32 %v394_v60, 0.0  ;;  %v379_v4 = vmul.f32 %v346_v2, %v331_v59 }
  0xb4   : > { %413 = vst.msk [vmem:[%s711_s28 + $0x10] sm:$0xff] %vm410_vm0, %v404_v63  ;;  %v397_v6 = vadd.f32 %v389_v61, %v381_v0 }
  0xb5   : > { %411 = vst.msk [vmem:[%s711_s28] sm:$0xff] %vm410_vm0, %v402_v3  ;;  %v395_v8 = vadd.f32 %v387_v1, %v379_v4  ;;  %v366_v10 = vpop.permute.xlu1 %365 }
  0xb6   : > { %v405_v11 = vmax.f32 %v397_v6, 0.0  ;;  %v383_v12 = vmul.f32 %v366_v10, %v335_v5  ;;  %v361_v14 = vpop.permute.xlu0 %360 }
  0xb7   : > { %v403_v15 = vmax.f32 %v395_v8, 0.0  ;;  %v382_v16 = vmul.f32 %v361_v14, %v334_v7 }
  0xb8   : > { %414 = vst.msk [vmem:[%s711_s28 + $0x18] sm:$0xff] %vm410_vm0, %v405_v11  ;;  %v399_v18 = vadd.f32 %v391_v9, %v383_v12 }
  0xb9   : > { %412 = vst.msk [vmem:[%s711_s28 + $0x8] sm:$0xff] %vm410_vm0, %v403_v15  ;;  %v398_v20 = vadd.f32 %v390_v13, %v382_v16  ;;  %v376_v22 = vpop.permute.xlu1 %375 }
  0xba   : > { %v407_v23 = vmax.f32 %v399_v18, 0.0  ;;  %v385_v24 = vmul.f32 %v376_v22, %v337_v17  ;;  %v371_v26 = vpop.permute.xlu0 %370 }
  0xbb   : > { %v406_v27 = vmax.f32 %v398_v20, 0.0  ;;  %v384_v28 = vmul.f32 %v371_v26, %v336_v19 }
  0xbc   : > { %416 = vst.msk [vmem:[%s711_s28 + $0x28] sm:$0xff] %vm410_vm0, %v407_v23  ;;  %v401_v29 = vadd.f32 %v393_v21, %v385_v24 }
  0xbd   : > { %415 = vst.msk [vmem:[%s711_s28 + $0x20] sm:$0xff] %vm410_vm0, %v406_v27  ;;  %v400_v30 = vadd.f32 %v392_v25, %v384_v28 }
  0xbe   : > { %v409_v31 = vmax.f32 %v401_v29, 0.0 }
  0xbf   : > { %v408_v32 = vmax.f32 %v400_v30, 0.0 }
  0xc0   : > { %418 = vst.msk [vmem:[%s711_s28 + $0x38] sm:$0xff] %vm410_vm0, %v409_v31 }
  0xc1   : > { %417 = vst.msk [vmem:[%s711_s28 + $0x30] sm:$0xff] %vm410_vm0, %v408_v32 }
  0xc2 PF: > { %s13_s14 = sadd.s32 1, %s642_s14   ;;  %s752_s12 = smov %s638_s13 }
  0xc3   : > { %p10_p5 = scmp.ge.s32.totalorder %s13_s14, 4   ;;  %s753_s13 = smov %s755_s15 }
  0xc5   :  { %12 = sbr.rel (!%p10_p5) target bundleno = 2 (0x2), region = 68 }

// kernel: _lambda_.25
= control target key start
LH: loop header
LB: loop body
LE: loop exit
PB: predicated region body
PF: predicated region fallthrough
CT: control target
= control target key end

     0   :  { %s832_s15 = smov 0   ;;  %s834_s16 = smov 0   ;;  %s982_s0 = inlined_call_operand.vmem [shape: bf16[32,640], index: 0, kind: input, shape index: {}]   ;;  %s983_s1 = inlined_call_operand.vmem [shape: bf16[640,128], index: 1, kind: input, shape index: {}]   ;;  %s984_s2 = inlined_call_operand.vmem [shape: f32[1,128], index: 2, kind: input, shape index: {}]   ;;  %s985_s3 = inlined_call_operand.vmem [shape: f32[1,128], index: 3, kind: input, shape index: {}]   ;;  %s986_s4 = inlined_call_operand.vmem [shape: f32[32,128], index: 4, kind: output, shape index: {}]  }
   0x1   :  { %s836_s17 = smov 0   ;;  %s838_s18 = smov 0  }
   0x2   :  { %s840_s19 = smov 0  }
   0x3 LB: > { %s26_s20 = sadd.s32 1, %s800_s18  ;;  %p49_p1 = scmp.ne.s32.totalorder %s792_s16, %s788_s15  ;;  %s804_s19 = sphi %s840_s19, %s14_s19   ;;  %s800_s18 = sphi %s838_s18, %s990_s18   ;;  %s796_s17 = sphi %s836_s17, %s989_s17   ;;  %s792_s16 = sphi %s834_s16, %s988_s16   ;;  %s788_s15 = sphi %s832_s15, %s987_s15  }
   0x4   : > { %p27_p0 = scmp.ge.s32.totalorder %s26_s20, 5  ;;  %p50_p2 = scmp.eq.s32.totalorder %s804_s19, 0 }
   0x5   : > { %s42_s22 = sadd.s32 1, %s792_s16  ;;  %p660_p5 = scmp.ge.s32.totalorder %s804_s19, 5 }
   0x6   : > { %s992_s20 = smov (%p27_p0, %s26_s20), 0  ;;  %p51_p3 = por %p50_p2, %p49_p1 }
   0x7   : > { %s38_s21 = ssub.s32 %s800_s18, %s992_s20  ;;  %195 = sbr.rel (%p660_p5) target bundleno = 21 (0x15), region = 24 }
   0x8   : > { %p40_p4 = scmp.eq.s32.totalorder %s38_s21, 0 }
   0xa   : > { %s867_s23 = scalar_select %p40_p4, %s792_s16, %s42_s22  }
   0xe   : > { %198 = sbr.rel (!%p51_p3) target bundleno = 21 (0x15), region = 28  ;;  %s200_s24 = sand.u32 (%p51_p3), 1, %s792_s16  }
   0xf   : > { %s662_s25 = sshll.u32 (%p51_p3), %s800_s18, 2  ;;  %s661_s26 = sshll.u32 (%p51_p3), %s200_s24, 4 }
  0x10   : > { %s207_s29 = scalar_lea.vmem (%p51_p3), %s982_s0, %s662_s25  ;;  %s202_s30 = scalar_lea.vmem (%p51_p3), [#allocation2], %s661_s26 }
  0x11   : > { %v223_v0 = vld [vmem:[%s207_s29] sm:$0xf] (%p51_p3)  ;;  %v225_v1 = vld [vmem:[%s207_s29 + $0x14] sm:$0xf] (%p51_p3)  ;;  %v227_v2 = vld [vmem:[%s207_s29 + $0x28] sm:$0xf] (%p51_p3) }
  0x12   : > { %224 = vst [vmem:[%s202_s30] sm:$0xf] (%p51_p3), %v223_v0  ;;  %226 = vst [vmem:[%s202_s30 + $0x4] sm:$0xf] (%p51_p3), %v225_v1  ;;  %v229_v3 = vld [vmem:[%s207_s29 + $0x3c] sm:$0xf] (%p51_p3) }
  0x13   : > { %228 = vst [vmem:[%s202_s30 + $0x8] sm:$0xf] (%p51_p3), %v227_v2  ;;  %230 = vst [vmem:[%s202_s30 + $0xc] sm:$0xf] (%p51_p3), %v229_v3 }
  0x15 PF: > { %p663_p6 = scmp.ge.s32.totalorder %s804_s19, 1  ;;  %p272_p7 = scmp.lt.s32.totalorder %s804_s19, 6 }
  0x17   : > { %p273_p8 = pnand %p663_p6, %p272_p7 }
  0x18   : > { %s279_s5 = sand.u32 (!%p273_p8), 1, %s788_s15   ;;  %s665_s6 = sshll.u32 (!%p273_p8), %s796_s17, 4 }
  0x19   : > { %276 = sbr.rel (%p273_p8) target bundleno = 304 (0x130), region = 73  ;;  %s879_s7 = sshll.u32 (!%p273_p8), %s279_s5, 4 }
  0x1a   : > { %p323_p9 = scmp.lt.s32.totalorder (!%p273_p8), %s665_s6, 79  ;;  %s281_s12 = scalar_lea.vmem (!%p273_p8), [#allocation2], %s879_s7 }
  0x1b   : > { %p667_p10 = scmp.ne.s32.totalorder (!%p273_p8), %s796_s17, 0 }
  0x20   : > { %s994_s6 = smov (!%p323_p9, %s665_s6), 79  ;;  %350 = sbr.rel (%p667_p10) target bundleno = 39 (0x27), region = 81 }
  0x21   : > { %s666_s8 = sshll.u32 %s994_s6, 2  ;;  %v806_v4 = vmov (!%p667_p10), 0.0  }
  0x22   : > { %s884_s11 = scalar_lea.vmem %s983_s1, %s666_s8  ;;  %351 = vst [vmem:[%s986_s4] sm:$0xff] (!%p667_p10), %v806_v4  ;;  %352 = vst [vmem:[%s986_s4 + $0x8] sm:$0xff] (!%p667_p10), %v806_v4 }
  0x23   : > { %353 = vst [vmem:[%s986_s4 + $0x10] sm:$0xff] (!%p667_p10), %v806_v4  ;;  %354 = vst [vmem:[%s986_s4 + $0x18] sm:$0xff] (!%p667_p10), %v806_v4 }
  0x27 PF: > { %v756_v5 = vld [vmem:[%s884_s11] sm:$0xff]   ;;  %v757_v6 = vld [vmem:[%s884_s11 + $0x8] sm:$0xff]   ;;  %v758_v7 = vld [vmem:[%s884_s11 + $0x10] sm:$0xff]   ;;  %p678_p11 = scmp.ne.s32.totalorder %s796_s17, 4 }
  0x28   : > { %695 = vmatprep.subr.bf16.mxu0 %v756_v5  ;;  %v759_v8 = vld [vmem:[%s884_s11 + $0x18] sm:$0xff]   ;;  %v764_v9 = vld [vmem:[%s281_s12] sm:$0xff]   ;;  %v761_v11 = vld [vmem:[%s884_s11 + $0x28] sm:$0xff]  }
  0x29   : > { %696 = vmatpush3.bf16.msra.mxu0 %v756_v5  ;;  %711 = vmatprep.mubr.bf16.mxu0 %v764_v9  ;;  %v760_v10 = vld [vmem:[%s884_s11 + $0x20] sm:$0xff]   ;;  %v762_v12 = vld [vmem:[%s884_s11 + $0x30] sm:$0xff]   ;;  %v763_v13 = vld [vmem:[%s884_s11 + $0x38] sm:$0xff]  }
  0x2a   : > { %697 = vmatprep.subr.bf16.mxu0 %v757_v6  ;;  %v765_v14 = vld [vmem:[%s281_s12 + $0x8] sm:$0xff]   ;;  %v357_v15 = vld [vmem:[%s986_s4 + $0x10] sm:$0xff]  ;;  %v355_v16 = vld [vmem:[%s986_s4] sm:$0xff] }
  0x2b   : > { %v358_v18 = vld [vmem:[%s986_s4 + $0x18] sm:$0xff]  ;;  %v356_v21 = vld [vmem:[%s986_s4 + $0x8] sm:$0xff]  ;;  %v679_v28 = vld [vmem:[%s984_s2] ss:$0 sm:$0xff] (!%p678_p11) }
  0x2c   : > { %v680_v29 = vld [vmem:[%s985_s3] ss:$0 sm:$0xff] (!%p678_p11) }
  0x2d   : > { %698 = vmatpush3.bf16.msra.mxu0 %v757_v6 }
  0x2e   : > { %699 = vmatprep.subr.bf16.mxu0 %v758_v7 }
  0x31   : > { %700 = vmatpush3.bf16.msra.mxu0 %v758_v7 }
  0x32   : > { %701 = vmatprep.subr.bf16.mxu0 %v759_v8 }
  0x35   : > { %702 = vmatpush3.bf16.msra.mxu0 %v759_v8 }
  0x36   : > { %703 = vmatprep.subr.bf16.mxu0 %v760_v10 }
  0x39   : > { %704 = vmatpush3.bf16.msra.mxu0 %v760_v10 }
  0x3a   : > { %705 = vmatprep.subr.bf16.mxu0 %v761_v11 }
  0x3d   : > { %706 = vmatpush3.bf16.msra.mxu0 %v761_v11 }
  0x3e   : > { %707 = vmatprep.subr.bf16.mxu0 %v762_v12 }
  0x41   : > { %708 = vmatpush3.bf16.msra.mxu0 %v762_v12 }
  0x42   : > { %709 = vmatprep.subr.bf16.mxu0 %v763_v13 }
  0x45   : > { %710 = vmatpush3.bf16.msra.mxu0 %v763_v13 }
  0x48   : > { %712 = vmatmul.mubr.bf16.vlgmr.msra.gmra.mrb[0].mxu0 %v765_v14 }
 0x11b   : > { %v713_v17 = vpop.f32.mrb[0].mxu0  ;;  %499 = sbr.rel (%p678_p11) target bundleno = 304 (0x130), region = 85 }
 0x11c   : > { %v490_v19 = vadd.f32 %v713_v17, %v357_v15  ;;  %v473_v20 = vpop.f32.mrb[1].mxu0 }
 0x11d   : > { %v488_v22 = vadd.f32 %v473_v20, %v355_v16  ;;  %v714_v23 = vpop.f32.mrb[2].mxu0 }
 0x11e   : > { %494 = vst [vmem:[%s986_s4 + $0x10] sm:$0xff] %v490_v19  ;;  %v491_v24 = vadd.f32 %v714_v23, %v358_v18  ;;  %v476_v25 = vpop.f32.mrb[3].mxu0 }
 0x11f   : > { %492 = vst [vmem:[%s986_s4] sm:$0xff] %v488_v22  ;;  %v489_v26 = vadd.f32 %v476_v25, %v356_v21 }
 0x120   : > { %495 = vst [vmem:[%s986_s4 + $0x18] sm:$0xff] %v491_v24 }
 0x121   : > { %493 = vst [vmem:[%s986_s4 + $0x8] sm:$0xff] %v489_v26 }
 0x125   : > { %v502_v32 = vld [vmem:[%s986_s4 + $0x10] sm:$0xff] }
 0x126   : > { %v500_v27 = vld [vmem:[%s986_s4] sm:$0xff]  ;;  %v513_v35 = vmul.f32 %v679_v28, %v502_v32 }
 0x127   : > { %v511_v30 = vmul.f32 %v679_v28, %v500_v27  ;;  %v503_v33 = vld [vmem:[%s986_s4 + $0x18] sm:$0xff] }
 0x128   : > { %v501_v31 = vld [vmem:[%s986_s4 + $0x8] sm:$0xff]  ;;  %v514_v36 = vmul.f32 %v679_v28, %v503_v33  ;;  %v524_v39 = vadd.f32 %v680_v29, %v513_v35 }
 0x129   : > { %v512_v34 = vmul.f32 %v679_v28, %v501_v31  ;;  %v522_v37 = vadd.f32 %v680_v29, %v511_v30 }
 0x12a   : > { %v525_v40 = vadd.f32 %v680_v29, %v514_v36  ;;  %v528_v43 = vmax.f32 %v524_v39, 0.0 }
 0x12b   : > { %v523_v38 = vadd.f32 %v680_v29, %v512_v34  ;;  %v526_v41 = vmax.f32 %v522_v37, 0.0 }
 0x12c   : > { %v529_v44 = vmax.f32 %v525_v40, 0.0  ;;  %532 = vst [vmem:[%s986_s4 + $0x10] sm:$0xff] %v528_v43 }
 0x12d   : > { %v527_v42 = vmax.f32 %v523_v38, 0.0  ;;  %530 = vst [vmem:[%s986_s4] sm:$0xff] %v526_v41 }
 0x12e   : > { %533 = vst [vmem:[%s986_s4 + $0x18] sm:$0xff] %v529_v44 }
 0x12f   : > { %531 = vst [vmem:[%s986_s4 + $0x8] sm:$0xff] %v527_v42 }
 0x130 PF: > { %s14_s19 = sadd.s32 1, %s804_s19   ;;  %s987_s15 = smov %s792_s16 }
 0x131   : > { %p11_p12 = scmp.ge.s32.totalorder %s14_s19, 7   ;;  %s988_s16 = smov %s867_s23 }
 0x132   : > { %s989_s17 = smov %s800_s18  ;;  %s990_s18 = smov %s992_s20 }
 0x133   :  { %13 = sbr.rel (!%p11_p12) target bundleno = 3 (0x3), region = 129 }

// kernel: _lambda_.26
= control target key start
LH: loop header
LB: loop body
LE: loop exit
PB: predicated region body
PF: predicated region fallthrough
CT: control target
= control target key end

     0   :  { %s828_s15 = smov 0   ;;  %s830_s16 = smov 0   ;;  %s978_s0 = inlined_call_operand.vmem [shape: bf16[32,1152], index: 0, kind: input, shape index: {}]   ;;  %s979_s1 = inlined_call_operand.vmem [shape: bf16[1152,128], index: 1, kind: input, shape index: {}]   ;;  %s980_s2 = inlined_call_operand.vmem [shape: f32[1,128], index: 2, kind: input, shape index: {}]   ;;  %s981_s3 = inlined_call_operand.vmem [shape: f32[1,128], index: 3, kind: input, shape index: {}]   ;;  %s982_s4 = inlined_call_operand.vmem [shape: f32[32,128], index: 4, kind: output, shape index: {}]  }
   0x1   :  { %s832_s17 = smov 0   ;;  %s834_s18 = smov 0  }
   0x2   :  { %s836_s19 = smov 0  }
   0x3 LB: > { %s26_s20 = sadd.s32 1, %s796_s18  ;;  %p49_p1 = scmp.ne.s32.totalorder %s788_s16, %s784_s15  ;;  %s800_s19 = sphi %s836_s19, %s14_s19   ;;  %s796_s18 = sphi %s834_s18, %s986_s18   ;;  %s792_s17 = sphi %s832_s17, %s985_s17   ;;  %s788_s16 = sphi %s830_s16, %s984_s16   ;;  %s784_s15 = sphi %s828_s15, %s983_s15  }
   0x4   : > { %p27_p0 = scmp.ge.s32.totalorder %s26_s20, 9  ;;  %p50_p2 = scmp.eq.s32.totalorder %s800_s19, 0 }
   0x5   : > { %s42_s22 = sadd.s32 1, %s788_s16  ;;  %p656_p5 = scmp.ge.s32.totalorder %s800_s19, 9 }
   0x6   : > { %s988_s20 = smov (%p27_p0, %s26_s20), 0  ;;  %p51_p3 = por %p50_p2, %p49_p1 }
   0x7   : > { %s38_s21 = ssub.s32 %s796_s18, %s988_s20  ;;  %195 = sbr.rel (%p656_p5) target bundleno = 21 (0x15), region = 24 }
   0x8   : > { %p40_p4 = scmp.eq.s32.totalorder %s38_s21, 0 }
   0xa   : > { %s863_s23 = scalar_select %p40_p4, %s788_s16, %s42_s22  }
   0xe   : > { %198 = sbr.rel (!%p51_p3) target bundleno = 21 (0x15), region = 28  ;;  %s200_s24 = sand.u32 (%p51_p3), 1, %s788_s16  }
   0xf   : > { %s658_s25 = sshll.u32 (%p51_p3), %s796_s18, 2  ;;  %s657_s26 = sshll.u32 (%p51_p3), %s200_s24, 4 }
  0x10   : > { %s207_s29 = scalar_lea.vmem (%p51_p3), %s978_s0, %s658_s25  ;;  %s202_s30 = scalar_lea.vmem (%p51_p3), [#allocation2], %s657_s26 }
  0x11   : > { %v223_v0 = vld [vmem:[%s207_s29] sm:$0xf] (%p51_p3)  ;;  %v225_v1 = vld [vmem:[%s207_s29 + $0x24] sm:$0xf] (%p51_p3)  ;;  %v227_v2 = vld [vmem:[%s207_s29 + $0x48] sm:$0xf] (%p51_p3) }
  0x12   : > { %224 = vst [vmem:[%s202_s30] sm:$0xf] (%p51_p3), %v223_v0  ;;  %226 = vst [vmem:[%s202_s30 + $0x4] sm:$0xf] (%p51_p3), %v225_v1  ;;  %v229_v3 = vld [vmem:[%s207_s29 + $0x6c] sm:$0xf] (%p51_p3) }
  0x13   : > { %228 = vst [vmem:[%s202_s30 + $0x8] sm:$0xf] (%p51_p3), %v227_v2  ;;  %230 = vst [vmem:[%s202_s30 + $0xc] sm:$0xf] (%p51_p3), %v229_v3 }
  0x15 PF: > { %p659_p6 = scmp.ge.s32.totalorder %s800_s19, 1  ;;  %p272_p7 = scmp.lt.s32.totalorder %s800_s19, 10 }
  0x17   : > { %p273_p8 = pnand %p659_p6, %p272_p7 }
  0x18   : > { %s279_s5 = sand.u32 (!%p273_p8), 1, %s784_s15   ;;  %s661_s6 = sshll.u32 (!%p273_p8), %s792_s17, 4 }
  0x19   : > { %276 = sbr.rel (%p273_p8) target bundleno = 302 (0x12e), region = 73  ;;  %s875_s7 = sshll.u32 (!%p273_p8), %s279_s5, 4 }
  0x1a   : > { %p323_p9 = scmp.lt.s32.totalorder (!%p273_p8), %s661_s6, 143  ;;  %s281_s12 = scalar_lea.vmem (!%p273_p8), [#allocation2], %s875_s7 }
  0x1b   : > { %p663_p10 = scmp.ne.s32.totalorder (!%p273_p8), %s792_s17, 0 }
  0x20   : > { %s990_s6 = smov (!%p323_p9, %s661_s6), 143  ;;  %350 = sbr.rel (%p663_p10) target bundleno = 39 (0x27), region = 81 }
  0x21   : > { %s662_s8 = sshll.u32 %s990_s6, 2  ;;  %v802_v4 = vmov (!%p663_p10), 0.0  }
  0x22   : > { %s880_s11 = scalar_lea.vmem %s979_s1, %s662_s8  ;;  %351 = vst [vmem:[%s982_s4] sm:$0xff] (!%p663_p10), %v802_v4  ;;  %352 = vst [vmem:[%s982_s4 + $0x8] sm:$0xff] (!%p663_p10), %v802_v4 }
  0x23   : > { %353 = vst [vmem:[%s982_s4 + $0x10] sm:$0xff] (!%p663_p10), %v802_v4  ;;  %354 = vst [vmem:[%s982_s4 + $0x18] sm:$0xff] (!%p663_p10), %v802_v4 }
  0x27 PF: > { %v752_v5 = vld [vmem:[%s880_s11] sm:$0xff]   ;;  %v753_v6 = vld [vmem:[%s880_s11 + $0x8] sm:$0xff]   ;;  %v754_v7 = vld [vmem:[%s880_s11 + $0x10] sm:$0xff]   ;;  %p674_p11 = scmp.ne.s32.totalorder %s792_s17, 8 }
  0x28   : > { %691 = vmatprep.subr.bf16.mxu0 %v752_v5  ;;  %v755_v8 = vld [vmem:[%s880_s11 + $0x18] sm:$0xff]   ;;  %v760_v9 = vld [vmem:[%s281_s12] sm:$0xff]   ;;  %v757_v11 = vld [vmem:[%s880_s11 + $0x28] sm:$0xff]  }
  0x29   : > { %692 = vmatpush3.bf16.msra.mxu0 %v752_v5  ;;  %707 = vmatprep.mubr.bf16.mxu0 %v760_v9  ;;  %v756_v10 = vld [vmem:[%s880_s11 + $0x20] sm:$0xff]   ;;  %v758_v12 = vld [vmem:[%s880_s11 + $0x30] sm:$0xff]   ;;  %v759_v13 = vld [vmem:[%s880_s11 + $0x38] sm:$0xff]  }
  0x2a   : > { %693 = vmatprep.subr.bf16.mxu0 %v753_v6  ;;  %v761_v14 = vld [vmem:[%s281_s12 + $0x8] sm:$0xff]   ;;  %v357_v15 = vld [vmem:[%s982_s4 + $0x10] sm:$0xff]  ;;  %v355_v16 = vld [vmem:[%s982_s4] sm:$0xff] }
  0x2b   : > { %v358_v18 = vld [vmem:[%s982_s4 + $0x18] sm:$0xff]  ;;  %v356_v21 = vld [vmem:[%s982_s4 + $0x8] sm:$0xff]  ;;  %v675_v28 = vld [vmem:[%s980_s2] ss:$0 sm:$0xff] (!%p674_p11) }
  0x2c   : > { %v676_v29 = vld [vmem:[%s981_s3] ss:$0 sm:$0xff] (!%p674_p11) }
  0x2d   : > { %694 = vmatpush3.bf16.msra.mxu0 %v753_v6 }
  0x2e   : > { %695 = vmatprep.subr.bf16.mxu0 %v754_v7 }
  0x31   : > { %696 = vmatpush3.bf16.msra.mxu0 %v754_v7 }
  0x32   : > { %697 = vmatprep.subr.bf16.mxu0 %v755_v8 }
  0x35   : > { %698 = vmatpush3.bf16.msra.mxu0 %v755_v8 }
  0x36   : > { %699 = vmatprep.subr.bf16.mxu0 %v756_v10 }
  0x39   : > { %700 = vmatpush3.bf16.msra.mxu0 %v756_v10 }
  0x3a   : > { %701 = vmatprep.subr.bf16.mxu0 %v757_v11 }
  0x3d   : > { %702 = vmatpush3.bf16.msra.mxu0 %v757_v11 }
  0x3e   : > { %703 = vmatprep.subr.bf16.mxu0 %v758_v12 }
  0x41   : > { %704 = vmatpush3.bf16.msra.mxu0 %v758_v12 }
  0x42   : > { %705 = vmatprep.subr.bf16.mxu0 %v759_v13 }
  0x45   : > { %706 = vmatpush3.bf16.msra.mxu0 %v759_v13 }
  0x48   : > { %708 = vmatmul.mubr.bf16.vlgmr.msra.gmra.mrb[0].mxu0 %v761_v14 }
 0x11b   : > { %v709_v17 = vpop.f32.mrb[0].mxu0  ;;  %499 = sbr.rel (%p674_p11) target bundleno = 302 (0x12e), region = 85 }
 0x11c   : > { %v490_v19 = vadd.f32 %v709_v17, %v357_v15  ;;  %v473_v20 = vpop.f32.mrb[1].mxu0 }
 0x11d   : > { %v488_v22 = vadd.f32 %v473_v20, %v355_v16  ;;  %v710_v23 = vpop.f32.mrb[2].mxu0 }
 0x11e   : > { %494 = vst [vmem:[%s982_s4 + $0x10] sm:$0xff] %v490_v19  ;;  %v491_v24 = vadd.f32 %v710_v23, %v358_v18  ;;  %v476_v25 = vpop.f32.mrb[3].mxu0 }
 0x11f   : > { %492 = vst [vmem:[%s982_s4] sm:$0xff] %v488_v22  ;;  %v489_v26 = vadd.f32 %v476_v25, %v356_v21 }
 0x120   : > { %495 = vst [vmem:[%s982_s4 + $0x18] sm:$0xff] %v491_v24 }
 0x121   : > { %493 = vst [vmem:[%s982_s4 + $0x8] sm:$0xff] %v489_v26 }
 0x125   : > { %v502_v32 = vld [vmem:[%s982_s4 + $0x10] sm:$0xff] }
 0x126   : > { %v500_v27 = vld [vmem:[%s982_s4] sm:$0xff]  ;;  %v513_v35 = vmul.f32 %v675_v28, %v502_v32 }
 0x127   : > { %v511_v30 = vmul.f32 %v675_v28, %v500_v27  ;;  %v503_v33 = vld [vmem:[%s982_s4 + $0x18] sm:$0xff] }
 0x128   : > { %v501_v31 = vld [vmem:[%s982_s4 + $0x8] sm:$0xff]  ;;  %v514_v36 = vmul.f32 %v675_v28, %v503_v33  ;;  %v524_v39 = vadd.f32 %v676_v29, %v513_v35 }
 0x129   : > { %v512_v34 = vmul.f32 %v675_v28, %v501_v31  ;;  %v522_v37 = vadd.f32 %v676_v29, %v511_v30 }
 0x12a   : > { %v525_v40 = vadd.f32 %v676_v29, %v514_v36  ;;  %528 = vst [vmem:[%s982_s4 + $0x10] sm:$0xff] %v524_v39 }
 0x12b   : > { %v523_v38 = vadd.f32 %v676_v29, %v512_v34  ;;  %526 = vst [vmem:[%s982_s4] sm:$0xff] %v522_v37 }
 0x12c   : > { %529 = vst [vmem:[%s982_s4 + $0x18] sm:$0xff] %v525_v40 }
 0x12d   : > { %527 = vst [vmem:[%s982_s4 + $0x8] sm:$0xff] %v523_v38 }
 0x12e PF: > { %s14_s19 = sadd.s32 1, %s800_s19   ;;  %s983_s15 = smov %s788_s16 }
 0x12f   : > { %p11_p12 = scmp.ge.s32.totalorder %s14_s19, 11   ;;  %s984_s16 = smov %s863_s23 }
 0x130   : > { %s985_s17 = smov %s796_s18  ;;  %s986_s18 = smov %s988_s20 }
 0x131   :  { %13 = sbr.rel (!%p11_p12) target bundleno = 3 (0x3), region = 129 }

// kernel: _lambda_.28
= control target key start
LH: loop header
LB: loop body
LE: loop exit
PB: predicated region body
PF: predicated region fallthrough
CT: control target
= control target key end

     0   :  { %s624_s15 = smov 0   ;;  %s626_s16 = smov 0   ;;  %s666_s0 = inlined_call_operand.vmem [shape: f32[2,16,128], index: 0, kind: input, shape index: {}]   ;;  %s667_s1 = inlined_call_operand.vmem [shape: f32[2,1,128], index: 1, kind: input, shape index: {}]   ;;  %s668_s2 = inlined_call_operand.vmem [shape: f32[2,16,128], index: 2, kind: output, shape index: {0}]   ;;  %s669_s3 = inlined_call_operand.vmem [shape: f32[2,16,1], index: 3, kind: output, shape index: {1}]   ;;  %s670_s4 = inlined_call_operand.vmem [shape: f32[2,16,1], index: 4, kind: output, shape index: {2}]  }
   0x1   :  { %s628_s17 = smov 0  }
   0x2 LB: > { %s27_s18 = sadd.s32 1, %s593_s16  ;;  %p532_p0 = scmp.ge.s32.totalorder %s597_s17, 1  ;;  %s597_s17 = sphi %s628_s17, %s15_s17   ;;  %s593_s16 = sphi %s626_s16, %s672_s16   ;;  %s589_s15 = sphi %s624_s15, %s671_s15  }
   0x3   : > { %p29_p1 = scmp.ge.s32.totalorder %s27_s18, 2  ;;  %p200_p2 = scmp.lt.s32.totalorder %s597_s17, 3 }
   0x5   : > { %s674_s18 = smov (%p29_p1, %s27_s18), 0  ;;  %p201_p3 = pnand %p532_p0, %p200_p2 }
   0x6   : > { %p256_p4 = scmp.lt.s32.totalorder (!%p201_p3), %s589_s15, 1  ;;  %v307_v5 = vlaneseq (!%p201_p3)  ;;  %vm320_vm0 = vcmask (!%p201_p3), 7168  }
   0x7   : > { %204 = sbr.rel (%p201_p3) target bundleno = 198 (0xc6), region = 28 }
   0x8   : > { %v308_v6 = vshrl.u32 (!%p201_p3), %v307_v5, 7 }
   0xa   : > { %v309_v7 = vsub.s32 (!%p201_p3), 0, %v308_v6 }
   0xe   : > { %s676_s15 = smov (!%p256_p4, %s589_s15), 1 }
   0xf   : > { %s267_s21 = scalar_lea.vmem %s667_s1, %s676_s15  ;;  %s543_s22 = sshll.u32 %s676_s15, 4 }
  0x10   : > { %v298_v0 = vld [vmem:[%s267_s21] sm:$0x1]  ;;  %s263_s25 = scalar_lea.vmem %s666_s0, %s543_s22  ;;  %s276_s28 = scalar_lea.vmem %s668_s2, %s543_s22 }
  0x11   : > { %v299_v1 = vsub.f32 0.0, %v298_v0  ;;  %v304_v9 = vld [vmem:[%s263_s25] sm:$0xff]  ;;  %v305_v10 = vld [vmem:[%s263_s25 + $0x8] sm:$0xff]  ;;  %s286_s5 = scalar_lea.vmem %s669_s3, %s543_s22  ;;  %s296_s8 = scalar_lea.vmem %s670_s4, %s543_s22 }
  0x13   : > { %v300_v2 = vmul.f32 1.442695, %v299_v1 }
  0x15   : > { %571 = vpow2.f32 %v300_v2 }
  0x1f   : > { %v572_v3 = vpop.eup %571 }
  0x20   : > { %v302_v4 = vadd.f32 1.0, %v572_v3 }
  0x22   : > { %573 = vrcp.f32 %v302_v4 }
  0x2c   : > { %v574_v8 = vpop.eup %573 }
  0x2d   : > { %v310_v11 = vrot.slane %v574_v8, %v309_v7 }
  0x2f   : > { %v312_v12 = vmul.f32 %v310_v11, %v304_v9  ;;  %v313_v13 = vmul.f32 %v310_v11, %v305_v10 }
  0x31   : > { %323 = vadd.xlane.f32.xlu0 %v312_v12  ;;  %314 = vst [vmem:[%s276_s28] sm:$0xff] %v312_v12  ;;  %316 = vmax.xlane.f32.xlu1 %v312_v12  ;;  %315 = vst [vmem:[%s276_s28 + $0x8] sm:$0xff] %v313_v13 }
  0x35   : > { %325 = vadd.xlane.f32.xlu0 %v313_v13  ;;  %318 = vmax.xlane.f32.xlu1 %v313_v13 }
  0xbe   : > { %v324_v14 = vpop.xlane.xlu0 %323  ;;  %v317_v15 = vpop.xlane.xlu1 %316 }
  0xbf   : > { %v328_v16 = vmul.f32 0.0078125, %v324_v14  ;;  %321 = vst.msk [vmem:[%s286_s5] sm:$0xff] %vm320_vm0, %v317_v15 }
  0xc1   : > { %330 = vst.msk [vmem:[%s296_s8] sm:$0xff] %vm320_vm0, %v328_v16 }
  0xc2   : > { %v326_v17 = vpop.xlane.xlu0 %325  ;;  %v319_v18 = vpop.xlane.xlu1 %318 }
  0xc3   : > { %v329_v19 = vmul.f32 0.0078125, %v326_v17  ;;  %322 = vst.msk [vmem:[%s286_s5 + $0x8] sm:$0xff] %vm320_vm0, %v319_v18 }
  0xc5   : > { %331 = vst.msk [vmem:[%s296_s8 + $0x8] sm:$0xff] %vm320_vm0, %v329_v19 }
  0xc6 PF: > { %s15_s17 = sadd.s32 1, %s597_s17   ;;  %s671_s15 = smov %s593_s16 }
  0xc7   : > { %p12_p5 = scmp.ge.s32.totalorder %s15_s17, 4   ;;  %s672_s16 = smov %s674_s18 }
  0xc9   :  { %14 = sbr.rel (!%p12_p5) target bundleno = 2 (0x2), region = 85 }

// kernel: _lambda_.29
= control target key start
LH: loop header
LB: loop body
LE: loop exit
PB: predicated region body
PF: predicated region fallthrough
CT: control target
= control target key end

     0   :  { %s537_s12 = smov 0   ;;  %s539_s13 = smov 0   ;;  %s576_s0 = inlined_call_operand.vmem [shape: f32[2,16,128], index: 0, kind: input, shape index: {}]   ;;  %s577_s1 = inlined_call_operand.vmem [shape: f32[2,16,1], index: 1, kind: input, shape index: {}]   ;;  %s578_s2 = inlined_call_operand.vmem [shape: f32[2,16,128], index: 2, kind: input, shape index: {}]   ;;  %s579_s3 = inlined_call_operand.vmem [shape: f32[2,16,128], index: 3, kind: output, shape index: {}]  }
   0x1   :  { %s541_s14 = smov 0  }
   0x2 LB: > { %s25_s15 = sadd.s32 1, %s510_s13  ;;  %p443_p0 = scmp.ge.s32.totalorder %s514_s14, 1  ;;  %s514_s14 = sphi %s541_s14, %s13_s14   ;;  %s510_s13 = sphi %s539_s13, %s581_s13   ;;  %s506_s12 = sphi %s537_s12, %s580_s12  }
   0x3   : > { %p27_p1 = scmp.ge.s32.totalorder %s25_s15, 2  ;;  %p192_p2 = scmp.lt.s32.totalorder %s514_s14, 3 }
   0x5   : > { %s583_s15 = smov (%p27_p1, %s25_s15), 0  ;;  %p193_p3 = pnand %p443_p0, %p192_p2 }
   0x6   : > { %p243_p4 = scmp.lt.s32.totalorder (!%p193_p3), %s506_s12, 1  ;;  %v516_v0 = vmov (!%p193_p3), 0  }
   0x7   : > { %196 = sbr.rel (%p193_p3) target bundleno = 185 (0xb9), region = 32  ;;  %483 = vset.pattern.permute.xlu0 (!%p193_p3), %v516_v0 }
   0xe   : > { %s585_s12 = smov (!%p243_p4, %s506_s12), 1 }
   0xf   : > { %s454_s16 = sshll.u32 %s585_s12, 4 }
  0x10   : > { %s260_s19 = scalar_lea.vmem %s577_s1, %s454_s16  ;;  %s250_s22 = scalar_lea.vmem %s576_s0, %s454_s16 }
  0x11   : > { %v282_v1 = vld [vmem:[%s260_s19] sm:$0xff]  ;;  %v283_v2 = vld [vmem:[%s260_s19 + $0x8] sm:$0xff]  ;;  %s270_s25 = scalar_lea.vmem %s578_s2, %s454_s16  ;;  %s280_s28 = scalar_lea.vmem %s579_s3, %s454_s16 }
  0x12   : > { %v284_v3 = vsub.f32 0.0, %v282_v1  ;;  %v285_v4 = vsub.f32 0.0, %v283_v2  ;;  %v294_v13 = vld [vmem:[%s250_s22] sm:$0xff]  ;;  %v295_v17 = vld [vmem:[%s250_s22 + $0x8] sm:$0xff] }
  0x13   : > { %v308_v14 = vld [vmem:[%s270_s25] sm:$0xff]  ;;  %v309_v19 = vld [vmem:[%s270_s25 + $0x8] sm:$0xff] }
  0x14   : > { %v286_v5 = vmul.f32 1.442695, %v284_v3  ;;  %v288_v6 = vmul.f32 1.442695, %v285_v4 }
  0x16   : > { %484 = vpow2.f32 %v286_v5 }
  0x17   : > { %486 = vpow2.f32 %v288_v6 }
  0x20   : > { %v485_v7 = vpop.eup %484 }
  0x21   : > { %v487_v8 = vpop.eup %486  ;;  %v290_v9 = vadd.f32 1.0, %v485_v7 }
  0x22   : > { %v291_v10 = vadd.f32 1.0, %v487_v8 }
  0x23   : > { %488 = vrcp.f32 %v290_v9 }
  0x24   : > { %490 = vrcp.f32 %v291_v10 }
  0x2d   : > { %v489_v11 = vpop.eup %488 }
  0x2e   : > { %298 = vperm.xlu0 %483, %v489_v11   ;;  %v491_v12 = vpop.eup %490 }
  0x32   : > { %303 = vperm.xlu0 %483, %v491_v12  }
  0xad   : > { %v299_v15 = vpop.permute.xlu0 %298 }
  0xae   : > { %v306_v16 = vmul.f32 %v299_v15, %v294_v13 }
  0xb0   : > { %v310_v18 = vadd.f32 %v308_v14, %v306_v16 }
  0xb1   : > { %v304_v20 = vpop.permute.xlu0 %303 }
  0xb2   : > { %v312_v21 = vmax.f32 %v310_v18, 0.0  ;;  %v307_v22 = vmul.f32 %v304_v20, %v295_v17 }
  0xb4   : > { %314 = vst [vmem:[%s280_s28] sm:$0xff] %v312_v21  ;;  %v311_v23 = vadd.f32 %v309_v19, %v307_v22 }
  0xb6   : > { %v313_v24 = vmax.f32 %v311_v23, 0.0 }
  0xb8   : > { %315 = vst [vmem:[%s280_s28 + $0x8] sm:$0xff] %v313_v24 }
  0xb9 PF: > { %s13_s14 = sadd.s32 1, %s514_s14   ;;  %s580_s12 = smov %s510_s13 }
  0xba   : > { %p10_p5 = scmp.ge.s32.totalorder %s13_s14, 4   ;;  %s581_s13 = smov %s583_s15 }
  0xbc   :  { %12 = sbr.rel (!%p10_p5) target bundleno = 2 (0x2), region = 68 }

// kernel: _lambda_.27
= control target key start
LH: loop header
LB: loop body
LE: loop exit
PB: predicated region body
PF: predicated region fallthrough
CT: control target
= control target key end

     0   :  { %vm76_vm0 = vcmask 523264   ;;  %s273_s1 = inlined_call_operand.vmem [shape: bf16[64,128], index: 1, kind: input, shape index: {}]   ;;  %s274_s0 = inlined_call_operand.vmem [shape: bf16[32,64], index: 0, kind: input, shape index: {}]   ;;  %s275_s2 = inlined_call_operand.vmem [shape: f32[1,128], index: 2, kind: input, shape index: {}]   ;;  %s276_s3 = inlined_call_operand.vmem [shape: f32[1,128], index: 3, kind: input, shape index: {}]   ;;  %s277_s4 = inlined_call_operand.vmem [shape: f32[32,128], index: 4, kind: output, shape index: {}]  }
   0x1   :  { %v206_v0 = vld [vmem:[%s273_s1] sm:$0xff]   ;;  %v207_v1 = vld [vmem:[%s273_s1 + $0x8] sm:$0xff]   ;;  %v208_v2 = vld [vmem:[%s273_s1 + $0x10] sm:$0xff]  }
   0x2   :  { %193 = vmatprep.subr.bf16.mxu0 %v206_v0  ;;  %v210_v3 = vld [vmem:[%s274_s0] sm:$0xff]   ;;  %v209_v4 = vld [vmem:[%s273_s1 + $0x18] sm:$0xff]   ;;  %v211_v5 = vld [vmem:[%s274_s0 + $0x8] sm:$0xff]  }
   0x3   :  { %194 = vmatpush3.bf16.msra.mxu0 %v206_v0  ;;  %201 = vmatprep.mubr.msk.bf16.mxu0 %vm76_vm0, %v210_v3  ;;  %v185_v7 = vld [vmem:[%s275_s2] ss:$0 sm:$0xff] }
   0x4   :  { %195 = vmatprep.subr.bf16.mxu0 %v207_v1  ;;  %v186_v9 = vld [vmem:[%s276_s3] ss:$0 sm:$0xff] }
   0x7   :  { %196 = vmatpush3.bf16.msra.mxu0 %v207_v1 }
   0x8   :  { %197 = vmatprep.subr.bf16.mxu0 %v208_v2 }
   0xb   :  { %198 = vmatpush3.bf16.msra.mxu0 %v208_v2 }
   0xc   :  { %199 = vmatprep.subr.bf16.mxu0 %v209_v4 }
   0xf   :  { %200 = vmatpush3.bf16.msra.mxu0 %v209_v4 }
  0x12   :  { %202 = vmatmul.mubr.msk.bf16.vlgmr.msra.gmra.mrb[0].mxu0 %vm76_vm0, %v211_v5 }
  0xe5   :  { %v203_v6 = vpop.f32.mrb[0].mxu0 }
  0xe6   :  { %v117_v8 = vpop.f32.mrb[1].mxu0  ;;  %v156_v11 = vmul.f32 %v203_v6, %v185_v7 }
  0xe7   :  { %v204_v10 = vpop.f32.mrb[2].mxu0  ;;  %v154_v13 = vmul.f32 %v185_v7, %v117_v8 }
  0xe8   :  { %v120_v12 = vpop.f32.mrb[3].mxu0  ;;  %v167_v14 = vadd.f32 %v186_v9, %v156_v11  ;;  %v157_v15 = vmul.f32 %v204_v10, %v185_v7 }
  0xe9   :  { %v165_v16 = vadd.f32 %v186_v9, %v154_v13  ;;  %v155_v17 = vmul.f32 %v185_v7, %v120_v12 }
  0xea   :  { %171 = vst [vmem:[%s277_s4 + $0x10] sm:$0xff] %v167_v14  ;;  %v168_v18 = vadd.f32 %v186_v9, %v157_v15 }
  0xeb   :  { %169 = vst [vmem:[%s277_s4] sm:$0xff] %v165_v16  ;;  %v166_v19 = vadd.f32 %v186_v9, %v155_v17 }
  0xec   :  { %172 = vst [vmem:[%s277_s4 + $0x18] sm:$0xff] %v168_v18 }
  0xed   :  { %170 = vst [vmem:[%s277_s4 + $0x8] sm:$0xff] %v166_v19 }

// kernel: _lambda_.30
= control target key start
LH: loop header
LB: loop body
LE: loop exit
PB: predicated region body
PF: predicated region fallthrough
CT: control target
= control target key end

     0   :  { %s770_s15 = smov 0   ;;  %s772_s16 = smov 0   ;;  %s867_s0 = inlined_call_operand.vmem [shape: bf16[8,1152], index: 0, kind: input, shape index: {}]   ;;  %s868_s1 = inlined_call_operand.vmem [shape: bf16[1152,256], index: 1, kind: input, shape index: {}]   ;;  %s869_s2 = inlined_call_operand.vmem [shape: f32[1,256], index: 2, kind: input, shape index: {}]   ;;  %s870_s3 = inlined_call_operand.vmem [shape: f32[1,256], index: 3, kind: input, shape index: {}]   ;;  %s871_s4 = inlined_call_operand.vmem [shape: f32[8,256], index: 4, kind: output, shape index: {}]  }
   0x1   :  { %s774_s17 = smov 0  }
   0x2 LB: > { %s26_s18 = sadd.s32 1, %s737_s16  ;;  %p641_p0 = scmp.ge.s32.totalorder %s741_s17, 1  ;;  %s741_s17 = sphi %s774_s17, %s14_s17   ;;  %s737_s16 = sphi %s772_s16, %s873_s16   ;;  %s733_s15 = sphi %s770_s15, %s872_s15  }
   0x3   : > { %p27_p1 = scmp.ge.s32.totalorder %s26_s18, 9  ;;  %p227_p2 = scmp.lt.s32.totalorder %s741_s17, 10 }
   0x5   : > { %s875_s18 = smov (%p27_p1, %s26_s18), 0  ;;  %p228_p3 = pnand %p641_p0, %p227_p2 }
   0x6   : > { %p280_p4 = scmp.lt.s32.totalorder (!%p228_p3), %s733_s15, 8  ;;  %s643_s19 = sshll.u32 (!%p228_p3), %s733_s15, 4 }
   0x7   : > { %231 = sbr.rel (%p228_p3) target bundleno = 285 (0x11d), region = 36  ;;  %p288_p5 = scmp.lt.s32.totalorder (!%p228_p3), %s643_s19, 143 }
   0x8   : > { %p646_p6 = scmp.ne.s32.totalorder (!%p228_p3), %s733_s15, 0 }
   0xe   : > { %s281_s20 = scalar_select %p280_p4, %s733_s15, 8 }
   0xf   : > { %s877_s19 = smov (!%p288_p5, %s643_s19), 143  ;;  %322 = sbr.rel (%p646_p6) target bundleno = 22 (0x16), region = 40 }
  0x10   : > { %s642_s21 = sshll.u32 %s281_s20, 2  ;;  %s668_s25 = sshll.u32 %s877_s19, 3  ;;  %v743_v0 = vmov (!%p646_p6), 0.0  }
  0x11   : > { %s796_s24 = scalar_lea.vmem %s867_s0, %s642_s21  ;;  %s801_s28 = scalar_lea.vmem %s868_s1, %s668_s25  ;;  %323 = vst [vmem:[%s871_s4] sm:$0xff] (!%p646_p6), %v743_v0  ;;  %324 = vst [vmem:[%s871_s4 + $0x8] sm:$0xff] (!%p646_p6), %v743_v0 }
  0x16 PF: > { %v695_v1 = vld [vmem:[%s801_s28 + $0x4] ss:$8 sps:$4 sm:$0xff]   ;;  %v697_v2 = vld [vmem:[%s801_s28] ss:$8 sps:$4 sm:$0xff]   ;;  %v744_v3 = vmov 0   ;;  %p663_p7 = scmp.ne.s32.totalorder %s733_s15, 8 }
  0x17   : > { %456 = vmatprep.mubr.bf16.mxu0 %v744_v3  ;;  %424 = vmatprep.subr.bf16.mxu0 %v695_v1  ;;  %v698_v4 = vld [vmem:[%s801_s28 + $0x14] ss:$8 sps:$4 sm:$0xff]   ;;  %v700_v5 = vld [vmem:[%s801_s28 + $0x10] ss:$8 sps:$4 sm:$0xff]   ;;  %v701_v6 = vld [vmem:[%s801_s28 + $0x24] ss:$8 sps:$4 sm:$0xff]   ;;  %v477_v27 = vlaneseq (!%p663_p7) }
  0x18   : > { %425 = vmatpush1.bf16.msra.mxu0 %v697_v2  ;;  %v703_v7 = vld [vmem:[%s801_s28 + $0x20] ss:$8 sps:$4 sm:$0xff]   ;;  %v704_v8 = vld [vmem:[%s801_s28 + $0x34] ss:$8 sps:$4 sm:$0xff]   ;;  %v706_v9 = vld [vmem:[%s801_s28 + $0x30] ss:$8 sps:$4 sm:$0xff]  }
  0x19   : > { %426 = vmatprep.subr.bf16.mxu0 %v698_v4  ;;  %v707_v10 = vld [vmem:[%s801_s28 + $0x44] ss:$8 sps:$4 sm:$0xff]   ;;  %v709_v11 = vld [vmem:[%s801_s28 + $0x40] ss:$8 sps:$4 sm:$0xff]   ;;  %v710_v12 = vld [vmem:[%s801_s28 + $0x54] ss:$8 sps:$4 sm:$0xff]  }
  0x1a   : > { %v712_v13 = vld [vmem:[%s801_s28 + $0x50] ss:$8 sps:$4 sm:$0xff]   ;;  %v713_v14 = vld [vmem:[%s801_s28 + $0x64] ss:$8 sps:$4 sm:$0xff]   ;;  %v715_v15 = vld [vmem:[%s801_s28 + $0x60] ss:$8 sps:$4 sm:$0xff]  }
  0x1b   : > { %v716_v16 = vld [vmem:[%s801_s28 + $0x74] ss:$8 sps:$4 sm:$0xff]   ;;  %v718_v17 = vld [vmem:[%s801_s28 + $0x70] ss:$8 sps:$4 sm:$0xff]   ;;  %v327_v18 = vld [vmem:[%s796_s24] sm:$0xf] }
  0x1c   : > { %427 = vmatpush1.bf16.msra.mxu0 %v700_v5  ;;  %v325_v19 = vld [vmem:[%s871_s4] sm:$0xff]  ;;  %v326_v20 = vld [vmem:[%s871_s4 + $0x8] sm:$0xff]  ;;  %v478_v28 = vshrl.u32 (!%p663_p7), %v477_v27, 7 }
  0x1d   : > { %428 = vmatprep.subr.bf16.mxu0 %v701_v6  ;;  %v475_v29 = vld [vmem:[%s869_s2] sm:$0x3] (!%p663_p7) }
  0x1e   : > { %v489_v30 = vld [vmem:[%s870_s3] sm:$0x3] (!%p663_p7)  ;;  %v479_v31 = vsub.s32 (!%p663_p7), 0, %v478_v28  ;;  %v483_v32 = vsub.s32 (!%p663_p7), 1, %v478_v28 }
  0x20   : > { %429 = vmatpush1.bf16.msra.mxu0 %v703_v7  ;;  %v480_v35 = vrot.slane (!%p663_p7), %v475_v29, %v479_v31  ;;  %v494_v36 = vrot.slane (!%p663_p7), %v489_v30, %v479_v31  ;;  %v484_v37 = vrot.slane (!%p663_p7), %v475_v29, %v483_v32  ;;  %v498_v38 = vrot.slane (!%p663_p7), %v489_v30, %v483_v32 }
  0x21   : > { %430 = vmatprep.subr.bf16.mxu0 %v704_v8 }
  0x24   : > { %431 = vmatpush1.bf16.msra.mxu0 %v706_v9 }
  0x25   : > { %432 = vmatprep.subr.bf16.mxu0 %v707_v10 }
  0x28   : > { %433 = vmatpush1.bf16.msra.mxu0 %v709_v11 }
  0x29   : > { %434 = vmatprep.subr.bf16.mxu0 %v710_v12 }
  0x2c   : > { %435 = vmatpush1.bf16.msra.mxu0 %v712_v13 }
  0x2d   : > { %436 = vmatprep.subr.bf16.mxu0 %v713_v14 }
  0x30   : > { %437 = vmatpush1.bf16.msra.mxu0 %v715_v15 }
  0x31   : > { %438 = vmatprep.subr.bf16.mxu0 %v716_v16 }
  0x34   : > { %439 = vmatpush1.bf16.msra.mxu0 %v718_v17 }
  0x37   : > { %457 = vmatmul.mubr.bf16.vlgmr.msra.gmra.mrb[0].mxu0 %v327_v18 }
 0x108   : > { %472 = sbr.rel (%p663_p7) target bundleno = 285 (0x11d), region = 44 }
 0x10a   : > { %v458_v21 = vpop.f32.mrb[0].mxu0 }
 0x10b   : > { %v465_v22 = vadd.f32 %v458_v21, %v325_v19  ;;  %v460_v23 = vpop.f32.mrb[1].mxu0 }
 0x10c   : > { %v466_v24 = vadd.f32 %v460_v23, %v326_v20  ;;  %v462_v25 = vpop.f32.mrb[2].mxu0 }
 0x10d   : > { %467 = vst [vmem:[%s871_s4] sm:$0xff] %v465_v22  ;;  %v463_v26 = vpop.f32.mrb[3].mxu0 }
 0x10e   : > { %468 = vst [vmem:[%s871_s4 + $0x8] sm:$0xff] %v466_v24 }
 0x114   : > { %v473_v33 = vld [vmem:[%s871_s4] sm:$0xff] }
 0x115   : > { %v474_v34 = vld [vmem:[%s871_s4 + $0x8] sm:$0xff]  ;;  %v487_v39 = vmul.f32 %v480_v35, %v473_v33 }
 0x116   : > { %v488_v40 = vmul.f32 %v484_v37, %v474_v34 }
 0x117   : > { %v501_v41 = vadd.f32 %v494_v36, %v487_v39 }
 0x118   : > { %v502_v42 = vadd.f32 %v498_v38, %v488_v40 }
 0x119   : > { %v503_v43 = vmax.f32 %v501_v41, 0.0 }
 0x11a   : > { %v504_v44 = vmax.f32 %v502_v42, 0.0 }
 0x11b   : > { %505 = vst [vmem:[%s871_s4] sm:$0xff] %v503_v43 }
 0x11c   : > { %506 = vst [vmem:[%s871_s4 + $0x8] sm:$0xff] %v504_v44 }
 0x11d PF: > { %s14_s17 = sadd.s32 1, %s741_s17   ;;  %s872_s15 = smov %s737_s16 }
 0x11e   : > { %p11_p8 = scmp.ge.s32.totalorder %s14_s17, 11   ;;  %s873_s16 = smov %s875_s18 }
 0x120   :  { %13 = sbr.rel (!%p11_p8) target bundleno = 2 (0x2), region = 83 }

// kernel: _lambda_.31
= control target key start
LH: loop header
LB: loop body
LE: loop exit
PB: predicated region body
PF: predicated region fallthrough
CT: control target
= control target key end

     0   :  { %s918_s15 = smov 0   ;;  %s920_s16 = smov 0   ;;  %s1030_s0 = inlined_call_operand.vmem [shape: bf16[8,2304], index: 0, kind: input, shape index: {}]   ;;  %s1031_s1 = inlined_call_operand.vmem [shape: bf16[2304,256], index: 1, kind: input, shape index: {}]   ;;  %s1032_s2 = inlined_call_operand.vmem [shape: f32[1,256], index: 2, kind: input, shape index: {}]   ;;  %s1033_s3 = inlined_call_operand.vmem [shape: f32[1,256], index: 3, kind: input, shape index: {}]   ;;  %s1034_s4 = inlined_call_operand.vmem [shape: f32[8,256], index: 4, kind: output, shape index: {}]  }
   0x1   :  { %s922_s17 = smov 0  }
   0x2 LB: > { %s26_s18 = sadd.s32 1, %s886_s16  ;;  %p746_p0 = scmp.ge.s32.totalorder %s890_s17, 1  ;;  %s890_s17 = sphi %s922_s17, %s14_s17   ;;  %s886_s16 = sphi %s920_s16, %s1036_s16   ;;  %s882_s15 = sphi %s918_s15, %s1035_s15  }
   0x3   : > { %p27_p1 = scmp.ge.s32.totalorder %s26_s18, 9  ;;  %p229_p2 = scmp.lt.s32.totalorder %s890_s17, 10 }
   0x5   : > { %s1038_s18 = smov (%p27_p1, %s26_s18), 0  ;;  %p230_p3 = pnand %p746_p0, %p229_p2 }
   0x6   : > { %s747_s19 = sshll.u32 (!%p230_p3), %s882_s15, 1  ;;  %s749_s20 = sshll.u32 (!%p230_p3), %s882_s15, 5 }
   0x7   : > { %233 = sbr.rel (%p230_p3) target bundleno = 317 (0x13d), region = 36  ;;  %p284_p4 = scmp.lt.s32.totalorder (!%p230_p3), %s747_s19, 17 }
   0x8   : > { %p293_p5 = scmp.lt.s32.totalorder (!%p230_p3), %s749_s20, 287  ;;  %p752_p6 = scmp.ne.s32.totalorder (!%p230_p3), %s882_s15, 0 }
   0xe   : > { %s1040_s19 = smov (!%p284_p4, %s747_s19), 17  ;;  %s1042_s20 = smov (!%p293_p5, %s749_s20), 287 }
   0xf   : > { %s748_s21 = sshll.u32 %s1040_s19, 2  ;;  %s792_s25 = sshll.u32 %s1042_s20, 3  ;;  %v892_v0 = vmov (!%p752_p6), 0.0  }
  0x10   : > { %s943_s24 = scalar_lea.vmem %s1030_s0, %s748_s21  ;;  %s948_s28 = scalar_lea.vmem %s1031_s1, %s792_s25  ;;  %327 = vst [vmem:[%s1034_s4] sm:$0xff] (!%p752_p6), %v892_v0  ;;  %328 = vst [vmem:[%s1034_s4 + $0x8] sm:$0xff] (!%p752_p6), %v892_v0 }
  0x11   : > { %326 = sbr.rel (%p752_p6) target bundleno = 24 (0x18), region = 40 }
  0x18 PF: > { %v818_v1 = vld [vmem:[%s948_s28 + $0x4] ss:$8 sps:$4 sm:$0xff]   ;;  %v820_v2 = vld [vmem:[%s948_s28] ss:$8 sps:$4 sm:$0xff]   ;;  %v821_v3 = vld [vmem:[%s948_s28 + $0x14] ss:$8 sps:$4 sm:$0xff]  }
  0x19   : > { %531 = vmatprep.subr.bf16.mxu0 %v818_v1  ;;  %v823_v4 = vld [vmem:[%s948_s28 + $0x10] ss:$8 sps:$4 sm:$0xff]   ;;  %v824_v5 = vld [vmem:[%s948_s28 + $0x24] ss:$8 sps:$4 sm:$0xff]   ;;  %v826_v6 = vld [vmem:[%s948_s28 + $0x20] ss:$8 sps:$4 sm:$0xff]  }
  0x1a   : > { %532 = vmatpush1.bf16.msra.mxu0 %v820_v2  ;;  %v827_v7 = vld [vmem:[%s948_s28 + $0x34] ss:$8 sps:$4 sm:$0xff]   ;;  %v829_v8 = vld [vmem:[%s948_s28 + $0x30] ss:$8 sps:$4 sm:$0xff]   ;;  %v830_v9 = vld [vmem:[%s948_s28 + $0x44] ss:$8 sps:$4 sm:$0xff]  }
  0x1b   : > { %533 = vmatprep.subr.bf16.mxu0 %v821_v3  ;;  %v832_v10 = vld [vmem:[%s948_s28 + $0x40] ss:$8 sps:$4 sm:$0xff]   ;;  %v833_v11 = vld [vmem:[%s948_s28 + $0x54] ss:$8 sps:$4 sm:$0xff]   ;;  %v835_v12 = vld [vmem:[%s948_s28 + $0x50] ss:$8 sps:$4 sm:$0xff]  }
  0x1c   : > { %v836_v13 = vld [vmem:[%s948_s28 + $0x64] ss:$8 sps:$4 sm:$0xff]   ;;  %v838_v16 = vld [vmem:[%s948_s28 + $0x60] ss:$8 sps:$4 sm:$0xff]   ;;  %v839_v17 = vld [vmem:[%s948_s28 + $0x74] ss:$8 sps:$4 sm:$0xff]  }
  0x1d   : > { %v331_v14 = vld [vmem:[%s943_s24] sm:$0xff]  ;;  %v841_v18 = vld [vmem:[%s948_s28 + $0x70] ss:$8 sps:$4 sm:$0xff]   ;;  %v845_v21 = vld [vmem:[%s948_s28 + $0x94] ss:$8 sps:$4 sm:$0xff]   ;;  %p787_p7 = scmp.ne.s32.totalorder %s882_s15, 8 }
  0x1e   : > { %534 = vmatpush1.bf16.msra.mxu0 %v823_v4  ;;  %v754_v15 = vcombine.high %v331_v14, %v331_v14  ;;  %v842_v19 = vld [vmem:[%s948_s28 + $0x84] ss:$8 sps:$4 sm:$0xff]   ;;  %v844_v20 = vld [vmem:[%s948_s28 + $0x80] ss:$8 sps:$4 sm:$0xff]   ;;  %v847_v22 = vld [vmem:[%s948_s28 + $0x90] ss:$8 sps:$4 sm:$0xff]   ;;  %v753_v35 = vcombine.low %v331_v14, %v331_v14  ;;  %v584_v44 = vlaneseq (!%p787_p7) }
  0x1f   : > { %535 = vmatprep.subr.bf16.mxu0 %v824_v5  ;;  %v848_v23 = vld [vmem:[%s948_s28 + $0xa4] ss:$8 sps:$4 sm:$0xff]   ;;  %v850_v24 = vld [vmem:[%s948_s28 + $0xa0] ss:$8 sps:$4 sm:$0xff]   ;;  %v851_v25 = vld [vmem:[%s948_s28 + $0xb4] ss:$8 sps:$4 sm:$0xff]  }
  0x20   : > { %563 = vmatprep.mubr.bf16.mxu0 %v754_v15  ;;  %v853_v26 = vld [vmem:[%s948_s28 + $0xb0] ss:$8 sps:$4 sm:$0xff]   ;;  %v854_v27 = vld [vmem:[%s948_s28 + $0xc4] ss:$8 sps:$4 sm:$0xff]   ;;  %v856_v28 = vld [vmem:[%s948_s28 + $0xc0] ss:$8 sps:$4 sm:$0xff]  }
  0x21   : > { %v857_v29 = vld [vmem:[%s948_s28 + $0xd4] ss:$8 sps:$4 sm:$0xff]   ;;  %v859_v30 = vld [vmem:[%s948_s28 + $0xd0] ss:$8 sps:$4 sm:$0xff]   ;;  %v860_v31 = vld [vmem:[%s948_s28 + $0xe4] ss:$8 sps:$4 sm:$0xff]  }
  0x22   : > { %536 = vmatpush1.bf16.msra.mxu0 %v826_v6  ;;  %v862_v32 = vld [vmem:[%s948_s28 + $0xe0] ss:$8 sps:$4 sm:$0xff]   ;;  %v863_v33 = vld [vmem:[%s948_s28 + $0xf4] ss:$8 sps:$4 sm:$0xff]   ;;  %v865_v34 = vld [vmem:[%s948_s28 + $0xf0] ss:$8 sps:$4 sm:$0xff]  }
  0x23   : > { %537 = vmatprep.subr.bf16.mxu0 %v827_v7  ;;  %v329_v36 = vld [vmem:[%s1034_s4] sm:$0xff]  ;;  %v330_v37 = vld [vmem:[%s1034_s4 + $0x8] sm:$0xff]  ;;  %v585_v45 = vshrl.u32 (!%p787_p7), %v584_v44, 7 }
  0x24   : > { %v582_v46 = vld [vmem:[%s1032_s2] sm:$0x3] (!%p787_p7) }
  0x25   : > { %v596_v47 = vld [vmem:[%s1033_s3] sm:$0x3] (!%p787_p7)  ;;  %v586_v48 = vsub.s32 (!%p787_p7), 0, %v585_v45  ;;  %v590_v49 = vsub.s32 (!%p787_p7), 1, %v585_v45 }
  0x26   : > { %538 = vmatpush1.bf16.msra.mxu0 %v829_v8 }
  0x27   : > { %539 = vmatprep.subr.bf16.mxu0 %v830_v9  ;;  %v587_v52 = vrot.slane (!%p787_p7), %v582_v46, %v586_v48  ;;  %v601_v53 = vrot.slane (!%p787_p7), %v596_v47, %v586_v48  ;;  %v591_v54 = vrot.slane (!%p787_p7), %v582_v46, %v590_v49  ;;  %v605_v55 = vrot.slane (!%p787_p7), %v596_v47, %v590_v49 }
  0x2a   : > { %540 = vmatpush1.bf16.msra.mxu0 %v832_v10 }
  0x2b   : > { %541 = vmatprep.subr.bf16.mxu0 %v833_v11 }
  0x2e   : > { %542 = vmatpush1.bf16.msra.mxu0 %v835_v12 }
  0x2f   : > { %543 = vmatprep.subr.bf16.mxu0 %v836_v13 }
  0x32   : > { %544 = vmatpush1.bf16.msra.mxu0 %v838_v16 }
  0x33   : > { %545 = vmatprep.subr.bf16.mxu0 %v839_v17 }
  0x36   : > { %546 = vmatpush1.bf16.msra.mxu0 %v841_v18 }
  0x37   : > { %547 = vmatprep.subr.bf16.mxu0 %v842_v19 }
  0x3a   : > { %548 = vmatpush1.bf16.msra.mxu0 %v844_v20 }
  0x3b   : > { %549 = vmatprep.subr.bf16.mxu0 %v845_v21 }
  0x3e   : > { %550 = vmatpush1.bf16.msra.mxu0 %v847_v22 }
  0x3f   : > { %551 = vmatprep.subr.bf16.mxu0 %v848_v23 }
  0x42   : > { %552 = vmatpush1.bf16.msra.mxu0 %v850_v24 }
  0x43   : > { %553 = vmatprep.subr.bf16.mxu0 %v851_v25 }
  0x46   : > { %554 = vmatpush1.bf16.msra.mxu0 %v853_v26 }
  0x47   : > { %555 = vmatprep.subr.bf16.mxu0 %v854_v27 }
  0x4a   : > { %556 = vmatpush1.bf16.msra.mxu0 %v856_v28 }
  0x4b   : > { %557 = vmatprep.subr.bf16.mxu0 %v857_v29 }
  0x4e   : > { %558 = vmatpush1.bf16.msra.mxu0 %v859_v30 }
  0x4f   : > { %559 = vmatprep.subr.bf16.mxu0 %v860_v31 }
  0x52   : > { %560 = vmatpush1.bf16.msra.mxu0 %v862_v32 }
  0x53   : > { %561 = vmatprep.subr.bf16.mxu0 %v863_v33 }
  0x56   : > { %562 = vmatpush1.bf16.msra.mxu0 %v865_v34 }
  0x59   : > { %564 = vmatmul.mubr.bf16.vlgmr.msra.gmra.mrb[0].mxu0 %v753_v35 }
 0x12a   : > { %579 = sbr.rel (%p787_p7) target bundleno = 317 (0x13d), region = 44 }
 0x12c   : > { %v565_v38 = vpop.f32.mrb[0].mxu0 }
 0x12d   : > { %v572_v39 = vadd.f32 %v565_v38, %v329_v36  ;;  %v567_v40 = vpop.f32.mrb[1].mxu0 }
 0x12e   : > { %v573_v41 = vadd.f32 %v567_v40, %v330_v37  ;;  %v569_v42 = vpop.f32.mrb[2].mxu0 }
 0x12f   : > { %574 = vst [vmem:[%s1034_s4] sm:$0xff] %v572_v39  ;;  %v570_v43 = vpop.f32.mrb[3].mxu0 }
 0x130   : > { %575 = vst [vmem:[%s1034_s4 + $0x8] sm:$0xff] %v573_v41 }
 0x136   : > { %v580_v50 = vld [vmem:[%s1034_s4] sm:$0xff] }
 0x137   : > { %v581_v51 = vld [vmem:[%s1034_s4 + $0x8] sm:$0xff]  ;;  %v594_v56 = vmul.f32 %v587_v52, %v580_v50 }
 0x138   : > { %v595_v57 = vmul.f32 %v591_v54, %v581_v51 }
 0x139   : > { %v608_v58 = vadd.f32 %v601_v53, %v594_v56 }
 0x13a   : > { %v609_v59 = vadd.f32 %v605_v55, %v595_v57 }
 0x13b   : > { %610 = vst [vmem:[%s1034_s4] sm:$0xff] %v608_v58 }
 0x13c   : > { %611 = vst [vmem:[%s1034_s4 + $0x8] sm:$0xff] %v609_v59 }
 0x13d PF: > { %s14_s17 = sadd.s32 1, %s890_s17   ;;  %s1035_s15 = smov %s886_s16 }
 0x13e   : > { %p11_p8 = scmp.ge.s32.totalorder %s14_s17, 11   ;;  %s1036_s16 = smov %s1038_s18 }
 0x140   :  { %13 = sbr.rel (!%p11_p8) target bundleno = 2 (0x2), region = 83 }

// kernel: _lambda_.33
= control target key start
LH: loop header
LB: loop body
LE: loop exit
PB: predicated region body
PF: predicated region fallthrough
CT: control target
= control target key end

     0   :  { %s601_s15 = smov 0   ;;  %s603_s16 = smov 0   ;;  %s648_s0 = inlined_call_operand.vmem [shape: f32[2,8,256], index: 0, kind: input, shape index: {}]   ;;  %s649_s1 = inlined_call_operand.vmem [shape: f32[2,1,256], index: 1, kind: input, shape index: {}]   ;;  %s650_s2 = inlined_call_operand.vmem [shape: f32[2,8,256], index: 2, kind: output, shape index: {0}]   ;;  %s651_s3 = inlined_call_operand.vmem [shape: f32[2,8,1], index: 3, kind: output, shape index: {1}]   ;;  %s652_s4 = inlined_call_operand.vmem [shape: f32[2,8,1], index: 4, kind: output, shape index: {2}]  }
   0x1   :  { %s605_s17 = smov 0  }
   0x2 LB: > { %s27_s18 = sadd.s32 1, %s570_s16  ;;  %p512_p0 = scmp.ge.s32.totalorder %s574_s17, 1  ;;  %s574_s17 = sphi %s605_s17, %s15_s17   ;;  %s570_s16 = sphi %s603_s16, %s654_s16   ;;  %s566_s15 = sphi %s601_s15, %s653_s15  }
   0x3   : > { %p29_p1 = scmp.ge.s32.totalorder %s27_s18, 2  ;;  %p200_p2 = scmp.lt.s32.totalorder %s574_s17, 3 }
   0x5   : > { %s656_s18 = smov (%p29_p1, %s27_s18), 0  ;;  %p201_p3 = pnand %p512_p0, %p200_p2 }
   0x6   : > { %p252_p4 = scmp.lt.s32.totalorder (!%p201_p3), %s566_s15, 1  ;;  %v297_v5 = vlaneseq (!%p201_p3)  ;;  %vm314_vm0 = vcmask (!%p201_p3), 7168  }
   0x7   : > { %204 = sbr.rel (%p201_p3) target bundleno = 199 (0xc7), region = 28 }
   0x8   : > { %v298_v6 = vshrl.u32 (!%p201_p3), %v297_v5, 7 }
   0xa   : > { %v299_v7 = vsub.s32 (!%p201_p3), 0, %v298_v6  ;;  %v303_v8 = vsub.s32 (!%p201_p3), 1, %v298_v6 }
   0xe   : > { %s658_s15 = smov (!%p252_p4, %s566_s15), 1 }
   0xf   : > { %s515_s19 = sshll.u32 %s658_s15, 1  ;;  %s522_s23 = sshll.u32 %s658_s15, 4 }
  0x10   : > { %s264_s22 = scalar_lea.vmem %s649_s1, %s515_s19  ;;  %s260_s26 = scalar_lea.vmem %s648_s0, %s522_s23 }
  0x11   : > { %v288_v0 = vld [vmem:[%s264_s22] sm:$0x3]  ;;  %v295_v11 = vld [vmem:[%s260_s26 + $0x8] sm:$0xff]  ;;  %s273_s29 = scalar_lea.vmem %s650_s2, %s522_s23  ;;  %s518_s30 = sshll.u32 %s658_s15, 3 }
  0x12   : > { %v289_v1 = vsub.f32 0.0, %v288_v0  ;;  %v294_v10 = vld [vmem:[%s260_s26] sm:$0xff]  ;;  %s287_s7 = scalar_lea.vmem %s652_s4, %s518_s30  ;;  %s280_s10 = scalar_lea.vmem %s651_s3, %s518_s30 }
  0x14   : > { %v290_v2 = vmul.f32 1.442695, %v289_v1 }
  0x16   : > { %548 = vpow2.f32 %v290_v2 }
  0x20   : > { %v549_v3 = vpop.eup %548 }
  0x21   : > { %v292_v4 = vadd.f32 1.0, %v549_v3 }
  0x23   : > { %550 = vrcp.f32 %v292_v4 }
  0x2d   : > { %v551_v9 = vpop.eup %550 }
  0x2e   : > { %v300_v12 = vrot.slane %v551_v9, %v299_v7  ;;  %v304_v13 = vrot.slane %v551_v9, %v303_v8 }
  0x30   : > { %v307_v14 = vmul.f32 %v300_v12, %v294_v10  ;;  %v308_v15 = vmul.f32 %v304_v13, %v295_v11 }
  0x32   : > { %310 = vst [vmem:[%s273_s29 + $0x8] sm:$0xff] %v308_v15  ;;  %v316_v16 = vadd.f32 %v308_v15, %v307_v14  ;;  %309 = vst [vmem:[%s273_s29] sm:$0xff] %v307_v14  ;;  %v311_v17 = vmax.f32 %v307_v14, %v308_v15 }
  0x34   : > { %317 = vadd.xlane.f32.xlu0 %v316_v16 }
  0x38   : > { %312 = vmax.xlane.f32.xlu0 %v311_v17 }
  0xc1   : > { %v318_v18 = vpop.xlane.xlu0 %317 }
  0xc2   : > { %v320_v19 = vmul.f32 0.00390625, %v318_v18 }
  0xc4   : > { %321 = vst.msk [vmem:[%s287_s7] sm:$0xff] %vm314_vm0, %v320_v19 }
  0xc5   : > { %v313_v20 = vpop.xlane.xlu0 %312 }
  0xc6   : > { %315 = vst.msk [vmem:[%s280_s10] sm:$0xff] %vm314_vm0, %v313_v20 }
  0xc7 PF: > { %s15_s17 = sadd.s32 1, %s574_s17   ;;  %s653_s15 = smov %s570_s16 }
  0xc8   : > { %p12_p5 = scmp.ge.s32.totalorder %s15_s17, 4   ;;  %s654_s16 = smov %s656_s18 }
  0xca   :  { %14 = sbr.rel (!%p12_p5) target bundleno = 2 (0x2), region = 85 }

// kernel: _lambda_.34
= control target key start
LH: loop header
LB: loop body
LE: loop exit
PB: predicated region body
PF: predicated region fallthrough
CT: control target
= control target key end

     0   :  { %s512_s12 = smov 0   ;;  %s514_s13 = smov 0   ;;  %s551_s0 = inlined_call_operand.vmem [shape: f32[2,8,256], index: 0, kind: input, shape index: {}]   ;;  %s552_s1 = inlined_call_operand.vmem [shape: f32[2,8,1], index: 1, kind: input, shape index: {}]   ;;  %s553_s2 = inlined_call_operand.vmem [shape: f32[2,8,256], index: 2, kind: input, shape index: {}]   ;;  %s554_s3 = inlined_call_operand.vmem [shape: f32[2,8,256], index: 3, kind: output, shape index: {}]  }
   0x1   :  { %s516_s14 = smov 0  }
   0x2 LB: > { %s25_s15 = sadd.s32 1, %s485_s13  ;;  %p424_p0 = scmp.ge.s32.totalorder %s489_s14, 1  ;;  %s489_s14 = sphi %s516_s14, %s13_s14   ;;  %s485_s13 = sphi %s514_s13, %s556_s13   ;;  %s481_s12 = sphi %s512_s12, %s555_s12  }
   0x3   : > { %p27_p1 = scmp.ge.s32.totalorder %s25_s15, 2  ;;  %p187_p2 = scmp.lt.s32.totalorder %s489_s14, 3 }
   0x5   : > { %s558_s15 = smov (%p27_p1, %s25_s15), 0  ;;  %p188_p3 = pnand %p424_p0, %p187_p2 }
   0x6   : > { %p235_p4 = scmp.lt.s32.totalorder (!%p188_p3), %s481_s12, 1  ;;  %v491_v0 = vmov (!%p188_p3), 0  }
   0x7   : > { %191 = sbr.rel (%p188_p3) target bundleno = 181 (0xb5), region = 32  ;;  %462 = vset.pattern.permute.xlu0 (!%p188_p3), %v491_v0 }
   0xe   : > { %s560_s12 = smov (!%p235_p4, %s481_s12), 1 }
   0xf   : > { %s427_s16 = sshll.u32 %s560_s12, 3  ;;  %s434_s20 = sshll.u32 %s560_s12, 4 }
  0x10   : > { %s250_s19 = scalar_lea.vmem %s552_s1, %s427_s16  ;;  %s243_s23 = scalar_lea.vmem %s551_s0, %s434_s20 }
  0x11   : > { %v269_v1 = vld [vmem:[%s250_s19] sm:$0xff]  ;;  %s259_s26 = scalar_lea.vmem %s553_s2, %s434_s20  ;;  %v276_v8 = vld [vmem:[%s243_s23 + $0x8] sm:$0xff]  ;;  %s268_s29 = scalar_lea.vmem %s554_s3, %s434_s20 }
  0x12   : > { %v270_v2 = vsub.f32 0.0, %v269_v1  ;;  %v275_v7 = vld [vmem:[%s243_s23] sm:$0xff]  ;;  %v285_v11 = vld [vmem:[%s259_s26 + $0x8] sm:$0xff] }
  0x13   : > { %v284_v10 = vld [vmem:[%s259_s26] sm:$0xff] }
  0x14   : > { %v271_v3 = vmul.f32 1.442695, %v270_v2 }
  0x16   : > { %463 = vpow2.f32 %v271_v3 }
  0x20   : > { %v464_v4 = vpop.eup %463 }
  0x21   : > { %v273_v5 = vadd.f32 1.0, %v464_v4 }
  0x23   : > { %465 = vrcp.f32 %v273_v5 }
  0x2d   : > { %v466_v6 = vpop.eup %465 }
  0x2e   : > { %279 = vperm.xlu0 %462, %v466_v6  }
  0xad   : > { %v280_v9 = vpop.permute.xlu0 %279 }
  0xae   : > { %v282_v12 = vmul.f32 %v280_v9, %v275_v7  ;;  %v283_v13 = vmul.f32 %v280_v9, %v276_v8 }
  0xb0   : > { %v286_v14 = vadd.f32 %v284_v10, %v282_v12  ;;  %v287_v15 = vadd.f32 %v285_v11, %v283_v13 }
  0xb2   : > { %v288_v16 = vmax.f32 %v286_v14, 0.0  ;;  %v289_v17 = vmax.f32 %v287_v15, 0.0 }
  0xb4   : > { %290 = vst [vmem:[%s268_s29] sm:$0xff] %v288_v16  ;;  %291 = vst [vmem:[%s268_s29 + $0x8] sm:$0xff] %v289_v17 }
  0xb5 PF: > { %s13_s14 = sadd.s32 1, %s489_s14   ;;  %s555_s12 = smov %s485_s13 }
  0xb6   : > { %p10_p5 = scmp.ge.s32.totalorder %s13_s14, 4   ;;  %s556_s13 = smov %s558_s15 }
  0xb8   :  { %12 = sbr.rel (!%p10_p5) target bundleno = 2 (0x2), region = 68 }

// kernel: _lambda_.32
= control target key start
LH: loop header
LB: loop body
LE: loop exit
PB: predicated region body
PF: predicated region fallthrough
CT: control target
= control target key end

     0   :  { %v249_v1 = vmov 0   ;;  %v175_v18 = vlaneseq  ;;  %s338_s1 = inlined_call_operand.vmem [shape: bf16[128,256], index: 1, kind: input, shape index: {}]   ;;  %s339_s0 = inlined_call_operand.vmem [shape: bf16[8,128], index: 0, kind: input, shape index: {}]   ;;  %s340_s2 = inlined_call_operand.vmem [shape: f32[1,256], index: 2, kind: input, shape index: {}]   ;;  %s341_s3 = inlined_call_operand.vmem [shape: f32[1,256], index: 3, kind: input, shape index: {}]   ;;  %s342_s4 = inlined_call_operand.vmem [shape: f32[8,256], index: 4, kind: output, shape index: {}]  }
   0x1   :  { %v225_v0 = vld [vmem:[%s338_s1 + $0x4] ss:$8 sps:$4 sm:$0xff]   ;;  %155 = vmatprep.mubr.bf16.mxu0 %v249_v1  ;;  %v227_v2 = vld [vmem:[%s338_s1] ss:$8 sps:$4 sm:$0xff]   ;;  %v228_v3 = vld [vmem:[%s338_s1 + $0x14] ss:$8 sps:$4 sm:$0xff]  }
   0x2   :  { %123 = vmatprep.subr.bf16.mxu0 %v225_v0  ;;  %v230_v4 = vld [vmem:[%s338_s1 + $0x10] ss:$8 sps:$4 sm:$0xff]   ;;  %v231_v5 = vld [vmem:[%s338_s1 + $0x24] ss:$8 sps:$4 sm:$0xff]   ;;  %v233_v6 = vld [vmem:[%s338_s1 + $0x20] ss:$8 sps:$4 sm:$0xff]  }
   0x3   :  { %124 = vmatpush1.bf16.msra.mxu0 %v227_v2  ;;  %v234_v7 = vld [vmem:[%s338_s1 + $0x34] ss:$8 sps:$4 sm:$0xff]   ;;  %v236_v8 = vld [vmem:[%s338_s1 + $0x30] ss:$8 sps:$4 sm:$0xff]   ;;  %v237_v9 = vld [vmem:[%s338_s1 + $0x44] ss:$8 sps:$4 sm:$0xff]  }
   0x4   :  { %125 = vmatprep.subr.bf16.mxu0 %v228_v3  ;;  %v239_v10 = vld [vmem:[%s338_s1 + $0x40] ss:$8 sps:$4 sm:$0xff]   ;;  %v240_v11 = vld [vmem:[%s338_s1 + $0x54] ss:$8 sps:$4 sm:$0xff]   ;;  %v242_v12 = vld [vmem:[%s338_s1 + $0x50] ss:$8 sps:$4 sm:$0xff]  }
   0x5   :  { %v243_v13 = vld [vmem:[%s338_s1 + $0x64] ss:$8 sps:$4 sm:$0xff]   ;;  %v245_v14 = vld [vmem:[%s338_s1 + $0x60] ss:$8 sps:$4 sm:$0xff]   ;;  %v246_v15 = vld [vmem:[%s338_s1 + $0x74] ss:$8 sps:$4 sm:$0xff]  }
   0x6   :  { %v248_v16 = vld [vmem:[%s338_s1 + $0x70] ss:$8 sps:$4 sm:$0xff]   ;;  %v26_v17 = vld [vmem:[%s339_s0] sm:$0xf]  ;;  %v176_v19 = vshrl.u32 %v175_v18, 7 }
   0x7   :  { %126 = vmatpush1.bf16.msra.mxu0 %v230_v4  ;;  %v173_v21 = vld [vmem:[%s340_s2] sm:$0x3] }
   0x8   :  { %127 = vmatprep.subr.bf16.mxu0 %v231_v5  ;;  %v177_v20 = vsub.s32 0, %v176_v19  ;;  %v181_v22 = vsub.s32 1, %v176_v19  ;;  %v187_v23 = vld [vmem:[%s341_s3] sm:$0x3] }
   0xa   :  { %v178_v24 = vrot.slane %v173_v21, %v177_v20  ;;  %v182_v26 = vrot.slane %v173_v21, %v181_v22  ;;  %v192_v27 = vrot.slane %v187_v23, %v177_v20  ;;  %v196_v29 = vrot.slane %v187_v23, %v181_v22 }
   0xb   :  { %128 = vmatpush1.bf16.msra.mxu0 %v233_v6 }
   0xc   :  { %129 = vmatprep.subr.bf16.mxu0 %v234_v7 }
   0xf   :  { %130 = vmatpush1.bf16.msra.mxu0 %v236_v8 }
  0x10   :  { %131 = vmatprep.subr.bf16.mxu0 %v237_v9 }
  0x13   :  { %132 = vmatpush1.bf16.msra.mxu0 %v239_v10 }
  0x14   :  { %133 = vmatprep.subr.bf16.mxu0 %v240_v11 }
  0x17   :  { %134 = vmatpush1.bf16.msra.mxu0 %v242_v12 }
  0x18   :  { %135 = vmatprep.subr.bf16.mxu0 %v243_v13 }
  0x1b   :  { %136 = vmatpush1.bf16.msra.mxu0 %v245_v14 }
  0x1c   :  { %137 = vmatprep.subr.bf16.mxu0 %v246_v15 }
  0x1f   :  { %138 = vmatpush1.bf16.msra.mxu0 %v248_v16 }
  0x22   :  { %156 = vmatmul.mubr.bf16.vlgmr.msra.gmra.mrb[0].mxu0 %v26_v17 }
  0xf5   :  { %v157_v25 = vpop.f32.mrb[0].mxu0 }
  0xf6   :  { %v159_v28 = vpop.f32.mrb[1].mxu0  ;;  %v185_v31 = vmul.f32 %v178_v24, %v157_v25 }
  0xf7   :  { %v161_v30 = vpop.f32.mrb[2].mxu0  ;;  %v186_v33 = vmul.f32 %v182_v26, %v159_v28 }
  0xf8   :  { %v162_v32 = vpop.f32.mrb[3].mxu0  ;;  %v199_v34 = vadd.f32 %v192_v27, %v185_v31 }
  0xf9   :  { %v200_v35 = vadd.f32 %v196_v29, %v186_v33 }
  0xfa   :  { %201 = vst [vmem:[%s342_s4] sm:$0xff] %v199_v34 }
  0xfb   :  { %202 = vst [vmem:[%s342_s4 + $0x8] sm:$0xff] %v200_v35 }

// kernel: _lambda_.35
= control target key start
LH: loop header
LB: loop body
LE: loop exit
PB: predicated region body
PF: predicated region fallthrough
CT: control target
= control target key end

     0   :  { %s1136_s15 = smov 0   ;;  %s1138_s16 = smov 0   ;;  %s1368_s0 = inlined_call_operand.vmem [shape: bf16[8,2304], index: 0, kind: input, shape index: {}]   ;;  %s1369_s1 = inlined_call_operand.vmem [shape: bf16[2304,512], index: 1, kind: input, shape index: {}]   ;;  %s1370_s2 = inlined_call_operand.vmem [shape: f32[1,512], index: 2, kind: input, shape index: {}]   ;;  %s1371_s3 = inlined_call_operand.vmem [shape: f32[1,512], index: 3, kind: input, shape index: {}]   ;;  %s1372_s4 = inlined_call_operand.vmem [shape: f32[8,512], index: 4, kind: output, shape index: {}]  }
   0x1   :  { %s1140_s17 = smov 0   ;;  %s1142_s18 = smov 0  }
   0x2   :  { %s1144_s19 = smov 0   ;;  %s1146_s20 = smov 0  }
   0x3   :  { %s1148_s21 = smov 0  }
   0x4 LB: > { %s26_s22 = sadd.s32 1, %s1100_s19  ;;  %s29_s23 = sadd.s32 1, %s1104_s20  ;;  %s1108_s21 = sphi %s1148_s21, %s14_s21   ;;  %s1104_s20 = sphi %s1146_s20, %s1378_s20   ;;  %s1100_s19 = sphi %s1144_s19, %s1377_s19   ;;  %s1096_s18 = sphi %s1142_s18, %s1376_s18   ;;  %s1092_s17 = sphi %s1140_s17, %s1375_s17   ;;  %s1088_s16 = sphi %s1138_s16, %s1374_s16   ;;  %s1084_s15 = sphi %s1136_s15, %s1373_s15  }
   0x5   : > { %p27_p0 = scmp.ge.s32.totalorder %s26_s22, 9  ;;  %p77_p1 = scmp.ne.s32.totalorder %s1088_s16, %s1084_s15 }
   0x6   : > { %p78_p2 = scmp.eq.s32.totalorder %s1108_s21, 0  ;;  %s70_s27 = sadd.s32 1, %s1088_s16 }
   0x7   : > { %s1380_s22 = smov (%p27_p0, %s26_s22), 0  ;;  %s1382_s23 = smov (!%p27_p0, %s29_s23), %s1104_s20 }
   0x8   : > { %p79_p3 = por %p78_p2, %p77_p1  ;;  %p31_p4 = scmp.ge.s32.totalorder %s1382_s23, 2 }
   0x9   : > { %s65_s24 = ssub.s32 %s1100_s19, %s1380_s22  ;;  %p894_p6 = scmp.ge.s32.totalorder %s1108_s21, 18 }
   0xa   : > { %s1384_s23 = smov (%p31_p4, %s1382_s23), 0 }
   0xb   : > { %s66_s25 = ssub.s32 %s1104_s20, %s1384_s23  ;;  %183 = sbr.rel (%p894_p6) target bundleno = 41 (0x29), region = 16 }
   0xc   : > { %s67_s26 = sor.u32 %s66_s25, %s65_s24 }
   0xd   : > { %p68_p5 = scmp.eq.s32.totalorder %s67_s26, 0 }
   0xf   : > { %s1187_s28 = scalar_select %p68_p5, %s1088_s16, %s70_s27  }
  0x12   : > { %199 = sbr.rel (!%p79_p3) target bundleno = 41 (0x29), region = 24  ;;  %s201_s29 = sand.u32 (%p79_p3), 1, %s1088_s16  }
  0x13   : > { %s897_s30 = sshll.u32 (%p79_p3), %s1104_s20, 1  ;;  %s895_s5 = sshll.u32 (%p79_p3), %s201_s29, 8 }
  0x14   : > { %s946_s6 = sshll.u32 (%p79_p3), %s1100_s19, 7  ;;  %s1201_s12 = scalar_lea.vmem (%p79_p3), [#allocation2], %s895_s5 }
  0x15   : > { %s207_s7 = sadd.s32 (%p79_p3), %s946_s6, %s897_s30 }
  0x16   : > { %s899_s8 = sshll.u32 (%p79_p3), %s207_s7, 2 }
  0x17   : > { %s1196_s11 = scalar_lea.vmem (%p79_p3), %s1369_s1, %s899_s8 }
  0x18   : > { %v299_v0 = vld [vmem:[%s1196_s11] sm:$0xff] (%p79_p3)  ;;  %v301_v1 = vld [vmem:[%s1196_s11 + $0x10] sm:$0xff] (%p79_p3) }
  0x19   : > { %v303_v2 = vld [vmem:[%s1196_s11 + $0x20] sm:$0xff]  ;;  %300 = vst [vmem:[%s1201_s12] sm:$0xff] %v299_v0  ;;  %302 = vst [vmem:[%s1201_s12 + $0x8] sm:$0xff] %v301_v1  ;;  %v305_v3 = vld [vmem:[%s1196_s11 + $0x30] sm:$0xff] }
  0x1a   : > { %304 = vst [vmem:[%s1201_s12 + $0x10] sm:$0xff] %v303_v2  ;;  %v307_v4 = vld [vmem:[%s1196_s11 + $0x40] sm:$0xff]  ;;  %v309_v5 = vld [vmem:[%s1196_s11 + $0x50] sm:$0xff]  ;;  %306 = vst [vmem:[%s1201_s12 + $0x18] sm:$0xff] %v305_v3 }
  0x1b   : > { %308 = vst [vmem:[%s1201_s12 + $0x20] sm:$0xff] %v307_v4  ;;  %310 = vst [vmem:[%s1201_s12 + $0x28] sm:$0xff] %v309_v5  ;;  %v311_v6 = vld [vmem:[%s1196_s11 + $0x60] sm:$0xff]  ;;  %v313_v7 = vld [vmem:[%s1196_s11 + $0x70] sm:$0xff] }
  0x1c   : > { %v315_v8 = vld [vmem:[%s1196_s11 + $0x80] sm:$0xff]  ;;  %312 = vst [vmem:[%s1201_s12 + $0x30] sm:$0xff] %v311_v6  ;;  %314 = vst [vmem:[%s1201_s12 + $0x38] sm:$0xff] %v313_v7  ;;  %v317_v9 = vld [vmem:[%s1196_s11 + $0x90] sm:$0xff] }
  0x1d   : > { %316 = vst [vmem:[%s1201_s12 + $0x40] sm:$0xff] %v315_v8  ;;  %v319_v10 = vld [vmem:[%s1196_s11 + $0xa0] sm:$0xff]  ;;  %v321_v11 = vld [vmem:[%s1196_s11 + $0xb0] sm:$0xff]  ;;  %318 = vst [vmem:[%s1201_s12 + $0x48] sm:$0xff] %v317_v9 }
  0x1e   : > { %320 = vst [vmem:[%s1201_s12 + $0x50] sm:$0xff] %v319_v10  ;;  %322 = vst [vmem:[%s1201_s12 + $0x58] sm:$0xff] %v321_v11  ;;  %v323_v12 = vld [vmem:[%s1196_s11 + $0xc0] sm:$0xff]  ;;  %v325_v13 = vld [vmem:[%s1196_s11 + $0xd0] sm:$0xff] }
  0x1f   : > { %v327_v14 = vld [vmem:[%s1196_s11 + $0xe0] sm:$0xff]  ;;  %324 = vst [vmem:[%s1201_s12 + $0x60] sm:$0xff] %v323_v12  ;;  %326 = vst [vmem:[%s1201_s12 + $0x68] sm:$0xff] %v325_v13  ;;  %v329_v15 = vld [vmem:[%s1196_s11 + $0xf0] sm:$0xff] }
  0x20   : > { %328 = vst [vmem:[%s1201_s12 + $0x70] sm:$0xff] %v327_v14  ;;  %v331_v16 = vld [vmem:[%s1196_s11 + $0x100] sm:$0xff]  ;;  %v333_v17 = vld [vmem:[%s1196_s11 + $0x110] sm:$0xff]  ;;  %330 = vst [vmem:[%s1201_s12 + $0x78] sm:$0xff] %v329_v15 }
  0x21   : > { %332 = vst [vmem:[%s1201_s12 + $0x80] sm:$0xff] %v331_v16  ;;  %334 = vst [vmem:[%s1201_s12 + $0x88] sm:$0xff] %v333_v17  ;;  %v335_v18 = vld [vmem:[%s1196_s11 + $0x120] sm:$0xff]  ;;  %v337_v19 = vld [vmem:[%s1196_s11 + $0x130] sm:$0xff] }
  0x22   : > { %v339_v20 = vld [vmem:[%s1196_s11 + $0x140] sm:$0xff]  ;;  %336 = vst [vmem:[%s1201_s12 + $0x90] sm:$0xff] %v335_v18  ;;  %338 = vst [vmem:[%s1201_s12 + $0x98] sm:$0xff] %v337_v19  ;;  %v341_v21 = vld [vmem:[%s1196_s11 + $0x150] sm:$0xff] }
  0x23   : > { %340 = vst [vmem:[%s1201_s12 + $0xa0] sm:$0xff] %v339_v20  ;;  %v343_v22 = vld [vmem:[%s1196_s11 + $0x160] sm:$0xff]  ;;  %v345_v23 = vld [vmem:[%s1196_s11 + $0x170] sm:$0xff]  ;;  %342 = vst [vmem:[%s1201_s12 + $0xa8] sm:$0xff] %v341_v21 }
  0x24   : > { %344 = vst [vmem:[%s1201_s12 + $0xb0] sm:$0xff] %v343_v22  ;;  %346 = vst [vmem:[%s1201_s12 + $0xb8] sm:$0xff] %v345_v23  ;;  %v347_v24 = vld [vmem:[%s1196_s11 + $0x180] sm:$0xff]  ;;  %v349_v25 = vld [vmem:[%s1196_s11 + $0x190] sm:$0xff] }
  0x25   : > { %v351_v26 = vld [vmem:[%s1196_s11 + $0x1a0] sm:$0xff]  ;;  %348 = vst [vmem:[%s1201_s12 + $0xc0] sm:$0xff] %v347_v24  ;;  %350 = vst [vmem:[%s1201_s12 + $0xc8] sm:$0xff] %v349_v25  ;;  %v353_v27 = vld [vmem:[%s1196_s11 + $0x1b0] sm:$0xff] }
  0x26   : > { %352 = vst [vmem:[%s1201_s12 + $0xd0] sm:$0xff] %v351_v26  ;;  %v355_v28 = vld [vmem:[%s1196_s11 + $0x1c0] sm:$0xff]  ;;  %v357_v29 = vld [vmem:[%s1196_s11 + $0x1d0] sm:$0xff]  ;;  %354 = vst [vmem:[%s1201_s12 + $0xd8] sm:$0xff] %v353_v27 }
  0x27   : > { %356 = vst [vmem:[%s1201_s12 + $0xe0] sm:$0xff] %v355_v28  ;;  %358 = vst [vmem:[%s1201_s12 + $0xe8] sm:$0xff] %v357_v29  ;;  %v359_v30 = vld [vmem:[%s1196_s11 + $0x1e0] sm:$0xff]  ;;  %v361_v31 = vld [vmem:[%s1196_s11 + $0x1f0] sm:$0xff] }
  0x28   : > { %360 = vst [vmem:[%s1201_s12 + $0xf0] sm:$0xff] %v359_v30  ;;  %362 = vst [vmem:[%s1201_s12 + $0xf8] sm:$0xff] %v361_v31 }
  0x29 PF: > { %p900_p7 = scmp.ge.s32.totalorder %s1108_s21, 1  ;;  %p383_p8 = scmp.lt.s32.totalorder %s1108_s21, 19 }
  0x2b   : > { %p384_p9 = pnand %p900_p7, %p383_p8 }
  0x2c   : > { %s390_s13 = sand.u32 (!%p384_p9), 1, %s1084_s15   ;;  %s902_s14 = sshll.u32 (!%p384_p9), %s1092_s17, 1 }
  0x2d   : > { %387 = sbr.rel (%p384_p9) target bundleno = 357 (0x165), region = 70  ;;  %s901_s24 = sshll.u32 (!%p384_p9), %s390_s13, 8 }
  0x2e   : > { %p439_p10 = scmp.lt.s32.totalorder (!%p384_p9), %s902_s14, 17  ;;  %s904_s25 = sshll.u32 (!%p384_p9), %s1096_s18, 1 }
  0x2f   : > { %p449_p11 = scmp.lt.s32.totalorder (!%p384_p9), %s904_s25, 3  ;;  %s1290_s13 = scalar_lea.vmem (!%p384_p9), [#allocation2], %s901_s24 }
  0x30   : > { %p908_p12 = scmp.ne.s32.totalorder (!%p384_p9), %s1092_s17, 0 }
  0x34   : > { %s1386_s14 = smov (!%p439_p10, %s902_s14), 17  ;;  %s1388_s25 = smov (!%p449_p11, %s904_s25), 3 }
  0x35   : > { %s903_s26 = sshll.u32 %s1386_s14, 2  ;;  %s451_s15 = scalar_lea.vmem %s1370_s2, %s1388_s25  ;;  %v1110_v32 = vmov (!%p908_p12), 0.0  }
  0x36   : > { %s1272_s30 = scalar_lea.vmem %s1368_s0, %s903_s26  ;;  %s456_s18 = scalar_lea.vmem %s1371_s3, %s1388_s25 }
  0x37   : > { %s907_s9 = sshll.u32 %s1388_s25, 3  ;;  %471 = sbr.rel (%p908_p12) target bundleno = 62 (0x3e), region = 78 }
  0x38   : > { %s1288_s12 = scalar_lea.vmem %s1372_s4, %s907_s9 }
  0x39   : > { %472 = vst [vmem:[%s1288_s12] sm:$0xff] (!%p908_p12), %v1110_v32  ;;  %473 = vst [vmem:[%s1288_s12 + $0x8] sm:$0xff] (!%p908_p12), %v1110_v32 }
  0x3e PF: > { %v1004_v33 = vld [vmem:[%s1290_s13 + $0x4] ss:$8 sps:$4 sm:$0xff]   ;;  %v1006_v34 = vld [vmem:[%s1290_s13] ss:$8 sps:$4 sm:$0xff]   ;;  %v1007_v35 = vld [vmem:[%s1290_s13 + $0x14] ss:$8 sps:$4 sm:$0xff]  }
  0x3f   : > { %676 = vmatprep.subr.bf16.mxu0 %v1004_v33  ;;  %v1009_v36 = vld [vmem:[%s1290_s13 + $0x10] ss:$8 sps:$4 sm:$0xff]   ;;  %v1010_v37 = vld [vmem:[%s1290_s13 + $0x24] ss:$8 sps:$4 sm:$0xff]   ;;  %v1012_v38 = vld [vmem:[%s1290_s13 + $0x20] ss:$8 sps:$4 sm:$0xff]  }
  0x40   : > { %677 = vmatpush1.bf16.msra.mxu0 %v1006_v34  ;;  %v1013_v39 = vld [vmem:[%s1290_s13 + $0x34] ss:$8 sps:$4 sm:$0xff]   ;;  %v1015_v40 = vld [vmem:[%s1290_s13 + $0x30] ss:$8 sps:$4 sm:$0xff]   ;;  %v1016_v41 = vld [vmem:[%s1290_s13 + $0x44] ss:$8 sps:$4 sm:$0xff]  }
  0x41   : > { %678 = vmatprep.subr.bf16.mxu0 %v1007_v35  ;;  %v1018_v42 = vld [vmem:[%s1290_s13 + $0x40] ss:$8 sps:$4 sm:$0xff]   ;;  %v1019_v43 = vld [vmem:[%s1290_s13 + $0x54] ss:$8 sps:$4 sm:$0xff]   ;;  %v1021_v44 = vld [vmem:[%s1290_s13 + $0x50] ss:$8 sps:$4 sm:$0xff]  }
  0x42   : > { %v1022_v45 = vld [vmem:[%s1290_s13 + $0x64] ss:$8 sps:$4 sm:$0xff]   ;;  %v1024_v48 = vld [vmem:[%s1290_s13 + $0x60] ss:$8 sps:$4 sm:$0xff]   ;;  %v1025_v49 = vld [vmem:[%s1290_s13 + $0x74] ss:$8 sps:$4 sm:$0xff]  }
  0x43   : > { %v476_v46 = vld [vmem:[%s1272_s30] sm:$0xff]  ;;  %v1027_v50 = vld [vmem:[%s1290_s13 + $0x70] ss:$8 sps:$4 sm:$0xff]   ;;  %v1031_v53 = vld [vmem:[%s1290_s13 + $0x94] ss:$8 sps:$4 sm:$0xff]   ;;  %p943_p13 = scmp.ne.s32.totalorder %s1092_s17, 8 }
  0x44   : > { %679 = vmatpush1.bf16.msra.mxu0 %v1009_v36  ;;  %v910_v47 = vcombine.high %v476_v46, %v476_v46  ;;  %v1028_v51 = vld [vmem:[%s1290_s13 + $0x84] ss:$8 sps:$4 sm:$0xff]   ;;  %v1030_v52 = vld [vmem:[%s1290_s13 + $0x80] ss:$8 sps:$4 sm:$0xff]   ;;  %v1033_v54 = vld [vmem:[%s1290_s13 + $0x90] ss:$8 sps:$4 sm:$0xff]   ;;  %v909_v3 = vcombine.low %v476_v46, %v476_v46  ;;  %v729_v12 = vlaneseq (!%p943_p13) }
  0x45   : > { %680 = vmatprep.subr.bf16.mxu0 %v1010_v37  ;;  %v1034_v55 = vld [vmem:[%s1290_s13 + $0xa4] ss:$8 sps:$4 sm:$0xff]   ;;  %v1036_v56 = vld [vmem:[%s1290_s13 + $0xa0] ss:$8 sps:$4 sm:$0xff]   ;;  %v1037_v57 = vld [vmem:[%s1290_s13 + $0xb4] ss:$8 sps:$4 sm:$0xff]  }
  0x46   : > { %708 = vmatprep.mubr.bf16.mxu0 %v910_v47  ;;  %v1039_v58 = vld [vmem:[%s1290_s13 + $0xb0] ss:$8 sps:$4 sm:$0xff]   ;;  %v1040_v59 = vld [vmem:[%s1290_s13 + $0xc4] ss:$8 sps:$4 sm:$0xff]   ;;  %v1042_v60 = vld [vmem:[%s1290_s13 + $0xc0] ss:$8 sps:$4 sm:$0xff]  }
  0x47   : > { %v1043_v61 = vld [vmem:[%s1290_s13 + $0xd4] ss:$8 sps:$4 sm:$0xff]   ;;  %v1045_v62 = vld [vmem:[%s1290_s13 + $0xd0] ss:$8 sps:$4 sm:$0xff]   ;;  %v1046_v63 = vld [vmem:[%s1290_s13 + $0xe4] ss:$8 sps:$4 sm:$0xff]  }
  0x48   : > { %681 = vmatpush1.bf16.msra.mxu0 %v1012_v38  ;;  %v1048_v0 = vld [vmem:[%s1290_s13 + $0xe0] ss:$8 sps:$4 sm:$0xff]   ;;  %v1049_v1 = vld [vmem:[%s1290_s13 + $0xf4] ss:$8 sps:$4 sm:$0xff]   ;;  %v1051_v2 = vld [vmem:[%s1290_s13 + $0xf0] ss:$8 sps:$4 sm:$0xff]  }
  0x49   : > { %682 = vmatprep.subr.bf16.mxu0 %v1013_v39  ;;  %v474_v4 = vld [vmem:[%s1288_s12] sm:$0xff]  ;;  %v475_v5 = vld [vmem:[%s1288_s12 + $0x8] sm:$0xff]  ;;  %v730_v13 = vshrl.u32 (!%p943_p13), %v729_v12, 7 }
  0x4a   : > { %v727_v14 = vld [vmem:[%s451_s15] sm:$0x3] (!%p943_p13) }
  0x4b   : > { %v741_v15 = vld [vmem:[%s456_s18] sm:$0x3] (!%p943_p13)  ;;  %v731_v16 = vsub.s32 (!%p943_p13), 0, %v730_v13  ;;  %v735_v17 = vsub.s32 (!%p943_p13), 1, %v730_v13 }
  0x4c   : > { %683 = vmatpush1.bf16.msra.mxu0 %v1015_v40 }
  0x4d   : > { %684 = vmatprep.subr.bf16.mxu0 %v1016_v41  ;;  %v732_v20 = vrot.slane (!%p943_p13), %v727_v14, %v731_v16  ;;  %v736_v21 = vrot.slane (!%p943_p13), %v727_v14, %v735_v17  ;;  %v746_v22 = vrot.slane (!%p943_p13), %v741_v15, %v731_v16  ;;  %v750_v23 = vrot.slane (!%p943_p13), %v741_v15, %v735_v17 }
  0x50   : > { %685 = vmatpush1.bf16.msra.mxu0 %v1018_v42 }
  0x51   : > { %686 = vmatprep.subr.bf16.mxu0 %v1019_v43 }
  0x54   : > { %687 = vmatpush1.bf16.msra.mxu0 %v1021_v44 }
  0x55   : > { %688 = vmatprep.subr.bf16.mxu0 %v1022_v45 }
  0x58   : > { %689 = vmatpush1.bf16.msra.mxu0 %v1024_v48 }
  0x59   : > { %690 = vmatprep.subr.bf16.mxu0 %v1025_v49 }
  0x5c   : > { %691 = vmatpush1.bf16.msra.mxu0 %v1027_v50 }
  0x5d   : > { %692 = vmatprep.subr.bf16.mxu0 %v1028_v51 }
  0x60   : > { %693 = vmatpush1.bf16.msra.mxu0 %v1030_v52 }
  0x61   : > { %694 = vmatprep.subr.bf16.mxu0 %v1031_v53 }
  0x64   : > { %695 = vmatpush1.bf16.msra.mxu0 %v1033_v54 }
  0x65   : > { %696 = vmatprep.subr.bf16.mxu0 %v1034_v55 }
  0x68   : > { %697 = vmatpush1.bf16.msra.mxu0 %v1036_v56 }
  0x69   : > { %698 = vmatprep.subr.bf16.mxu0 %v1037_v57 }
  0x6c   : > { %699 = vmatpush1.bf16.msra.mxu0 %v1039_v58 }
  0x6d   : > { %700 = vmatprep.subr.bf16.mxu0 %v1040_v59 }
  0x70   : > { %701 = vmatpush1.bf16.msra.mxu0 %v1042_v60 }
  0x71   : > { %702 = vmatprep.subr.bf16.mxu0 %v1043_v61 }
  0x74   : > { %703 = vmatpush1.bf16.msra.mxu0 %v1045_v62 }
  0x75   : > { %704 = vmatprep.subr.bf16.mxu0 %v1046_v63 }
  0x78   : > { %705 = vmatpush1.bf16.msra.mxu0 %v1048_v0 }
  0x79   : > { %706 = vmatprep.subr.bf16.mxu0 %v1049_v1 }
  0x7c   : > { %707 = vmatpush1.bf16.msra.mxu0 %v1051_v2 }
  0x7f   : > { %709 = vmatmul.mubr.bf16.vlgmr.msra.gmra.mrb[0].mxu0 %v909_v3 }
 0x150   : > { %724 = sbr.rel (%p943_p13) target bundleno = 357 (0x165), region = 82 }
 0x152   : > { %v710_v6 = vpop.f32.mrb[0].mxu0 }
 0x153   : > { %v717_v7 = vadd.f32 %v710_v6, %v474_v4  ;;  %v712_v8 = vpop.f32.mrb[1].mxu0 }
 0x154   : > { %v718_v9 = vadd.f32 %v712_v8, %v475_v5  ;;  %v714_v10 = vpop.f32.mrb[2].mxu0 }
 0x155   : > { %719 = vst [vmem:[%s1288_s12] sm:$0xff] %v717_v7  ;;  %v715_v11 = vpop.f32.mrb[3].mxu0 }
 0x156   : > { %720 = vst [vmem:[%s1288_s12 + $0x8] sm:$0xff] %v718_v9 }
 0x15c   : > { %v725_v18 = vld [vmem:[%s1288_s12] sm:$0xff] }
 0x15d   : > { %v726_v19 = vld [vmem:[%s1288_s12 + $0x8] sm:$0xff]  ;;  %v739_v24 = vmul.f32 %v732_v20, %v725_v18 }
 0x15e   : > { %v740_v25 = vmul.f32 %v736_v21, %v726_v19 }
 0x15f   : > { %v753_v26 = vadd.f32 %v746_v22, %v739_v24 }
 0x160   : > { %v754_v27 = vadd.f32 %v750_v23, %v740_v25 }
 0x161   : > { %v755_v28 = vmax.f32 %v753_v26, 0.0 }
 0x162   : > { %v756_v29 = vmax.f32 %v754_v27, 0.0 }
 0x163   : > { %757 = vst [vmem:[%s1288_s12] sm:$0xff] %v755_v28 }
 0x164   : > { %758 = vst [vmem:[%s1288_s12 + $0x8] sm:$0xff] %v756_v29 }
 0x165 PF: > { %s14_s21 = sadd.s32 1, %s1108_s21   ;;  %s1373_s15 = smov %s1088_s16 }
 0x166   : > { %p11_p0 = scmp.ge.s32.totalorder %s14_s21, 20   ;;  %s1374_s16 = smov %s1187_s28 }
 0x167   : > { %s1375_s17 = smov %s1100_s19  ;;  %s1376_s18 = smov %s1104_s20 }
 0x168   : > { %s1377_s19 = smov %s1380_s22  ;;  %s1378_s20 = smov %s1384_s23 }
 0x169   :  { %13 = sbr.rel (!%p11_p0) target bundleno = 4 (0x4), region = 126 }

// kernel: _lambda_.36
= control target key start
LH: loop header
LB: loop body
LE: loop exit
PB: predicated region body
PF: predicated region fallthrough
CT: control target
= control target key end

     0   :  { %s1134_s15 = smov 0   ;;  %s1136_s16 = smov 0   ;;  %s1366_s0 = inlined_call_operand.vmem [shape: bf16[8,4608], index: 0, kind: input, shape index: {}]   ;;  %s1367_s1 = inlined_call_operand.vmem [shape: bf16[4608,512], index: 1, kind: input, shape index: {}]   ;;  %s1368_s2 = inlined_call_operand.vmem [shape: f32[1,512], index: 2, kind: input, shape index: {}]   ;;  %s1369_s3 = inlined_call_operand.vmem [shape: f32[1,512], index: 3, kind: input, shape index: {}]   ;;  %s1370_s4 = inlined_call_operand.vmem [shape: f32[8,512], index: 4, kind: output, shape index: {}]  }
   0x1   :  { %s1138_s17 = smov 0   ;;  %s1140_s18 = smov 0  }
   0x2   :  { %s1142_s19 = smov 0   ;;  %s1144_s20 = smov 0  }
   0x3   :  { %s1146_s21 = smov 0  }
   0x4 LB: > { %s26_s22 = sadd.s32 1, %s1098_s19  ;;  %s29_s23 = sadd.s32 1, %s1102_s20  ;;  %s1106_s21 = sphi %s1146_s21, %s14_s21   ;;  %s1102_s20 = sphi %s1144_s20, %s1376_s20   ;;  %s1098_s19 = sphi %s1142_s19, %s1375_s19   ;;  %s1094_s18 = sphi %s1140_s18, %s1374_s18   ;;  %s1090_s17 = sphi %s1138_s17, %s1373_s17   ;;  %s1086_s16 = sphi %s1136_s16, %s1372_s16   ;;  %s1082_s15 = sphi %s1134_s15, %s1371_s15  }
   0x5   : > { %p27_p0 = scmp.ge.s32.totalorder %s26_s22, 18  ;;  %p77_p1 = scmp.ne.s32.totalorder %s1086_s16, %s1082_s15 }
   0x6   : > { %p78_p2 = scmp.eq.s32.totalorder %s1106_s21, 0  ;;  %s70_s27 = sadd.s32 1, %s1086_s16 }
   0x7   : > { %s1378_s22 = smov (%p27_p0, %s26_s22), 0  ;;  %s1380_s23 = smov (!%p27_p0, %s29_s23), %s1102_s20 }
   0x8   : > { %p79_p3 = por %p78_p2, %p77_p1  ;;  %p31_p4 = scmp.ge.s32.totalorder %s1380_s23, 2 }
   0x9   : > { %s65_s24 = ssub.s32 %s1098_s19, %s1378_s22  ;;  %p892_p6 = scmp.ge.s32.totalorder %s1106_s21, 36 }
   0xa   : > { %s1382_s23 = smov (%p31_p4, %s1380_s23), 0 }
   0xb   : > { %s66_s25 = ssub.s32 %s1102_s20, %s1382_s23  ;;  %183 = sbr.rel (%p892_p6) target bundleno = 41 (0x29), region = 16 }
   0xc   : > { %s67_s26 = sor.u32 %s66_s25, %s65_s24 }
   0xd   : > { %p68_p5 = scmp.eq.s32.totalorder %s67_s26, 0 }
   0xf   : > { %s1185_s28 = scalar_select %p68_p5, %s1086_s16, %s70_s27  }
  0x12   : > { %199 = sbr.rel (!%p79_p3) target bundleno = 41 (0x29), region = 24  ;;  %s201_s29 = sand.u32 (%p79_p3), 1, %s1086_s16  }
  0x13   : > { %s895_s30 = sshll.u32 (%p79_p3), %s1102_s20, 1  ;;  %s893_s5 = sshll.u32 (%p79_p3), %s201_s29, 8 }
  0x14   : > { %s944_s6 = sshll.u32 (%p79_p3), %s1098_s19, 7  ;;  %s1199_s12 = scalar_lea.vmem (%p79_p3), [#allocation2], %s893_s5 }
  0x15   : > { %s207_s7 = sadd.s32 (%p79_p3), %s944_s6, %s895_s30 }
  0x16   : > { %s897_s8 = sshll.u32 (%p79_p3), %s207_s7, 2 }
  0x17   : > { %s1194_s11 = scalar_lea.vmem (%p79_p3), %s1367_s1, %s897_s8 }
  0x18   : > { %v299_v0 = vld [vmem:[%s1194_s11] sm:$0xff] (%p79_p3)  ;;  %v301_v1 = vld [vmem:[%s1194_s11 + $0x10] sm:$0xff] (%p79_p3) }
  0x19   : > { %v303_v2 = vld [vmem:[%s1194_s11 + $0x20] sm:$0xff]  ;;  %300 = vst [vmem:[%s1199_s12] sm:$0xff] %v299_v0  ;;  %302 = vst [vmem:[%s1199_s12 + $0x8] sm:$0xff] %v301_v1  ;;  %v305_v3 = vld [vmem:[%s1194_s11 + $0x30] sm:$0xff] }
  0x1a   : > { %304 = vst [vmem:[%s1199_s12 + $0x10] sm:$0xff] %v303_v2  ;;  %v307_v4 = vld [vmem:[%s1194_s11 + $0x40] sm:$0xff]  ;;  %v309_v5 = vld [vmem:[%s1194_s11 + $0x50] sm:$0xff]  ;;  %306 = vst [vmem:[%s1199_s12 + $0x18] sm:$0xff] %v305_v3 }
  0x1b   : > { %308 = vst [vmem:[%s1199_s12 + $0x20] sm:$0xff] %v307_v4  ;;  %310 = vst [vmem:[%s1199_s12 + $0x28] sm:$0xff] %v309_v5  ;;  %v311_v6 = vld [vmem:[%s1194_s11 + $0x60] sm:$0xff]  ;;  %v313_v7 = vld [vmem:[%s1194_s11 + $0x70] sm:$0xff] }
  0x1c   : > { %v315_v8 = vld [vmem:[%s1194_s11 + $0x80] sm:$0xff]  ;;  %312 = vst [vmem:[%s1199_s12 + $0x30] sm:$0xff] %v311_v6  ;;  %314 = vst [vmem:[%s1199_s12 + $0x38] sm:$0xff] %v313_v7  ;;  %v317_v9 = vld [vmem:[%s1194_s11 + $0x90] sm:$0xff] }
  0x1d   : > { %316 = vst [vmem:[%s1199_s12 + $0x40] sm:$0xff] %v315_v8  ;;  %v319_v10 = vld [vmem:[%s1194_s11 + $0xa0] sm:$0xff]  ;;  %v321_v11 = vld [vmem:[%s1194_s11 + $0xb0] sm:$0xff]  ;;  %318 = vst [vmem:[%s1199_s12 + $0x48] sm:$0xff] %v317_v9 }
  0x1e   : > { %320 = vst [vmem:[%s1199_s12 + $0x50] sm:$0xff] %v319_v10  ;;  %322 = vst [vmem:[%s1199_s12 + $0x58] sm:$0xff] %v321_v11  ;;  %v323_v12 = vld [vmem:[%s1194_s11 + $0xc0] sm:$0xff]  ;;  %v325_v13 = vld [vmem:[%s1194_s11 + $0xd0] sm:$0xff] }
  0x1f   : > { %v327_v14 = vld [vmem:[%s1194_s11 + $0xe0] sm:$0xff]  ;;  %324 = vst [vmem:[%s1199_s12 + $0x60] sm:$0xff] %v323_v12  ;;  %326 = vst [vmem:[%s1199_s12 + $0x68] sm:$0xff] %v325_v13  ;;  %v329_v15 = vld [vmem:[%s1194_s11 + $0xf0] sm:$0xff] }
  0x20   : > { %328 = vst [vmem:[%s1199_s12 + $0x70] sm:$0xff] %v327_v14  ;;  %v331_v16 = vld [vmem:[%s1194_s11 + $0x100] sm:$0xff]  ;;  %v333_v17 = vld [vmem:[%s1194_s11 + $0x110] sm:$0xff]  ;;  %330 = vst [vmem:[%s1199_s12 + $0x78] sm:$0xff] %v329_v15 }
  0x21   : > { %332 = vst [vmem:[%s1199_s12 + $0x80] sm:$0xff] %v331_v16  ;;  %334 = vst [vmem:[%s1199_s12 + $0x88] sm:$0xff] %v333_v17  ;;  %v335_v18 = vld [vmem:[%s1194_s11 + $0x120] sm:$0xff]  ;;  %v337_v19 = vld [vmem:[%s1194_s11 + $0x130] sm:$0xff] }
  0x22   : > { %v339_v20 = vld [vmem:[%s1194_s11 + $0x140] sm:$0xff]  ;;  %336 = vst [vmem:[%s1199_s12 + $0x90] sm:$0xff] %v335_v18  ;;  %338 = vst [vmem:[%s1199_s12 + $0x98] sm:$0xff] %v337_v19  ;;  %v341_v21 = vld [vmem:[%s1194_s11 + $0x150] sm:$0xff] }
  0x23   : > { %340 = vst [vmem:[%s1199_s12 + $0xa0] sm:$0xff] %v339_v20  ;;  %v343_v22 = vld [vmem:[%s1194_s11 + $0x160] sm:$0xff]  ;;  %v345_v23 = vld [vmem:[%s1194_s11 + $0x170] sm:$0xff]  ;;  %342 = vst [vmem:[%s1199_s12 + $0xa8] sm:$0xff] %v341_v21 }
  0x24   : > { %344 = vst [vmem:[%s1199_s12 + $0xb0] sm:$0xff] %v343_v22  ;;  %346 = vst [vmem:[%s1199_s12 + $0xb8] sm:$0xff] %v345_v23  ;;  %v347_v24 = vld [vmem:[%s1194_s11 + $0x180] sm:$0xff]  ;;  %v349_v25 = vld [vmem:[%s1194_s11 + $0x190] sm:$0xff] }
  0x25   : > { %v351_v26 = vld [vmem:[%s1194_s11 + $0x1a0] sm:$0xff]  ;;  %348 = vst [vmem:[%s1199_s12 + $0xc0] sm:$0xff] %v347_v24  ;;  %350 = vst [vmem:[%s1199_s12 + $0xc8] sm:$0xff] %v349_v25  ;;  %v353_v27 = vld [vmem:[%s1194_s11 + $0x1b0] sm:$0xff] }
  0x26   : > { %352 = vst [vmem:[%s1199_s12 + $0xd0] sm:$0xff] %v351_v26  ;;  %v355_v28 = vld [vmem:[%s1194_s11 + $0x1c0] sm:$0xff]  ;;  %v357_v29 = vld [vmem:[%s1194_s11 + $0x1d0] sm:$0xff]  ;;  %354 = vst [vmem:[%s1199_s12 + $0xd8] sm:$0xff] %v353_v27 }
  0x27   : > { %356 = vst [vmem:[%s1199_s12 + $0xe0] sm:$0xff] %v355_v28  ;;  %358 = vst [vmem:[%s1199_s12 + $0xe8] sm:$0xff] %v357_v29  ;;  %v359_v30 = vld [vmem:[%s1194_s11 + $0x1e0] sm:$0xff]  ;;  %v361_v31 = vld [vmem:[%s1194_s11 + $0x1f0] sm:$0xff] }
  0x28   : > { %360 = vst [vmem:[%s1199_s12 + $0xf0] sm:$0xff] %v359_v30  ;;  %362 = vst [vmem:[%s1199_s12 + $0xf8] sm:$0xff] %v361_v31 }
  0x29 PF: > { %p898_p7 = scmp.ge.s32.totalorder %s1106_s21, 1  ;;  %p383_p8 = scmp.lt.s32.totalorder %s1106_s21, 37 }
  0x2b   : > { %p384_p9 = pnand %p898_p7, %p383_p8 }
  0x2c   : > { %s390_s13 = sand.u32 (!%p384_p9), 1, %s1082_s15   ;;  %s900_s14 = sshll.u32 (!%p384_p9), %s1090_s17, 1 }
  0x2d   : > { %387 = sbr.rel (%p384_p9) target bundleno = 355 (0x163), region = 70  ;;  %s899_s24 = sshll.u32 (!%p384_p9), %s390_s13, 8 }
  0x2e   : > { %p439_p10 = scmp.lt.s32.totalorder (!%p384_p9), %s900_s14, 35  ;;  %s902_s25 = sshll.u32 (!%p384_p9), %s1094_s18, 1 }
  0x2f   : > { %p449_p11 = scmp.lt.s32.totalorder (!%p384_p9), %s902_s25, 3  ;;  %s1288_s13 = scalar_lea.vmem (!%p384_p9), [#allocation2], %s899_s24 }
  0x30   : > { %p906_p12 = scmp.ne.s32.totalorder (!%p384_p9), %s1090_s17, 0 }
  0x34   : > { %s1384_s14 = smov (!%p439_p10, %s900_s14), 35  ;;  %s1386_s25 = smov (!%p449_p11, %s902_s25), 3 }
  0x35   : > { %s901_s26 = sshll.u32 %s1384_s14, 2  ;;  %s451_s15 = scalar_lea.vmem %s1368_s2, %s1386_s25  ;;  %v1108_v32 = vmov (!%p906_p12), 0.0  }
  0x36   : > { %s1270_s30 = scalar_lea.vmem %s1366_s0, %s901_s26  ;;  %s456_s18 = scalar_lea.vmem %s1369_s3, %s1386_s25 }
  0x37   : > { %s905_s9 = sshll.u32 %s1386_s25, 3  ;;  %471 = sbr.rel (%p906_p12) target bundleno = 62 (0x3e), region = 78 }
  0x38   : > { %s1286_s12 = scalar_lea.vmem %s1370_s4, %s905_s9 }
  0x39   : > { %472 = vst [vmem:[%s1286_s12] sm:$0xff] (!%p906_p12), %v1108_v32  ;;  %473 = vst [vmem:[%s1286_s12 + $0x8] sm:$0xff] (!%p906_p12), %v1108_v32 }
  0x3e PF: > { %v1002_v33 = vld [vmem:[%s1288_s13 + $0x4] ss:$8 sps:$4 sm:$0xff]   ;;  %v1004_v34 = vld [vmem:[%s1288_s13] ss:$8 sps:$4 sm:$0xff]   ;;  %v1005_v35 = vld [vmem:[%s1288_s13 + $0x14] ss:$8 sps:$4 sm:$0xff]  }
  0x3f   : > { %676 = vmatprep.subr.bf16.mxu0 %v1002_v33  ;;  %v1007_v36 = vld [vmem:[%s1288_s13 + $0x10] ss:$8 sps:$4 sm:$0xff]   ;;  %v1008_v37 = vld [vmem:[%s1288_s13 + $0x24] ss:$8 sps:$4 sm:$0xff]   ;;  %v1010_v38 = vld [vmem:[%s1288_s13 + $0x20] ss:$8 sps:$4 sm:$0xff]  }
  0x40   : > { %677 = vmatpush1.bf16.msra.mxu0 %v1004_v34  ;;  %v1011_v39 = vld [vmem:[%s1288_s13 + $0x34] ss:$8 sps:$4 sm:$0xff]   ;;  %v1013_v40 = vld [vmem:[%s1288_s13 + $0x30] ss:$8 sps:$4 sm:$0xff]   ;;  %v1014_v41 = vld [vmem:[%s1288_s13 + $0x44] ss:$8 sps:$4 sm:$0xff]  }
  0x41   : > { %678 = vmatprep.subr.bf16.mxu0 %v1005_v35  ;;  %v1016_v42 = vld [vmem:[%s1288_s13 + $0x40] ss:$8 sps:$4 sm:$0xff]   ;;  %v1017_v43 = vld [vmem:[%s1288_s13 + $0x54] ss:$8 sps:$4 sm:$0xff]   ;;  %v1019_v44 = vld [vmem:[%s1288_s13 + $0x50] ss:$8 sps:$4 sm:$0xff]  }
  0x42   : > { %v1020_v45 = vld [vmem:[%s1288_s13 + $0x64] ss:$8 sps:$4 sm:$0xff]   ;;  %v1022_v48 = vld [vmem:[%s1288_s13 + $0x60] ss:$8 sps:$4 sm:$0xff]   ;;  %v1023_v49 = vld [vmem:[%s1288_s13 + $0x74] ss:$8 sps:$4 sm:$0xff]  }
  0x43   : > { %v476_v46 = vld [vmem:[%s1270_s30] sm:$0xff]  ;;  %v1025_v50 = vld [vmem:[%s1288_s13 + $0x70] ss:$8 sps:$4 sm:$0xff]   ;;  %v1029_v53 = vld [vmem:[%s1288_s13 + $0x94] ss:$8 sps:$4 sm:$0xff]   ;;  %p941_p13 = scmp.ne.s32.totalorder %s1090_s17, 17 }
  0x44   : > { %679 = vmatpush1.bf16.msra.mxu0 %v1007_v36  ;;  %v908_v47 = vcombine.high %v476_v46, %v476_v46  ;;  %v1026_v51 = vld [vmem:[%s1288_s13 + $0x84] ss:$8 sps:$4 sm:$0xff]   ;;  %v1028_v52 = vld [vmem:[%s1288_s13 + $0x80] ss:$8 sps:$4 sm:$0xff]   ;;  %v1031_v54 = vld [vmem:[%s1288_s13 + $0x90] ss:$8 sps:$4 sm:$0xff]   ;;  %v907_v3 = vcombine.low %v476_v46, %v476_v46  ;;  %v729_v12 = vlaneseq (!%p941_p13) }
  0x45   : > { %680 = vmatprep.subr.bf16.mxu0 %v1008_v37  ;;  %v1032_v55 = vld [vmem:[%s1288_s13 + $0xa4] ss:$8 sps:$4 sm:$0xff]   ;;  %v1034_v56 = vld [vmem:[%s1288_s13 + $0xa0] ss:$8 sps:$4 sm:$0xff]   ;;  %v1035_v57 = vld [vmem:[%s1288_s13 + $0xb4] ss:$8 sps:$4 sm:$0xff]  }
  0x46   : > { %708 = vmatprep.mubr.bf16.mxu0 %v908_v47  ;;  %v1037_v58 = vld [vmem:[%s1288_s13 + $0xb0] ss:$8 sps:$4 sm:$0xff]   ;;  %v1038_v59 = vld [vmem:[%s1288_s13 + $0xc4] ss:$8 sps:$4 sm:$0xff]   ;;  %v1040_v60 = vld [vmem:[%s1288_s13 + $0xc0] ss:$8 sps:$4 sm:$0xff]  }
  0x47   : > { %v1041_v61 = vld [vmem:[%s1288_s13 + $0xd4] ss:$8 sps:$4 sm:$0xff]   ;;  %v1043_v62 = vld [vmem:[%s1288_s13 + $0xd0] ss:$8 sps:$4 sm:$0xff]   ;;  %v1044_v63 = vld [vmem:[%s1288_s13 + $0xe4] ss:$8 sps:$4 sm:$0xff]  }
  0x48   : > { %681 = vmatpush1.bf16.msra.mxu0 %v1010_v38  ;;  %v1046_v0 = vld [vmem:[%s1288_s13 + $0xe0] ss:$8 sps:$4 sm:$0xff]   ;;  %v1047_v1 = vld [vmem:[%s1288_s13 + $0xf4] ss:$8 sps:$4 sm:$0xff]   ;;  %v1049_v2 = vld [vmem:[%s1288_s13 + $0xf0] ss:$8 sps:$4 sm:$0xff]  }
  0x49   : > { %682 = vmatprep.subr.bf16.mxu0 %v1011_v39  ;;  %v474_v4 = vld [vmem:[%s1286_s12] sm:$0xff]  ;;  %v475_v5 = vld [vmem:[%s1286_s12 + $0x8] sm:$0xff]  ;;  %v730_v13 = vshrl.u32 (!%p941_p13), %v729_v12, 7 }
  0x4a   : > { %v727_v14 = vld [vmem:[%s451_s15] sm:$0x3] (!%p941_p13) }
  0x4b   : > { %v741_v15 = vld [vmem:[%s456_s18] sm:$0x3] (!%p941_p13)  ;;  %v731_v16 = vsub.s32 (!%p941_p13), 0, %v730_v13  ;;  %v735_v17 = vsub.s32 (!%p941_p13), 1, %v730_v13 }
  0x4c   : > { %683 = vmatpush1.bf16.msra.mxu0 %v1013_v40 }
  0x4d   : > { %684 = vmatprep.subr.bf16.mxu0 %v1014_v41  ;;  %v732_v20 = vrot.slane (!%p941_p13), %v727_v14, %v731_v16  ;;  %v736_v21 = vrot.slane (!%p941_p13), %v727_v14, %v735_v17  ;;  %v746_v22 = vrot.slane (!%p941_p13), %v741_v15, %v731_v16  ;;  %v750_v23 = vrot.slane (!%p941_p13), %v741_v15, %v735_v17 }
  0x50   : > { %685 = vmatpush1.bf16.msra.mxu0 %v1016_v42 }
  0x51   : > { %686 = vmatprep.subr.bf16.mxu0 %v1017_v43 }
  0x54   : > { %687 = vmatpush1.bf16.msra.mxu0 %v1019_v44 }
  0x55   : > { %688 = vmatprep.subr.bf16.mxu0 %v1020_v45 }
  0x58   : > { %689 = vmatpush1.bf16.msra.mxu0 %v1022_v48 }
  0x59   : > { %690 = vmatprep.subr.bf16.mxu0 %v1023_v49 }
  0x5c   : > { %691 = vmatpush1.bf16.msra.mxu0 %v1025_v50 }
  0x5d   : > { %692 = vmatprep.subr.bf16.mxu0 %v1026_v51 }
  0x60   : > { %693 = vmatpush1.bf16.msra.mxu0 %v1028_v52 }
  0x61   : > { %694 = vmatprep.subr.bf16.mxu0 %v1029_v53 }
  0x64   : > { %695 = vmatpush1.bf16.msra.mxu0 %v1031_v54 }
  0x65   : > { %696 = vmatprep.subr.bf16.mxu0 %v1032_v55 }
  0x68   : > { %697 = vmatpush1.bf16.msra.mxu0 %v1034_v56 }
  0x69   : > { %698 = vmatprep.subr.bf16.mxu0 %v1035_v57 }
  0x6c   : > { %699 = vmatpush1.bf16.msra.mxu0 %v1037_v58 }
  0x6d   : > { %700 = vmatprep.subr.bf16.mxu0 %v1038_v59 }
  0x70   : > { %701 = vmatpush1.bf16.msra.mxu0 %v1040_v60 }
  0x71   : > { %702 = vmatprep.subr.bf16.mxu0 %v1041_v61 }
  0x74   : > { %703 = vmatpush1.bf16.msra.mxu0 %v1043_v62 }
  0x75   : > { %704 = vmatprep.subr.bf16.mxu0 %v1044_v63 }
  0x78   : > { %705 = vmatpush1.bf16.msra.mxu0 %v1046_v0 }
  0x79   : > { %706 = vmatprep.subr.bf16.mxu0 %v1047_v1 }
  0x7c   : > { %707 = vmatpush1.bf16.msra.mxu0 %v1049_v2 }
  0x7f   : > { %709 = vmatmul.mubr.bf16.vlgmr.msra.gmra.mrb[0].mxu0 %v907_v3 }
 0x150   : > { %724 = sbr.rel (%p941_p13) target bundleno = 355 (0x163), region = 82 }
 0x152   : > { %v710_v6 = vpop.f32.mrb[0].mxu0 }
 0x153   : > { %v717_v7 = vadd.f32 %v710_v6, %v474_v4  ;;  %v712_v8 = vpop.f32.mrb[1].mxu0 }
 0x154   : > { %v718_v9 = vadd.f32 %v712_v8, %v475_v5  ;;  %v714_v10 = vpop.f32.mrb[2].mxu0 }
 0x155   : > { %719 = vst [vmem:[%s1286_s12] sm:$0xff] %v717_v7  ;;  %v715_v11 = vpop.f32.mrb[3].mxu0 }
 0x156   : > { %720 = vst [vmem:[%s1286_s12 + $0x8] sm:$0xff] %v718_v9 }
 0x15c   : > { %v725_v18 = vld [vmem:[%s1286_s12] sm:$0xff] }
 0x15d   : > { %v726_v19 = vld [vmem:[%s1286_s12 + $0x8] sm:$0xff]  ;;  %v739_v24 = vmul.f32 %v732_v20, %v725_v18 }
 0x15e   : > { %v740_v25 = vmul.f32 %v736_v21, %v726_v19 }
 0x15f   : > { %v753_v26 = vadd.f32 %v746_v22, %v739_v24 }
 0x160   : > { %v754_v27 = vadd.f32 %v750_v23, %v740_v25 }
 0x161   : > { %755 = vst [vmem:[%s1286_s12] sm:$0xff] %v753_v26 }
 0x162   : > { %756 = vst [vmem:[%s1286_s12 + $0x8] sm:$0xff] %v754_v27 }
 0x163 PF: > { %s14_s21 = sadd.s32 1, %s1106_s21   ;;  %s1371_s15 = smov %s1086_s16 }
 0x164   : > { %p11_p0 = scmp.ge.s32.totalorder %s14_s21, 38   ;;  %s1372_s16 = smov %s1185_s28 }
 0x165   : > { %s1373_s17 = smov %s1098_s19  ;;  %s1374_s18 = smov %s1102_s20 }
 0x166   : > { %s1375_s19 = smov %s1378_s22  ;;  %s1376_s20 = smov %s1382_s23 }
 0x167   :  { %13 = sbr.rel (!%p11_p0) target bundleno = 4 (0x4), region = 126 }

// kernel: _lambda_.38
= control target key start
LH: loop header
LB: loop body
LE: loop exit
PB: predicated region body
PF: predicated region fallthrough
CT: control target
= control target key end

     0   :  { %s621_s15 = smov 0   ;;  %s623_s16 = smov 0   ;;  %s668_s0 = inlined_call_operand.vmem [shape: f32[2,8,512], index: 0, kind: input, shape index: {}]   ;;  %s669_s1 = inlined_call_operand.vmem [shape: f32[2,1,512], index: 1, kind: input, shape index: {}]   ;;  %s670_s2 = inlined_call_operand.vmem [shape: f32[2,8,512], index: 2, kind: output, shape index: {0}]   ;;  %s671_s3 = inlined_call_operand.vmem [shape: f32[2,8,1], index: 3, kind: output, shape index: {1}]   ;;  %s672_s4 = inlined_call_operand.vmem [shape: f32[2,8,1], index: 4, kind: output, shape index: {2}]  }
   0x1   :  { %s625_s17 = smov 0  }
   0x2 LB: > { %s27_s18 = sadd.s32 1, %s590_s16  ;;  %p532_p0 = scmp.ge.s32.totalorder %s594_s17, 1  ;;  %s594_s17 = sphi %s625_s17, %s15_s17   ;;  %s590_s16 = sphi %s623_s16, %s674_s16   ;;  %s586_s15 = sphi %s621_s15, %s673_s15  }
   0x3   : > { %p29_p1 = scmp.ge.s32.totalorder %s27_s18, 2  ;;  %p200_p2 = scmp.lt.s32.totalorder %s594_s17, 3 }
   0x5   : > { %s676_s18 = smov (%p29_p1, %s27_s18), 0  ;;  %p201_p3 = pnand %p532_p0, %p200_p2 }
   0x6   : > { %p252_p4 = scmp.lt.s32.totalorder (!%p201_p3), %s586_s15, 1  ;;  %v299_v5 = vlaneseq (!%p201_p3)  ;;  %vm332_vm0 = vcmask (!%p201_p3), 7168  }
   0x7   : > { %204 = sbr.rel (%p201_p3) target bundleno = 203 (0xcb), region = 28 }
   0x8   : > { %v300_v6 = vshrl.u32 (!%p201_p3), %v299_v5, 7 }
   0xa   : > { %v301_v7 = vsub.s32 (!%p201_p3), 0, %v300_v6  ;;  %v305_v8 = vsub.s32 (!%p201_p3), 1, %v300_v6  ;;  %v309_v9 = vsub.s32 (!%p201_p3), 2, %v300_v6  ;;  %v313_v10 = vsub.s32 (!%p201_p3), 3, %v300_v6 }
   0xe   : > { %s678_s15 = smov (!%p252_p4, %s586_s15), 1 }
   0xf   : > { %s535_s19 = sshll.u32 %s678_s15, 2  ;;  %s542_s23 = sshll.u32 %s678_s15, 5 }
  0x10   : > { %s264_s22 = scalar_lea.vmem %s669_s1, %s535_s19  ;;  %s260_s26 = scalar_lea.vmem %s668_s0, %s542_s23 }
  0x11   : > { %v288_v0 = vld [vmem:[%s264_s22] sm:$0xf]  ;;  %v295_v13 = vld [vmem:[%s260_s26 + $0x8] sm:$0xff]  ;;  %v296_v14 = vld [vmem:[%s260_s26 + $0x10] sm:$0xff]  ;;  %s273_s29 = scalar_lea.vmem %s670_s2, %s542_s23  ;;  %s538_s30 = sshll.u32 %s678_s15, 3 }
  0x12   : > { %v289_v1 = vsub.f32 0.0, %v288_v0  ;;  %v294_v11 = vld [vmem:[%s260_s26] sm:$0xff]  ;;  %v297_v15 = vld [vmem:[%s260_s26 + $0x18] sm:$0xff]  ;;  %s287_s7 = scalar_lea.vmem %s672_s4, %s538_s30  ;;  %s280_s10 = scalar_lea.vmem %s671_s3, %s538_s30 }
  0x14   : > { %v290_v2 = vmul.f32 1.442695, %v289_v1 }
  0x16   : > { %568 = vpow2.f32 %v290_v2 }
  0x20   : > { %v569_v3 = vpop.eup %568 }
  0x21   : > { %v292_v4 = vadd.f32 1.0, %v569_v3 }
  0x23   : > { %570 = vrcp.f32 %v292_v4 }
  0x2d   : > { %v571_v12 = vpop.eup %570 }
  0x2e   : > { %v302_v16 = vrot.slane %v571_v12, %v301_v7  ;;  %v306_v17 = vrot.slane %v571_v12, %v305_v8  ;;  %v310_v18 = vrot.slane %v571_v12, %v309_v9  ;;  %v314_v19 = vrot.slane %v571_v12, %v313_v10 }
  0x30   : > { %v319_v20 = vmul.f32 %v302_v16, %v294_v11  ;;  %v320_v21 = vmul.f32 %v306_v17, %v295_v13  ;;  %v321_v22 = vmul.f32 %v310_v18, %v296_v14  ;;  %v322_v23 = vmul.f32 %v314_v19, %v297_v15 }
  0x32   : > { %324 = vst [vmem:[%s273_s29 + $0x8] sm:$0xff] %v320_v21  ;;  %325 = vst [vmem:[%s273_s29 + $0x10] sm:$0xff] %v321_v22  ;;  %v334_v24 = vadd.f32 %v320_v21, %v319_v20  ;;  %v327_v26 = vmax.f32 %v319_v20, %v320_v21  ;;  %v328_v27 = vmax.f32 %v321_v22, %v322_v23 }
  0x33   : > { %326 = vst [vmem:[%s273_s29 + $0x18] sm:$0xff] %v322_v23  ;;  %323 = vst [vmem:[%s273_s29] sm:$0xff] %v319_v20 }
  0x34   : > { %v335_v25 = vadd.f32 %v334_v24, %v321_v22  ;;  %v329_v29 = vmax.f32 %v327_v26, %v328_v27 }
  0x36   : > { %v336_v28 = vadd.f32 %v335_v25, %v322_v23 }
  0x38   : > { %337 = vadd.xlane.f32.xlu0 %v336_v28 }
  0x3c   : > { %330 = vmax.xlane.f32.xlu0 %v329_v29 }
  0xc5   : > { %v338_v30 = vpop.xlane.xlu0 %337 }
  0xc6   : > { %v340_v31 = vmul.f32 0.001953125, %v338_v30 }
  0xc8   : > { %341 = vst.msk [vmem:[%s287_s7] sm:$0xff] %vm332_vm0, %v340_v31 }
  0xc9   : > { %v331_v32 = vpop.xlane.xlu0 %330 }
  0xca   : > { %333 = vst.msk [vmem:[%s280_s10] sm:$0xff] %vm332_vm0, %v331_v32 }
  0xcb PF: > { %s15_s17 = sadd.s32 1, %s594_s17   ;;  %s673_s15 = smov %s590_s16 }
  0xcc   : > { %p12_p5 = scmp.ge.s32.totalorder %s15_s17, 4   ;;  %s674_s16 = smov %s676_s18 }
  0xce   :  { %14 = sbr.rel (!%p12_p5) target bundleno = 2 (0x2), region = 85 }

// kernel: _lambda_.37
= control target key start
LH: loop header
LB: loop body
LE: loop exit
PB: predicated region body
PF: predicated region fallthrough
CT: control target
= control target key end

     0   :  { %s1096_s15 = smov 0   ;;  %s1098_s16 = smov 0   ;;  %s1293_s0 = inlined_call_operand.vmem [shape: bf16[8,256], index: 0, kind: input, shape index: {}]   ;;  %s1294_s1 = inlined_call_operand.vmem [shape: bf16[256,512], index: 1, kind: input, shape index: {}]   ;;  %s1295_s2 = inlined_call_operand.vmem [shape: f32[1,512], index: 2, kind: input, shape index: {}]   ;;  %s1296_s3 = inlined_call_operand.vmem [shape: f32[1,512], index: 3, kind: input, shape index: {}]   ;;  %s1297_s4 = inlined_call_operand.vmem [shape: f32[8,512], index: 4, kind: output, shape index: {}]  }
   0x1   :  { %s1100_s17 = smov 0   ;;  %s1102_s18 = smov 0  }
   0x2   :  { %s1104_s19 = smov 0  }
   0x3 LB: > { %s29_s20 = sadd.s32 1, %s1064_s18  ;;  %p77_p1 = scmp.ne.s32.totalorder %s1056_s16, %s1052_s15  ;;  %s1068_s19 = sphi %s1104_s19, %s14_s19   ;;  %s1064_s18 = sphi %s1102_s18, %s1301_s18   ;;  %s1060_s17 = sphi %s1100_s17, %s1300_s17   ;;  %s1056_s16 = sphi %s1098_s16, %s1299_s16   ;;  %s1052_s15 = sphi %s1096_s15, %s1298_s15  }
   0x4   : > { %p31_p0 = scmp.ge.s32.totalorder %s29_s20, 2  ;;  %p78_p2 = scmp.eq.s32.totalorder %s1068_s19, 0 }
   0x5   : > { %s70_s22 = sadd.s32 1, %s1056_s16  ;;  %p892_p5 = scmp.ge.s32.totalorder %s1068_s19, 2 }
   0x6   : > { %s1303_s20 = smov (%p31_p0, %s29_s20), 0  ;;  %p79_p3 = por %p78_p2, %p77_p1 }
   0x7   : > { %s66_s21 = ssub.s32 %s1064_s18, %s1303_s20  ;;  %196 = sbr.rel (%p892_p5) target bundleno = 34 (0x22), region = 20 }
   0x8   : > { %p68_p4 = scmp.eq.s32.totalorder %s66_s21, 0 }
   0xa   : > { %s1131_s23 = scalar_select %p68_p4, %s1056_s16, %s70_s22  }
   0xe   : > { %199 = sbr.rel (!%p79_p3) target bundleno = 34 (0x22), region = 24  ;;  %s201_s24 = sand.u32 (%p79_p3), 1, %s1056_s16  }
   0xf   : > { %s938_s25 = sshll.u32 (%p79_p3), %s1064_s18, 3  ;;  %s893_s26 = sshll.u32 (%p79_p3), %s201_s24, 8 }
  0x10   : > { %s1139_s29 = scalar_lea.vmem (%p79_p3), %s1294_s1, %s938_s25  ;;  %s1144_s30 = scalar_lea.vmem (%p79_p3), [#allocation2], %s893_s26 }
  0x11   : > { %v299_v0 = vld [vmem:[%s1139_s29] sm:$0xff] (%p79_p3)  ;;  %v301_v1 = vld [vmem:[%s1139_s29 + $0x10] sm:$0xff] (%p79_p3) }
  0x12   : > { %v303_v2 = vld [vmem:[%s1139_s29 + $0x20] sm:$0xff] (%p79_p3)  ;;  %300 = vst [vmem:[%s1144_s30] sm:$0xff] (%p79_p3), %v299_v0  ;;  %302 = vst [vmem:[%s1144_s30 + $0x8] sm:$0xff] (%p79_p3), %v301_v1  ;;  %v305_v3 = vld [vmem:[%s1139_s29 + $0x30] sm:$0xff] (%p79_p3) }
  0x13   : > { %304 = vst [vmem:[%s1144_s30 + $0x10] sm:$0xff] (%p79_p3), %v303_v2  ;;  %v307_v4 = vld [vmem:[%s1139_s29 + $0x40] sm:$0xff] (%p79_p3)  ;;  %v309_v5 = vld [vmem:[%s1139_s29 + $0x50] sm:$0xff] (%p79_p3)  ;;  %306 = vst [vmem:[%s1144_s30 + $0x18] sm:$0xff] (%p79_p3), %v305_v3 }
  0x14   : > { %308 = vst [vmem:[%s1144_s30 + $0x20] sm:$0xff] (%p79_p3), %v307_v4  ;;  %310 = vst [vmem:[%s1144_s30 + $0x28] sm:$0xff] (%p79_p3), %v309_v5  ;;  %v311_v6 = vld [vmem:[%s1139_s29 + $0x60] sm:$0xff] (%p79_p3)  ;;  %v313_v7 = vld [vmem:[%s1139_s29 + $0x70] sm:$0xff] (%p79_p3) }
  0x15   : > { %v315_v8 = vld [vmem:[%s1139_s29 + $0x80] sm:$0xff]  ;;  %312 = vst [vmem:[%s1144_s30 + $0x30] sm:$0xff] %v311_v6  ;;  %314 = vst [vmem:[%s1144_s30 + $0x38] sm:$0xff] %v313_v7  ;;  %v317_v9 = vld [vmem:[%s1139_s29 + $0x90] sm:$0xff] }
  0x16   : > { %316 = vst [vmem:[%s1144_s30 + $0x40] sm:$0xff] %v315_v8  ;;  %v319_v10 = vld [vmem:[%s1139_s29 + $0xa0] sm:$0xff]  ;;  %v321_v11 = vld [vmem:[%s1139_s29 + $0xb0] sm:$0xff]  ;;  %318 = vst [vmem:[%s1144_s30 + $0x48] sm:$0xff] %v317_v9 }
  0x17   : > { %320 = vst [vmem:[%s1144_s30 + $0x50] sm:$0xff] %v319_v10  ;;  %322 = vst [vmem:[%s1144_s30 + $0x58] sm:$0xff] %v321_v11  ;;  %v323_v12 = vld [vmem:[%s1139_s29 + $0xc0] sm:$0xff]  ;;  %v325_v13 = vld [vmem:[%s1139_s29 + $0xd0] sm:$0xff] }
  0x18   : > { %v327_v14 = vld [vmem:[%s1139_s29 + $0xe0] sm:$0xff]  ;;  %324 = vst [vmem:[%s1144_s30 + $0x60] sm:$0xff] %v323_v12  ;;  %326 = vst [vmem:[%s1144_s30 + $0x68] sm:$0xff] %v325_v13  ;;  %v329_v15 = vld [vmem:[%s1139_s29 + $0xf0] sm:$0xff] }
  0x19   : > { %328 = vst [vmem:[%s1144_s30 + $0x70] sm:$0xff] %v327_v14  ;;  %v331_v16 = vld [vmem:[%s1139_s29 + $0x100] sm:$0xff]  ;;  %v333_v17 = vld [vmem:[%s1139_s29 + $0x110] sm:$0xff]  ;;  %330 = vst [vmem:[%s1144_s30 + $0x78] sm:$0xff] %v329_v15 }
  0x1a   : > { %332 = vst [vmem:[%s1144_s30 + $0x80] sm:$0xff] %v331_v16  ;;  %334 = vst [vmem:[%s1144_s30 + $0x88] sm:$0xff] %v333_v17  ;;  %v335_v18 = vld [vmem:[%s1139_s29 + $0x120] sm:$0xff]  ;;  %v337_v19 = vld [vmem:[%s1139_s29 + $0x130] sm:$0xff] }
  0x1b   : > { %v339_v20 = vld [vmem:[%s1139_s29 + $0x140] sm:$0xff]  ;;  %336 = vst [vmem:[%s1144_s30 + $0x90] sm:$0xff] %v335_v18  ;;  %338 = vst [vmem:[%s1144_s30 + $0x98] sm:$0xff] %v337_v19  ;;  %v341_v21 = vld [vmem:[%s1139_s29 + $0x150] sm:$0xff] }
  0x1c   : > { %340 = vst [vmem:[%s1144_s30 + $0xa0] sm:$0xff] %v339_v20  ;;  %v343_v22 = vld [vmem:[%s1139_s29 + $0x160] sm:$0xff]  ;;  %v345_v23 = vld [vmem:[%s1139_s29 + $0x170] sm:$0xff]  ;;  %342 = vst [vmem:[%s1144_s30 + $0xa8] sm:$0xff] %v341_v21 }
  0x1d   : > { %344 = vst [vmem:[%s1144_s30 + $0xb0] sm:$0xff] %v343_v22  ;;  %346 = vst [vmem:[%s1144_s30 + $0xb8] sm:$0xff] %v345_v23  ;;  %v347_v24 = vld [vmem:[%s1139_s29 + $0x180] sm:$0xff]  ;;  %v349_v25 = vld [vmem:[%s1139_s29 + $0x190] sm:$0xff] }
  0x1e   : > { %v351_v26 = vld [vmem:[%s1139_s29 + $0x1a0] sm:$0xff]  ;;  %348 = vst [vmem:[%s1144_s30 + $0xc0] sm:$0xff] %v347_v24  ;;  %350 = vst [vmem:[%s1144_s30 + $0xc8] sm:$0xff] %v349_v25  ;;  %v353_v27 = vld [vmem:[%s1139_s29 + $0x1b0] sm:$0xff] }
  0x1f   : > { %352 = vst [vmem:[%s1144_s30 + $0xd0] sm:$0xff] %v351_v26  ;;  %v355_v28 = vld [vmem:[%s1139_s29 + $0x1c0] sm:$0xff]  ;;  %v357_v29 = vld [vmem:[%s1139_s29 + $0x1d0] sm:$0xff]  ;;  %354 = vst [vmem:[%s1144_s30 + $0xd8] sm:$0xff] %v353_v27 }
  0x20   : > { %356 = vst [vmem:[%s1144_s30 + $0xe0] sm:$0xff] %v355_v28  ;;  %358 = vst [vmem:[%s1144_s30 + $0xe8] sm:$0xff] %v357_v29  ;;  %v359_v30 = vld [vmem:[%s1139_s29 + $0x1e0] sm:$0xff]  ;;  %v361_v31 = vld [vmem:[%s1139_s29 + $0x1f0] sm:$0xff] }
  0x21   : > { %360 = vst [vmem:[%s1144_s30 + $0xf0] sm:$0xff] %v359_v30  ;;  %362 = vst [vmem:[%s1144_s30 + $0xf8] sm:$0xff] %v361_v31 }
  0x22 PF: > { %p896_p6 = scmp.ge.s32.totalorder %s1068_s19, 1  ;;  %p383_p7 = scmp.lt.s32.totalorder %s1068_s19, 3 }
  0x24   : > { %p384_p8 = pnand %p896_p6, %p383_p7 }
  0x25   : > { %s390_s5 = sand.u32 (!%p384_p8), 1, %s1052_s15   ;;  %v1213_v32 = vld [vmem:[%s1293_s0] sm:$0xff] (!%p384_p8)  ;;  %s898_s8 = sshll.u32 (!%p384_p8), %s1060_s17, 1  ;;  %v1070_v39 = vmov (!%p384_p8), 0.0   ;;  %v728_v4 = vlaneseq (!%p384_p8) }
  0x26   : > { %387 = sbr.rel (%p384_p8) target bundleno = 332 (0x14c), region = 70  ;;  %s897_s9 = sshll.u32 (!%p384_p8), %s390_s5, 8  ;;  %v903_v33 = vcombine.high (!%p384_p8), %v1213_v32, %v1213_v32  ;;  %v902_v3 = vcombine.low (!%p384_p8), %v1213_v32, %v1213_v32 }
  0x27   : > { %p449_p9 = scmp.lt.s32.totalorder (!%p384_p8), %s898_s8, 3  ;;  %s1218_s10 = scalar_lea.vmem (!%p384_p8), [#allocation2], %s897_s9  ;;  %v729_v6 = vshrl.u32 (!%p384_p8), %v728_v4, 7 }
  0x28   : > { %v980_v34 = vld [vmem:[%s1218_s10 + $0x4] ss:$8 sps:$4 sm:$0xff] (!%p384_p8)   ;;  %708 = vmatprep.mubr.bf16.mxu0 (!%p384_p8), %v903_v33  ;;  %v982_v35 = vld [vmem:[%s1218_s10] ss:$8 sps:$4 sm:$0xff] (!%p384_p8)   ;;  %v983_v36 = vld [vmem:[%s1218_s10 + $0x14] ss:$8 sps:$4 sm:$0xff] (!%p384_p8)  }
  0x29   : > { %676 = vmatprep.subr.bf16.mxu0 (!%p384_p8), %v980_v34  ;;  %v985_v37 = vld [vmem:[%s1218_s10 + $0x10] ss:$8 sps:$4 sm:$0xff] (!%p384_p8)   ;;  %v986_v38 = vld [vmem:[%s1218_s10 + $0x24] ss:$8 sps:$4 sm:$0xff] (!%p384_p8)   ;;  %v988_v40 = vld [vmem:[%s1218_s10 + $0x20] ss:$8 sps:$4 sm:$0xff] (!%p384_p8)  }
  0x2a   : > { %677 = vmatpush1.bf16.msra.mxu0 (!%p384_p8), %v982_v35  ;;  %v989_v41 = vld [vmem:[%s1218_s10 + $0x34] ss:$8 sps:$4 sm:$0xff] (!%p384_p8)   ;;  %v991_v42 = vld [vmem:[%s1218_s10 + $0x30] ss:$8 sps:$4 sm:$0xff] (!%p384_p8)   ;;  %v992_v43 = vld [vmem:[%s1218_s10 + $0x44] ss:$8 sps:$4 sm:$0xff] (!%p384_p8)  }
  0x2b   : > { %678 = vmatprep.subr.bf16.mxu0 (!%p384_p8), %v983_v36  ;;  %v994_v44 = vld [vmem:[%s1218_s10 + $0x40] ss:$8 sps:$4 sm:$0xff] (!%p384_p8)   ;;  %v995_v45 = vld [vmem:[%s1218_s10 + $0x54] ss:$8 sps:$4 sm:$0xff] (!%p384_p8)   ;;  %v997_v46 = vld [vmem:[%s1218_s10 + $0x50] ss:$8 sps:$4 sm:$0xff] (!%p384_p8)  }
  0x2c   : > { %v998_v47 = vld [vmem:[%s1218_s10 + $0x64] ss:$8 sps:$4 sm:$0xff] (!%p384_p8)   ;;  %v1000_v48 = vld [vmem:[%s1218_s10 + $0x60] ss:$8 sps:$4 sm:$0xff] (!%p384_p8)   ;;  %v1001_v49 = vld [vmem:[%s1218_s10 + $0x74] ss:$8 sps:$4 sm:$0xff] (!%p384_p8)  }
  0x2d   : > { %s1305_s8 = smov (!%p449_p9, %s898_s8), 3  ;;  %v1003_v50 = vld [vmem:[%s1218_s10 + $0x70] ss:$8 sps:$4 sm:$0xff]   ;;  %v1004_v51 = vld [vmem:[%s1218_s10 + $0x84] ss:$8 sps:$4 sm:$0xff]   ;;  %v734_v11 = vsub.s32 1, %v729_v6 }
  0x2e   : > { %s901_s11 = sshll.u32 %s1305_s8, 3  ;;  %679 = vmatpush1.bf16.msra.mxu0 %v985_v37  ;;  %v1006_v52 = vld [vmem:[%s1218_s10 + $0x80] ss:$8 sps:$4 sm:$0xff]   ;;  %v1007_v53 = vld [vmem:[%s1218_s10 + $0x94] ss:$8 sps:$4 sm:$0xff]   ;;  %s451_s21 = scalar_lea.vmem %s1295_s2, %s1305_s8  ;;  %v730_v14 = vsub.s32 0, %v729_v6 }
  0x2f   : > { %s1230_s14 = scalar_lea.vmem %s1297_s4, %s901_s11  ;;  %680 = vmatprep.subr.bf16.mxu0 %v986_v38  ;;  %v1009_v54 = vld [vmem:[%s1218_s10 + $0x90] ss:$8 sps:$4 sm:$0xff]   ;;  %v1010_v55 = vld [vmem:[%s1218_s10 + $0xa4] ss:$8 sps:$4 sm:$0xff]   ;;  %v1012_v56 = vld [vmem:[%s1218_s10 + $0xa0] ss:$8 sps:$4 sm:$0xff]   ;;  %s456_s25 = scalar_lea.vmem %s1296_s3, %s1305_s8 }
  0x30   : > { %472 = vst [vmem:[%s1230_s14] sm:$0xff] %v1070_v39  ;;  %473 = vst [vmem:[%s1230_s14 + $0x8] sm:$0xff] %v1070_v39  ;;  %v1013_v57 = vld [vmem:[%s1218_s10 + $0xb4] ss:$8 sps:$4 sm:$0xff]   ;;  %v1015_v58 = vld [vmem:[%s1218_s10 + $0xb0] ss:$8 sps:$4 sm:$0xff]  }
  0x31   : > { %v1016_v59 = vld [vmem:[%s1218_s10 + $0xc4] ss:$8 sps:$4 sm:$0xff]   ;;  %v1018_v60 = vld [vmem:[%s1218_s10 + $0xc0] ss:$8 sps:$4 sm:$0xff]   ;;  %v1019_v61 = vld [vmem:[%s1218_s10 + $0xd4] ss:$8 sps:$4 sm:$0xff]  }
  0x32   : > { %681 = vmatpush1.bf16.msra.mxu0 %v988_v40  ;;  %v1021_v62 = vld [vmem:[%s1218_s10 + $0xd0] ss:$8 sps:$4 sm:$0xff]   ;;  %v1022_v63 = vld [vmem:[%s1218_s10 + $0xe4] ss:$8 sps:$4 sm:$0xff]   ;;  %v1024_v0 = vld [vmem:[%s1218_s10 + $0xe0] ss:$8 sps:$4 sm:$0xff]  }
  0x33   : > { %682 = vmatprep.subr.bf16.mxu0 %v989_v41  ;;  %v1025_v1 = vld [vmem:[%s1218_s10 + $0xf4] ss:$8 sps:$4 sm:$0xff]   ;;  %v1027_v2 = vld [vmem:[%s1218_s10 + $0xf0] ss:$8 sps:$4 sm:$0xff]   ;;  %v726_v13 = vld [vmem:[%s451_s21] sm:$0x3] }
  0x34   : > { %v735_v15 = vrot.slane %v726_v13, %v734_v11  ;;  %v731_v16 = vrot.slane %v726_v13, %v730_v14  ;;  %v740_v17 = vld [vmem:[%s456_s25] sm:$0x3] }
  0x35   : > { %v745_v18 = vrot.slane %v740_v17, %v730_v14  ;;  %v749_v21 = vrot.slane %v740_v17, %v734_v11 }
  0x36   : > { %683 = vmatpush1.bf16.msra.mxu0 %v991_v42 }
  0x37   : > { %684 = vmatprep.subr.bf16.mxu0 %v992_v43  ;;  %v474_v5 = vld [vmem:[%s1230_s14] sm:$0xff] }
  0x3a   : > { %685 = vmatpush1.bf16.msra.mxu0 %v994_v44 }
  0x3b   : > { %686 = vmatprep.subr.bf16.mxu0 %v995_v45 }
  0x3e   : > { %687 = vmatpush1.bf16.msra.mxu0 %v997_v46 }
  0x3f   : > { %688 = vmatprep.subr.bf16.mxu0 %v998_v47 }
  0x42   : > { %689 = vmatpush1.bf16.msra.mxu0 %v1000_v48 }
  0x43   : > { %690 = vmatprep.subr.bf16.mxu0 %v1001_v49 }
  0x46   : > { %691 = vmatpush1.bf16.msra.mxu0 %v1003_v50 }
  0x47   : > { %692 = vmatprep.subr.bf16.mxu0 %v1004_v51 }
  0x4a   : > { %693 = vmatpush1.bf16.msra.mxu0 %v1006_v52 }
  0x4b   : > { %694 = vmatprep.subr.bf16.mxu0 %v1007_v53 }
  0x4e   : > { %695 = vmatpush1.bf16.msra.mxu0 %v1009_v54 }
  0x4f   : > { %696 = vmatprep.subr.bf16.mxu0 %v1010_v55 }
  0x52   : > { %697 = vmatpush1.bf16.msra.mxu0 %v1012_v56 }
  0x53   : > { %698 = vmatprep.subr.bf16.mxu0 %v1013_v57 }
  0x56   : > { %699 = vmatpush1.bf16.msra.mxu0 %v1015_v58 }
  0x57   : > { %700 = vmatprep.subr.bf16.mxu0 %v1016_v59 }
  0x5a   : > { %701 = vmatpush1.bf16.msra.mxu0 %v1018_v60 }
  0x5b   : > { %702 = vmatprep.subr.bf16.mxu0 %v1019_v61 }
  0x5e   : > { %703 = vmatpush1.bf16.msra.mxu0 %v1021_v62 }
  0x5f   : > { %704 = vmatprep.subr.bf16.mxu0 %v1022_v63 }
  0x62   : > { %705 = vmatpush1.bf16.msra.mxu0 %v1024_v0 }
  0x63   : > { %706 = vmatprep.subr.bf16.mxu0 %v1025_v1 }
  0x66   : > { %707 = vmatpush1.bf16.msra.mxu0 %v1027_v2 }
  0x69   : > { %709 = vmatmul.mubr.bf16.vlgmr.msra.gmra.mrb[0].mxu0 %v902_v3 }
 0x13c   : > { %v710_v7 = vpop.f32.mrb[0].mxu0 }
 0x13d   : > { %v717_v8 = vadd.f32 %v710_v7, %v474_v5  ;;  %v712_v9 = vpop.f32.mrb[1].mxu0 }
 0x13e   : > { %v714_v10 = vpop.f32.mrb[2].mxu0  ;;  %720 = vst [vmem:[%s1230_s14 + $0x8] sm:$0xff] %v712_v9  ;;  %v739_v20 = vmul.f32 %v735_v15, %v712_v9 }
 0x13f   : > { %719 = vst [vmem:[%s1230_s14] sm:$0xff] %v717_v8  ;;  %v715_v12 = vpop.f32.mrb[3].mxu0 }
 0x140   : > { %v753_v24 = vadd.f32 %v749_v21, %v739_v20 }
 0x142   : > { %755 = vst [vmem:[%s1230_s14 + $0x8] sm:$0xff] %v753_v24 }
 0x146   : > { %v724_v19 = vld [vmem:[%s1230_s14] sm:$0xff] }
 0x147   : > { %v738_v22 = vmul.f32 %v731_v16, %v724_v19 }
 0x149   : > { %v752_v23 = vadd.f32 %v745_v18, %v738_v22 }
 0x14b   : > { %754 = vst [vmem:[%s1230_s14] sm:$0xff] %v752_v23 }
 0x14c PF: > { %s14_s19 = sadd.s32 1, %s1068_s19   ;;  %s1298_s15 = smov %s1056_s16 }
 0x14d   : > { %p11_p10 = scmp.ge.s32.totalorder %s14_s19, 4   ;;  %s1299_s16 = smov %s1131_s23 }
 0x14e   : > { %s1300_s17 = smov %s1064_s18  ;;  %s1301_s18 = smov %s1303_s20 }
 0x14f   :  { %13 = sbr.rel (!%p11_p10) target bundleno = 3 (0x3), region = 126 }

// kernel: _lambda_.39
= control target key start
LH: loop header
LB: loop body
LE: loop exit
PB: predicated region body
PF: predicated region fallthrough
CT: control target
= control target key end

     0   :  { %s524_s12 = smov 0   ;;  %s526_s13 = smov 0   ;;  %s563_s0 = inlined_call_operand.vmem [shape: f32[2,8,512], index: 0, kind: input, shape index: {}]   ;;  %s564_s1 = inlined_call_operand.vmem [shape: f32[2,8,1], index: 1, kind: input, shape index: {}]   ;;  %s565_s2 = inlined_call_operand.vmem [shape: f32[2,8,512], index: 2, kind: input, shape index: {}]   ;;  %s566_s3 = inlined_call_operand.vmem [shape: f32[2,8,512], index: 3, kind: output, shape index: {}]  }
   0x1   :  { %s528_s14 = smov 0  }
   0x2 LB: > { %s25_s15 = sadd.s32 1, %s497_s13  ;;  %p436_p0 = scmp.ge.s32.totalorder %s501_s14, 1  ;;  %s501_s14 = sphi %s528_s14, %s13_s14   ;;  %s497_s13 = sphi %s526_s13, %s568_s13   ;;  %s493_s12 = sphi %s524_s12, %s567_s12  }
   0x3   : > { %p27_p1 = scmp.ge.s32.totalorder %s25_s15, 2  ;;  %p187_p2 = scmp.lt.s32.totalorder %s501_s14, 3 }
   0x5   : > { %s570_s15 = smov (%p27_p1, %s25_s15), 0  ;;  %p188_p3 = pnand %p436_p0, %p187_p2 }
   0x6   : > { %p235_p4 = scmp.lt.s32.totalorder (!%p188_p3), %s493_s12, 1  ;;  %v503_v0 = vmov (!%p188_p3), 0  }
   0x7   : > { %191 = sbr.rel (%p188_p3) target bundleno = 182 (0xb6), region = 32  ;;  %474 = vset.pattern.permute.xlu0 (!%p188_p3), %v503_v0 }
   0xe   : > { %s572_s12 = smov (!%p235_p4, %s493_s12), 1 }
   0xf   : > { %s439_s16 = sshll.u32 %s572_s12, 3  ;;  %s446_s20 = sshll.u32 %s572_s12, 5 }
  0x10   : > { %s250_s19 = scalar_lea.vmem %s564_s1, %s439_s16  ;;  %s243_s23 = scalar_lea.vmem %s563_s0, %s446_s20 }
  0x11   : > { %v269_v1 = vld [vmem:[%s250_s19] sm:$0xff]  ;;  %s259_s26 = scalar_lea.vmem %s565_s2, %s446_s20  ;;  %v276_v8 = vld [vmem:[%s243_s23 + $0x8] sm:$0xff]  ;;  %v277_v9 = vld [vmem:[%s243_s23 + $0x10] sm:$0xff]  ;;  %s268_s29 = scalar_lea.vmem %s566_s3, %s446_s20 }
  0x12   : > { %v270_v2 = vsub.f32 0.0, %v269_v1  ;;  %v275_v7 = vld [vmem:[%s243_s23] sm:$0xff]  ;;  %v278_v10 = vld [vmem:[%s243_s23 + $0x18] sm:$0xff]  ;;  %v289_v13 = vld [vmem:[%s259_s26 + $0x8] sm:$0xff] }
  0x13   : > { %v288_v11 = vld [vmem:[%s259_s26] sm:$0xff]  ;;  %v290_v14 = vld [vmem:[%s259_s26 + $0x10] sm:$0xff]  ;;  %v291_v15 = vld [vmem:[%s259_s26 + $0x18] sm:$0xff] }
  0x14   : > { %v271_v3 = vmul.f32 1.442695, %v270_v2 }
  0x16   : > { %475 = vpow2.f32 %v271_v3 }
  0x20   : > { %v476_v4 = vpop.eup %475 }
  0x21   : > { %v273_v5 = vadd.f32 1.0, %v476_v4 }
  0x23   : > { %477 = vrcp.f32 %v273_v5 }
  0x2d   : > { %v478_v6 = vpop.eup %477 }
  0x2e   : > { %281 = vperm.xlu0 %474, %v478_v6  }
  0xad   : > { %v282_v12 = vpop.permute.xlu0 %281 }
  0xae   : > { %v284_v16 = vmul.f32 %v282_v12, %v275_v7  ;;  %v285_v17 = vmul.f32 %v282_v12, %v276_v8  ;;  %v286_v18 = vmul.f32 %v282_v12, %v277_v9  ;;  %v287_v19 = vmul.f32 %v282_v12, %v278_v10 }
  0xb0   : > { %v292_v20 = vadd.f32 %v288_v11, %v284_v16  ;;  %v293_v21 = vadd.f32 %v289_v13, %v285_v17  ;;  %v294_v22 = vadd.f32 %v290_v14, %v286_v18  ;;  %v295_v23 = vadd.f32 %v291_v15, %v287_v19 }
  0xb2   : > { %v296_v24 = vmax.f32 %v292_v20, 0.0  ;;  %v297_v25 = vmax.f32 %v293_v21, 0.0  ;;  %v298_v26 = vmax.f32 %v294_v22, 0.0  ;;  %v299_v27 = vmax.f32 %v295_v23, 0.0 }
  0xb4   : > { %300 = vst [vmem:[%s268_s29] sm:$0xff] %v296_v24  ;;  %301 = vst [vmem:[%s268_s29 + $0x8] sm:$0xff] %v297_v25 }
  0xb5   : > { %302 = vst [vmem:[%s268_s29 + $0x10] sm:$0xff] %v298_v26  ;;  %303 = vst [vmem:[%s268_s29 + $0x18] sm:$0xff] %v299_v27 }
  0xb6 PF: > { %s13_s14 = sadd.s32 1, %s501_s14   ;;  %s567_s12 = smov %s497_s13 }
  0xb7   : > { %p10_p5 = scmp.ge.s32.totalorder %s13_s14, 4   ;;  %s568_s13 = smov %s570_s15 }
  0xb9   :  { %12 = sbr.rel (!%p10_p5) target bundleno = 2 (0x2), region = 68 }

</bundles_post_ra>
